<compile_context>
chip_gen: v7x
topology: tpu7x:2x2x1
jax: 0.10.0
libtpu: 0.0.40
codegen_flags: <defaults>
</compile_context>

<pallas_src>
import functools

import jax
import jax.numpy as jnp
from jax.experimental import pallas as pl
from jax.experimental.pallas import tpu as pltpu

NC = 3
NDF = 64
LEAKY_SLOPE = 0.2
BN_EPS = 1e-5


# ----------------------------------------------------------------------------
# Pallas kernels
# ----------------------------------------------------------------------------
def _matmul_act_kernel(a_ref, b_ref, o_ref, *, act):
    """Single-K-step matmul tile with fused activation (no accumulator)."""
    y = jnp.dot(a_ref[...], b_ref[...], preferred_element_type=jnp.float32)
    if act == "leaky":
        y = jnp.where(y >= 0, y, LEAKY_SLOPE * y)
    elif act == "sigmoid":
        y = jax.nn.sigmoid(y)
    o_ref[...] = y.astype(o_ref.dtype)


def matmul_act(a, b, act="none", tm=None, tn=None):
    """a: (M, K) bf16, b: (K, N) bf16 -> act(a @ b) in f32. Single K step."""
    M, K = a.shape
    K2, N = b.shape
    assert K == K2
    tm = M if tm is None else tm
    tn = N if tn is None else tn
    assert M % tm == 0 and N % tn == 0
    return pl.pallas_call(
        functools.partial(_matmul_act_kernel, act=act),
        out_shape=jax.ShapeDtypeStruct((M, N), jnp.float32),
        grid_spec=pltpu.PrefetchScalarGridSpec(
            num_scalar_prefetch=0,
            grid=(M // tm, N // tn),
            in_specs=[pl.BlockSpec((tm, K), lambda i, j: (i, 0)),
                      pl.BlockSpec((K, tn), lambda i, j: (0, j))],
            out_specs=pl.BlockSpec((tm, tn), lambda i, j: (i, j))),
        compiler_params=pltpu.CompilerParams(
            dimension_semantics=("parallel", "parallel")),
    )(a, b)


def _matmul_stats_kernel(a_ref, b_ref, o_ref, s1_ref, s2_ref):
    """Matmul tile + fused column sum / sum-of-squares for BatchNorm stats."""
    y = jnp.dot(a_ref[...], b_ref[...], preferred_element_type=jnp.float32)
    o_ref[...] = y
    s1_ref[...] = jnp.sum(y, axis=0, keepdims=True)
    s2_ref[...] = jnp.sum(y * y, axis=0, keepdims=True)


def matmul_stats(a, b, tn=None):
    """Returns (y = a @ b, colsum(y), colsum(y^2)). Grid only over N; M and K
    are kept as a single block (they fit VMEM for every layer here)."""
    M, K = a.shape
    K2, N = b.shape
    assert K == K2
    tn = N if tn is None else tn
    assert N % tn == 0
    return pl.pallas_call(
        _matmul_stats_kernel,
        out_shape=(jax.ShapeDtypeStruct((M, N), jnp.float32),
                   jax.ShapeDtypeStruct((1, N), jnp.float32),
                   jax.ShapeDtypeStruct((1, N), jnp.float32)),
        grid_spec=pltpu.PrefetchScalarGridSpec(
            num_scalar_prefetch=0,
            grid=(N // tn,),
            in_specs=[pl.BlockSpec((M, K), lambda j: (0, 0)),
                      pl.BlockSpec((K, tn), lambda j: (0, j))],
            out_specs=(pl.BlockSpec((M, tn), lambda j: (0, j)),
                       pl.BlockSpec((1, tn), lambda j: (0, j)),
                       pl.BlockSpec((1, tn), lambda j: (0, j)))),
        compiler_params=pltpu.CompilerParams(
            dimension_semantics=("parallel",)),
    )(a, b)


def _bn_leaky_kernel(y_ref, scale_ref, shift_ref, o_ref):
    y = y_ref[...] * scale_ref[...] + shift_ref[...]
    o_ref[...] = jnp.where(y >= 0, y, LEAKY_SLOPE * y)


def bn_leaky(y, scale, shift):
    """y: (M, C) f32; scale/shift: (C,). Fused affine-normalize + LeakyReLU,
    tiled over M so DMA of the next row-block overlaps VPU work."""
    M, C = y.shape
    tm = 256 if (M % 256 == 0 and M > 256) else M
    scale2 = scale.reshape(1, C).astype(jnp.float32)
    shift2 = shift.reshape(1, C).astype(jnp.float32)
    return pl.pallas_call(
        _bn_leaky_kernel,
        out_shape=jax.ShapeDtypeStruct((M, C), jnp.float32),
        grid_spec=pltpu.PrefetchScalarGridSpec(
            num_scalar_prefetch=0,
            grid=(M // tm,),
            in_specs=[pl.BlockSpec((tm, C), lambda i: (i, 0)),
                      pl.BlockSpec((1, C), lambda i: (0, 0)),
                      pl.BlockSpec((1, C), lambda i: (0, 0))],
            out_specs=pl.BlockSpec((tm, C), lambda i: (i, 0))),
        compiler_params=pltpu.CompilerParams(
            dimension_semantics=("parallel",)),
    )(y, scale2, shift2)


# ----------------------------------------------------------------------------
# Conv via im2col (patch extraction is plain-JAX glue; matmul is the kernel)
# ----------------------------------------------------------------------------
def extract_patches(x_nhwc, kh, kw, stride, pad):
    """NHWC -> (N*OH*OW, KH*KW*Cin) bf16 patches."""
    x = x_nhwc.astype(jnp.bfloat16)
    N, H, W, C = x.shape
    xp = jnp.pad(x, ((0, 0), (pad, pad), (pad, pad), (0, 0)))
    OH = (H + 2 * pad - kh) // stride + 1
    OW = (W + 2 * pad - kw) // stride + 1
    cols = []
    for i in range(kh):
        for j in range(kw):
            cols.append(xp[:, i:i + stride * OH:stride,
                           j:j + stride * OW:stride, :])
    patches = jnp.stack(cols, axis=3)                # (N, OH, OW, KH*KW, C)
    patches = patches.reshape(N * OH * OW, kh * kw * C)
    return patches, OH, OW


def preprocess_params(params):
    """One-time weight reformat + bf16 cast, hoisted out of the forward."""
    out = {}
    for k, v in params.items():
        if k.startswith("w"):
            cout, cin, kh, kw = v.shape
            out[k] = (jnp.transpose(v, (2, 3, 1, 0))
                      .reshape(kh * kw * cin, cout).astype(jnp.bfloat16))
        else:
            out[k] = v.astype(jnp.float32)
    return out


# ----------------------------------------------------------------------------
# Discriminator forward
# ----------------------------------------------------------------------------
def discriminator_forward(x_nchw, pp):
    x = jnp.transpose(x_nchw, (0, 2, 3, 1)).astype(jnp.float32)   # -> NHWC
    n = x.shape[0]

    # Layer 1: Conv(3 -> 64, 4, 2, 1) + LeakyReLU(0.2)
    patches, oh, ow = extract_patches(x, 4, 4, 2, 1)   # (n*32*32, 48)
    m = patches.shape[0]
    tm = 512 if m % 512 == 0 else m                    # lane dim = full N (64)
    y = matmul_act(patches, pp["w1"], act="leaky", tm=tm)
    x = y.reshape(n, oh, ow, pp["w1"].shape[1])

    # Layers 2-4: Conv + BatchNorm (training-mode batch stats) + LeakyReLU.
    # BN statistics come from the matmul epilogue (fused column sums).
    for wk, gk, bk, tn in (("w2", "g2", "b2", 128),
                           ("w3", "g3", "b3", 128),
                           ("w4", "g4", "b4", 256)):
        patches, oh, ow = extract_patches(x, 4, 4, 2, 1)
        cout = pp[wk].shape[1]
        y, s1, s2 = matmul_stats(patches, pp[wk], tn=tn)
        m = y.shape[0]
        mean = s1[0] / m
        # Biased variance (matches PyTorch training-mode BatchNorm); clamp at
        # zero to guard against E[y^2]-E[y]^2 cancellation.
        var = jnp.maximum(s2[0] / m - mean * mean, 0.0)
        scale = pp[gk] * jax.lax.rsqrt(var + BN_EPS)
        shift = pp[bk] - mean * scale
        y = bn_leaky(y, scale, shift)
        x = y.reshape(n, oh, ow, cout)

    # Layer 5: Conv(512 -> 1, 4, 1, 0) + Sigmoid.
    # A (n, 8192) . (8192, 1) dot (~32 KFLOP): plain-JAX per perf review (b);
    # a padded Pallas call would cost more in data movement than the compute.
    patches, oh, ow = extract_patches(x, 4, 4, 1, 0)   # (n, 8192)
    logits = jnp.dot(patches, pp["w5"], preferred_element_type=jnp.float32)
    out = jax.nn.sigmoid(logits).reshape(n, 1, oh, ow)  # NCHW: (n, 1, 1, 1)
    return out


# ----------------------------------------------------------------------------
if __name__ == "__main__":
    key = jax.random.PRNGKey(0)
    keys = jax.random.split(key, 6)
    # Deterministic synthetic parameters (DCGAN-style N(0, 0.02) conv weights,
    # BN gamma=1 / beta=0), PyTorch layouts.
    params = {
        "w1": jax.random.normal(keys[0], (NDF, NC, 4, 4), jnp.float32) * 0.02,
        "w2": jax.random.normal(keys[1], (NDF * 2, NDF, 4, 4), jnp.float32) * 0.02,
        "g2": jnp.ones((NDF * 2,), jnp.float32),
        "b2": jnp.zeros((NDF * 2,), jnp.float32),
        "w3": jax.random.normal(keys[2], (NDF * 4, NDF * 2, 4, 4), jnp.float32) * 0.02,
        "g3": jnp.ones((NDF * 4,), jnp.float32),
        "b3": jnp.zeros((NDF * 4,), jnp.float32),
        "w4": jax.random.normal(keys[3], (NDF * 8, NDF * 4, 4, 4), jnp.float32) * 0.02,
        "g4": jnp.ones((NDF * 8,), jnp.float32),
        "b4": jnp.zeros((NDF * 8,), jnp.float32),
        "w5": jax.random.normal(keys[4], (1, NDF * 8, 4, 4), jnp.float32) * 0.02,
    }

    # One-time parameter preprocessing (transpose/reshape + bf16 cast).
    pp = preprocess_params(params)

    # The final 4x4 valid conv requires 64x64 spatial input; batch kept small.
    x = jax.random.normal(keys[5], (2, NC, 64, 64), jnp.float32)

    out = jax.jit(discriminator_forward)(x, pp)
    out = jax.block_until_ready(out)
    assert out.shape == (2, 1, 1, 1), out.shape
    assert bool(jnp.all((out >= 0.0) & (out <= 1.0)))
    print("KERNEL_OK")
</pallas_src>

<mosaic_0001>
module attributes {stable_mosaic.version = 11 : i64} {
  func.func @_matmul_act_kernel(%arg0: i32, %arg1: i32, %arg2: memref<512x48xbf16, #tpu.memory_space<vmem>>, %arg3: memref<48x64xbf16, #tpu.memory_space<vmem>>, %arg4: memref<512x64xf32, #tpu.memory_space<vmem>>) attributes {dimension_semantics = [#tpu.dimension_semantics<parallel>, #tpu.dimension_semantics<parallel>], iteration_bounds = array<i64: 4, 1>, scalar_prefetch = 0 : i64, scratch_operands = 0 : i64, tpu.core_type = #tpu.core_type<tc>, window_params = [{transform_indices = @transform_0, window_bounds = array<i64: 512, 48>}, {transform_indices = @transform_1, window_bounds = array<i64: 48, 64>}, {transform_indices = @transform_2, window_bounds = array<i64: 512, 64>}]} {
    %c0 = arith.constant 0 : index
    %c0_0 = arith.constant 0 : index
    %0 = vector.load %arg2[%c0, %c0_0] : memref<512x48xbf16, #tpu.memory_space<vmem>>, vector<512x48xbf16>
    %c0_1 = arith.constant 0 : index
    %c0_2 = arith.constant 0 : index
    %1 = vector.load %arg3[%c0_1, %c0_2] : memref<48x64xbf16, #tpu.memory_space<vmem>>, vector<48x64xbf16>
    %cst = arith.constant dense<0.000000e+00> : vector<512x64xf32>
    %2 = tpu.matmul %0, %1, %cst {dimension_numbers = #tpu.dot_dimension_numbers<[1], [0], [0], [1], [0, 0, 1, 1], [], []>} : vector<512x48xbf16>, vector<48x64xbf16>, vector<512x64xf32> -> vector<512x64xf32>
    %cst_3 = arith.constant 0.000000e+00 : f32
    %3 = vector.broadcast %cst_3 : f32 to vector<512x64xf32>
    %4 = arith.cmpf oge, %2, %3 : vector<512x64xf32>
    %cst_4 = arith.constant 2.000000e-01 : f32
    %5 = vector.broadcast %cst_4 : f32 to vector<512x64xf32>
    %6 = arith.mulf %5, %2 : vector<512x64xf32>
    %7 = arith.select %4, %2, %6 : vector<512x64xi1>, vector<512x64xf32>
    %c0_5 = arith.constant 0 : index
    %c0_6 = arith.constant 0 : index
    %8 = vector.load %arg4[%c0_5, %c0_6] : memref<512x64xf32, #tpu.memory_space<vmem>>, vector<512x64xf32>
    tpu.vector_store %arg4[%c0_5, %c0_6], %7 {strides = array<i32>} : memref<512x64xf32, #tpu.memory_space<vmem>>, vector<512x64xf32>,
    return
  }
  func.func @transform_0(%arg0: i32, %arg1: i32) -> (i32, i32) {
    %c0_i32 = arith.constant 0 : i32
    %c0_i32_0 = arith.constant 0 : i32
    return %arg0, %c0_i32 : i32, i32
  }
  func.func @transform_1(%arg0: i32, %arg1: i32) -> (i32, i32) {
    %c0_i32 = arith.constant 0 : i32
    %c0_i32_0 = arith.constant 0 : i32
    return %c0_i32, %arg1 : i32, i32
  }
  func.func @transform_2(%arg0: i32, %arg1: i32) -> (i32, i32) {
    %c0_i32 = arith.constant 0 : i32
    return %arg0, %arg1 : i32, i32
  }
}

module attributes {stable_mosaic.version = 11 : i64} {
  func.func @_matmul_stats_kernel(%arg0: i32, %arg1: memref<512x1024xbf16, #tpu.memory_space<vmem>>, %arg2: memref<1024x128xbf16, #tpu.memory_space<vmem>>, %arg3: memref<512x128xf32, #tpu.memory_space<vmem>>, %arg4: memref<1x128xf32, #tpu.memory_space<vmem>>, %arg5: memref<1x128xf32, #tpu.memory_space<vmem>>) attributes {dimension_semantics = [#tpu.dimension_semantics<parallel>], iteration_bounds = array<i64: 1>, scalar_prefetch = 0 : i64, scratch_operands = 0 : i64, tpu.core_type = #tpu.core_type<tc>, window_params = [{pipeline_mode = #tpu.pipeline_mode<synchronous>, transform_indices = @transform_0, window_bounds = array<i64: 512, 1024>}, {transform_indices = @transform_1, window_bounds = array<i64: 1024, 128>}, {transform_indices = @transform_2, window_bounds = array<i64: 512, 128>}, {transform_indices = @transform_3, window_bounds = array<i64: 1, 128>}, {transform_indices = @transform_4, window_bounds = array<i64: 1, 128>}]} {
    %c0 = arith.constant 0 : index
    %c0_0 = arith.constant 0 : index
    %0 = vector.load %arg1[%c0, %c0_0] : memref<512x1024xbf16, #tpu.memory_space<vmem>>, vector<512x1024xbf16>
    %c0_1 = arith.constant 0 : index
    %c0_2 = arith.constant 0 : index
    %1 = vector.load %arg2[%c0_1, %c0_2] : memref<1024x128xbf16, #tpu.memory_space<vmem>>, vector<1024x128xbf16>
    %cst = arith.constant dense<0.000000e+00> : vector<512x128xf32>
    %2 = tpu.matmul %0, %1, %cst {dimension_numbers = #tpu.dot_dimension_numbers<[1], [0], [0], [1], [0, 0, 1, 1], [], []>} : vector<512x1024xbf16>, vector<1024x128xbf16>, vector<512x128xf32> -> vector<512x128xf32>
    %c0_3 = arith.constant 0 : index
    %c0_4 = arith.constant 0 : index
    %3 = vector.load %arg3[%c0_3, %c0_4] : memref<512x128xf32, #tpu.memory_space<vmem>>, vector<512x128xf32>
    tpu.vector_store %arg3[%c0_3, %c0_4], %2 {strides = array<i32>} : memref<512x128xf32, #tpu.memory_space<vmem>>, vector<512x128xf32>,
    %cst_5 = arith.constant dense<0.000000e+00> : vector<128xf32>
    %4 = vector.multi_reduction <add>, %2, %cst_5 [0] : vector<512x128xf32> to vector<128xf32>
    %5 = vector.shape_cast %4 : vector<128xf32> to vector<1x128xf32>
    %c0_6 = arith.constant 0 : index
    %c0_7 = arith.constant 0 : index
    %6 = vector.load %arg4[%c0_6, %c0_7] : memref<1x128xf32, #tpu.memory_space<vmem>>, vector<1x128xf32>
    tpu.vector_store %arg4[%c0_6, %c0_7], %5 {strides = array<i32>} : memref<1x128xf32, #tpu.memory_space<vmem>>, vector<1x128xf32>,
    %7 = arith.mulf %2, %2 : vector<512x128xf32>
    %cst_8 = arith.constant dense<0.000000e+00> : vector<128xf32>
    %8 = vector.multi_reduction <add>, %7, %cst_8 [0] : vector<512x128xf32> to vector<128xf32>
    %9 = vector.shape_cast %8 : vector<128xf32> to vector<1x128xf32>
    %c0_9 = arith.constant 0 : index
    %c0_10 = arith.constant 0 : index
    %10 = vector.load %arg5[%c0_9, %c0_10] : memref<1x128xf32, #tpu.memory_space<vmem>>, vector<1x128xf32>
    tpu.vector_store %arg5[%c0_9, %c0_10], %9 {strides = array<i32>} : memref<1x128xf32, #tpu.memory_space<vmem>>, vector<1x128xf32>,
    return
  }
  func.func @transform_0(%arg0: i32) -> (i32, i32) {
    %c0_i32 = arith.constant 0 : i32
    %c0_i32_0 = arith.constant 0 : i32
    %c0_i32_1 = arith.constant 0 : i32
    return %c0_i32, %c0_i32_0 : i32, i32
  }
  func.func @transform_1(%arg0: i32) -> (i32, i32) {
    %c0_i32 = arith.constant 0 : i32
    %c0_i32_0 = arith.constant 0 : i32
    return %c0_i32, %arg0 : i32, i32
  }
  func.func @transform_2(%arg0: i32) -> (i32, i32) {
    %c0_i32 = arith.constant 0 : i32
    %c0_i32_0 = arith.constant 0 : i32
    return %c0_i32, %arg0 : i32, i32
  }
  func.func @transform_3(%arg0: i32) -> (i32, i32) {
    %c0_i32 = arith.constant 0 : i32
    %c0_i32_0 = arith.constant 0 : i32
    return %c0_i32, %arg0 : i32, i32
  }
  func.func @transform_4(%arg0: i32) -> (i32, i32) {
    %c0_i32 = arith.constant 0 : i32
    %c0_i32_0 = arith.constant 0 : i32
    return %c0_i32, %arg0 : i32, i32
  }
}

module attributes {stable_mosaic.version = 11 : i64} {
  func.func @_bn_leaky_kernel(%arg0: i32, %arg1: memref<256x128xf32, #tpu.memory_space<vmem>>, %arg2: memref<1x128xf32, #tpu.memory_space<vmem>>, %arg3: memref<1x128xf32, #tpu.memory_space<vmem>>, %arg4: memref<256x128xf32, #tpu.memory_space<vmem>>) attributes {dimension_semantics = [#tpu.dimension_semantics<parallel>], iteration_bounds = array<i64: 2>, scalar_prefetch = 0 : i64, scratch_operands = 0 : i64, tpu.core_type = #tpu.core_type<tc>, window_params = [{transform_indices = @transform_0, window_bounds = array<i64: 256, 128>}, {pipeline_mode = #tpu.pipeline_mode<synchronous>, transform_indices = @transform_1, window_bounds = array<i64: 1, 128>}, {pipeline_mode = #tpu.pipeline_mode<synchronous>, transform_indices = @transform_2, window_bounds = array<i64: 1, 128>}, {transform_indices = @transform_3, window_bounds = array<i64: 256, 128>}]} {
    %c0 = arith.constant 0 : index
    %c0_0 = arith.constant 0 : index
    %0 = vector.load %arg1[%c0, %c0_0] : memref<256x128xf32, #tpu.memory_space<vmem>>, vector<256x128xf32>
    %c0_1 = arith.constant 0 : index
    %c0_2 = arith.constant 0 : index
    %1 = vector.load %arg2[%c0_1, %c0_2] : memref<1x128xf32, #tpu.memory_space<vmem>>, vector<1x128xf32>
    %2 = vector.broadcast %1 : vector<1x128xf32> to vector<256x128xf32>
    %3 = arith.mulf %0, %2 : vector<256x128xf32>
    %c0_3 = arith.constant 0 : index
    %c0_4 = arith.constant 0 : index
    %4 = vector.load %arg3[%c0_3, %c0_4] : memref<1x128xf32, #tpu.memory_space<vmem>>, vector<1x128xf32>
    %5 = vector.broadcast %4 : vector<1x128xf32> to vector<256x128xf32>
    %6 = arith.addf %3, %5 : vector<256x128xf32>
    %cst = arith.constant 0.000000e+00 : f32
    %7 = vector.broadcast %cst : f32 to vector<256x128xf32>
    %8 = arith.cmpf oge, %6, %7 : vector<256x128xf32>
    %cst_5 = arith.constant 2.000000e-01 : f32
    %9 = vector.broadcast %cst_5 : f32 to vector<256x128xf32>
    %10 = arith.mulf %9, %6 : vector<256x128xf32>
    %11 = arith.select %8, %6, %10 : vector<256x128xi1>, vector<256x128xf32>
    %c0_6 = arith.constant 0 : index
    %c0_7 = arith.constant 0 : index
    %12 = vector.load %arg4[%c0_6, %c0_7] : memref<256x128xf32, #tpu.memory_space<vmem>>, vector<256x128xf32>
    tpu.vector_store %arg4[%c0_6, %c0_7], %11 {strides = array<i32>} : memref<256x128xf32, #tpu.memory_space<vmem>>, vector<256x128xf32>,
    return
  }
  func.func @transform_0(%arg0: i32) -> (i32, i32) {
    %c0_i32 = arith.constant 0 : i32
    %c0_i32_0 = arith.constant 0 : i32
    return %arg0, %c0_i32 : i32, i32
  }
  func.func @transform_1(%arg0: i32) -> (i32, i32) {
    %c0_i32 = arith.constant 0 : i32
    %c0_i32_0 = arith.constant 0 : i32
    %c0_i32_1 = arith.constant 0 : i32
    return %c0_i32, %c0_i32_0 : i32, i32
  }
  func.func @transform_2(%arg0: i32) -> (i32, i32) {
    %c0_i32 = arith.constant 0 : i32
    %c0_i32_0 = arith.constant 0 : i32
    %c0_i32_1 = arith.constant 0 : i32
    return %c0_i32, %c0_i32_0 : i32, i32
  }
  func.func @transform_3(%arg0: i32) -> (i32, i32) {
    %c0_i32 = arith.constant 0 : i32
    %c0_i32_0 = arith.constant 0 : i32
    return %arg0, %c0_i32 : i32, i32
  }
}

module attributes {stable_mosaic.version = 11 : i64} {
  func.func @_matmul_stats_kernel(%arg0: i32, %arg1: memref<128x2048xbf16, #tpu.memory_space<vmem>>, %arg2: memref<2048x128xbf16, #tpu.memory_space<vmem>>, %arg3: memref<128x128xf32, #tpu.memory_space<vmem>>, %arg4: memref<1x128xf32, #tpu.memory_space<vmem>>, %arg5: memref<1x128xf32, #tpu.memory_space<vmem>>) attributes {dimension_semantics = [#tpu.dimension_semantics<parallel>], iteration_bounds = array<i64: 2>, scalar_prefetch = 0 : i64, scratch_operands = 0 : i64, tpu.core_type = #tpu.core_type<tc>, window_params = [{pipeline_mode = #tpu.pipeline_mode<synchronous>, transform_indices = @transform_0, window_bounds = array<i64: 128, 2048>}, {transform_indices = @transform_1, window_bounds = array<i64: 2048, 128>}, {transform_indices = @transform_2, window_bounds = array<i64: 128, 128>}, {transform_indices = @transform_3, window_bounds = array<i64: 1, 128>}, {transform_indices = @transform_4, window_bounds = array<i64: 1, 128>}]} {
    %c0 = arith.constant 0 : index
    %c0_0 = arith.constant 0 : index
    %0 = vector.load %arg1[%c0, %c0_0] : memref<128x2048xbf16, #tpu.memory_space<vmem>>, vector<128x2048xbf16>
    %c0_1 = arith.constant 0 : index
    %c0_2 = arith.constant 0 : index
    %1 = vector.load %arg2[%c0_1, %c0_2] : memref<2048x128xbf16, #tpu.memory_space<vmem>>, vector<2048x128xbf16>
    %cst = arith.constant dense<0.000000e+00> : vector<128x128xf32>
    %2 = tpu.matmul %0, %1, %cst {dimension_numbers = #tpu.dot_dimension_numbers<[1], [0], [0], [1], [0, 0, 1, 1], [], []>} : vector<128x2048xbf16>, vector<2048x128xbf16>, vector<128x128xf32> -> vector<128x128xf32>
    %c0_3 = arith.constant 0 : index
    %c0_4 = arith.constant 0 : index
    %3 = vector.load %arg3[%c0_3, %c0_4] : memref<128x128xf32, #tpu.memory_space<vmem>>, vector<128x128xf32>
    tpu.vector_store %arg3[%c0_3, %c0_4], %2 {strides = array<i32>} : memref<128x128xf32, #tpu.memory_space<vmem>>, vector<128x128xf32>,
    %cst_5 = arith.constant dense<0.000000e+00> : vector<128xf32>
    %4 = vector.multi_reduction <add>, %2, %cst_5 [0] : vector<128x128xf32> to vector<128xf32>
    %5 = vector.shape_cast %4 : vector<128xf32> to vector<1x128xf32>
    %c0_6 = arith.constant 0 : index
    %c0_7 = arith.constant 0 : index
    %6 = vector.load %arg4[%c0_6, %c0_7] : memref<1x128xf32, #tpu.memory_space<vmem>>, vector<1x128xf32>
    tpu.vector_store %arg4[%c0_6, %c0_7], %5 {strides = array<i32>} : memref<1x128xf32, #tpu.memory_space<vmem>>, vector<1x128xf32>,
    %7 = arith.mulf %2, %2 : vector<128x128xf32>
    %cst_8 = arith.constant dense<0.000000e+00> : vector<128xf32>
    %8 = vector.multi_reduction <add>, %7, %cst_8 [0] : vector<128x128xf32> to vector<128xf32>
    %9 = vector.shape_cast %8 : vector<128xf32> to vector<1x128xf32>
    %c0_9 = arith.constant 0 : index
    %c0_10 = arith.constant 0 : index
    %10 = vector.load %arg5[%c0_9, %c0_10] : memref<1x128xf32, #tpu.memory_space<vmem>>, vector<1x128xf32>
    tpu.vector_store %arg5[%c0_9, %c0_10], %9 {strides = array<i32>} : memref<1x128xf32, #tpu.memory_space<vmem>>, vector<1x128xf32>,
    return
  }
  func.func @transform_0(%arg0: i32) -> (i32, i32) {
    %c0_i32 = arith.constant 0 : i32
    %c0_i32_0 = arith.constant 0 : i32
    %c0_i32_1 = arith.constant 0 : i32
    return %c0_i32, %c0_i32_0 : i32, i32
  }
  func.func @transform_1(%arg0: i32) -> (i32, i32) {
    %c0_i32 = arith.constant 0 : i32
    %c0_i32_0 = arith.constant 0 : i32
    return %c0_i32, %arg0 : i32, i32
  }
  func.func @transform_2(%arg0: i32) -> (i32, i32) {
    %c0_i32 = arith.constant 0 : i32
    %c0_i32_0 = arith.constant 0 : i32
    return %c0_i32, %arg0 : i32, i32
  }
  func.func @transform_3(%arg0: i32) -> (i32, i32) {
    %c0_i32 = arith.constant 0 : i32
    %c0_i32_0 = arith.constant 0 : i32
    return %c0_i32, %arg0 : i32, i32
  }
  func.func @transform_4(%arg0: i32) -> (i32, i32) {
    %c0_i32 = arith.constant 0 : i32
    %c0_i32_0 = arith.constant 0 : i32
    return %c0_i32, %arg0 : i32, i32
  }
}

module attributes {stable_mosaic.version = 11 : i64} {
  func.func @_bn_leaky_kernel(%arg0: i32, %arg1: memref<128x256xf32, #tpu.memory_space<vmem>>, %arg2: memref<1x256xf32, #tpu.memory_space<vmem>>, %arg3: memref<1x256xf32, #tpu.memory_space<vmem>>, %arg4: memref<128x256xf32, #tpu.memory_space<vmem>>) attributes {dimension_semantics = [#tpu.dimension_semantics<parallel>], iteration_bounds = array<i64: 1>, scalar_prefetch = 0 : i64, scratch_operands = 0 : i64, tpu.core_type = #tpu.core_type<tc>, window_params = [{transform_indices = @transform_0, window_bounds = array<i64: 128, 256>}, {pipeline_mode = #tpu.pipeline_mode<synchronous>, transform_indices = @transform_1, window_bounds = array<i64: 1, 256>}, {pipeline_mode = #tpu.pipeline_mode<synchronous>, transform_indices = @transform_2, window_bounds = array<i64: 1, 256>}, {transform_indices = @transform_3, window_bounds = array<i64: 128, 256>}]} {
    %c0 = arith.constant 0 : index
    %c0_0 = arith.constant 0 : index
    %0 = vector.load %arg1[%c0, %c0_0] : memref<128x256xf32, #tpu.memory_space<vmem>>, vector<128x256xf32>
    %c0_1 = arith.constant 0 : index
    %c0_2 = arith.constant 0 : index
    %1 = vector.load %arg2[%c0_1, %c0_2] : memref<1x256xf32, #tpu.memory_space<vmem>>, vector<1x256xf32>
    %2 = vector.broadcast %1 : vector<1x256xf32> to vector<128x256xf32>
    %3 = arith.mulf %0, %2 : vector<128x256xf32>
    %c0_3 = arith.constant 0 : index
    %c0_4 = arith.constant 0 : index
    %4 = vector.load %arg3[%c0_3, %c0_4] : memref<1x256xf32, #tpu.memory_space<vmem>>, vector<1x256xf32>
    %5 = vector.broadcast %4 : vector<1x256xf32> to vector<128x256xf32>
    %6 = arith.addf %3, %5 : vector<128x256xf32>
    %cst = arith.constant 0.000000e+00 : f32
    %7 = vector.broadcast %cst : f32 to vector<128x256xf32>
    %8 = arith.cmpf oge, %6, %7 : vector<128x256xf32>
    %cst_5 = arith.constant 2.000000e-01 : f32
    %9 = vector.broadcast %cst_5 : f32 to vector<128x256xf32>
    %10 = arith.mulf %9, %6 : vector<128x256xf32>
    %11 = arith.select %8, %6, %10 : vector<128x256xi1>, vector<128x256xf32>
    %c0_6 = arith.constant 0 : index
    %c0_7 = arith.constant 0 : index
    %12 = vector.load %arg4[%c0_6, %c0_7] : memref<128x256xf32, #tpu.memory_space<vmem>>, vector<128x256xf32>
    tpu.vector_store %arg4[%c0_6, %c0_7], %11 {strides = array<i32>} : memref<128x256xf32, #tpu.memory_space<vmem>>, vector<128x256xf32>,
    return
  }
  func.func @transform_0(%arg0: i32) -> (i32, i32) {
    %c0_i32 = arith.constant 0 : i32
    %c0_i32_0 = arith.constant 0 : i32
    return %arg0, %c0_i32 : i32, i32
  }
  func.func @transform_1(%arg0: i32) -> (i32, i32) {
    %c0_i32 = arith.constant 0 : i32
    %c0_i32_0 = arith.constant 0 : i32
    %c0_i32_1 = arith.constant 0 : i32
    return %c0_i32, %c0_i32_0 : i32, i32
  }
  func.func @transform_2(%arg0: i32) -> (i32, i32) {
    %c0_i32 = arith.constant 0 : i32
    %c0_i32_0 = arith.constant 0 : i32
    %c0_i32_1 = arith.constant 0 : i32
    return %c0_i32, %c0_i32_0 : i32, i32
  }
  func.func @transform_3(%arg0: i32) -> (i32, i32) {
    %c0_i32 = arith.constant 0 : i32
    %c0_i32_0 = arith.constant 0 : i32
    return %arg0, %c0_i32 : i32, i32
  }
}

module attributes {stable_mosaic.version = 11 : i64} {
  func.func @_matmul_stats_kernel(%arg0: i32, %arg1: memref<32x4096xbf16, #tpu.memory_space<vmem>>, %arg2: memref<4096x256xbf16, #tpu.memory_space<vmem>>, %arg3: memref<32x256xf32, #tpu.memory_space<vmem>>, %arg4: memref<1x256xf32, #tpu.memory_space<vmem>>, %arg5: memref<1x256xf32, #tpu.memory_space<vmem>>) attributes {dimension_semantics = [#tpu.dimension_semantics<parallel>], iteration_bounds = array<i64: 2>, scalar_prefetch = 0 : i64, scratch_operands = 0 : i64, tpu.core_type = #tpu.core_type<tc>, window_params = [{pipeline_mode = #tpu.pipeline_mode<synchronous>, transform_indices = @transform_0, window_bounds = array<i64: 32, 4096>}, {transform_indices = @transform_1, window_bounds = array<i64: 4096, 256>}, {transform_indices = @transform_2, window_bounds = array<i64: 32, 256>}, {transform_indices = @transform_3, window_bounds = array<i64: 1, 256>}, {transform_indices = @transform_4, window_bounds = array<i64: 1, 256>}]} {
    %c0 = arith.constant 0 : index
    %c0_0 = arith.constant 0 : index
    %0 = vector.load %arg1[%c0, %c0_0] : memref<32x4096xbf16, #tpu.memory_space<vmem>>, vector<32x4096xbf16>
    %c0_1 = arith.constant 0 : index
    %c0_2 = arith.constant 0 : index
    %1 = vector.load %arg2[%c0_1, %c0_2] : memref<4096x256xbf16, #tpu.memory_space<vmem>>, vector<4096x256xbf16>
    %cst = arith.constant dense<0.000000e+00> : vector<32x256xf32>
    %2 = tpu.matmul %0, %1, %cst {dimension_numbers = #tpu.dot_dimension_numbers<[1], [0], [0], [1], [0, 0, 1, 1], [], []>} : vector<32x4096xbf16>, vector<4096x256xbf16>, vector<32x256xf32> -> vector<32x256xf32>
    %c0_3 = arith.constant 0 : index
    %c0_4 = arith.constant 0 : index
    %3 = vector.load %arg3[%c0_3, %c0_4] : memref<32x256xf32, #tpu.memory_space<vmem>>, vector<32x256xf32>
    tpu.vector_store %arg3[%c0_3, %c0_4], %2 {strides = array<i32>} : memref<32x256xf32, #tpu.memory_space<vmem>>, vector<32x256xf32>,
    %cst_5 = arith.constant dense<0.000000e+00> : vector<256xf32>
    %4 = vector.multi_reduction <add>, %2, %cst_5 [0] : vector<32x256xf32> to vector<256xf32>
    %5 = vector.shape_cast %4 : vector<256xf32> to vector<1x256xf32>
    %c0_6 = arith.constant 0 : index
    %c0_7 = arith.constant 0 : index
    %6 = vector.load %arg4[%c0_6, %c0_7] : memref<1x256xf32, #tpu.memory_space<vmem>>, vector<1x256xf32>
    tpu.vector_store %arg4[%c0_6, %c0_7], %5 {strides = array<i32>} : memref<1x256xf32, #tpu.memory_space<vmem>>, vector<1x256xf32>,
    %7 = arith.mulf %2, %2 : vector<32x256xf32>
    %cst_8 = arith.constant dense<0.000000e+00> : vector<256xf32>
    %8 = vector.multi_reduction <add>, %7, %cst_8 [0] : vector<32x256xf32> to vector<256xf32>
    %9 = vector.shape_cast %8 : vector<256xf32> to vector<1x256xf32>
    %c0_9 = arith.constant 0 : index
    %c0_10 = arith.constant 0 : index
    %10 = vector.load %arg5[%c0_9, %c0_10] : memref<1x256xf32, #tpu.memory_space<vmem>>, vector<1x256xf32>
    tpu.vector_store %arg5[%c0_9, %c0_10], %9 {strides = array<i32>} : memref<1x256xf32, #tpu.memory_space<vmem>>, vector<1x256xf32>,
    return
  }
  func.func @transform_0(%arg0: i32) -> (i32, i32) {
    %c0_i32 = arith.constant 0 : i32
    %c0_i32_0 = arith.constant 0 : i32
    %c0_i32_1 = arith.constant 0 : i32
    return %c0_i32, %c0_i32_0 : i32, i32
  }
  func.func @transform_1(%arg0: i32) -> (i32, i32) {
    %c0_i32 = arith.constant 0 : i32
    %c0_i32_0 = arith.constant 0 : i32
    return %c0_i32, %arg0 : i32, i32
  }
  func.func @transform_2(%arg0: i32) -> (i32, i32) {
    %c0_i32 = arith.constant 0 : i32
    %c0_i32_0 = arith.constant 0 : i32
    return %c0_i32, %arg0 : i32, i32
  }
  func.func @transform_3(%arg0: i32) -> (i32, i32) {
    %c0_i32 = arith.constant 0 : i32
    %c0_i32_0 = arith.constant 0 : i32
    return %c0_i32, %arg0 : i32, i32
  }
  func.func @transform_4(%arg0: i32) -> (i32, i32) {
    %c0_i32 = arith.constant 0 : i32
    %c0_i32_0 = arith.constant 0 : i32
    return %c0_i32, %arg0 : i32, i32
  }
}

module attributes {stable_mosaic.version = 11 : i64} {
  func.func @_bn_leaky_kernel(%arg0: i32, %arg1: memref<32x512xf32, #tpu.memory_space<vmem>>, %arg2: memref<1x512xf32, #tpu.memory_space<vmem>>, %arg3: memref<1x512xf32, #tpu.memory_space<vmem>>, %arg4: memref<32x512xf32, #tpu.memory_space<vmem>>) attributes {dimension_semantics = [#tpu.dimension_semantics<parallel>], iteration_bounds = array<i64: 1>, scalar_prefetch = 0 : i64, scratch_operands = 0 : i64, tpu.core_type = #tpu.core_type<tc>, window_params = [{transform_indices = @transform_0, window_bounds = array<i64: 32, 512>}, {pipeline_mode = #tpu.pipeline_mode<synchronous>, transform_indices = @transform_1, window_bounds = array<i64: 1, 512>}, {pipeline_mode = #tpu.pipeline_mode<synchronous>, transform_indices = @transform_2, window_bounds = array<i64: 1, 512>}, {transform_indices = @transform_3, window_bounds = array<i64: 32, 512>}]} {
    %c0 = arith.constant 0 : index
    %c0_0 = arith.constant 0 : index
    %0 = vector.load %arg1[%c0, %c0_0] : memref<32x512xf32, #tpu.memory_space<vmem>>, vector<32x512xf32>
    %c0_1 = arith.constant 0 : index
    %c0_2 = arith.constant 0 : index
    %1 = vector.load %arg2[%c0_1, %c0_2] : memref<1x512xf32, #tpu.memory_space<vmem>>, vector<1x512xf32>
    %2 = vector.broadcast %1 : vector<1x512xf32> to vector<32x512xf32>
    %3 = arith.mulf %0, %2 : vector<32x512xf32>
    %c0_3 = arith.constant 0 : index
    %c0_4 = arith.constant 0 : index
    %4 = vector.load %arg3[%c0_3, %c0_4] : memref<1x512xf32, #tpu.memory_space<vmem>>, vector<1x512xf32>
    %5 = vector.broadcast %4 : vector<1x512xf32> to vector<32x512xf32>
    %6 = arith.addf %3, %5 : vector<32x512xf32>
    %cst = arith.constant 0.000000e+00 : f32
    %7 = vector.broadcast %cst : f32 to vector<32x512xf32>
    %8 = arith.cmpf oge, %6, %7 : vector<32x512xf32>
    %cst_5 = arith.constant 2.000000e-01 : f32
    %9 = vector.broadcast %cst_5 : f32 to vector<32x512xf32>
    %10 = arith.mulf %9, %6 : vector<32x512xf32>
    %11 = arith.select %8, %6, %10 : vector<32x512xi1>, vector<32x512xf32>
    %c0_6 = arith.constant 0 : index
    %c0_7 = arith.constant 0 : index
    %12 = vector.load %arg4[%c0_6, %c0_7] : memref<32x512xf32, #tpu.memory_space<vmem>>, vector<32x512xf32>
    tpu.vector_store %arg4[%c0_6, %c0_7], %11 {strides = array<i32>} : memref<32x512xf32, #tpu.memory_space<vmem>>, vector<32x512xf32>,
    return
  }
  func.func @transform_0(%arg0: i32) -> (i32, i32) {
    %c0_i32 = arith.constant 0 : i32
    %c0_i32_0 = arith.constant 0 : i32
    return %arg0, %c0_i32 : i32, i32
  }
  func.func @transform_1(%arg0: i32) -> (i32, i32) {
    %c0_i32 = arith.constant 0 : i32
    %c0_i32_0 = arith.constant 0 : i32
    %c0_i32_1 = arith.constant 0 : i32
    return %c0_i32, %c0_i32_0 : i32, i32
  }
  func.func @transform_2(%arg0: i32) -> (i32, i32) {
    %c0_i32 = arith.constant 0 : i32
    %c0_i32_0 = arith.constant 0 : i32
    %c0_i32_1 = arith.constant 0 : i32
    return %c0_i32, %c0_i32_0 : i32, i32
  }
  func.func @transform_3(%arg0: i32) -> (i32, i32) {
    %c0_i32 = arith.constant 0 : i32
    %c0_i32_0 = arith.constant 0 : i32
    return %arg0, %c0_i32 : i32, i32
  }
}

</mosaic_0001>

<bundles_post_ra>
// kernel: discriminator_forward.7
= control target key start
LH: loop header
LB: loop body
LE: loop exit
PB: predicated region body
PF: predicated region fallthrough
CT: control target
= control target key end

     0   :  { %s1454_s9 = smov 0   ;;  %s1456_s10 = smov 0   ;;  %s1696_s0 = inlined_call_operand.vmem [shape: bf16[2048,48], index: 0, kind: input, shape index: {}]   ;;  %s1697_s1 = inlined_call_operand.vmem [shape: bf16[48,64], index: 1, kind: input, shape index: {}]   ;;  %s1698_s2 = inlined_call_operand.vmem [shape: f32[2048,64], index: 2, kind: output, shape index: {}]  }
   0x1   :  { %s1458_s11 = smov 0  }
   0x2 LB: > { %s24_s12 = sadd.s32 1, %s1433_s10  ;;  %p1171_p0 = scmp.ge.s32.totalorder %s1437_s11, 1  ;;  %s1437_s11 = sphi %s1458_s11, %s12_s11   ;;  %s1433_s10 = sphi %s1456_s10, %s1700_s10   ;;  %s1429_s9 = sphi %s1454_s9, %s1699_s9  }
   0x3   : > { %p26_p1 = scmp.ge.s32.totalorder %s24_s12, 4  ;;  %p136_p2 = scmp.lt.s32.totalorder %s1437_s11, 5 }
   0x5   : > { %s1702_s12 = smov (%p26_p1, %s24_s12), 0  ;;  %p137_p3 = pnand %p1171_p0, %p136_p2 }
   0x6   : > { %v1380_v0 = vld [vmem:[%s1697_s1] sm:$0xff] (!%p137_p3)   ;;  %s1172_s15 = sshll.u32 (!%p137_p3), %s1429_s9, 6  ;;  %v1381_v1 = vld [vmem:[%s1697_s1 + $0x8] sm:$0xff] (!%p137_p3)   ;;  %v1382_v2 = vld [vmem:[%s1697_s1 + $0x10] sm:$0xff] (!%p137_p3)   ;;  %vm433_vm0 = vcmask (!%p137_p3), 392192   ;;  %vm1011_vm1 = vcmask (!%p137_p3), 523264  }
   0x7   : > { %140 = sbr.rel (%p137_p3) target bundleno = 297 (0x129), region = 28  ;;  %p166_p4 = scmp.lt.s32.totalorder (!%p137_p3), %s1172_s15, 255  ;;  %1280 = vmatprep.subr.bf16.mxu0 (!%p137_p3), %v1380_v0  ;;  %1350 = vmatprep.subr.bf16.mxu1 (!%p137_p3), %v1380_v0 }
   0x8   : > { %1281 = vmatpush3.bf16.msra.mxu0 (!%p137_p3), %v1380_v0  ;;  %1353 = vmatpush3.bf16.msra.mxu1 (!%p137_p3), %v1380_v0 }
   0x9   : > { %1282 = vmatprep.subr.bf16.mxu0 (!%p137_p3), %v1381_v1  ;;  %1351 = vmatprep.subr.bf16.mxu1 (!%p137_p3), %v1381_v1 }
   0xc   : > { %1283 = vmatpush3.bf16.msra.mxu0 (!%p137_p3), %v1381_v1  ;;  %1354 = vmatpush3.bf16.msra.mxu1 (!%p137_p3), %v1381_v1 }
   0xd   : > { %1284 = vmatprep.subr.bf16.mxu0 (!%p137_p3), %v1382_v2  ;;  %1352 = vmatprep.subr.bf16.mxu1 (!%p137_p3), %v1382_v2 }
   0xe   : > { %s1704_s15 = smov (!%p166_p4, %s1172_s15), 255 }
   0xf   : > { %s1173_s20 = sshll.u32 %s1704_s15, 2  ;;  %s1175_s24 = sshll.u32 %s1704_s15, 3 }
  0x10   : > { %s1487_s23 = scalar_lea.vmem %s1696_s0, %s1173_s20  ;;  %1285 = vmatpush3.bf16.msra.mxu0 %v1382_v2  ;;  %1355 = vmatpush3.bf16.msra.mxu1 %v1382_v2  ;;  %s1557_s27 = scalar_lea.vmem %s1698_s2, %s1175_s24 }
  0x11   : > { %v1383_v3 = vld [vmem:[%s1487_s23] sm:$0xff]   ;;  %v1385_v5 = vld [vmem:[%s1487_s23 + $0x8] sm:$0xff]   ;;  %v1387_v7 = vld [vmem:[%s1487_s23 + $0x10] sm:$0xff]  }
  0x12   : > { %v1384_v4 = vld [vmem:[%s1487_s23 + $0x80] sm:$0xff]   ;;  %1286 = vmatprep.mubr.msk.bf16.mxu0 %vm433_vm0, %v1383_v3  ;;  %v1386_v6 = vld [vmem:[%s1487_s23 + $0x88] sm:$0xff]   ;;  %v1388_v8 = vld [vmem:[%s1487_s23 + $0x90] sm:$0xff]  }
  0x13   : > { %1318 = vmatprep.mubr.msk.bf16.mxu1 %vm433_vm0, %v1384_v4  ;;  %1287 = vmatmul.mubr.msk.bf16.vlgmr.msra.gmra.mrb[0].mxu0 %vm433_vm0, %v1385_v5  ;;  %v1389_v9 = vld [vmem:[%s1487_s23 + $0x18] sm:$0xff]   ;;  %v1391_v11 = vld [vmem:[%s1487_s23 + $0x20] sm:$0xff]   ;;  %v1393_v13 = vld [vmem:[%s1487_s23 + $0x28] sm:$0xff]  }
  0x14   : > { %1319 = vmatmul.mubr.msk.bf16.vlgmr.msra.gmra.mrb[0].mxu1 %vm433_vm0, %v1386_v6  ;;  %1290 = vmatprep.mubr.msk.bf16.mxu0 %vm433_vm0, %v1387_v7  ;;  %v1390_v10 = vld [vmem:[%s1487_s23 + $0x98] sm:$0xff]   ;;  %v1392_v12 = vld [vmem:[%s1487_s23 + $0xa0] sm:$0xff]   ;;  %v1394_v14 = vld [vmem:[%s1487_s23 + $0xa8] sm:$0xff]  }
  0x15   : > { %1322 = vmatprep.mubr.msk.bf16.mxu1 %vm433_vm0, %v1388_v8  ;;  %v1395_v15 = vld [vmem:[%s1487_s23 + $0x30] sm:$0xff]   ;;  %v1397_v17 = vld [vmem:[%s1487_s23 + $0x38] sm:$0xff]   ;;  %v1399_v19 = vld [vmem:[%s1487_s23 + $0x40] sm:$0xff]  }
  0x16   : > { %v1396_v16 = vld [vmem:[%s1487_s23 + $0xb0] sm:$0xff]   ;;  %v1398_v18 = vld [vmem:[%s1487_s23 + $0xb8] sm:$0xff]   ;;  %v1400_v20 = vld [vmem:[%s1487_s23 + $0xc0] sm:$0xff]  }
  0x17   : > { %v1401_v21 = vld [vmem:[%s1487_s23 + $0x48] sm:$0xff]   ;;  %v1403_v23 = vld [vmem:[%s1487_s23 + $0x50] sm:$0xff]   ;;  %v1405_v25 = vld [vmem:[%s1487_s23 + $0x58] sm:$0xff]  }
  0x18   : > { %v1402_v22 = vld [vmem:[%s1487_s23 + $0xc8] sm:$0xff]   ;;  %v1404_v24 = vld [vmem:[%s1487_s23 + $0xd0] sm:$0xff]   ;;  %v1406_v26 = vld [vmem:[%s1487_s23 + $0xd8] sm:$0xff]  }
  0x19   : > { %v1407_v27 = vld [vmem:[%s1487_s23 + $0x60] sm:$0xff]   ;;  %v1409_v29 = vld [vmem:[%s1487_s23 + $0x68] sm:$0xff]   ;;  %v1411_v31 = vld [vmem:[%s1487_s23 + $0x70] sm:$0xff]  }
  0x1a   : > { %v1408_v28 = vld [vmem:[%s1487_s23 + $0xe0] sm:$0xff]   ;;  %v1410_v30 = vld [vmem:[%s1487_s23 + $0xe8] sm:$0xff]   ;;  %v1412_v32 = vld [vmem:[%s1487_s23 + $0xf0] sm:$0xff]  }
  0x1b   : > { %1291 = vmatmul.mubr.msk.bf16.gmra.mrb[4].mxu0 %vm433_vm0, %v1389_v9  ;;  %v1413_v33 = vld [vmem:[%s1487_s23 + $0x78] sm:$0xff]  }
  0x1c   : > { %1323 = vmatmul.mubr.msk.bf16.gmra.mrb[4].mxu1 %vm433_vm0, %v1390_v10  ;;  %1294 = vmatprep.mubr.msk.bf16.mxu0 %vm433_vm0, %v1391_v11  ;;  %v1414_v34 = vld [vmem:[%s1487_s23 + $0xf8] sm:$0xff]  }
  0x1d   : > { %1326 = vmatprep.mubr.msk.bf16.mxu1 %vm433_vm0, %v1392_v12 }
  0x23   : > { %1295 = vmatmul.mubr.msk.bf16.gmra.mrb[8].mxu0 %vm433_vm0, %v1393_v13 }
  0x24   : > { %1327 = vmatmul.mubr.msk.bf16.gmra.mrb[8].mxu1 %vm433_vm0, %v1394_v14  ;;  %1298 = vmatprep.mubr.msk.bf16.mxu0 %vm433_vm0, %v1395_v15 }
  0x25   : > { %1330 = vmatprep.mubr.msk.bf16.mxu1 %vm433_vm0, %v1396_v16 }
  0x2b   : > { %1299 = vmatmul.mubr.msk.bf16.gmra.mrb[12].mxu0 %vm433_vm0, %v1397_v17 }
  0x2c   : > { %1331 = vmatmul.mubr.msk.bf16.gmra.mrb[12].mxu1 %vm433_vm0, %v1398_v18  ;;  %1302 = vmatprep.mubr.msk.bf16.mxu0 %vm433_vm0, %v1399_v19 }
  0x2d   : > { %1334 = vmatprep.mubr.msk.bf16.mxu1 %vm433_vm0, %v1400_v20 }
  0x33   : > { %1303 = vmatmul.mubr.msk.bf16.gmra.mrb[16].mxu0 %vm433_vm0, %v1401_v21 }
  0x34   : > { %1335 = vmatmul.mubr.msk.bf16.gmra.mrb[16].mxu1 %vm433_vm0, %v1402_v22  ;;  %1306 = vmatprep.mubr.msk.bf16.mxu0 %vm433_vm0, %v1403_v23 }
  0x35   : > { %1338 = vmatprep.mubr.msk.bf16.mxu1 %vm433_vm0, %v1404_v24 }
  0x3b   : > { %1307 = vmatmul.mubr.msk.bf16.gmra.mrb[20].mxu0 %vm433_vm0, %v1405_v25 }
  0x3c   : > { %1339 = vmatmul.mubr.msk.bf16.gmra.mrb[20].mxu1 %vm433_vm0, %v1406_v26  ;;  %1310 = vmatprep.mubr.msk.bf16.mxu0 %vm433_vm0, %v1407_v27 }
  0x3d   : > { %1342 = vmatprep.mubr.msk.bf16.mxu1 %vm433_vm0, %v1408_v28 }
  0x43   : > { %1311 = vmatmul.mubr.msk.bf16.gmra.mrb[24].mxu0 %vm433_vm0, %v1409_v29 }
  0x44   : > { %1343 = vmatmul.mubr.msk.bf16.gmra.mrb[24].mxu1 %vm433_vm0, %v1410_v30  ;;  %1314 = vmatprep.mubr.msk.bf16.mxu0 %vm433_vm0, %v1411_v31 }
  0x45   : > { %1346 = vmatprep.mubr.msk.bf16.mxu1 %vm433_vm0, %v1412_v32 }
  0x4b   : > { %1315 = vmatmul.mubr.msk.bf16.gmra.mrb[28].mxu0 %vm433_vm0, %v1413_v33 }
  0x4c   : > { %1347 = vmatmul.mubr.msk.bf16.gmra.mrb[28].mxu1 %vm433_vm0, %v1414_v34 }
  0xe6   : > { %v1288_v35 = vpop.f32.mrb[0].mxu0 }
  0xe7   : > { %v1320_v36 = vpop.f32.mrb[0].mxu1  ;;  %vm821_vm2 = vcmp.ge.f32.partialorder %v1288_v35, 0.0  ;;  %v885_v37 = vmul.f32 0.2, %v1288_v35  ;;  %v564_v39 = vpop.f32.mrb[1].mxu0 }
  0xe8   : > { %vm853_vm3 = vcmp.ge.f32.partialorder %v1320_v36, 0.0  ;;  %v917_v38 = vmul.f32 0.2, %v1320_v36  ;;  %v692_v40 = vpop.f32.mrb[1].mxu1  ;;  %vm819_vm4 = vcmp.ge.f32.partialorder %v564_v39, 0.0  ;;  %v1289_v44 = vpop.f32.mrb[2].mxu0 }
  0xe9   : > { %v949_v41 = vsel %vm821_vm2, %v1288_v35, %v885_v37  ;;  %v883_v43 = vmul.f32 0.2, %v564_v39  ;;  %v1321_v45 = vpop.f32.mrb[2].mxu1  ;;  %vm851_vm5 = vcmp.ge.f32.partialorder %v692_v40, 0.0  ;;  %v915_v46 = vmul.f32 0.2, %v692_v40 }
  0xea   : > { %v981_v42 = vsel %vm853_vm3, %v1320_v36, %v917_v38  ;;  %1014 = vst.msk [vmem:[%s1557_s27 + $0x10] sm:$0xff] %vm1011_vm1, %v949_v41  ;;  %vm822_vm6 = vcmp.ge.f32.partialorder %v1289_v44, 0.0  ;;  %v886_v47 = vmul.f32 0.2, %v1289_v44  ;;  %vm854_vm7 = vcmp.ge.f32.partialorder %v1321_v45, 0.0  ;;  %v567_v50 = vpop.f32.mrb[3].mxu0 }
  0xeb   : > { %1046 = vst.msk [vmem:[%s1557_s27 + $0x110] sm:$0xff] %vm1011_vm1, %v981_v42  ;;  %v947_v48 = vsel %vm819_vm4, %v564_v39, %v883_v43  ;;  %v918_v49 = vmul.f32 0.2, %v1321_v45  ;;  %v695_v51 = vpop.f32.mrb[3].mxu1  ;;  %v979_v52 = vsel %vm851_vm5, %v692_v40, %v915_v46  ;;  %vm820_vm8 = vcmp.ge.f32.partialorder %v567_v50, 0.0 }
  0xec   : > { %1012 = vst.msk [vmem:[%s1557_s27] sm:$0xff] %vm1011_vm1, %v947_v48  ;;  %v950_v53 = vsel %vm822_vm6, %v1289_v44, %v886_v47  ;;  %v884_v54 = vmul.f32 0.2, %v567_v50  ;;  %1044 = vst.msk [vmem:[%s1557_s27 + $0x100] sm:$0xff] %vm1011_vm1, %v979_v52  ;;  %vm852_vm9 = vcmp.ge.f32.partialorder %v695_v51, 0.0 }
  0xed   : > { %1015 = vst.msk [vmem:[%s1557_s27 + $0x18] sm:$0xff] %vm1011_vm1, %v950_v53  ;;  %v982_v55 = vsel %vm854_vm7, %v1321_v45, %v918_v49  ;;  %v916_v56 = vmul.f32 0.2, %v695_v51 }
  0xee   : > { %1047 = vst.msk [vmem:[%s1557_s27 + $0x118] sm:$0xff] %vm1011_vm1, %v982_v55  ;;  %v948_v57 = vsel %vm820_vm8, %v567_v50, %v884_v54  ;;  %v1292_v58 = vpop.f32.mrb[4].mxu0 }
  0xef   : > { %v1324_v59 = vpop.f32.mrb[4].mxu1  ;;  %1013 = vst.msk [vmem:[%s1557_s27 + $0x8] sm:$0xff] %vm1011_vm1, %v948_v57  ;;  %v980_v60 = vsel %vm852_vm9, %v695_v51, %v916_v56  ;;  %vm825_vm10 = vcmp.ge.f32.partialorder %v1292_v58, 0.0  ;;  %v889_v61 = vmul.f32 0.2, %v1292_v58  ;;  %v580_v62 = vpop.f32.mrb[5].mxu0 }
  0xf0   : > { %vm857_vm11 = vcmp.ge.f32.partialorder %v1324_v59, 0.0  ;;  %v708_v63 = vpop.f32.mrb[5].mxu1  ;;  %1045 = vst.msk [vmem:[%s1557_s27 + $0x108] sm:$0xff] %vm1011_vm1, %v980_v60  ;;  %v921_v0 = vmul.f32 0.2, %v1324_v59  ;;  %vm823_vm12 = vcmp.ge.f32.partialorder %v580_v62, 0.0 }
  0xf1   : > { %v887_v1 = vmul.f32 0.2, %v580_v62  ;;  %vm855_vm13 = vcmp.ge.f32.partialorder %v708_v63, 0.0  ;;  %v953_v2 = vsel %vm825_vm10, %v1292_v58, %v889_v61  ;;  %v919_v3 = vmul.f32 0.2, %v708_v63  ;;  %v1293_v4 = vpop.f32.mrb[6].mxu0 }
  0xf2   : > { %v1325_v5 = vpop.f32.mrb[6].mxu1  ;;  %1018 = vst.msk [vmem:[%s1557_s27 + $0x30] sm:$0xff] %vm1011_vm1, %v953_v2  ;;  %v985_v6 = vsel %vm857_vm11, %v1324_v59, %v921_v0  ;;  %vm826_vm14 = vcmp.ge.f32.partialorder %v1293_v4, 0.0  ;;  %v890_v8 = vmul.f32 0.2, %v1293_v4  ;;  %v583_v9 = vpop.f32.mrb[7].mxu0 }
  0xf3   : > { %v951_v7 = vsel %vm823_vm12, %v580_v62, %v887_v1  ;;  %v711_v10 = vpop.f32.mrb[7].mxu1  ;;  %1050 = vst.msk [vmem:[%s1557_s27 + $0x130] sm:$0xff] %vm1011_vm1, %v985_v6  ;;  %v983_v11 = vsel %vm855_vm13, %v708_v63, %v919_v3  ;;  %vm858_vm15 = vcmp.ge.f32.partialorder %v1325_v5, 0.0  ;;  %v922_v12 = vmul.f32 0.2, %v1325_v5 }
  0xf4   : > { %1016 = vst.msk [vmem:[%s1557_s27 + $0x20] sm:$0xff] %vm1011_vm1, %v951_v7  ;;  %vm824_vm0 = vcmp.ge.f32.partialorder %v583_v9, 0.0  ;;  %1048 = vst.msk [vmem:[%s1557_s27 + $0x120] sm:$0xff] %vm1011_vm1, %v983_v11  ;;  %v954_v13 = vsel %vm826_vm14, %v1293_v4, %v890_v8  ;;  %v888_v14 = vmul.f32 0.2, %v583_v9  ;;  %vm856_vm2 = vcmp.ge.f32.partialorder %v711_v10, 0.0 }
  0xf5   : > { %v920_v15 = vmul.f32 0.2, %v711_v10  ;;  %1019 = vst.msk [vmem:[%s1557_s27 + $0x38] sm:$0xff] %vm1011_vm1, %v954_v13  ;;  %v986_v16 = vsel %vm858_vm15, %v1325_v5, %v922_v12 }
  0xf6   : > { %1051 = vst.msk [vmem:[%s1557_s27 + $0x138] sm:$0xff] %vm1011_vm1, %v986_v16  ;;  %v952_v17 = vsel %vm824_vm0, %v583_v9, %v888_v14  ;;  %v1296_v19 = vpop.f32.mrb[8].mxu0 }
  0xf7   : > { %v984_v18 = vsel %vm856_vm2, %v711_v10, %v920_v15  ;;  %v1328_v20 = vpop.f32.mrb[8].mxu1  ;;  %1017 = vst.msk [vmem:[%s1557_s27 + $0x28] sm:$0xff] %vm1011_vm1, %v952_v17  ;;  %vm829_vm3 = vcmp.ge.f32.partialorder %v1296_v19, 0.0  ;;  %v893_v21 = vmul.f32 0.2, %v1296_v19  ;;  %v596_v23 = vpop.f32.mrb[9].mxu0 }
  0xf8   : > { %1049 = vst.msk [vmem:[%s1557_s27 + $0x128] sm:$0xff] %vm1011_vm1, %v984_v18  ;;  %vm861_vm4 = vcmp.ge.f32.partialorder %v1328_v20, 0.0  ;;  %v925_v22 = vmul.f32 0.2, %v1328_v20  ;;  %v724_v24 = vpop.f32.mrb[9].mxu1  ;;  %vm827_vm5 = vcmp.ge.f32.partialorder %v596_v23, 0.0 }
  0xf9   : > { %v957_v25 = vsel %vm829_vm3, %v1296_v19, %v893_v21  ;;  %v891_v27 = vmul.f32 0.2, %v596_v23  ;;  %v1297_v28 = vpop.f32.mrb[10].mxu0  ;;  %v1329_v29 = vpop.f32.mrb[10].mxu1  ;;  %vm859_vm6 = vcmp.ge.f32.partialorder %v724_v24, 0.0 }
  0xfa   : > { %v989_v26 = vsel %vm861_vm4, %v1328_v20, %v925_v22  ;;  %1022 = vst.msk [vmem:[%s1557_s27 + $0x50] sm:$0xff] %vm1011_vm1, %v957_v25  ;;  %v923_v30 = vmul.f32 0.2, %v724_v24  ;;  %vm830_vm7 = vcmp.ge.f32.partialorder %v1297_v28, 0.0  ;;  %v894_v31 = vmul.f32 0.2, %v1297_v28 }
  0xfb   : > { %1054 = vst.msk [vmem:[%s1557_s27 + $0x150] sm:$0xff] %vm1011_vm1, %v989_v26  ;;  %v955_v32 = vsel %vm827_vm5, %v596_v23, %v891_v27  ;;  %vm862_vm8 = vcmp.ge.f32.partialorder %v1329_v29, 0.0  ;;  %v926_v33 = vmul.f32 0.2, %v1329_v29  ;;  %v599_v34 = vpop.f32.mrb[11].mxu0  ;;  %v727_v35 = vpop.f32.mrb[11].mxu1 }
  0xfc   : > { %1020 = vst.msk [vmem:[%s1557_s27 + $0x40] sm:$0xff] %vm1011_vm1, %v955_v32  ;;  %v987_v36 = vsel %vm859_vm6, %v724_v24, %v923_v30  ;;  %v958_v37 = vsel %vm830_vm7, %v1297_v28, %v894_v31  ;;  %vm828_vm9 = vcmp.ge.f32.partialorder %v599_v34, 0.0  ;;  %v892_v38 = vmul.f32 0.2, %v599_v34 }
  0xfd   : > { %1052 = vst.msk [vmem:[%s1557_s27 + $0x140] sm:$0xff] %vm1011_vm1, %v987_v36  ;;  %1023 = vst.msk [vmem:[%s1557_s27 + $0x58] sm:$0xff] %vm1011_vm1, %v958_v37  ;;  %v990_v39 = vsel %vm862_vm8, %v1329_v29, %v926_v33  ;;  %vm860_vm10 = vcmp.ge.f32.partialorder %v727_v35, 0.0  ;;  %v924_v40 = vmul.f32 0.2, %v727_v35 }
  0xfe   : > { %1055 = vst.msk [vmem:[%s1557_s27 + $0x158] sm:$0xff] %vm1011_vm1, %v990_v39  ;;  %v956_v41 = vsel %vm828_vm9, %v599_v34, %v892_v38  ;;  %v1300_v42 = vpop.f32.mrb[12].mxu0 }
  0xff   : > { %v1332_v43 = vpop.f32.mrb[12].mxu1  ;;  %1021 = vst.msk [vmem:[%s1557_s27 + $0x48] sm:$0xff] %vm1011_vm1, %v956_v41  ;;  %v988_v44 = vsel %vm860_vm10, %v727_v35, %v924_v40  ;;  %vm833_vm11 = vcmp.ge.f32.partialorder %v1300_v42, 0.0  ;;  %v897_v45 = vmul.f32 0.2, %v1300_v42  ;;  %v612_v46 = vpop.f32.mrb[13].mxu0 }
 0x100   : > { %vm865_vm12 = vcmp.ge.f32.partialorder %v1332_v43, 0.0  ;;  %v740_v47 = vpop.f32.mrb[13].mxu1  ;;  %1053 = vst.msk [vmem:[%s1557_s27 + $0x148] sm:$0xff] %vm1011_vm1, %v988_v44  ;;  %v929_v48 = vmul.f32 0.2, %v1332_v43  ;;  %vm831_vm13 = vcmp.ge.f32.partialorder %v612_v46, 0.0 }
 0x101   : > { %v895_v49 = vmul.f32 0.2, %v612_v46  ;;  %vm863_vm14 = vcmp.ge.f32.partialorder %v740_v47, 0.0  ;;  %v961_v50 = vsel %vm833_vm11, %v1300_v42, %v897_v45  ;;  %v927_v51 = vmul.f32 0.2, %v740_v47  ;;  %v1301_v52 = vpop.f32.mrb[14].mxu0 }
 0x102   : > { %v1333_v53 = vpop.f32.mrb[14].mxu1  ;;  %1026 = vst.msk [vmem:[%s1557_s27 + $0x70] sm:$0xff] %vm1011_vm1, %v961_v50  ;;  %v993_v54 = vsel %vm865_vm12, %v1332_v43, %v929_v48  ;;  %vm834_vm15 = vcmp.ge.f32.partialorder %v1301_v52, 0.0  ;;  %v898_v56 = vmul.f32 0.2, %v1301_v52  ;;  %v615_v57 = vpop.f32.mrb[15].mxu0 }
 0x103   : > { %v959_v55 = vsel %vm831_vm13, %v612_v46, %v895_v49  ;;  %v743_v58 = vpop.f32.mrb[15].mxu1  ;;  %1058 = vst.msk [vmem:[%s1557_s27 + $0x170] sm:$0xff] %vm1011_vm1, %v993_v54  ;;  %v991_v59 = vsel %vm863_vm14, %v740_v47, %v927_v51  ;;  %vm866_vm0 = vcmp.ge.f32.partialorder %v1333_v53, 0.0  ;;  %v930_v60 = vmul.f32 0.2, %v1333_v53 }
 0x104   : > { %1024 = vst.msk [vmem:[%s1557_s27 + $0x60] sm:$0xff] %vm1011_vm1, %v959_v55  ;;  %vm832_vm2 = vcmp.ge.f32.partialorder %v615_v57, 0.0  ;;  %1056 = vst.msk [vmem:[%s1557_s27 + $0x160] sm:$0xff] %vm1011_vm1, %v991_v59  ;;  %v962_v61 = vsel %vm834_vm15, %v1301_v52, %v898_v56  ;;  %v896_v62 = vmul.f32 0.2, %v615_v57  ;;  %vm864_vm3 = vcmp.ge.f32.partialorder %v743_v58, 0.0 }
 0x105   : > { %v928_v63 = vmul.f32 0.2, %v743_v58  ;;  %1027 = vst.msk [vmem:[%s1557_s27 + $0x78] sm:$0xff] %vm1011_vm1, %v962_v61  ;;  %v994_v0 = vsel %vm866_vm0, %v1333_v53, %v930_v60 }
 0x106   : > { %1059 = vst.msk [vmem:[%s1557_s27 + $0x178] sm:$0xff] %vm1011_vm1, %v994_v0  ;;  %v960_v1 = vsel %vm832_vm2, %v615_v57, %v896_v62  ;;  %v1304_v3 = vpop.f32.mrb[16].mxu0 }
 0x107   : > { %v992_v2 = vsel %vm864_vm3, %v743_v58, %v928_v63  ;;  %v1336_v4 = vpop.f32.mrb[16].mxu1  ;;  %1025 = vst.msk [vmem:[%s1557_s27 + $0x68] sm:$0xff] %vm1011_vm1, %v960_v1  ;;  %vm837_vm4 = vcmp.ge.f32.partialorder %v1304_v3, 0.0  ;;  %v901_v5 = vmul.f32 0.2, %v1304_v3  ;;  %v628_v7 = vpop.f32.mrb[17].mxu0 }
 0x108   : > { %1057 = vst.msk [vmem:[%s1557_s27 + $0x168] sm:$0xff] %vm1011_vm1, %v992_v2  ;;  %vm869_vm5 = vcmp.ge.f32.partialorder %v1336_v4, 0.0  ;;  %v933_v6 = vmul.f32 0.2, %v1336_v4  ;;  %v756_v8 = vpop.f32.mrb[17].mxu1  ;;  %vm835_vm6 = vcmp.ge.f32.partialorder %v628_v7, 0.0 }
 0x109   : > { %v965_v9 = vsel %vm837_vm4, %v1304_v3, %v901_v5  ;;  %v899_v11 = vmul.f32 0.2, %v628_v7  ;;  %v1305_v12 = vpop.f32.mrb[18].mxu0  ;;  %v1337_v13 = vpop.f32.mrb[18].mxu1  ;;  %vm867_vm7 = vcmp.ge.f32.partialorder %v756_v8, 0.0 }
 0x10a   : > { %v997_v10 = vsel %vm869_vm5, %v1336_v4, %v933_v6  ;;  %1030 = vst.msk [vmem:[%s1557_s27 + $0x90] sm:$0xff] %vm1011_vm1, %v965_v9  ;;  %v931_v14 = vmul.f32 0.2, %v756_v8  ;;  %vm838_vm8 = vcmp.ge.f32.partialorder %v1305_v12, 0.0  ;;  %v902_v15 = vmul.f32 0.2, %v1305_v12 }
 0x10b   : > { %1062 = vst.msk [vmem:[%s1557_s27 + $0x190] sm:$0xff] %vm1011_vm1, %v997_v10  ;;  %v963_v16 = vsel %vm835_vm6, %v628_v7, %v899_v11  ;;  %vm870_vm9 = vcmp.ge.f32.partialorder %v1337_v13, 0.0  ;;  %v934_v17 = vmul.f32 0.2, %v1337_v13  ;;  %v631_v18 = vpop.f32.mrb[19].mxu0  ;;  %v759_v19 = vpop.f32.mrb[19].mxu1 }
 0x10c   : > { %1028 = vst.msk [vmem:[%s1557_s27 + $0x80] sm:$0xff] %vm1011_vm1, %v963_v16  ;;  %v995_v20 = vsel %vm867_vm7, %v756_v8, %v931_v14  ;;  %v966_v21 = vsel %vm838_vm8, %v1305_v12, %v902_v15  ;;  %vm836_vm10 = vcmp.ge.f32.partialorder %v631_v18, 0.0  ;;  %v900_v22 = vmul.f32 0.2, %v631_v18 }
 0x10d   : > { %1060 = vst.msk [vmem:[%s1557_s27 + $0x180] sm:$0xff] %vm1011_vm1, %v995_v20  ;;  %1031 = vst.msk [vmem:[%s1557_s27 + $0x98] sm:$0xff] %vm1011_vm1, %v966_v21  ;;  %v998_v23 = vsel %vm870_vm9, %v1337_v13, %v934_v17  ;;  %vm868_vm11 = vcmp.ge.f32.partialorder %v759_v19, 0.0  ;;  %v932_v24 = vmul.f32 0.2, %v759_v19 }
 0x10e   : > { %1063 = vst.msk [vmem:[%s1557_s27 + $0x198] sm:$0xff] %vm1011_vm1, %v998_v23  ;;  %v964_v25 = vsel %vm836_vm10, %v631_v18, %v900_v22  ;;  %v1308_v26 = vpop.f32.mrb[20].mxu0 }
 0x10f   : > { %v1340_v27 = vpop.f32.mrb[20].mxu1  ;;  %1029 = vst.msk [vmem:[%s1557_s27 + $0x88] sm:$0xff] %vm1011_vm1, %v964_v25  ;;  %v996_v28 = vsel %vm868_vm11, %v759_v19, %v932_v24  ;;  %vm841_vm12 = vcmp.ge.f32.partialorder %v1308_v26, 0.0  ;;  %v905_v29 = vmul.f32 0.2, %v1308_v26  ;;  %v644_v30 = vpop.f32.mrb[21].mxu0 }
 0x110   : > { %vm873_vm13 = vcmp.ge.f32.partialorder %v1340_v27, 0.0  ;;  %v772_v31 = vpop.f32.mrb[21].mxu1  ;;  %1061 = vst.msk [vmem:[%s1557_s27 + $0x188] sm:$0xff] %vm1011_vm1, %v996_v28  ;;  %v937_v32 = vmul.f32 0.2, %v1340_v27  ;;  %vm839_vm14 = vcmp.ge.f32.partialorder %v644_v30, 0.0 }
 0x111   : > { %v903_v33 = vmul.f32 0.2, %v644_v30  ;;  %vm871_vm15 = vcmp.ge.f32.partialorder %v772_v31, 0.0  ;;  %v969_v34 = vsel %vm841_vm12, %v1308_v26, %v905_v29  ;;  %v935_v35 = vmul.f32 0.2, %v772_v31  ;;  %v1309_v36 = vpop.f32.mrb[22].mxu0 }
 0x112   : > { %v1341_v37 = vpop.f32.mrb[22].mxu1  ;;  %1034 = vst.msk [vmem:[%s1557_s27 + $0xb0] sm:$0xff] %vm1011_vm1, %v969_v34  ;;  %v1001_v38 = vsel %vm873_vm13, %v1340_v27, %v937_v32  ;;  %vm842_vm0 = vcmp.ge.f32.partialorder %v1309_v36, 0.0  ;;  %v906_v40 = vmul.f32 0.2, %v1309_v36  ;;  %v647_v41 = vpop.f32.mrb[23].mxu0 }
 0x113   : > { %v967_v39 = vsel %vm839_vm14, %v644_v30, %v903_v33  ;;  %v775_v42 = vpop.f32.mrb[23].mxu1  ;;  %1066 = vst.msk [vmem:[%s1557_s27 + $0x1b0] sm:$0xff] %vm1011_vm1, %v1001_v38  ;;  %v999_v43 = vsel %vm871_vm15, %v772_v31, %v935_v35  ;;  %vm874_vm2 = vcmp.ge.f32.partialorder %v1341_v37, 0.0  ;;  %v938_v44 = vmul.f32 0.2, %v1341_v37 }
 0x114   : > { %1032 = vst.msk [vmem:[%s1557_s27 + $0xa0] sm:$0xff] %vm1011_vm1, %v967_v39  ;;  %vm840_vm3 = vcmp.ge.f32.partialorder %v647_v41, 0.0  ;;  %1064 = vst.msk [vmem:[%s1557_s27 + $0x1a0] sm:$0xff] %vm1011_vm1, %v999_v43  ;;  %v970_v45 = vsel %vm842_vm0, %v1309_v36, %v906_v40  ;;  %v904_v46 = vmul.f32 0.2, %v647_v41  ;;  %vm872_vm4 = vcmp.ge.f32.partialorder %v775_v42, 0.0 }
 0x115   : > { %v936_v47 = vmul.f32 0.2, %v775_v42  ;;  %1035 = vst.msk [vmem:[%s1557_s27 + $0xb8] sm:$0xff] %vm1011_vm1, %v970_v45  ;;  %v1002_v48 = vsel %vm874_vm2, %v1341_v37, %v938_v44 }
 0x116   : > { %1067 = vst.msk [vmem:[%s1557_s27 + $0x1b8] sm:$0xff] %vm1011_vm1, %v1002_v48  ;;  %v968_v49 = vsel %vm840_vm3, %v647_v41, %v904_v46  ;;  %v1312_v51 = vpop.f32.mrb[24].mxu0 }
 0x117   : > { %v1000_v50 = vsel %vm872_vm4, %v775_v42, %v936_v47  ;;  %v1344_v52 = vpop.f32.mrb[24].mxu1  ;;  %1033 = vst.msk [vmem:[%s1557_s27 + $0xa8] sm:$0xff] %vm1011_vm1, %v968_v49  ;;  %vm845_vm5 = vcmp.ge.f32.partialorder %v1312_v51, 0.0  ;;  %v909_v53 = vmul.f32 0.2, %v1312_v51  ;;  %v660_v55 = vpop.f32.mrb[25].mxu0 }
 0x118   : > { %1065 = vst.msk [vmem:[%s1557_s27 + $0x1a8] sm:$0xff] %vm1011_vm1, %v1000_v50  ;;  %vm877_vm6 = vcmp.ge.f32.partialorder %v1344_v52, 0.0  ;;  %v941_v54 = vmul.f32 0.2, %v1344_v52  ;;  %v788_v56 = vpop.f32.mrb[25].mxu1  ;;  %vm843_vm7 = vcmp.ge.f32.partialorder %v660_v55, 0.0 }
 0x119   : > { %v973_v57 = vsel %vm845_vm5, %v1312_v51, %v909_v53  ;;  %v907_v59 = vmul.f32 0.2, %v660_v55  ;;  %v1313_v60 = vpop.f32.mrb[26].mxu0  ;;  %v1345_v61 = vpop.f32.mrb[26].mxu1  ;;  %vm875_vm8 = vcmp.ge.f32.partialorder %v788_v56, 0.0 }
 0x11a   : > { %v1005_v58 = vsel %vm877_vm6, %v1344_v52, %v941_v54  ;;  %1038 = vst.msk [vmem:[%s1557_s27 + $0xd0] sm:$0xff] %vm1011_vm1, %v973_v57  ;;  %v939_v62 = vmul.f32 0.2, %v788_v56  ;;  %vm846_vm9 = vcmp.ge.f32.partialorder %v1313_v60, 0.0  ;;  %v910_v63 = vmul.f32 0.2, %v1313_v60 }
 0x11b   : > { %1070 = vst.msk [vmem:[%s1557_s27 + $0x1d0] sm:$0xff] %vm1011_vm1, %v1005_v58  ;;  %v971_v0 = vsel %vm843_vm7, %v660_v55, %v907_v59  ;;  %vm878_vm10 = vcmp.ge.f32.partialorder %v1345_v61, 0.0  ;;  %v942_v1 = vmul.f32 0.2, %v1345_v61  ;;  %v663_v2 = vpop.f32.mrb[27].mxu0  ;;  %v791_v3 = vpop.f32.mrb[27].mxu1 }
 0x11c   : > { %1036 = vst.msk [vmem:[%s1557_s27 + $0xc0] sm:$0xff] %vm1011_vm1, %v971_v0  ;;  %v1003_v4 = vsel %vm875_vm8, %v788_v56, %v939_v62  ;;  %v974_v5 = vsel %vm846_vm9, %v1313_v60, %v910_v63  ;;  %vm844_vm11 = vcmp.ge.f32.partialorder %v663_v2, 0.0  ;;  %v908_v6 = vmul.f32 0.2, %v663_v2 }
 0x11d   : > { %1068 = vst.msk [vmem:[%s1557_s27 + $0x1c0] sm:$0xff] %vm1011_vm1, %v1003_v4  ;;  %1039 = vst.msk [vmem:[%s1557_s27 + $0xd8] sm:$0xff] %vm1011_vm1, %v974_v5  ;;  %v1006_v7 = vsel %vm878_vm10, %v1345_v61, %v942_v1  ;;  %vm876_vm12 = vcmp.ge.f32.partialorder %v791_v3, 0.0  ;;  %v940_v8 = vmul.f32 0.2, %v791_v3 }
 0x11e   : > { %1071 = vst.msk [vmem:[%s1557_s27 + $0x1d8] sm:$0xff] %vm1011_vm1, %v1006_v7  ;;  %v972_v9 = vsel %vm844_vm11, %v663_v2, %v908_v6  ;;  %v1316_v10 = vpop.f32.mrb[28].mxu0 }
 0x11f   : > { %v1348_v11 = vpop.f32.mrb[28].mxu1  ;;  %1037 = vst.msk [vmem:[%s1557_s27 + $0xc8] sm:$0xff] %vm1011_vm1, %v972_v9  ;;  %v1004_v12 = vsel %vm876_vm12, %v791_v3, %v940_v8  ;;  %vm849_vm13 = vcmp.ge.f32.partialorder %v1316_v10, 0.0  ;;  %v913_v13 = vmul.f32 0.2, %v1316_v10  ;;  %v676_v14 = vpop.f32.mrb[29].mxu0 }
 0x120   : > { %vm881_vm14 = vcmp.ge.f32.partialorder %v1348_v11, 0.0  ;;  %v804_v15 = vpop.f32.mrb[29].mxu1  ;;  %1069 = vst.msk [vmem:[%s1557_s27 + $0x1c8] sm:$0xff] %vm1011_vm1, %v1004_v12  ;;  %v945_v16 = vmul.f32 0.2, %v1348_v11  ;;  %vm847_vm15 = vcmp.ge.f32.partialorder %v676_v14, 0.0 }
 0x121   : > { %v911_v17 = vmul.f32 0.2, %v676_v14  ;;  %vm879_vm0 = vcmp.ge.f32.partialorder %v804_v15, 0.0  ;;  %v977_v18 = vsel %vm849_vm13, %v1316_v10, %v913_v13  ;;  %v943_v19 = vmul.f32 0.2, %v804_v15  ;;  %v1317_v20 = vpop.f32.mrb[30].mxu0 }
 0x122   : > { %v1349_v21 = vpop.f32.mrb[30].mxu1  ;;  %1042 = vst.msk [vmem:[%s1557_s27 + $0xf0] sm:$0xff] %vm1011_vm1, %v977_v18  ;;  %v1009_v22 = vsel %vm881_vm14, %v1348_v11, %v945_v16  ;;  %vm850_vm2 = vcmp.ge.f32.partialorder %v1317_v20, 0.0  ;;  %v914_v24 = vmul.f32 0.2, %v1317_v20  ;;  %v679_v25 = vpop.f32.mrb[31].mxu0 }
 0x123   : > { %v975_v23 = vsel %vm847_vm15, %v676_v14, %v911_v17  ;;  %v807_v26 = vpop.f32.mrb[31].mxu1  ;;  %1074 = vst.msk [vmem:[%s1557_s27 + $0x1f0] sm:$0xff] %vm1011_vm1, %v1009_v22  ;;  %v1007_v27 = vsel %vm879_vm0, %v804_v15, %v943_v19  ;;  %vm882_vm3 = vcmp.ge.f32.partialorder %v1349_v21, 0.0  ;;  %v946_v28 = vmul.f32 0.2, %v1349_v21 }
 0x124   : > { %1040 = vst.msk [vmem:[%s1557_s27 + $0xe0] sm:$0xff] %vm1011_vm1, %v975_v23  ;;  %vm848_vm4 = vcmp.ge.f32.partialorder %v679_v25, 0.0  ;;  %1072 = vst.msk [vmem:[%s1557_s27 + $0x1e0] sm:$0xff] %vm1011_vm1, %v1007_v27  ;;  %v978_v29 = vsel %vm850_vm2, %v1317_v20, %v914_v24  ;;  %v912_v30 = vmul.f32 0.2, %v679_v25  ;;  %vm880_vm5 = vcmp.ge.f32.partialorder %v807_v26, 0.0 }
 0x125   : > { %v944_v31 = vmul.f32 0.2, %v807_v26  ;;  %1043 = vst.msk [vmem:[%s1557_s27 + $0xf8] sm:$0xff] %vm1011_vm1, %v978_v29  ;;  %v1010_v32 = vsel %vm882_vm3, %v1349_v21, %v946_v28 }
 0x126   : > { %1075 = vst.msk [vmem:[%s1557_s27 + $0x1f8] sm:$0xff] %vm1011_vm1, %v1010_v32  ;;  %v976_v33 = vsel %vm848_vm4, %v679_v25, %v912_v30 }
 0x127   : > { %v1008_v34 = vsel %vm880_vm5, %v807_v26, %v944_v31  ;;  %1041 = vst.msk [vmem:[%s1557_s27 + $0xe8] sm:$0xff] %vm1011_vm1, %v976_v33 }
 0x128   : > { %1073 = vst.msk [vmem:[%s1557_s27 + $0x1e8] sm:$0xff] %vm1011_vm1, %v1008_v34 }
 0x129 PF: > { %s12_s11 = sadd.s32 1, %s1437_s11   ;;  %s1699_s9 = smov %s1433_s10 }
 0x12a   : > { %p9_p5 = scmp.ge.s32.totalorder %s12_s11, 6   ;;  %s1700_s10 = smov %s1702_s12 }
 0x12c   :  { %11 = sbr.rel (!%p9_p5) target bundleno = 2 (0x2), region = 61 }

// kernel: discriminator_forward.8
= control target key start
LH: loop header
LB: loop body
LE: loop exit
PB: predicated region body
PF: predicated region fallthrough
CT: control target
= control target key end

     0   :  { %v4204_v0 = vmov 0   ;;  %s5468_s1 = inlined_call_operand.vmem [shape: bf16[1024,128], index: 1, kind: input, shape index: {}]   ;;  %s5469_s0 = inlined_call_operand.vmem [shape: bf16[512,1024], index: 0, kind: input, shape index: {}]   ;;  %s5470_s2 = inlined_call_operand.vmem [shape: f32[512,128], index: 2, kind: output, shape index: {0}]   ;;  %s5471_s3 = inlined_call_operand.vmem [shape: f32[1,128], index: 3, kind: output, shape index: {1}]   ;;  %s5472_s4 = inlined_call_operand.vmem [shape: f32[1,128], index: 4, kind: output, shape index: {2}]  }
   0x1   :  { %2063 = vmatprep.subr.bf16.mxu1 %v4204_v0  ;;  %2641 = vmatprep.subr.bf16.mxu0 %v4204_v0  ;;  %v4140_v1 = vld [vmem:[%s5468_s1] sm:$0xff]   ;;  %v4142_v3 = vld [vmem:[%s5468_s1 + $0x8] sm:$0xff]   ;;  %v4144_v5 = vld [vmem:[%s5468_s1 + $0x10] sm:$0xff]  }
   0x2   :  { %v4141_v2 = vld [vmem:[%s5468_s1 + $0x100] sm:$0xff]   ;;  %2064 = vmatpush1.bf16.msra.mxu1 %v4140_v1  ;;  %v4143_v4 = vld [vmem:[%s5468_s1 + $0x108] sm:$0xff]   ;;  %v4145_v6 = vld [vmem:[%s5468_s1 + $0x110] sm:$0xff]  }
   0x3   :  { %2642 = vmatpush1.bf16.msra.mxu0 %v4141_v2  ;;  %2065 = vmatprep.subr.bf16.mxu1 %v4204_v0  ;;  %v4146_v7 = vld [vmem:[%s5468_s1 + $0x18] sm:$0xff]   ;;  %v4148_v9 = vld [vmem:[%s5468_s1 + $0x20] sm:$0xff]   ;;  %v4150_v11 = vld [vmem:[%s5468_s1 + $0x28] sm:$0xff]  }
   0x4   :  { %2643 = vmatprep.subr.bf16.mxu0 %v4204_v0  ;;  %v4147_v8 = vld [vmem:[%s5468_s1 + $0x118] sm:$0xff]   ;;  %v4149_v10 = vld [vmem:[%s5468_s1 + $0x120] sm:$0xff]   ;;  %v4151_v12 = vld [vmem:[%s5468_s1 + $0x128] sm:$0xff]  }
   0x5   :  { %v4152_v13 = vld [vmem:[%s5468_s1 + $0x30] sm:$0xff]   ;;  %v4154_v15 = vld [vmem:[%s5468_s1 + $0x38] sm:$0xff]   ;;  %v4156_v17 = vld [vmem:[%s5468_s1 + $0x40] sm:$0xff]  }
   0x6   :  { %2066 = vmatpush1.bf16.msra.mxu1 %v4142_v3  ;;  %v4153_v14 = vld [vmem:[%s5468_s1 + $0x130] sm:$0xff]   ;;  %v4155_v16 = vld [vmem:[%s5468_s1 + $0x138] sm:$0xff]   ;;  %v4157_v18 = vld [vmem:[%s5468_s1 + $0x140] sm:$0xff]  }
   0x7   :  { %2644 = vmatpush1.bf16.msra.mxu0 %v4143_v4  ;;  %2067 = vmatprep.subr.bf16.mxu1 %v4204_v0  ;;  %v4305_v19 = vld [vmem:[%s5469_s0] sm:$0xff]  ;;  %v4315_v21 = vld [vmem:[%s5469_s0 + $0x10] sm:$0xff]  ;;  %v4158_v24 = vld [vmem:[%s5468_s1 + $0x48] sm:$0xff]  }
   0x8   :  { %2645 = vmatprep.subr.bf16.mxu0 %v4204_v0  ;;  %v4310_v20 = vld [vmem:[%s5469_s0 + $0x20] sm:$0xff]  ;;  %v4322_v23 = vld [vmem:[%s5469_s0 + $0x30] sm:$0xff]  ;;  %v4159_v26 = vld [vmem:[%s5468_s1 + $0x148] sm:$0xff]  }
   0x9   :  { %v3500_v22 = vcombine.high %v4305_v19, %v4310_v20  ;;  %v3504_v25 = vcombine.high %v4315_v21, %v4322_v23  ;;  %v4160_v27 = vld [vmem:[%s5468_s1 + $0x50] sm:$0xff]   ;;  %v4162_v29 = vld [vmem:[%s5468_s1 + $0x58] sm:$0xff]   ;;  %v4164_v31 = vld [vmem:[%s5468_s1 + $0x60] sm:$0xff]   ;;  %v3499_v42 = vcombine.low %v4305_v19, %v4310_v20  ;;  %v3503_v44 = vcombine.low %v4315_v21, %v4322_v23 }
   0xa   :  { %2068 = vmatpush1.bf16.msra.mxu1 %v4144_v5  ;;  %v4161_v28 = vld [vmem:[%s5468_s1 + $0x150] sm:$0xff]   ;;  %v4163_v30 = vld [vmem:[%s5468_s1 + $0x158] sm:$0xff]   ;;  %v4165_v32 = vld [vmem:[%s5468_s1 + $0x160] sm:$0xff]  }
   0xb   :  { %2646 = vmatpush1.bf16.msra.mxu0 %v4145_v6  ;;  %2069 = vmatprep.subr.bf16.mxu1 %v4204_v0  ;;  %v4166_v33 = vld [vmem:[%s5468_s1 + $0x68] sm:$0xff]   ;;  %v4168_v35 = vld [vmem:[%s5468_s1 + $0x70] sm:$0xff]   ;;  %v4170_v37 = vld [vmem:[%s5468_s1 + $0x78] sm:$0xff]  }
   0xc   :  { %2647 = vmatprep.subr.bf16.mxu0 %v4204_v0  ;;  %2095 = vmatprep.mubr.bf16.mxu1 %v3500_v22  ;;  %v4167_v34 = vld [vmem:[%s5468_s1 + $0x168] sm:$0xff]   ;;  %v4169_v36 = vld [vmem:[%s5468_s1 + $0x170] sm:$0xff]   ;;  %v4171_v38 = vld [vmem:[%s5468_s1 + $0x178] sm:$0xff]  }
   0xd   :  { %2673 = vmatprep.mubr.bf16.mxu0 %v3504_v25  ;;  %v23_v39 = vld [vmem:[%s5469_s0 + $0x40] sm:$0xff]  ;;  %v25_v41 = vld [vmem:[%s5469_s0 + $0x50] sm:$0xff]  ;;  %v4174_v51 = vld [vmem:[%s5468_s1 + $0x88] sm:$0xff]  }
   0xe   :  { %2070 = vmatpush1.bf16.msra.mxu1 %v4146_v7  ;;  %v27_v40 = vld [vmem:[%s5469_s0 + $0x60] sm:$0xff]  ;;  %v29_v43 = vld [vmem:[%s5469_s0 + $0x70] sm:$0xff]  ;;  %v4175_v52 = vld [vmem:[%s5468_s1 + $0x188] sm:$0xff]  }
   0xf   :  { %2648 = vmatpush1.bf16.msra.mxu0 %v4147_v8  ;;  %2071 = vmatprep.subr.bf16.mxu1 %v4204_v0  ;;  %v4172_v45 = vld [vmem:[%s5468_s1 + $0x80] sm:$0xff]   ;;  %v3508_v47 = vcombine.high %v23_v39, %v27_v40  ;;  %v3512_v48 = vcombine.high %v25_v41, %v29_v43  ;;  %v33_v53 = vld [vmem:[%s5469_s0 + $0x90] sm:$0xff]  ;;  %v3507_v55 = vcombine.low %v23_v39, %v27_v40  ;;  %v4178_v2 = vld [vmem:[%s5468_s1 + $0x98] sm:$0xff]  }
  0x10   :  { %2649 = vmatprep.subr.bf16.mxu0 %v4204_v0  ;;  %v4173_v46 = vld [vmem:[%s5468_s1 + $0x180] sm:$0xff]   ;;  %v37_v54 = vld [vmem:[%s5469_s0 + $0xb0] sm:$0xff]  ;;  %v3511_v56 = vcombine.low %v25_v41, %v29_v43  ;;  %v4179_v3 = vld [vmem:[%s5468_s1 + $0x198] sm:$0xff]  }
  0x11   :  { %v31_v49 = vld [vmem:[%s5469_s0 + $0x80] sm:$0xff]  ;;  %v3520_v58 = vcombine.high %v33_v53, %v37_v54  ;;  %v4176_v59 = vld [vmem:[%s5468_s1 + $0x90] sm:$0xff]   ;;  %v3519_v6 = vcombine.low %v33_v53, %v37_v54  ;;  %v4191_v39 = vld [vmem:[%s5468_s1 + $0x1c8] sm:$0xff]  }
  0x12   :  { %2072 = vmatpush1.bf16.msra.mxu1 %v4148_v9  ;;  %v35_v50 = vld [vmem:[%s5469_s0 + $0xa0] sm:$0xff]  ;;  %v4177_v60 = vld [vmem:[%s5468_s1 + $0x190] sm:$0xff]   ;;  %v4194_v54 = vld [vmem:[%s5468_s1 + $0xd8] sm:$0xff]  }
  0x13   :  { %2650 = vmatpush1.bf16.msra.mxu0 %v4149_v10  ;;  %2073 = vmatprep.subr.bf16.mxu1 %v4204_v0  ;;  %v3516_v57 = vcombine.high %v31_v49, %v35_v50  ;;  %v39_v61 = vld [vmem:[%s5469_s0 + $0xc0] sm:$0xff]  ;;  %v41_v63 = vld [vmem:[%s5469_s0 + $0xd0] sm:$0xff]  ;;  %v3515_v4 = vcombine.low %v31_v49, %v35_v50 }
  0x14   :  { %2651 = vmatprep.subr.bf16.mxu0 %v4204_v0  ;;  %v43_v62 = vld [vmem:[%s5469_s0 + $0xe0] sm:$0xff]  ;;  %v45_v1 = vld [vmem:[%s5469_s0 + $0xf0] sm:$0xff] }
  0x15   :  { %v4180_v5 = vld [vmem:[%s5468_s1 + $0xa0] sm:$0xff]   ;;  %v3524_v7 = vcombine.high %v39_v61, %v43_v62  ;;  %v3528_v9 = vcombine.high %v41_v63, %v45_v1  ;;  %v4184_v20 = vld [vmem:[%s5468_s1 + $0xb0] sm:$0xff]  }
  0x16   :  { %2074 = vmatpush1.bf16.msra.mxu1 %v4150_v11  ;;  %v4181_v8 = vld [vmem:[%s5468_s1 + $0x1a0] sm:$0xff]   ;;  %v4185_v21 = vld [vmem:[%s5468_s1 + $0x1b0] sm:$0xff]  }
  0x17   :  { %2652 = vmatpush1.bf16.msra.mxu0 %v4151_v12  ;;  %2075 = vmatprep.subr.bf16.mxu1 %v4204_v0  ;;  %v47_v10 = vld [vmem:[%s5469_s0 + $0x100] sm:$0xff]  ;;  %v49_v12 = vld [vmem:[%s5469_s0 + $0x110] sm:$0xff] }
  0x18   :  { %2653 = vmatprep.subr.bf16.mxu0 %v4204_v0  ;;  %v51_v11 = vld [vmem:[%s5469_s0 + $0x120] sm:$0xff]  ;;  %v57_v25 = vld [vmem:[%s5469_s0 + $0x150] sm:$0xff] }
  0x19   :  { %v55_v22 = vld [vmem:[%s5469_s0 + $0x140] sm:$0xff]  ;;  %v77_v49 = vld [vmem:[%s5469_s0 + $0x1f0] sm:$0xff] }
  0x1a   :  { %2076 = vmatpush1.bf16.msra.mxu1 %v4152_v13  ;;  %v53_v13 = vld [vmem:[%s5469_s0 + $0x130] sm:$0xff]  ;;  %v59_v23 = vld [vmem:[%s5469_s0 + $0x160] sm:$0xff] }
  0x1b   :  { %2654 = vmatpush1.bf16.msra.mxu0 %v4153_v14  ;;  %2077 = vmatprep.subr.bf16.mxu1 %v4204_v0  ;;  %v4182_v14 = vld [vmem:[%s5468_s1 + $0xa8] sm:$0xff]   ;;  %v3536_v19 = vcombine.high %v49_v12, %v53_v13  ;;  %v3539_v40 = vcombine.low %v55_v22, %v59_v23 }
  0x1c   :  { %2655 = vmatprep.subr.bf16.mxu0 %v4204_v0 }
  0x1e   :  { %2078 = vmatpush1.bf16.msra.mxu1 %v4154_v15  ;;  %v4183_v15 = vld [vmem:[%s5468_s1 + $0x1a8] sm:$0xff]  }
  0x1f   :  { %2656 = vmatpush1.bf16.msra.mxu0 %v4155_v16  ;;  %2079 = vmatprep.subr.bf16.mxu1 %v4204_v0  ;;  %v3523_v16 = vcombine.low %v39_v61, %v43_v62 }
  0x20   :  { %2657 = vmatprep.subr.bf16.mxu0 %v4204_v0 }
  0x22   :  { %2080 = vmatpush1.bf16.msra.mxu1 %v4156_v17  ;;  %v3527_v17 = vcombine.low %v41_v63, %v45_v1  ;;  %v87_v1 = vld [vmem:[%s5469_s0 + $0x240] sm:$0xff] }
  0x23   :  { %2658 = vmatpush1.bf16.msra.mxu0 %v4157_v18  ;;  %2081 = vmatprep.subr.bf16.mxu1 %v4204_v0  ;;  %v3532_v18 = vcombine.high %v47_v10, %v51_v11 }
  0x24   :  { %2659 = vmatprep.subr.bf16.mxu0 %v4204_v0 }
  0x26   :  { %2082 = vmatpush1.bf16.msra.mxu1 %v4158_v24  ;;  %v4186_v24 = vld [vmem:[%s5468_s1 + $0xb8] sm:$0xff]  }
  0x27   :  { %2660 = vmatpush1.bf16.msra.mxu0 %v4159_v26  ;;  %2083 = vmatprep.subr.bf16.mxu1 %v4204_v0  ;;  %v61_v26 = vld [vmem:[%s5469_s0 + $0x170] sm:$0xff] }
  0x28   :  { %2661 = vmatprep.subr.bf16.mxu0 %v4204_v0  ;;  %v3543_v41 = vcombine.low %v57_v25, %v61_v26 }
  0x2a   :  { %2084 = vmatpush1.bf16.msra.mxu1 %v4160_v27  ;;  %v4187_v27 = vld [vmem:[%s5468_s1 + $0x1b8] sm:$0xff]  }
  0x2b   :  { %2662 = vmatpush1.bf16.msra.mxu0 %v4161_v28  ;;  %2085 = vmatprep.subr.bf16.mxu1 %v4204_v0  ;;  %v3531_v28 = vcombine.low %v47_v10, %v51_v11  ;;  %v4197_v10 = vld [vmem:[%s5468_s1 + $0x1e0] sm:$0xff]  }
  0x2c   :  { %2663 = vmatprep.subr.bf16.mxu0 %v4204_v0  ;;  %v95_v11 = vld [vmem:[%s5469_s0 + $0x280] sm:$0xff] }
  0x2e   :  { %2086 = vmatpush1.bf16.msra.mxu1 %v4162_v29  ;;  %v3535_v29 = vcombine.low %v49_v12, %v53_v13  ;;  %v99_v12 = vld [vmem:[%s5469_s0 + $0x2a0] sm:$0xff]  ;;  %v97_v13 = vld [vmem:[%s5469_s0 + $0x290] sm:$0xff] }
  0x2f   :  { %2664 = vmatpush1.bf16.msra.mxu0 %v4163_v30  ;;  %2087 = vmatprep.subr.bf16.mxu1 %v4204_v0  ;;  %v3540_v30 = vcombine.high %v55_v22, %v59_v23  ;;  %v109_v22 = vld [vmem:[%s5469_s0 + $0x2f0] sm:$0xff]  ;;  %v3579_v23 = vcombine.low %v95_v11, %v99_v12 }
  0x30   :  { %2665 = vmatprep.subr.bf16.mxu0 %v4204_v0 }
  0x32   :  { %2088 = vmatpush1.bf16.msra.mxu1 %v4164_v31  ;;  %v3544_v31 = vcombine.high %v57_v25, %v61_v26 }
  0x33   :  { %2666 = vmatpush1.bf16.msra.mxu0 %v4165_v32  ;;  %2089 = vmatprep.subr.bf16.mxu1 %v4204_v0  ;;  %v4188_v32 = vld [vmem:[%s5468_s1 + $0xc0] sm:$0xff]  }
  0x34   :  { %2667 = vmatprep.subr.bf16.mxu0 %v4204_v0 }
  0x36   :  { %2090 = vmatpush1.bf16.msra.mxu1 %v4166_v33  ;;  %v4189_v33 = vld [vmem:[%s5468_s1 + $0x1c0] sm:$0xff]  }
  0x37   :  { %2668 = vmatpush1.bf16.msra.mxu0 %v4167_v34  ;;  %2091 = vmatprep.subr.bf16.mxu1 %v4204_v0  ;;  %v63_v34 = vld [vmem:[%s5469_s0 + $0x180] sm:$0xff] }
  0x38   :  { %2669 = vmatprep.subr.bf16.mxu0 %v4204_v0 }
  0x3a   :  { %2092 = vmatpush1.bf16.msra.mxu1 %v4168_v35  ;;  %v67_v35 = vld [vmem:[%s5469_s0 + $0x1a0] sm:$0xff] }
  0x3b   :  { %2670 = vmatpush1.bf16.msra.mxu0 %v4169_v36  ;;  %2093 = vmatprep.subr.bf16.mxu1 %v4204_v0  ;;  %v4190_v36 = vld [vmem:[%s5468_s1 + $0xc8] sm:$0xff]   ;;  %v3547_v50 = vcombine.low %v63_v34, %v67_v35 }
  0x3c   :  { %2671 = vmatprep.subr.bf16.mxu0 %v4204_v0 }
  0x3e   :  { %2094 = vmatpush1.bf16.msra.mxu1 %v4170_v37  ;;  %v65_v37 = vld [vmem:[%s5469_s0 + $0x190] sm:$0xff] }
  0x3f   :  { %2672 = vmatpush1.bf16.msra.mxu0 %v4171_v38  ;;  %2352 = vmatprep.subr.bf16.mxu1 %v4204_v0  ;;  %v69_v38 = vld [vmem:[%s5469_s0 + $0x1b0] sm:$0xff] }
  0x40   :  { %2930 = vmatprep.subr.bf16.mxu0 %v4204_v0  ;;  %v3552_v43 = vcombine.high %v65_v37, %v69_v38 }
  0x41   :  { %2096 = vmatmul.mubr.bf16.vlgmr.msra.gmra.mrb[0].mxu1 %v3499_v42  ;;  %v3548_v42 = vcombine.high %v63_v34, %v67_v35 }
  0x42   :  { %2674 = vmatmul.mubr.bf16.vlgmr.msra.gmra.mrb[0].mxu0 %v3503_v44  ;;  %2353 = vmatpush1.bf16.msra.mxu1 %v4172_v45  ;;  %v4192_v44 = vld [vmem:[%s5468_s1 + $0xd0] sm:$0xff]  }
  0x43   :  { %2931 = vmatpush1.bf16.msra.mxu0 %v4173_v46  ;;  %2103 = vmatprep.mubr.bf16.mxu1 %v3508_v47  ;;  %v4193_v45 = vld [vmem:[%s5468_s1 + $0x1d0] sm:$0xff]   ;;  %v71_v46 = vld [vmem:[%s5469_s0 + $0x1c0] sm:$0xff] }
  0x44   :  { %2681 = vmatprep.mubr.bf16.mxu0 %v3512_v48  ;;  %2354 = vmatprep.subr.bf16.mxu1 %v4204_v0  ;;  %v75_v47 = vld [vmem:[%s5469_s0 + $0x1e0] sm:$0xff]  ;;  %v73_v48 = vld [vmem:[%s5469_s0 + $0x1d0] sm:$0xff] }
  0x45   :  { %2932 = vmatprep.subr.bf16.mxu0 %v4204_v0  ;;  %v3560_v53 = vcombine.high %v73_v48, %v77_v49  ;;  %v3559_v61 = vcombine.low %v73_v48, %v77_v49  ;;  %v131_v48 = vld [vmem:[%s5469_s0 + $0x3a0] sm:$0xff]  ;;  %v129_v49 = vld [vmem:[%s5469_s0 + $0x390] sm:$0xff] }
  0x46   :  { %2355 = vmatpush1.bf16.msra.mxu1 %v4174_v51  ;;  %v3551_v51 = vcombine.low %v65_v37, %v69_v38  ;;  %v119_v37 = vld [vmem:[%s5469_s0 + $0x340] sm:$0xff] }
  0x47   :  { %2933 = vmatpush1.bf16.msra.mxu0 %v4175_v52  ;;  %2356 = vmatprep.subr.bf16.mxu1 %v4204_v0  ;;  %v3556_v52 = vcombine.high %v71_v46, %v75_v47  ;;  %v123_v38 = vld [vmem:[%s5469_s0 + $0x360] sm:$0xff] }
  0x48   :  { %2934 = vmatprep.subr.bf16.mxu0 %v4204_v0 }
  0x49   :  { %2104 = vmatmul.mubr.bf16.gmra.mrb[4].mxu1 %v3507_v55  ;;  %v4195_v55 = vld [vmem:[%s5468_s1 + $0x1d8] sm:$0xff]  }
  0x4a   :  { %2682 = vmatmul.mubr.bf16.gmra.mrb[4].mxu0 %v3511_v56  ;;  %2111 = vmatprep.mubr.bf16.mxu1 %v3516_v57  ;;  %v79_v56 = vld [vmem:[%s5469_s0 + $0x200] sm:$0xff] }
  0x4b   :  { %2689 = vmatprep.mubr.bf16.mxu0 %v3520_v58  ;;  %2357 = vmatpush1.bf16.msra.mxu1 %v4176_v59  ;;  %v83_v57 = vld [vmem:[%s5469_s0 + $0x220] sm:$0xff]  ;;  %v81_v58 = vld [vmem:[%s5469_s0 + $0x210] sm:$0xff] }
  0x4c   :  { %2935 = vmatpush1.bf16.msra.mxu0 %v4177_v60  ;;  %2358 = vmatprep.subr.bf16.mxu1 %v4204_v0  ;;  %v85_v59 = vld [vmem:[%s5469_s0 + $0x230] sm:$0xff]  ;;  %v3555_v60 = vcombine.low %v71_v46, %v75_v47  ;;  %v3564_v62 = vcombine.high %v79_v56, %v83_v57  ;;  %v127_v47 = vld [vmem:[%s5469_s0 + $0x380] sm:$0xff] }
  0x4d   :  { %2936 = vmatprep.subr.bf16.mxu0 %v4204_v0  ;;  %v3568_v63 = vcombine.high %v81_v58, %v85_v59  ;;  %v4201_v46 = vld [vmem:[%s5468_s1 + $0x1f0] sm:$0xff]  }
  0x4f   :  { %2359 = vmatpush1.bf16.msra.mxu1 %v4178_v2  ;;  %v91_v2 = vld [vmem:[%s5469_s0 + $0x260] sm:$0xff] }
  0x50   :  { %2937 = vmatpush1.bf16.msra.mxu0 %v4179_v3  ;;  %2360 = vmatprep.subr.bf16.mxu1 %v4204_v0  ;;  %v89_v3 = vld [vmem:[%s5469_s0 + $0x250] sm:$0xff] }
  0x51   :  { %2112 = vmatmul.mubr.bf16.gmra.mrb[8].mxu1 %v3515_v4  ;;  %2938 = vmatprep.subr.bf16.mxu0 %v4204_v0  ;;  %v93_v4 = vld [vmem:[%s5469_s0 + $0x270] sm:$0xff] }
  0x52   :  { %2690 = vmatmul.mubr.bf16.gmra.mrb[8].mxu0 %v3519_v6  ;;  %2119 = vmatprep.mubr.bf16.mxu1 %v3524_v7  ;;  %v3567_v6 = vcombine.low %v81_v58, %v85_v59  ;;  %v3572_v7 = vcombine.high %v87_v1, %v91_v2  ;;  %v3611_v58 = vcombine.low %v127_v47, %v131_v48 }
  0x53   :  { %2697 = vmatprep.mubr.bf16.mxu0 %v3528_v9  ;;  %2361 = vmatpush1.bf16.msra.mxu1 %v4180_v5  ;;  %v3563_v5 = vcombine.low %v79_v56, %v83_v57  ;;  %v4196_v9 = vld [vmem:[%s5468_s1 + $0xe0] sm:$0xff]   ;;  %v137_v57 = vld [vmem:[%s5469_s0 + $0x3d0] sm:$0xff] }
  0x54   :  { %2939 = vmatpush1.bf16.msra.mxu0 %v4181_v8  ;;  %2362 = vmatprep.subr.bf16.mxu1 %v4204_v0  ;;  %v3576_v8 = vcombine.high %v89_v3, %v93_v4  ;;  %v139_v56 = vld [vmem:[%s5469_s0 + $0x3e0] sm:$0xff] }
  0x55   :  { %2940 = vmatprep.subr.bf16.mxu0 %v4204_v0 }
  0x57   :  { %2363 = vmatpush1.bf16.msra.mxu1 %v4182_v14  ;;  %v101_v14 = vld [vmem:[%s5469_s0 + $0x2b0] sm:$0xff] }
  0x58   :  { %2941 = vmatpush1.bf16.msra.mxu0 %v4183_v15  ;;  %2364 = vmatprep.subr.bf16.mxu1 %v4204_v0  ;;  %v3571_v15 = vcombine.low %v87_v1, %v91_v2  ;;  %v143_v1 = vld [vmem:[%s5469_s0 + $0x400] sm:$0xff] }
  0x59   :  { %2120 = vmatmul.mubr.bf16.gmra.mrb[12].mxu1 %v3523_v16  ;;  %2942 = vmatprep.subr.bf16.mxu0 %v4204_v0  ;;  %v3575_v16 = vcombine.low %v89_v3, %v93_v4  ;;  %v147_v2 = vld [vmem:[%s5469_s0 + $0x420] sm:$0xff]  ;;  %v145_v3 = vld [vmem:[%s5469_s0 + $0x410] sm:$0xff] }
  0x5a   :  { %2698 = vmatmul.mubr.bf16.gmra.mrb[12].mxu0 %v3527_v17  ;;  %2127 = vmatprep.mubr.bf16.mxu1 %v3532_v18  ;;  %v3580_v17 = vcombine.high %v95_v11, %v99_v12  ;;  %v3584_v18 = vcombine.high %v97_v13, %v101_v14  ;;  %v149_v4 = vld [vmem:[%s5469_s0 + $0x430] sm:$0xff] }
  0x5b   :  { %2705 = vmatprep.mubr.bf16.mxu0 %v3536_v19  ;;  %2365 = vmatpush1.bf16.msra.mxu1 %v4184_v20  ;;  %v103_v19 = vld [vmem:[%s5469_s0 + $0x2c0] sm:$0xff]  ;;  %v153_v11 = vld [vmem:[%s5469_s0 + $0x450] sm:$0xff] }
  0x5c   :  { %2943 = vmatpush1.bf16.msra.mxu0 %v4185_v21  ;;  %2366 = vmatprep.subr.bf16.mxu1 %v4204_v0  ;;  %v107_v20 = vld [vmem:[%s5469_s0 + $0x2e0] sm:$0xff]  ;;  %v105_v21 = vld [vmem:[%s5469_s0 + $0x2d0] sm:$0xff] }
  0x5d   :  { %2944 = vmatprep.subr.bf16.mxu0 %v4204_v0  ;;  %v3588_v25 = vcombine.high %v103_v19, %v107_v20  ;;  %v3592_v26 = vcombine.high %v105_v21, %v109_v22  ;;  %v3591_v34 = vcombine.low %v105_v21, %v109_v22  ;;  %v157_v12 = vld [vmem:[%s5469_s0 + $0x470] sm:$0xff] }
  0x5e   :  { %v3639_v22 = vcombine.low %v153_v11, %v157_v12 }
  0x5f   :  { %2367 = vmatpush1.bf16.msra.mxu1 %v4186_v24  ;;  %v3583_v24 = vcombine.low %v97_v13, %v101_v14  ;;  %v3627_v13 = vcombine.low %v143_v1, %v147_v2  ;;  %v3631_v14 = vcombine.low %v145_v3, %v149_v4 }
  0x60   :  { %2945 = vmatpush1.bf16.msra.mxu0 %v4187_v27  ;;  %2368 = vmatprep.subr.bf16.mxu1 %v4204_v0  ;;  %v4198_v27 = vld [vmem:[%s5468_s1 + $0xe8] sm:$0xff]  }
  0x61   :  { %2128 = vmatmul.mubr.bf16.gmra.mrb[16].mxu1 %v3531_v28  ;;  %2946 = vmatprep.subr.bf16.mxu0 %v4204_v0  ;;  %v4199_v28 = vld [vmem:[%s5468_s1 + $0x1e8] sm:$0xff]  }
  0x62   :  { %2706 = vmatmul.mubr.bf16.gmra.mrb[16].mxu0 %v3535_v29  ;;  %2135 = vmatprep.mubr.bf16.mxu1 %v3540_v30  ;;  %v111_v29 = vld [vmem:[%s5469_s0 + $0x300] sm:$0xff] }
  0x63   :  { %2713 = vmatprep.mubr.bf16.mxu0 %v3544_v31  ;;  %2369 = vmatpush1.bf16.msra.mxu1 %v4188_v32  ;;  %v115_v30 = vld [vmem:[%s5469_s0 + $0x320] sm:$0xff]  ;;  %v113_v31 = vld [vmem:[%s5469_s0 + $0x310] sm:$0xff] }
  0x64   :  { %2947 = vmatpush1.bf16.msra.mxu0 %v4189_v33  ;;  %2370 = vmatprep.subr.bf16.mxu1 %v4204_v0  ;;  %v117_v32 = vld [vmem:[%s5469_s0 + $0x330] sm:$0xff]  ;;  %v3587_v33 = vcombine.low %v103_v19, %v107_v20  ;;  %v3596_v35 = vcombine.high %v111_v29, %v115_v30 }
  0x65   :  { %2948 = vmatprep.subr.bf16.mxu0 %v4204_v0  ;;  %v161_v19 = vld [vmem:[%s5469_s0 + $0x490] sm:$0xff] }
  0x66   :  { %v165_v20 = vld [vmem:[%s5469_s0 + $0x4b0] sm:$0xff] }
  0x67   :  { %2371 = vmatpush1.bf16.msra.mxu1 %v4190_v36  ;;  %v3600_v36 = vcombine.high %v113_v31, %v117_v32 }
  0x68   :  { %2949 = vmatpush1.bf16.msra.mxu0 %v4191_v39  ;;  %2372 = vmatprep.subr.bf16.mxu1 %v4204_v0  ;;  %v121_v39 = vld [vmem:[%s5469_s0 + $0x350] sm:$0xff] }
  0x69   :  { %2136 = vmatmul.mubr.bf16.gmra.mrb[20].mxu1 %v3539_v40  ;;  %2950 = vmatprep.subr.bf16.mxu0 %v4204_v0  ;;  %v125_v40 = vld [vmem:[%s5469_s0 + $0x370] sm:$0xff] }
  0x6a   :  { %2714 = vmatmul.mubr.bf16.gmra.mrb[20].mxu0 %v3543_v41  ;;  %2143 = vmatprep.mubr.bf16.mxu1 %v3548_v42  ;;  %v3595_v41 = vcombine.low %v111_v29, %v115_v30  ;;  %v3599_v42 = vcombine.low %v113_v31, %v117_v32  ;;  %v3647_v30 = vcombine.low %v161_v19, %v165_v20 }
  0x6b   :  { %2721 = vmatprep.mubr.bf16.mxu0 %v3552_v43  ;;  %2373 = vmatpush1.bf16.msra.mxu1 %v4192_v44  ;;  %v3604_v43 = vcombine.high %v119_v37, %v123_v38  ;;  %v3608_v44 = vcombine.high %v121_v39, %v125_v40 }
  0x6c   :  { %2951 = vmatpush1.bf16.msra.mxu0 %v4193_v45  ;;  %2374 = vmatprep.subr.bf16.mxu1 %v4204_v0  ;;  %v4200_v45 = vld [vmem:[%s5468_s1 + $0xf0] sm:$0xff]  }
  0x6d   :  { %2952 = vmatprep.subr.bf16.mxu0 %v4204_v0 }
  0x6f   :  { %2375 = vmatpush1.bf16.msra.mxu1 %v4194_v54 }
  0x70   :  { %2953 = vmatpush1.bf16.msra.mxu0 %v4195_v55  ;;  %2376 = vmatprep.subr.bf16.mxu1 %v4204_v0  ;;  %v135_v55 = vld [vmem:[%s5469_s0 + $0x3c0] sm:$0xff] }
  0x71   :  { %2144 = vmatmul.mubr.bf16.gmra.mrb[24].mxu1 %v3547_v50  ;;  %2954 = vmatprep.subr.bf16.mxu0 %v4204_v0  ;;  %v133_v50 = vld [vmem:[%s5469_s0 + $0x3b0] sm:$0xff] }
  0x72   :  { %2722 = vmatmul.mubr.bf16.gmra.mrb[24].mxu0 %v3551_v51  ;;  %2151 = vmatprep.mubr.bf16.mxu1 %v3556_v52  ;;  %v3603_v51 = vcombine.low %v119_v37, %v123_v38  ;;  %v3607_v52 = vcombine.low %v121_v39, %v125_v40  ;;  %v3616_v54 = vcombine.high %v129_v49, %v133_v50 }
  0x73   :  { %2729 = vmatprep.mubr.bf16.mxu0 %v3560_v53  ;;  %2377 = vmatpush1.bf16.msra.mxu1 %v4196_v9  ;;  %v3612_v53 = vcombine.high %v127_v47, %v131_v48  ;;  %v3615_v59 = vcombine.low %v129_v49, %v133_v50  ;;  %v151_v9 = vld [vmem:[%s5469_s0 + $0x440] sm:$0xff] }
  0x74   :  { %2955 = vmatpush1.bf16.msra.mxu0 %v4197_v10  ;;  %2378 = vmatprep.subr.bf16.mxu1 %v4204_v0  ;;  %v155_v10 = vld [vmem:[%s5469_s0 + $0x460] sm:$0xff] }
  0x75   :  { %2956 = vmatprep.subr.bf16.mxu0 %v4204_v0  ;;  %v3635_v21 = vcombine.low %v151_v9, %v155_v10  ;;  %v191_v49 = vld [vmem:[%s5469_s0 + $0x580] sm:$0xff] }
  0x76   :  { %v195_v50 = vld [vmem:[%s5469_s0 + $0x5a0] sm:$0xff] }
  0x77   :  { %2379 = vmatpush1.bf16.msra.mxu1 %v4198_v27  ;;  %v169_v27 = vld [vmem:[%s5469_s0 + $0x4d0] sm:$0xff] }
  0x78   :  { %2957 = vmatpush1.bf16.msra.mxu0 %v4199_v28  ;;  %2380 = vmatprep.subr.bf16.mxu1 %v4204_v0  ;;  %v173_v28 = vld [vmem:[%s5469_s0 + $0x4f0] sm:$0xff] }
  0x79   :  { %2152 = vmatmul.mubr.bf16.gmra.mrb[28].mxu1 %v3555_v60  ;;  %2958 = vmatprep.subr.bf16.mxu0 %v4204_v0  ;;  %v3620_v60 = vcombine.high %v135_v55, %v139_v56  ;;  %v3656_v32 = vcombine.high %v169_v27, %v173_v28  ;;  %v3655_v38 = vcombine.low %v169_v27, %v173_v28  ;;  %v233_v27 = vld [vmem:[%s5469_s0 + $0x6d0] sm:$0xff] }
  0x7a   :  { %2730 = vmatmul.mubr.bf16.gmra.mrb[28].mxu0 %v3559_v61  ;;  %2159 = vmatprep.mubr.bf16.mxu1 %v3564_v62  ;;  %v4202_v62 = vld [vmem:[%s5468_s1 + $0xf8] sm:$0xff]   ;;  %v237_v28 = vld [vmem:[%s5469_s0 + $0x6f0] sm:$0xff] }
  0x7b   :  { %2737 = vmatprep.mubr.bf16.mxu0 %v3568_v63  ;;  %2381 = vmatpush1.bf16.msra.mxu1 %v4200_v45  ;;  %v4203_v63 = vld [vmem:[%s5468_s1 + $0x1f8] sm:$0xff]  }
  0x7c   :  { %2959 = vmatpush1.bf16.msra.mxu0 %v4201_v46  ;;  %2382 = vmatprep.subr.bf16.mxu1 %v4204_v0 }
  0x7d   :  { %2960 = vmatprep.subr.bf16.mxu0 %v4204_v0  ;;  %v141_v0 = vld [vmem:[%s5469_s0 + $0x3f0] sm:$0xff] }
  0x7e   :  { %v3624_v61 = vcombine.high %v137_v57, %v141_v0 }
  0x7f   :  { %2383 = vmatpush1.bf16.msra.mxu1 %v4202_v62 }
  0x80   :  { %2961 = vmatpush1.bf16.msra.mxu0 %v4203_v63 }
  0x81   :  { %2160 = vmatmul.mubr.bf16.gmra.mrb[32].mxu1 %v3563_v5  ;;  %v3619_v5 = vcombine.low %v135_v55, %v139_v56  ;;  %v3676_v55 = vcombine.high %v191_v49, %v195_v50 }
  0x82   :  { %2738 = vmatmul.mubr.bf16.gmra.mrb[32].mxu0 %v3567_v6  ;;  %2167 = vmatprep.mubr.bf16.mxu1 %v3572_v7  ;;  %v3623_v6 = vcombine.low %v137_v57, %v141_v0  ;;  %v3628_v7 = vcombine.high %v143_v1, %v147_v2  ;;  %v199_v57 = vld [vmem:[%s5469_s0 + $0x5c0] sm:$0xff] }
  0x83   :  { %2745 = vmatprep.mubr.bf16.mxu0 %v3576_v8  ;;  %v3632_v8 = vcombine.high %v145_v3, %v149_v4  ;;  %v203_v0 = vld [vmem:[%s5469_s0 + $0x5e0] sm:$0xff]  ;;  %v209_v3 = vld [vmem:[%s5469_s0 + $0x610] sm:$0xff] }
  0x84   :  { %v3684_v62 = vcombine.high %v199_v57, %v203_v0  ;;  %v207_v1 = vld [vmem:[%s5469_s0 + $0x600] sm:$0xff]  ;;  %v213_v4 = vld [vmem:[%s5469_s0 + $0x630] sm:$0xff] }
  0x85   :  { %v211_v2 = vld [vmem:[%s5469_s0 + $0x620] sm:$0xff] }
  0x89   :  { %2168 = vmatmul.mubr.bf16.gmra.mrb[36].mxu1 %v3571_v15  ;;  %v3636_v15 = vcombine.high %v151_v9, %v155_v10  ;;  %v215_v9 = vld [vmem:[%s5469_s0 + $0x640] sm:$0xff] }
  0x8a   :  { %2746 = vmatmul.mubr.bf16.gmra.mrb[36].mxu0 %v3575_v16  ;;  %2175 = vmatprep.mubr.bf16.mxu1 %v3580_v17  ;;  %v3640_v16 = vcombine.high %v153_v11, %v157_v12  ;;  %v159_v17 = vld [vmem:[%s5469_s0 + $0x480] sm:$0xff]  ;;  %v217_v11 = vld [vmem:[%s5469_s0 + $0x650] sm:$0xff] }
  0x8b   :  { %2753 = vmatprep.mubr.bf16.mxu0 %v3584_v18  ;;  %v163_v18 = vld [vmem:[%s5469_s0 + $0x4a0] sm:$0xff]  ;;  %v221_v12 = vld [vmem:[%s5469_s0 + $0x670] sm:$0xff] }
  0x8c   :  { %v3643_v29 = vcombine.low %v159_v17, %v163_v18  ;;  %v219_v10 = vld [vmem:[%s5469_s0 + $0x660] sm:$0xff] }
  0x91   :  { %2176 = vmatmul.mubr.bf16.gmra.mrb[40].mxu1 %v3579_v23  ;;  %v3644_v23 = vcombine.high %v159_v17, %v163_v18  ;;  %v223_v17 = vld [vmem:[%s5469_s0 + $0x680] sm:$0xff] }
  0x92   :  { %2754 = vmatmul.mubr.bf16.gmra.mrb[40].mxu0 %v3583_v24  ;;  %2183 = vmatprep.mubr.bf16.mxu1 %v3588_v25  ;;  %v3648_v24 = vcombine.high %v161_v19, %v165_v20  ;;  %v167_v25 = vld [vmem:[%s5469_s0 + $0x4c0] sm:$0xff]  ;;  %v225_v19 = vld [vmem:[%s5469_s0 + $0x690] sm:$0xff] }
  0x93   :  { %2761 = vmatprep.mubr.bf16.mxu0 %v3592_v26  ;;  %v171_v26 = vld [vmem:[%s5469_s0 + $0x4e0] sm:$0xff]  ;;  %v229_v20 = vld [vmem:[%s5469_s0 + $0x6b0] sm:$0xff] }
  0x94   :  { %v3652_v31 = vcombine.high %v167_v25, %v171_v26  ;;  %v3651_v37 = vcombine.low %v167_v25, %v171_v26  ;;  %v227_v18 = vld [vmem:[%s5469_s0 + $0x6a0] sm:$0xff] }
  0x95   :  { %v231_v25 = vld [vmem:[%s5469_s0 + $0x6c0] sm:$0xff] }
  0x96   :  { %v235_v26 = vld [vmem:[%s5469_s0 + $0x6e0] sm:$0xff] }
  0x99   :  { %2184 = vmatmul.mubr.bf16.gmra.mrb[44].mxu1 %v3587_v33  ;;  %v175_v33 = vld [vmem:[%s5469_s0 + $0x500] sm:$0xff] }
  0x9a   :  { %2762 = vmatmul.mubr.bf16.gmra.mrb[44].mxu0 %v3591_v34  ;;  %2191 = vmatprep.mubr.bf16.mxu1 %v3596_v35  ;;  %v179_v34 = vld [vmem:[%s5469_s0 + $0x520] sm:$0xff]  ;;  %v177_v35 = vld [vmem:[%s5469_s0 + $0x510] sm:$0xff] }
  0x9b   :  { %2769 = vmatprep.mubr.bf16.mxu0 %v3600_v36  ;;  %v181_v36 = vld [vmem:[%s5469_s0 + $0x530] sm:$0xff]  ;;  %v3660_v39 = vcombine.high %v175_v33, %v179_v34  ;;  %v3659_v45 = vcombine.low %v175_v33, %v179_v34  ;;  %v239_v33 = vld [vmem:[%s5469_s0 + $0x700] sm:$0xff] }
  0x9c   :  { %v3664_v40 = vcombine.high %v177_v35, %v181_v36  ;;  %v3663_v46 = vcombine.low %v177_v35, %v181_v36  ;;  %v243_v34 = vld [vmem:[%s5469_s0 + $0x720] sm:$0xff]  ;;  %v241_v35 = vld [vmem:[%s5469_s0 + $0x710] sm:$0xff] }
  0x9d   :  { %v245_v36 = vld [vmem:[%s5469_s0 + $0x730] sm:$0xff] }
  0xa1   :  { %2192 = vmatmul.mubr.bf16.gmra.mrb[48].mxu1 %v3595_v41  ;;  %v183_v41 = vld [vmem:[%s5469_s0 + $0x540] sm:$0xff] }
  0xa2   :  { %2770 = vmatmul.mubr.bf16.gmra.mrb[48].mxu0 %v3599_v42  ;;  %2199 = vmatprep.mubr.bf16.mxu1 %v3604_v43  ;;  %v187_v42 = vld [vmem:[%s5469_s0 + $0x560] sm:$0xff]  ;;  %v185_v43 = vld [vmem:[%s5469_s0 + $0x550] sm:$0xff] }
  0xa3   :  { %2777 = vmatprep.mubr.bf16.mxu0 %v3608_v44  ;;  %v189_v44 = vld [vmem:[%s5469_s0 + $0x570] sm:$0xff]  ;;  %v3668_v47 = vcombine.high %v183_v41, %v187_v42 }
  0xa4   :  { %v3672_v48 = vcombine.high %v185_v43, %v189_v44 }
  0xa9   :  { %2200 = vmatmul.mubr.bf16.gmra.mrb[52].mxu1 %v3603_v51  ;;  %v193_v51 = vld [vmem:[%s5469_s0 + $0x590] sm:$0xff] }
  0xaa   :  { %2778 = vmatmul.mubr.bf16.gmra.mrb[52].mxu0 %v3607_v52  ;;  %2207 = vmatprep.mubr.bf16.mxu1 %v3612_v53  ;;  %v197_v52 = vld [vmem:[%s5469_s0 + $0x5b0] sm:$0xff]  ;;  %v3667_v53 = vcombine.low %v183_v41, %v187_v42  ;;  %v247_v41 = vld [vmem:[%s5469_s0 + $0x740] sm:$0xff] }
  0xab   :  { %2785 = vmatprep.mubr.bf16.mxu0 %v3616_v54  ;;  %v3671_v54 = vcombine.low %v185_v43, %v189_v44  ;;  %v3680_v56 = vcombine.high %v193_v51, %v197_v52  ;;  %v251_v42 = vld [vmem:[%s5469_s0 + $0x760] sm:$0xff]  ;;  %v249_v43 = vld [vmem:[%s5469_s0 + $0x750] sm:$0xff] }
  0xac   :  { %v253_v44 = vld [vmem:[%s5469_s0 + $0x770] sm:$0xff] }
  0xb1   :  { %2208 = vmatmul.mubr.bf16.gmra.mrb[56].mxu1 %v3611_v58  ;;  %v201_v58 = vld [vmem:[%s5469_s0 + $0x5d0] sm:$0xff] }
  0xb2   :  { %2786 = vmatmul.mubr.bf16.gmra.mrb[56].mxu0 %v3615_v59  ;;  %2215 = vmatprep.mubr.bf16.mxu1 %v3620_v60  ;;  %v205_v59 = vld [vmem:[%s5469_s0 + $0x5f0] sm:$0xff]  ;;  %v3675_v60 = vcombine.low %v191_v49, %v195_v50  ;;  %v255_v49 = vld [vmem:[%s5469_s0 + $0x780] sm:$0xff] }
  0xb3   :  { %2793 = vmatprep.mubr.bf16.mxu0 %v3624_v61  ;;  %v3679_v61 = vcombine.low %v193_v51, %v197_v52  ;;  %v3688_v63 = vcombine.high %v201_v58, %v205_v59  ;;  %v259_v50 = vld [vmem:[%s5469_s0 + $0x7a0] sm:$0xff]  ;;  %v257_v51 = vld [vmem:[%s5469_s0 + $0x790] sm:$0xff] }
  0xb4   :  { %v261_v52 = vld [vmem:[%s5469_s0 + $0x7b0] sm:$0xff] }
  0xb9   :  { %2216 = vmatmul.mubr.bf16.gmra.mrb[60].mxu1 %v3619_v5  ;;  %v3683_v5 = vcombine.low %v199_v57, %v203_v0  ;;  %v263_v57 = vld [vmem:[%s5469_s0 + $0x7c0] sm:$0xff] }
  0xba   :  { %2794 = vmatmul.mubr.bf16.gmra.mrb[60].mxu0 %v3623_v6  ;;  %2223 = vmatprep.mubr.bf16.mxu1 %v3628_v7  ;;  %v3687_v6 = vcombine.low %v201_v58, %v205_v59  ;;  %v3692_v7 = vcombine.high %v207_v1, %v211_v2  ;;  %v267_v0 = vld [vmem:[%s5469_s0 + $0x7e0] sm:$0xff]  ;;  %v265_v58 = vld [vmem:[%s5469_s0 + $0x7d0] sm:$0xff] }
  0xbb   :  { %2801 = vmatprep.mubr.bf16.mxu0 %v3632_v8  ;;  %v3696_v8 = vcombine.high %v209_v3, %v213_v4  ;;  %v269_v59 = vld [vmem:[%s5469_s0 + $0x7f0] sm:$0xff] }
  0xc1   :  { %2224 = vmatmul.mubr.bf16.gmra.mrb[64].mxu1 %v3627_v13  ;;  %v3691_v13 = vcombine.low %v207_v1, %v211_v2  ;;  %v16_v1 = vld [vmem:[%s5469_s0 + $0x8] sm:$0xff] }
  0xc2   :  { %2802 = vmatmul.mubr.bf16.gmra.mrb[64].mxu0 %v3631_v14  ;;  %2231 = vmatprep.mubr.bf16.mxu1 %v3636_v15  ;;  %v3695_v14 = vcombine.low %v209_v3, %v213_v4  ;;  %v3700_v15 = vcombine.high %v215_v9, %v219_v10  ;;  %v20_v2 = vld [vmem:[%s5469_s0 + $0x28] sm:$0xff]  ;;  %v18_v3 = vld [vmem:[%s5469_s0 + $0x18] sm:$0xff] }
  0xc3   :  { %2809 = vmatprep.mubr.bf16.mxu0 %v3640_v16  ;;  %v3704_v16 = vcombine.high %v217_v11, %v221_v12  ;;  %v22_v4 = vld [vmem:[%s5469_s0 + $0x38] sm:$0xff] }
  0xc9   :  { %2232 = vmatmul.mubr.bf16.gmra.mrb[68].mxu1 %v3635_v21  ;;  %v3699_v21 = vcombine.low %v215_v9, %v219_v10  ;;  %v24_v9 = vld [vmem:[%s5469_s0 + $0x48] sm:$0xff] }
  0xca   :  { %2810 = vmatmul.mubr.bf16.gmra.mrb[68].mxu0 %v3639_v22  ;;  %2239 = vmatprep.mubr.bf16.mxu1 %v3644_v23  ;;  %v3703_v22 = vcombine.low %v217_v11, %v221_v12  ;;  %v3708_v23 = vcombine.high %v223_v17, %v227_v18  ;;  %v28_v10 = vld [vmem:[%s5469_s0 + $0x68] sm:$0xff]  ;;  %v26_v11 = vld [vmem:[%s5469_s0 + $0x58] sm:$0xff] }
  0xcb   :  { %2817 = vmatprep.mubr.bf16.mxu0 %v3648_v24  ;;  %v3712_v24 = vcombine.high %v225_v19, %v229_v20  ;;  %v30_v12 = vld [vmem:[%s5469_s0 + $0x78] sm:$0xff] }
  0xd1   :  { %2240 = vmatmul.mubr.bf16.gmra.mrb[72].mxu1 %v3643_v29  ;;  %v3707_v29 = vcombine.low %v223_v17, %v227_v18  ;;  %v32_v17 = vld [vmem:[%s5469_s0 + $0x88] sm:$0xff] }
  0xd2   :  { %2818 = vmatmul.mubr.bf16.gmra.mrb[72].mxu0 %v3647_v30  ;;  %2247 = vmatprep.mubr.bf16.mxu1 %v3652_v31  ;;  %v3711_v30 = vcombine.low %v225_v19, %v229_v20  ;;  %v3716_v31 = vcombine.high %v231_v25, %v235_v26  ;;  %v36_v18 = vld [vmem:[%s5469_s0 + $0xa8] sm:$0xff]  ;;  %v34_v19 = vld [vmem:[%s5469_s0 + $0x98] sm:$0xff] }
  0xd3   :  { %2825 = vmatprep.mubr.bf16.mxu0 %v3656_v32  ;;  %v3720_v32 = vcombine.high %v233_v27, %v237_v28  ;;  %v38_v20 = vld [vmem:[%s5469_s0 + $0xb8] sm:$0xff] }
  0xd9   :  { %2248 = vmatmul.mubr.bf16.gmra.mrb[76].mxu1 %v3651_v37  ;;  %v3715_v37 = vcombine.low %v231_v25, %v235_v26  ;;  %v40_v25 = vld [vmem:[%s5469_s0 + $0xc8] sm:$0xff] }
  0xda   :  { %2826 = vmatmul.mubr.bf16.gmra.mrb[76].mxu0 %v3655_v38  ;;  %2255 = vmatprep.mubr.bf16.mxu1 %v3660_v39  ;;  %v3719_v38 = vcombine.low %v233_v27, %v237_v28  ;;  %v3724_v39 = vcombine.high %v239_v33, %v243_v34  ;;  %v44_v26 = vld [vmem:[%s5469_s0 + $0xe8] sm:$0xff]  ;;  %v42_v27 = vld [vmem:[%s5469_s0 + $0xd8] sm:$0xff] }
  0xdb   :  { %2833 = vmatprep.mubr.bf16.mxu0 %v3664_v40  ;;  %v3728_v40 = vcombine.high %v241_v35, %v245_v36  ;;  %v46_v28 = vld [vmem:[%s5469_s0 + $0xf8] sm:$0xff] }
  0xe1   :  { %2256 = vmatmul.mubr.bf16.gmra.mrb[80].mxu1 %v3659_v45  ;;  %v3723_v45 = vcombine.low %v239_v33, %v243_v34  ;;  %v48_v33 = vld [vmem:[%s5469_s0 + $0x108] sm:$0xff] }
  0xe2   :  { %2834 = vmatmul.mubr.bf16.gmra.mrb[80].mxu0 %v3663_v46  ;;  %2263 = vmatprep.mubr.bf16.mxu1 %v3668_v47  ;;  %v3727_v46 = vcombine.low %v241_v35, %v245_v36  ;;  %v3732_v47 = vcombine.high %v247_v41, %v251_v42  ;;  %v52_v34 = vld [vmem:[%s5469_s0 + $0x128] sm:$0xff]  ;;  %v50_v35 = vld [vmem:[%s5469_s0 + $0x118] sm:$0xff] }
  0xe3   :  { %2841 = vmatprep.mubr.bf16.mxu0 %v3672_v48  ;;  %v3736_v48 = vcombine.high %v249_v43, %v253_v44  ;;  %v54_v36 = vld [vmem:[%s5469_s0 + $0x138] sm:$0xff] }
  0xe9   :  { %2264 = vmatmul.mubr.bf16.gmra.mrb[84].mxu1 %v3667_v53  ;;  %v3731_v53 = vcombine.low %v247_v41, %v251_v42  ;;  %v56_v41 = vld [vmem:[%s5469_s0 + $0x148] sm:$0xff] }
  0xea   :  { %2842 = vmatmul.mubr.bf16.gmra.mrb[84].mxu0 %v3671_v54  ;;  %2271 = vmatprep.mubr.bf16.mxu1 %v3676_v55  ;;  %v3735_v54 = vcombine.low %v249_v43, %v253_v44  ;;  %v3740_v55 = vcombine.high %v255_v49, %v259_v50  ;;  %v60_v42 = vld [vmem:[%s5469_s0 + $0x168] sm:$0xff]  ;;  %v58_v43 = vld [vmem:[%s5469_s0 + $0x158] sm:$0xff] }
  0xeb   :  { %2849 = vmatprep.mubr.bf16.mxu0 %v3680_v56  ;;  %v3744_v56 = vcombine.high %v257_v51, %v261_v52  ;;  %v62_v44 = vld [vmem:[%s5469_s0 + $0x178] sm:$0xff] }
  0xf1   :  { %2272 = vmatmul.mubr.bf16.gmra.mrb[88].mxu1 %v3675_v60  ;;  %v3739_v60 = vcombine.low %v255_v49, %v259_v50  ;;  %v64_v49 = vld [vmem:[%s5469_s0 + $0x188] sm:$0xff] }
  0xf2   :  { %2850 = vmatmul.mubr.bf16.gmra.mrb[88].mxu0 %v3679_v61  ;;  %2279 = vmatprep.mubr.bf16.mxu1 %v3684_v62  ;;  %v3743_v61 = vcombine.low %v257_v51, %v261_v52  ;;  %v3748_v62 = vcombine.high %v263_v57, %v267_v0  ;;  %v68_v50 = vld [vmem:[%s5469_s0 + $0x1a8] sm:$0xff]  ;;  %v66_v51 = vld [vmem:[%s5469_s0 + $0x198] sm:$0xff] }
  0xf3   :  { %2857 = vmatprep.mubr.bf16.mxu0 %v3688_v63  ;;  %v3752_v63 = vcombine.high %v265_v58, %v269_v59  ;;  %v70_v52 = vld [vmem:[%s5469_s0 + $0x1b8] sm:$0xff] }
  0xf9   :  { %2280 = vmatmul.mubr.bf16.gmra.mrb[92].mxu1 %v3683_v5  ;;  %v3747_v5 = vcombine.low %v263_v57, %v267_v0  ;;  %v72_v57 = vld [vmem:[%s5469_s0 + $0x1c8] sm:$0xff] }
  0xfa   :  { %2858 = vmatmul.mubr.bf16.gmra.mrb[92].mxu0 %v3687_v6  ;;  %2287 = vmatprep.mubr.bf16.mxu1 %v3692_v7  ;;  %v3751_v6 = vcombine.low %v265_v58, %v269_v59  ;;  %v3502_v7 = vcombine.high %v16_v1, %v20_v2  ;;  %v76_v0 = vld [vmem:[%s5469_s0 + $0x1e8] sm:$0xff]  ;;  %v74_v58 = vld [vmem:[%s5469_s0 + $0x1d8] sm:$0xff] }
  0xfb   :  { %2865 = vmatprep.mubr.bf16.mxu0 %v3696_v8  ;;  %v3506_v8 = vcombine.high %v18_v3, %v22_v4  ;;  %v78_v59 = vld [vmem:[%s5469_s0 + $0x1f8] sm:$0xff] }
 0x101   :  { %2288 = vmatmul.mubr.bf16.gmra.mrb[96].mxu1 %v3691_v13  ;;  %v3501_v13 = vcombine.low %v16_v1, %v20_v2  ;;  %v80_v1 = vld [vmem:[%s5469_s0 + $0x208] sm:$0xff] }
 0x102   :  { %2866 = vmatmul.mubr.bf16.gmra.mrb[96].mxu0 %v3695_v14  ;;  %2295 = vmatprep.mubr.bf16.mxu1 %v3700_v15  ;;  %v3505_v14 = vcombine.low %v18_v3, %v22_v4  ;;  %v3510_v15 = vcombine.high %v24_v9, %v28_v10  ;;  %v84_v2 = vld [vmem:[%s5469_s0 + $0x228] sm:$0xff]  ;;  %v82_v3 = vld [vmem:[%s5469_s0 + $0x218] sm:$0xff] }
 0x103   :  { %2873 = vmatprep.mubr.bf16.mxu0 %v3704_v16  ;;  %v3514_v16 = vcombine.high %v26_v11, %v30_v12  ;;  %v86_v4 = vld [vmem:[%s5469_s0 + $0x238] sm:$0xff] }
 0x109   :  { %2296 = vmatmul.mubr.bf16.gmra.mrb[100].mxu1 %v3699_v21  ;;  %v3509_v21 = vcombine.low %v24_v9, %v28_v10  ;;  %v88_v9 = vld [vmem:[%s5469_s0 + $0x248] sm:$0xff] }
 0x10a   :  { %2874 = vmatmul.mubr.bf16.gmra.mrb[100].mxu0 %v3703_v22  ;;  %2303 = vmatprep.mubr.bf16.mxu1 %v3708_v23  ;;  %v3513_v22 = vcombine.low %v26_v11, %v30_v12  ;;  %v3518_v23 = vcombine.high %v32_v17, %v36_v18  ;;  %v92_v10 = vld [vmem:[%s5469_s0 + $0x268] sm:$0xff]  ;;  %v90_v11 = vld [vmem:[%s5469_s0 + $0x258] sm:$0xff] }
 0x10b   :  { %2881 = vmatprep.mubr.bf16.mxu0 %v3712_v24  ;;  %v3522_v24 = vcombine.high %v34_v19, %v38_v20  ;;  %v94_v12 = vld [vmem:[%s5469_s0 + $0x278] sm:$0xff] }
 0x111   :  { %2304 = vmatmul.mubr.bf16.gmra.mrb[104].mxu1 %v3707_v29  ;;  %v3517_v29 = vcombine.low %v32_v17, %v36_v18  ;;  %v96_v17 = vld [vmem:[%s5469_s0 + $0x288] sm:$0xff] }
 0x112   :  { %2882 = vmatmul.mubr.bf16.gmra.mrb[104].mxu0 %v3711_v30  ;;  %2311 = vmatprep.mubr.bf16.mxu1 %v3716_v31  ;;  %v3521_v30 = vcombine.low %v34_v19, %v38_v20  ;;  %v3526_v31 = vcombine.high %v40_v25, %v44_v26  ;;  %v100_v18 = vld [vmem:[%s5469_s0 + $0x2a8] sm:$0xff]  ;;  %v98_v19 = vld [vmem:[%s5469_s0 + $0x298] sm:$0xff] }
 0x113   :  { %2889 = vmatprep.mubr.bf16.mxu0 %v3720_v32  ;;  %v3530_v32 = vcombine.high %v42_v27, %v46_v28  ;;  %v102_v20 = vld [vmem:[%s5469_s0 + $0x2b8] sm:$0xff] }
 0x119   :  { %2312 = vmatmul.mubr.bf16.gmra.mrb[108].mxu1 %v3715_v37  ;;  %v3525_v37 = vcombine.low %v40_v25, %v44_v26  ;;  %v104_v25 = vld [vmem:[%s5469_s0 + $0x2c8] sm:$0xff] }
 0x11a   :  { %2890 = vmatmul.mubr.bf16.gmra.mrb[108].mxu0 %v3719_v38  ;;  %2319 = vmatprep.mubr.bf16.mxu1 %v3724_v39  ;;  %v3529_v38 = vcombine.low %v42_v27, %v46_v28  ;;  %v3534_v39 = vcombine.high %v48_v33, %v52_v34  ;;  %v108_v26 = vld [vmem:[%s5469_s0 + $0x2e8] sm:$0xff]  ;;  %v106_v27 = vld [vmem:[%s5469_s0 + $0x2d8] sm:$0xff] }
 0x11b   :  { %2897 = vmatprep.mubr.bf16.mxu0 %v3728_v40  ;;  %v3538_v40 = vcombine.high %v50_v35, %v54_v36  ;;  %v110_v28 = vld [vmem:[%s5469_s0 + $0x2f8] sm:$0xff] }
 0x121   :  { %2320 = vmatmul.mubr.bf16.gmra.mrb[112].mxu1 %v3723_v45  ;;  %v3533_v45 = vcombine.low %v48_v33, %v52_v34  ;;  %v112_v33 = vld [vmem:[%s5469_s0 + $0x308] sm:$0xff] }
 0x122   :  { %2898 = vmatmul.mubr.bf16.gmra.mrb[112].mxu0 %v3727_v46  ;;  %2327 = vmatprep.mubr.bf16.mxu1 %v3732_v47  ;;  %v3537_v46 = vcombine.low %v50_v35, %v54_v36  ;;  %v3542_v47 = vcombine.high %v56_v41, %v60_v42  ;;  %v116_v34 = vld [vmem:[%s5469_s0 + $0x328] sm:$0xff]  ;;  %v114_v35 = vld [vmem:[%s5469_s0 + $0x318] sm:$0xff] }
 0x123   :  { %2905 = vmatprep.mubr.bf16.mxu0 %v3736_v48  ;;  %v3546_v48 = vcombine.high %v58_v43, %v62_v44  ;;  %v118_v36 = vld [vmem:[%s5469_s0 + $0x338] sm:$0xff] }
 0x129   :  { %2328 = vmatmul.mubr.bf16.gmra.mrb[116].mxu1 %v3731_v53  ;;  %v3541_v53 = vcombine.low %v56_v41, %v60_v42  ;;  %v120_v41 = vld [vmem:[%s5469_s0 + $0x348] sm:$0xff] }
 0x12a   :  { %2906 = vmatmul.mubr.bf16.gmra.mrb[116].mxu0 %v3735_v54  ;;  %2335 = vmatprep.mubr.bf16.mxu1 %v3740_v55  ;;  %v3545_v54 = vcombine.low %v58_v43, %v62_v44  ;;  %v3550_v55 = vcombine.high %v64_v49, %v68_v50  ;;  %v124_v42 = vld [vmem:[%s5469_s0 + $0x368] sm:$0xff]  ;;  %v122_v43 = vld [vmem:[%s5469_s0 + $0x358] sm:$0xff] }
 0x12b   :  { %2913 = vmatprep.mubr.bf16.mxu0 %v3744_v56  ;;  %v3554_v56 = vcombine.high %v66_v51, %v70_v52  ;;  %v126_v44 = vld [vmem:[%s5469_s0 + $0x378] sm:$0xff] }
 0x131   :  { %2336 = vmatmul.mubr.bf16.gmra.mrb[120].mxu1 %v3739_v60  ;;  %v3549_v60 = vcombine.low %v64_v49, %v68_v50  ;;  %v128_v49 = vld [vmem:[%s5469_s0 + $0x388] sm:$0xff] }
 0x132   :  { %2914 = vmatmul.mubr.bf16.gmra.mrb[120].mxu0 %v3743_v61  ;;  %2343 = vmatprep.mubr.bf16.mxu1 %v3748_v62  ;;  %v3553_v61 = vcombine.low %v66_v51, %v70_v52  ;;  %v3558_v62 = vcombine.high %v72_v57, %v76_v0  ;;  %v132_v50 = vld [vmem:[%s5469_s0 + $0x3a8] sm:$0xff]  ;;  %v130_v51 = vld [vmem:[%s5469_s0 + $0x398] sm:$0xff] }
 0x133   :  { %2921 = vmatprep.mubr.bf16.mxu0 %v3752_v63  ;;  %v3562_v63 = vcombine.high %v74_v58, %v78_v59  ;;  %v134_v52 = vld [vmem:[%s5469_s0 + $0x3b8] sm:$0xff] }
 0x139   :  { %2344 = vmatmul.mubr.bf16.gmra.mrb[124].mxu1 %v3747_v5  ;;  %v3557_v5 = vcombine.low %v72_v57, %v76_v0  ;;  %v136_v57 = vld [vmem:[%s5469_s0 + $0x3c8] sm:$0xff] }
 0x13a   :  { %2922 = vmatmul.mubr.bf16.gmra.mrb[124].mxu0 %v3751_v6  ;;  %2384 = vmatprep.mubr.bf16.mxu1 %v3502_v7  ;;  %v3561_v6 = vcombine.low %v74_v58, %v78_v59  ;;  %v3566_v7 = vcombine.high %v80_v1, %v84_v2  ;;  %v140_v0 = vld [vmem:[%s5469_s0 + $0x3e8] sm:$0xff]  ;;  %v138_v58 = vld [vmem:[%s5469_s0 + $0x3d8] sm:$0xff] }
 0x13b   :  { %2962 = vmatprep.mubr.bf16.mxu0 %v3506_v8  ;;  %v3570_v8 = vcombine.high %v82_v3, %v86_v4  ;;  %v142_v59 = vld [vmem:[%s5469_s0 + $0x3f8] sm:$0xff] }
 0x141   :  { %2385 = vmatmul.mubr.bf16.vlgmr.msra.gmra.mrb[0].mxu1 %v3501_v13  ;;  %v3565_v13 = vcombine.low %v80_v1, %v84_v2  ;;  %v144_v1 = vld [vmem:[%s5469_s0 + $0x408] sm:$0xff] }
 0x142   :  { %2963 = vmatmul.mubr.bf16.vlgmr.msra.gmra.mrb[0].mxu0 %v3505_v14  ;;  %2392 = vmatprep.mubr.bf16.mxu1 %v3510_v15  ;;  %v3569_v14 = vcombine.low %v82_v3, %v86_v4  ;;  %v3574_v15 = vcombine.high %v88_v9, %v92_v10  ;;  %v148_v2 = vld [vmem:[%s5469_s0 + $0x428] sm:$0xff]  ;;  %v146_v3 = vld [vmem:[%s5469_s0 + $0x418] sm:$0xff] }
 0x143   :  { %2970 = vmatprep.mubr.bf16.mxu0 %v3514_v16  ;;  %v3578_v16 = vcombine.high %v90_v11, %v94_v12  ;;  %v150_v4 = vld [vmem:[%s5469_s0 + $0x438] sm:$0xff] }
 0x149   :  { %2393 = vmatmul.mubr.bf16.gmra.mrb[4].mxu1 %v3509_v21  ;;  %v3573_v21 = vcombine.low %v88_v9, %v92_v10  ;;  %v152_v9 = vld [vmem:[%s5469_s0 + $0x448] sm:$0xff] }
 0x14a   :  { %2971 = vmatmul.mubr.bf16.gmra.mrb[4].mxu0 %v3513_v22  ;;  %2400 = vmatprep.mubr.bf16.mxu1 %v3518_v23  ;;  %v3577_v22 = vcombine.low %v90_v11, %v94_v12  ;;  %v3582_v23 = vcombine.high %v96_v17, %v100_v18  ;;  %v156_v10 = vld [vmem:[%s5469_s0 + $0x468] sm:$0xff]  ;;  %v154_v11 = vld [vmem:[%s5469_s0 + $0x458] sm:$0xff] }
 0x14b   :  { %2978 = vmatprep.mubr.bf16.mxu0 %v3522_v24  ;;  %v3586_v24 = vcombine.high %v98_v19, %v102_v20  ;;  %v158_v12 = vld [vmem:[%s5469_s0 + $0x478] sm:$0xff] }
 0x151   :  { %2401 = vmatmul.mubr.bf16.gmra.mrb[8].mxu1 %v3517_v29  ;;  %v3581_v29 = vcombine.low %v96_v17, %v100_v18  ;;  %v160_v17 = vld [vmem:[%s5469_s0 + $0x488] sm:$0xff] }
 0x152   :  { %2979 = vmatmul.mubr.bf16.gmra.mrb[8].mxu0 %v3521_v30  ;;  %2408 = vmatprep.mubr.bf16.mxu1 %v3526_v31  ;;  %v3585_v30 = vcombine.low %v98_v19, %v102_v20  ;;  %v3590_v31 = vcombine.high %v104_v25, %v108_v26  ;;  %v164_v18 = vld [vmem:[%s5469_s0 + $0x4a8] sm:$0xff]  ;;  %v162_v19 = vld [vmem:[%s5469_s0 + $0x498] sm:$0xff] }
 0x153   :  { %2986 = vmatprep.mubr.bf16.mxu0 %v3530_v32  ;;  %v3594_v32 = vcombine.high %v106_v27, %v110_v28  ;;  %v166_v20 = vld [vmem:[%s5469_s0 + $0x4b8] sm:$0xff] }
 0x159   :  { %2409 = vmatmul.mubr.bf16.gmra.mrb[12].mxu1 %v3525_v37  ;;  %v3589_v37 = vcombine.low %v104_v25, %v108_v26  ;;  %v168_v25 = vld [vmem:[%s5469_s0 + $0x4c8] sm:$0xff] }
 0x15a   :  { %2987 = vmatmul.mubr.bf16.gmra.mrb[12].mxu0 %v3529_v38  ;;  %2416 = vmatprep.mubr.bf16.mxu1 %v3534_v39  ;;  %v3593_v38 = vcombine.low %v106_v27, %v110_v28  ;;  %v3598_v39 = vcombine.high %v112_v33, %v116_v34  ;;  %v172_v26 = vld [vmem:[%s5469_s0 + $0x4e8] sm:$0xff]  ;;  %v170_v27 = vld [vmem:[%s5469_s0 + $0x4d8] sm:$0xff] }
 0x15b   :  { %2994 = vmatprep.mubr.bf16.mxu0 %v3538_v40  ;;  %v3602_v40 = vcombine.high %v114_v35, %v118_v36  ;;  %v174_v28 = vld [vmem:[%s5469_s0 + $0x4f8] sm:$0xff] }
 0x161   :  { %2417 = vmatmul.mubr.bf16.gmra.mrb[16].mxu1 %v3533_v45  ;;  %v3597_v45 = vcombine.low %v112_v33, %v116_v34  ;;  %v176_v33 = vld [vmem:[%s5469_s0 + $0x508] sm:$0xff] }
 0x162   :  { %2995 = vmatmul.mubr.bf16.gmra.mrb[16].mxu0 %v3537_v46  ;;  %2424 = vmatprep.mubr.bf16.mxu1 %v3542_v47  ;;  %v3601_v46 = vcombine.low %v114_v35, %v118_v36  ;;  %v3606_v47 = vcombine.high %v120_v41, %v124_v42  ;;  %v180_v34 = vld [vmem:[%s5469_s0 + $0x528] sm:$0xff]  ;;  %v178_v35 = vld [vmem:[%s5469_s0 + $0x518] sm:$0xff] }
 0x163   :  { %3002 = vmatprep.mubr.bf16.mxu0 %v3546_v48  ;;  %v3610_v48 = vcombine.high %v122_v43, %v126_v44  ;;  %v182_v36 = vld [vmem:[%s5469_s0 + $0x538] sm:$0xff] }
 0x169   :  { %2425 = vmatmul.mubr.bf16.gmra.mrb[20].mxu1 %v3541_v53  ;;  %v3605_v53 = vcombine.low %v120_v41, %v124_v42  ;;  %v184_v41 = vld [vmem:[%s5469_s0 + $0x548] sm:$0xff] }
 0x16a   :  { %3003 = vmatmul.mubr.bf16.gmra.mrb[20].mxu0 %v3545_v54  ;;  %2432 = vmatprep.mubr.bf16.mxu1 %v3550_v55  ;;  %v3609_v54 = vcombine.low %v122_v43, %v126_v44  ;;  %v3614_v55 = vcombine.high %v128_v49, %v132_v50  ;;  %v188_v42 = vld [vmem:[%s5469_s0 + $0x568] sm:$0xff]  ;;  %v186_v43 = vld [vmem:[%s5469_s0 + $0x558] sm:$0xff] }
 0x16b   :  { %3010 = vmatprep.mubr.bf16.mxu0 %v3554_v56  ;;  %v3618_v56 = vcombine.high %v130_v51, %v134_v52  ;;  %v190_v44 = vld [vmem:[%s5469_s0 + $0x578] sm:$0xff] }
 0x171   :  { %2433 = vmatmul.mubr.bf16.gmra.mrb[24].mxu1 %v3549_v60  ;;  %v3613_v60 = vcombine.low %v128_v49, %v132_v50  ;;  %v192_v49 = vld [vmem:[%s5469_s0 + $0x588] sm:$0xff] }
 0x172   :  { %3011 = vmatmul.mubr.bf16.gmra.mrb[24].mxu0 %v3553_v61  ;;  %2440 = vmatprep.mubr.bf16.mxu1 %v3558_v62  ;;  %v3617_v61 = vcombine.low %v130_v51, %v134_v52  ;;  %v3622_v62 = vcombine.high %v136_v57, %v140_v0  ;;  %v196_v50 = vld [vmem:[%s5469_s0 + $0x5a8] sm:$0xff]  ;;  %v194_v51 = vld [vmem:[%s5469_s0 + $0x598] sm:$0xff] }
 0x173   :  { %3018 = vmatprep.mubr.bf16.mxu0 %v3562_v63  ;;  %v3626_v63 = vcombine.high %v138_v58, %v142_v59  ;;  %v198_v52 = vld [vmem:[%s5469_s0 + $0x5b8] sm:$0xff] }
 0x179   :  { %2441 = vmatmul.mubr.bf16.gmra.mrb[28].mxu1 %v3557_v5  ;;  %v3621_v5 = vcombine.low %v136_v57, %v140_v0  ;;  %v200_v57 = vld [vmem:[%s5469_s0 + $0x5c8] sm:$0xff] }
 0x17a   :  { %3019 = vmatmul.mubr.bf16.gmra.mrb[28].mxu0 %v3561_v6  ;;  %2448 = vmatprep.mubr.bf16.mxu1 %v3566_v7  ;;  %v3625_v6 = vcombine.low %v138_v58, %v142_v59  ;;  %v3630_v7 = vcombine.high %v144_v1, %v148_v2  ;;  %v204_v0 = vld [vmem:[%s5469_s0 + $0x5e8] sm:$0xff]  ;;  %v202_v58 = vld [vmem:[%s5469_s0 + $0x5d8] sm:$0xff] }
 0x17b   :  { %3026 = vmatprep.mubr.bf16.mxu0 %v3570_v8  ;;  %v3634_v8 = vcombine.high %v146_v3, %v150_v4  ;;  %v206_v59 = vld [vmem:[%s5469_s0 + $0x5f8] sm:$0xff] }
 0x181   :  { %2449 = vmatmul.mubr.bf16.gmra.mrb[32].mxu1 %v3565_v13  ;;  %v3629_v13 = vcombine.low %v144_v1, %v148_v2  ;;  %v208_v1 = vld [vmem:[%s5469_s0 + $0x608] sm:$0xff] }
 0x182   :  { %3027 = vmatmul.mubr.bf16.gmra.mrb[32].mxu0 %v3569_v14  ;;  %2456 = vmatprep.mubr.bf16.mxu1 %v3574_v15  ;;  %v3633_v14 = vcombine.low %v146_v3, %v150_v4  ;;  %v3638_v15 = vcombine.high %v152_v9, %v156_v10  ;;  %v212_v2 = vld [vmem:[%s5469_s0 + $0x628] sm:$0xff]  ;;  %v210_v3 = vld [vmem:[%s5469_s0 + $0x618] sm:$0xff] }
 0x183   :  { %3034 = vmatprep.mubr.bf16.mxu0 %v3578_v16  ;;  %v3642_v16 = vcombine.high %v154_v11, %v158_v12  ;;  %v214_v4 = vld [vmem:[%s5469_s0 + $0x638] sm:$0xff] }
 0x189   :  { %2457 = vmatmul.mubr.bf16.gmra.mrb[36].mxu1 %v3573_v21  ;;  %v3637_v21 = vcombine.low %v152_v9, %v156_v10  ;;  %v216_v9 = vld [vmem:[%s5469_s0 + $0x648] sm:$0xff] }
 0x18a   :  { %3035 = vmatmul.mubr.bf16.gmra.mrb[36].mxu0 %v3577_v22  ;;  %2464 = vmatprep.mubr.bf16.mxu1 %v3582_v23  ;;  %v3641_v22 = vcombine.low %v154_v11, %v158_v12  ;;  %v3646_v23 = vcombine.high %v160_v17, %v164_v18  ;;  %v220_v10 = vld [vmem:[%s5469_s0 + $0x668] sm:$0xff]  ;;  %v218_v11 = vld [vmem:[%s5469_s0 + $0x658] sm:$0xff] }
 0x18b   :  { %3042 = vmatprep.mubr.bf16.mxu0 %v3586_v24  ;;  %v3650_v24 = vcombine.high %v162_v19, %v166_v20  ;;  %v222_v12 = vld [vmem:[%s5469_s0 + $0x678] sm:$0xff] }
 0x191   :  { %2465 = vmatmul.mubr.bf16.gmra.mrb[40].mxu1 %v3581_v29  ;;  %v3645_v29 = vcombine.low %v160_v17, %v164_v18  ;;  %v224_v17 = vld [vmem:[%s5469_s0 + $0x688] sm:$0xff] }
 0x192   :  { %3043 = vmatmul.mubr.bf16.gmra.mrb[40].mxu0 %v3585_v30  ;;  %2472 = vmatprep.mubr.bf16.mxu1 %v3590_v31  ;;  %v3649_v30 = vcombine.low %v162_v19, %v166_v20  ;;  %v3654_v31 = vcombine.high %v168_v25, %v172_v26  ;;  %v228_v18 = vld [vmem:[%s5469_s0 + $0x6a8] sm:$0xff]  ;;  %v226_v19 = vld [vmem:[%s5469_s0 + $0x698] sm:$0xff] }
 0x193   :  { %3050 = vmatprep.mubr.bf16.mxu0 %v3594_v32  ;;  %v3658_v32 = vcombine.high %v170_v27, %v174_v28  ;;  %v230_v20 = vld [vmem:[%s5469_s0 + $0x6b8] sm:$0xff] }
 0x199   :  { %2473 = vmatmul.mubr.bf16.gmra.mrb[44].mxu1 %v3589_v37  ;;  %v3653_v37 = vcombine.low %v168_v25, %v172_v26  ;;  %v232_v25 = vld [vmem:[%s5469_s0 + $0x6c8] sm:$0xff] }
 0x19a   :  { %3051 = vmatmul.mubr.bf16.gmra.mrb[44].mxu0 %v3593_v38  ;;  %2480 = vmatprep.mubr.bf16.mxu1 %v3598_v39  ;;  %v3657_v38 = vcombine.low %v170_v27, %v174_v28  ;;  %v3662_v39 = vcombine.high %v176_v33, %v180_v34  ;;  %v236_v26 = vld [vmem:[%s5469_s0 + $0x6e8] sm:$0xff]  ;;  %v234_v27 = vld [vmem:[%s5469_s0 + $0x6d8] sm:$0xff] }
 0x19b   :  { %3058 = vmatprep.mubr.bf16.mxu0 %v3602_v40  ;;  %v3666_v40 = vcombine.high %v178_v35, %v182_v36  ;;  %v238_v28 = vld [vmem:[%s5469_s0 + $0x6f8] sm:$0xff] }
 0x1a1   :  { %2481 = vmatmul.mubr.bf16.gmra.mrb[48].mxu1 %v3597_v45  ;;  %v3661_v45 = vcombine.low %v176_v33, %v180_v34  ;;  %v240_v33 = vld [vmem:[%s5469_s0 + $0x708] sm:$0xff] }
 0x1a2   :  { %3059 = vmatmul.mubr.bf16.gmra.mrb[48].mxu0 %v3601_v46  ;;  %2488 = vmatprep.mubr.bf16.mxu1 %v3606_v47  ;;  %v3665_v46 = vcombine.low %v178_v35, %v182_v36  ;;  %v3670_v47 = vcombine.high %v184_v41, %v188_v42  ;;  %v244_v34 = vld [vmem:[%s5469_s0 + $0x728] sm:$0xff]  ;;  %v242_v36 = vld [vmem:[%s5469_s0 + $0x718] sm:$0xff] }
 0x1a3   :  { %3066 = vmatprep.mubr.bf16.mxu0 %v3610_v48  ;;  %v3674_v48 = vcombine.high %v186_v43, %v190_v44 }
 0x1a9   :  { %2489 = vmatmul.mubr.bf16.gmra.mrb[52].mxu1 %v3605_v53  ;;  %v3669_v53 = vcombine.low %v184_v41, %v188_v42 }
 0x1aa   :  { %3067 = vmatmul.mubr.bf16.gmra.mrb[52].mxu0 %v3609_v54  ;;  %2496 = vmatprep.mubr.bf16.mxu1 %v3614_v55  ;;  %v3673_v54 = vcombine.low %v186_v43, %v190_v44  ;;  %v3678_v55 = vcombine.high %v192_v49, %v196_v50  ;;  %v3721_v44 = vcombine.low %v234_v27, %v238_v28 }
 0x1ab   :  { %3074 = vmatprep.mubr.bf16.mxu0 %v3618_v56  ;;  %v3682_v56 = vcombine.high %v194_v51, %v198_v52 }
 0x1b1   :  { %2497 = vmatmul.mubr.bf16.gmra.mrb[56].mxu1 %v3613_v60  ;;  %v3677_v60 = vcombine.low %v192_v49, %v196_v50 }
 0x1b2   :  { %3075 = vmatmul.mubr.bf16.gmra.mrb[56].mxu0 %v3617_v61  ;;  %2504 = vmatprep.mubr.bf16.mxu1 %v3622_v62  ;;  %v3681_v61 = vcombine.low %v194_v51, %v198_v52  ;;  %v3686_v62 = vcombine.high %v200_v57, %v204_v0 }
 0x1b3   :  { %3082 = vmatprep.mubr.bf16.mxu0 %v3626_v63  ;;  %v3690_v63 = vcombine.high %v202_v58, %v206_v59 }
 0x1b9   :  { %2505 = vmatmul.mubr.bf16.gmra.mrb[60].mxu1 %v3621_v5  ;;  %v3685_v5 = vcombine.low %v200_v57, %v204_v0  ;;  %v250_v0 = vld [vmem:[%s5469_s0 + $0x758] sm:$0xff] }
 0x1ba   :  { %3083 = vmatmul.mubr.bf16.gmra.mrb[60].mxu0 %v3625_v6  ;;  %2512 = vmatprep.mubr.bf16.mxu1 %v3630_v7  ;;  %v3689_v6 = vcombine.low %v202_v58, %v206_v59  ;;  %v3694_v7 = vcombine.high %v208_v1, %v212_v2  ;;  %v254_v58 = vld [vmem:[%s5469_s0 + $0x778] sm:$0xff] }
 0x1bb   :  { %3090 = vmatprep.mubr.bf16.mxu0 %v3634_v8  ;;  %v3698_v8 = vcombine.high %v210_v3, %v214_v4 }
 0x1c1   :  { %2513 = vmatmul.mubr.bf16.gmra.mrb[64].mxu1 %v3629_v13  ;;  %v3693_v13 = vcombine.low %v208_v1, %v212_v2 }
 0x1c2   :  { %3091 = vmatmul.mubr.bf16.gmra.mrb[64].mxu0 %v3633_v14  ;;  %2520 = vmatprep.mubr.bf16.mxu1 %v3638_v15  ;;  %v3697_v14 = vcombine.low %v210_v3, %v214_v4  ;;  %v3702_v15 = vcombine.high %v216_v9, %v220_v10 }
 0x1c3   :  { %3098 = vmatprep.mubr.bf16.mxu0 %v3642_v16  ;;  %v3706_v16 = vcombine.high %v218_v11, %v222_v12 }
 0x1c9   :  { %2521 = vmatmul.mubr.bf16.gmra.mrb[68].mxu1 %v3637_v21  ;;  %v3701_v21 = vcombine.low %v216_v9, %v220_v10 }
 0x1ca   :  { %3099 = vmatmul.mubr.bf16.gmra.mrb[68].mxu0 %v3641_v22  ;;  %2528 = vmatprep.mubr.bf16.mxu1 %v3646_v23  ;;  %v3705_v22 = vcombine.low %v218_v11, %v222_v12  ;;  %v3710_v23 = vcombine.high %v224_v17, %v228_v18 }
 0x1cb   :  { %3106 = vmatprep.mubr.bf16.mxu0 %v3650_v24  ;;  %v3714_v24 = vcombine.high %v226_v19, %v230_v20 }
 0x1d1   :  { %2529 = vmatmul.mubr.bf16.gmra.mrb[72].mxu1 %v3645_v29  ;;  %v3709_v29 = vcombine.low %v224_v17, %v228_v18  ;;  %v258_v18 = vld [vmem:[%s5469_s0 + $0x798] sm:$0xff] }
 0x1d2   :  { %3107 = vmatmul.mubr.bf16.gmra.mrb[72].mxu0 %v3649_v30  ;;  %2536 = vmatprep.mubr.bf16.mxu1 %v3654_v31  ;;  %v3713_v30 = vcombine.low %v226_v19, %v230_v20  ;;  %v3718_v31 = vcombine.high %v232_v25, %v236_v26  ;;  %v262_v19 = vld [vmem:[%s5469_s0 + $0x7b8] sm:$0xff] }
 0x1d3   :  { %3114 = vmatprep.mubr.bf16.mxu0 %v3658_v32  ;;  %v3722_v32 = vcombine.high %v234_v27, %v238_v28 }
 0x1d9   :  { %2537 = vmatmul.mubr.bf16.gmra.mrb[76].mxu1 %v3653_v37  ;;  %v246_v37 = vld [vmem:[%s5469_s0 + $0x738] sm:$0xff] }
 0x1da   :  { %3115 = vmatmul.mubr.bf16.gmra.mrb[76].mxu0 %v3657_v38  ;;  %2544 = vmatprep.mubr.bf16.mxu1 %v3662_v39  ;;  %v3729_v2 = vcombine.low %v242_v36, %v246_v37 }
 0x1db   :  { %3122 = vmatprep.mubr.bf16.mxu0 %v3666_v40  ;;  %v3717_v40 = vcombine.low %v232_v25, %v236_v26  ;;  %v3737_v26 = vcombine.low %v250_v0, %v254_v58 }
 0x1e1   :  { %2545 = vmatmul.mubr.bf16.gmra.mrb[80].mxu1 %v3661_v45  ;;  %v3726_v45 = vcombine.high %v240_v33, %v244_v34 }
 0x1e2   :  { %3123 = vmatmul.mubr.bf16.gmra.mrb[80].mxu0 %v3665_v46  ;;  %2552 = vmatprep.mubr.bf16.mxu1 %v3670_v47 }
 0x1e3   :  { %3130 = vmatprep.mubr.bf16.mxu0 %v3674_v48  ;;  %v3730_v48 = vcombine.high %v242_v36, %v246_v37 }
 0x1e9   :  { %2553 = vmatmul.mubr.bf16.gmra.mrb[84].mxu1 %v3669_v53 }
 0x1ea   :  { %3131 = vmatmul.mubr.bf16.gmra.mrb[84].mxu0 %v3673_v54  ;;  %2560 = vmatprep.mubr.bf16.mxu1 %v3678_v55  ;;  %v248_v54 = vld [vmem:[%s5469_s0 + $0x748] sm:$0xff] }
 0x1eb   :  { %3138 = vmatprep.mubr.bf16.mxu0 %v3682_v56  ;;  %v252_v55 = vld [vmem:[%s5469_s0 + $0x768] sm:$0xff] }
 0x1ec   :  { %v3734_v3 = vcombine.high %v248_v54, %v252_v55 }
 0x1f1   :  { %2561 = vmatmul.mubr.bf16.gmra.mrb[88].mxu1 %v3677_v60 }
 0x1f2   :  { %3139 = vmatmul.mubr.bf16.gmra.mrb[88].mxu0 %v3681_v61  ;;  %2568 = vmatprep.mubr.bf16.mxu1 %v3686_v62  ;;  %v3725_v61 = vcombine.low %v240_v33, %v244_v34 }
 0x1f3   :  { %3146 = vmatprep.mubr.bf16.mxu0 %v3690_v63 }
 0x1f9   :  { %2569 = vmatmul.mubr.bf16.gmra.mrb[92].mxu1 %v3685_v5 }
 0x1fa   :  { %3147 = vmatmul.mubr.bf16.gmra.mrb[92].mxu0 %v3689_v6  ;;  %2576 = vmatprep.mubr.bf16.mxu1 %v3694_v7  ;;  %v3738_v6 = vcombine.high %v250_v0, %v254_v58 }
 0x1fb   :  { %3154 = vmatprep.mubr.bf16.mxu0 %v3698_v8 }
 0x201   :  { %2577 = vmatmul.mubr.bf16.gmra.mrb[96].mxu1 %v3693_v13 }
 0x202   :  { %3155 = vmatmul.mubr.bf16.gmra.mrb[96].mxu0 %v3697_v14  ;;  %2584 = vmatprep.mubr.bf16.mxu1 %v3702_v15  ;;  %v256_v14 = vld [vmem:[%s5469_s0 + $0x788] sm:$0xff] }
 0x203   :  { %3162 = vmatprep.mubr.bf16.mxu0 %v3706_v16  ;;  %v260_v15 = vld [vmem:[%s5469_s0 + $0x7a8] sm:$0xff] }
 0x204   :  { %v3742_v27 = vcombine.high %v256_v14, %v260_v15 }
 0x209   :  { %2585 = vmatmul.mubr.bf16.gmra.mrb[100].mxu1 %v3701_v21 }
 0x20a   :  { %3163 = vmatmul.mubr.bf16.gmra.mrb[100].mxu0 %v3705_v22  ;;  %2592 = vmatprep.mubr.bf16.mxu1 %v3710_v23  ;;  %v3733_v22 = vcombine.low %v248_v54, %v252_v55 }
 0x20b   :  { %3170 = vmatprep.mubr.bf16.mxu0 %v3714_v24 }
 0x211   :  { %2593 = vmatmul.mubr.bf16.gmra.mrb[104].mxu1 %v3709_v29 }
 0x212   :  { %3171 = vmatmul.mubr.bf16.gmra.mrb[104].mxu0 %v3713_v30  ;;  %2600 = vmatprep.mubr.bf16.mxu1 %v3718_v31  ;;  %v3746_v30 = vcombine.high %v258_v18, %v262_v19 }
 0x213   :  { %3178 = vmatprep.mubr.bf16.mxu0 %v3722_v32 }
 0x214   :  { %v2386_v35 = vpop.f32.mrb[0].mxu1 }
 0x215   :  { %v2964_v38 = vpop.f32.mrb[0].mxu0  ;;  %v2388_v39 = vpop.f32.mrb[1].mxu1 }
 0x216   :  { %v3819_v41 = vadd.f32 %v2964_v38, %v2386_v35  ;;  %v2966_v42 = vpop.f32.mrb[1].mxu0  ;;  %v2389_v43 = vpop.f32.mrb[2].mxu1  ;;  %v264_v38 = vld [vmem:[%s5469_s0 + $0x7c8] sm:$0xff] }
 0x217   :  { %v2967_v46 = vpop.f32.mrb[2].mxu0  ;;  %v2391_v47 = vpop.f32.mrb[3].mxu1  ;;  %v268_v39 = vld [vmem:[%s5469_s0 + $0x7e8] sm:$0xff]  ;;  %v266_v42 = vld [vmem:[%s5469_s0 + $0x7d8] sm:$0xff] }
 0x218   :  { %3219 = vst [vmem:[%s5470_s2] sm:$0xff] %v3819_v41  ;;  %v3820_v49 = vadd.f32 %v2967_v46, %v2389_v43  ;;  %v2969_v50 = vpop.f32.mrb[3].mxu0  ;;  %v3353_v51 = vmul.f32 %v3819_v41, %v3819_v41  ;;  %v270_v43 = vld [vmem:[%s5469_s0 + $0x7f8] sm:$0xff]  ;;  %v3741_v46 = vcombine.low %v256_v14, %v260_v15 }
 0x219   :  { %2601 = vmatmul.mubr.bf16.gmra.mrb[108].mxu1 %v3717_v40  ;;  %v3745_v50 = vcombine.low %v258_v18, %v262_v19  ;;  %v3754_v54 = vcombine.high %v266_v42, %v270_v43 }
 0x21a   :  { %3220 = vst [vmem:[%s5470_s2 + $0x8] sm:$0xff] %v3820_v49  ;;  %v3283_v52 = vadd.f32 %v3820_v49, %v3819_v41  ;;  %v3354_v53 = vmul.f32 %v3820_v49, %v3820_v49  ;;  %3179 = vmatmul.mubr.bf16.gmra.mrb[108].mxu0 %v3721_v44  ;;  %2608 = vmatprep.mubr.bf16.mxu1 %v3726_v45 }
 0x21b   :  { %3186 = vmatprep.mubr.bf16.mxu0 %v3730_v48 }
 0x21c   :  { %v3417_v56 = vadd.f32 %v3354_v53, %v3353_v51  ;;  %v2394_v57 = vpop.f32.mrb[4].mxu1  ;;  %v3750_v51 = vcombine.high %v264_v38, %v268_v39 }
 0x21d   :  { %v2972_v59 = vpop.f32.mrb[4].mxu0  ;;  %v2396_v60 = vpop.f32.mrb[5].mxu1 }
 0x21e   :  { %v3821_v62 = vadd.f32 %v2972_v59, %v2394_v57  ;;  %v2974_v63 = vpop.f32.mrb[5].mxu0  ;;  %v2397_v1 = vpop.f32.mrb[6].mxu1 }
 0x21f   :  { %v2975_v4 = vpop.f32.mrb[6].mxu0  ;;  %v2399_v5 = vpop.f32.mrb[7].mxu1 }
 0x220   :  { %3221 = vst [vmem:[%s5470_s2 + $0x10] sm:$0xff] %v3821_v62  ;;  %v3284_v7 = vadd.f32 %v3821_v62, %v3283_v52  ;;  %v3355_v8 = vmul.f32 %v3821_v62, %v3821_v62  ;;  %v3822_v9 = vadd.f32 %v2975_v4, %v2397_v1  ;;  %v2977_v10 = vpop.f32.mrb[7].mxu0 }
 0x221   :  { %2609 = vmatmul.mubr.bf16.gmra.mrb[112].mxu1 %v3725_v61 }
 0x222   :  { %v3418_v11 = vadd.f32 %v3417_v56, %v3355_v8  ;;  %3222 = vst [vmem:[%s5470_s2 + $0x18] sm:$0xff] %v3822_v9  ;;  %v3285_v12 = vadd.f32 %v3822_v9, %v3284_v7  ;;  %v3356_v13 = vmul.f32 %v3822_v9, %v3822_v9  ;;  %3187 = vmatmul.mubr.bf16.gmra.mrb[112].mxu0 %v3729_v2 }
 0x223   :  { %2616 = vmatprep.mubr.bf16.mxu1 %v3734_v3  ;;  %3194 = vmatprep.mubr.bf16.mxu0 %v3738_v6  ;;  %v3749_v2 = vcombine.low %v264_v38, %v268_v39  ;;  %v3753_v6 = vcombine.low %v266_v42, %v270_v43 }
 0x224   :  { %v3419_v16 = vadd.f32 %v3418_v11, %v3356_v13  ;;  %v2402_v17 = vpop.f32.mrb[8].mxu1 }
 0x225   :  { %v2980_v20 = vpop.f32.mrb[8].mxu0  ;;  %v2404_v21 = vpop.f32.mrb[9].mxu1 }
 0x226   :  { %v3823_v23 = vadd.f32 %v2980_v20, %v2402_v17  ;;  %v2982_v24 = vpop.f32.mrb[9].mxu0  ;;  %v2405_v25 = vpop.f32.mrb[10].mxu1 }
 0x227   :  { %v2983_v28 = vpop.f32.mrb[10].mxu0  ;;  %v2407_v29 = vpop.f32.mrb[11].mxu1 }
 0x228   :  { %3223 = vst [vmem:[%s5470_s2 + $0x20] sm:$0xff] %v3823_v23  ;;  %v3286_v31 = vadd.f32 %v3823_v23, %v3285_v12  ;;  %v3357_v32 = vmul.f32 %v3823_v23, %v3823_v23  ;;  %v3824_v33 = vadd.f32 %v2983_v28, %v2405_v25  ;;  %v2985_v34 = vpop.f32.mrb[11].mxu0 }
 0x229   :  { %2617 = vmatmul.mubr.bf16.gmra.mrb[116].mxu1 %v3733_v22 }
 0x22a   :  { %v3420_v35 = vadd.f32 %v3419_v16, %v3357_v32  ;;  %3224 = vst [vmem:[%s5470_s2 + $0x28] sm:$0xff] %v3824_v33  ;;  %v3287_v36 = vadd.f32 %v3824_v33, %v3286_v31  ;;  %v3358_v37 = vmul.f32 %v3824_v33, %v3824_v33  ;;  %3195 = vmatmul.mubr.bf16.gmra.mrb[116].mxu0 %v3737_v26 }
 0x22b   :  { %2624 = vmatprep.mubr.bf16.mxu1 %v3742_v27  ;;  %3202 = vmatprep.mubr.bf16.mxu0 %v3746_v30 }
 0x22c   :  { %v3421_v40 = vadd.f32 %v3420_v35, %v3358_v37  ;;  %v2410_v41 = vpop.f32.mrb[12].mxu1 }
 0x22d   :  { %v2988_v44 = vpop.f32.mrb[12].mxu0  ;;  %v2412_v45 = vpop.f32.mrb[13].mxu1 }
 0x22e   :  { %v3825_v47 = vadd.f32 %v2988_v44, %v2410_v41  ;;  %v2990_v48 = vpop.f32.mrb[13].mxu0  ;;  %v2413_v49 = vpop.f32.mrb[14].mxu1 }
 0x22f   :  { %v2991_v52 = vpop.f32.mrb[14].mxu0  ;;  %v2415_v53 = vpop.f32.mrb[15].mxu1 }
 0x230   :  { %3225 = vst [vmem:[%s5470_s2 + $0x30] sm:$0xff] %v3825_v47  ;;  %v3288_v55 = vadd.f32 %v3825_v47, %v3287_v36  ;;  %v3359_v56 = vmul.f32 %v3825_v47, %v3825_v47  ;;  %v3826_v57 = vadd.f32 %v2991_v52, %v2413_v49  ;;  %v2993_v0 = vpop.f32.mrb[15].mxu0 }
 0x231   :  { %2625 = vmatmul.mubr.bf16.gmra.mrb[120].mxu1 %v3741_v46 }
 0x232   :  { %v3422_v58 = vadd.f32 %v3421_v40, %v3359_v56  ;;  %3226 = vst [vmem:[%s5470_s2 + $0x38] sm:$0xff] %v3826_v57  ;;  %v3289_v59 = vadd.f32 %v3826_v57, %v3288_v55  ;;  %v3360_v60 = vmul.f32 %v3826_v57, %v3826_v57  ;;  %3203 = vmatmul.mubr.bf16.gmra.mrb[120].mxu0 %v3745_v50 }
 0x233   :  { %2632 = vmatprep.mubr.bf16.mxu1 %v3750_v51  ;;  %3210 = vmatprep.mubr.bf16.mxu0 %v3754_v54 }
 0x234   :  { %v3423_v61 = vadd.f32 %v3422_v58, %v3360_v60  ;;  %v2418_v62 = vpop.f32.mrb[16].mxu1 }
 0x235   :  { %v2996_v63 = vpop.f32.mrb[16].mxu0  ;;  %v2420_v1 = vpop.f32.mrb[17].mxu1 }
 0x236   :  { %v3827_v3 = vadd.f32 %v2996_v63, %v2418_v62  ;;  %v2998_v4 = vpop.f32.mrb[17].mxu0  ;;  %v2421_v5 = vpop.f32.mrb[18].mxu1 }
 0x237   :  { %v2999_v7 = vpop.f32.mrb[18].mxu0  ;;  %v2423_v8 = vpop.f32.mrb[19].mxu1 }
 0x238   :  { %3227 = vst [vmem:[%s5470_s2 + $0x40] sm:$0xff] %v3827_v3  ;;  %v3290_v9 = vadd.f32 %v3827_v3, %v3289_v59  ;;  %v3361_v10 = vmul.f32 %v3827_v3, %v3827_v3  ;;  %v3828_v11 = vadd.f32 %v2999_v7, %v2421_v5  ;;  %v3001_v12 = vpop.f32.mrb[19].mxu0 }
 0x239   :  { %2633 = vmatmul.mubr.bf16.gmra.mrb[124].mxu1 %v3749_v2 }
 0x23a   :  { %v3424_v13 = vadd.f32 %v3423_v61, %v3361_v10  ;;  %3228 = vst [vmem:[%s5470_s2 + $0x48] sm:$0xff] %v3828_v11  ;;  %v3291_v14 = vadd.f32 %v3828_v11, %v3290_v9  ;;  %v3362_v15 = vmul.f32 %v3828_v11, %v3828_v11  ;;  %3211 = vmatmul.mubr.bf16.gmra.mrb[124].mxu0 %v3753_v6 }
 0x23c   :  { %v3425_v16 = vadd.f32 %v3424_v13, %v3362_v15  ;;  %v2426_v17 = vpop.f32.mrb[20].mxu1 }
 0x23d   :  { %v3004_v18 = vpop.f32.mrb[20].mxu0  ;;  %v2428_v19 = vpop.f32.mrb[21].mxu1 }
 0x23e   :  { %v3829_v20 = vadd.f32 %v3004_v18, %v2426_v17  ;;  %v3006_v21 = vpop.f32.mrb[21].mxu0  ;;  %v2429_v22 = vpop.f32.mrb[22].mxu1 }
 0x23f   :  { %v3007_v23 = vpop.f32.mrb[22].mxu0  ;;  %v2431_v24 = vpop.f32.mrb[23].mxu1 }
 0x240   :  { %3229 = vst [vmem:[%s5470_s2 + $0x50] sm:$0xff] %v3829_v20  ;;  %v3292_v25 = vadd.f32 %v3829_v20, %v3291_v14  ;;  %v3363_v26 = vmul.f32 %v3829_v20, %v3829_v20  ;;  %v3830_v27 = vadd.f32 %v3007_v23, %v2429_v22  ;;  %v3009_v28 = vpop.f32.mrb[23].mxu0 }
 0x242   :  { %v3426_v29 = vadd.f32 %v3425_v16, %v3363_v26  ;;  %3230 = vst [vmem:[%s5470_s2 + $0x58] sm:$0xff] %v3830_v27  ;;  %v3293_v30 = vadd.f32 %v3830_v27, %v3292_v25  ;;  %v3364_v31 = vmul.f32 %v3830_v27, %v3830_v27 }
 0x244   :  { %v3427_v32 = vadd.f32 %v3426_v29, %v3364_v31  ;;  %v2434_v33 = vpop.f32.mrb[24].mxu1 }
 0x245   :  { %v3012_v34 = vpop.f32.mrb[24].mxu0  ;;  %v2436_v35 = vpop.f32.mrb[25].mxu1 }
 0x246   :  { %v3831_v36 = vadd.f32 %v3012_v34, %v2434_v33  ;;  %v3014_v37 = vpop.f32.mrb[25].mxu0  ;;  %v2437_v38 = vpop.f32.mrb[26].mxu1 }
 0x247   :  { %v3015_v39 = vpop.f32.mrb[26].mxu0  ;;  %v2439_v40 = vpop.f32.mrb[27].mxu1 }
 0x248   :  { %3231 = vst [vmem:[%s5470_s2 + $0x60] sm:$0xff] %v3831_v36  ;;  %v3294_v41 = vadd.f32 %v3831_v36, %v3293_v30  ;;  %v3365_v42 = vmul.f32 %v3831_v36, %v3831_v36  ;;  %v3832_v43 = vadd.f32 %v3015_v39, %v2437_v38  ;;  %v3017_v44 = vpop.f32.mrb[27].mxu0 }
 0x24a   :  { %v3428_v45 = vadd.f32 %v3427_v32, %v3365_v42  ;;  %3232 = vst [vmem:[%s5470_s2 + $0x68] sm:$0xff] %v3832_v43  ;;  %v3295_v46 = vadd.f32 %v3832_v43, %v3294_v41  ;;  %v3366_v47 = vmul.f32 %v3832_v43, %v3832_v43 }
 0x24c   :  { %v3429_v48 = vadd.f32 %v3428_v45, %v3366_v47  ;;  %v2442_v49 = vpop.f32.mrb[28].mxu1 }
 0x24d   :  { %v3020_v50 = vpop.f32.mrb[28].mxu0  ;;  %v2444_v51 = vpop.f32.mrb[29].mxu1 }
 0x24e   :  { %v3833_v52 = vadd.f32 %v3020_v50, %v2442_v49  ;;  %v3022_v53 = vpop.f32.mrb[29].mxu0  ;;  %v2445_v54 = vpop.f32.mrb[30].mxu1 }
 0x24f   :  { %v3023_v55 = vpop.f32.mrb[30].mxu0  ;;  %v2447_v56 = vpop.f32.mrb[31].mxu1 }
 0x250   :  { %3233 = vst [vmem:[%s5470_s2 + $0x70] sm:$0xff] %v3833_v52  ;;  %v3296_v57 = vadd.f32 %v3833_v52, %v3295_v46  ;;  %v3367_v0 = vmul.f32 %v3833_v52, %v3833_v52  ;;  %v3834_v58 = vadd.f32 %v3023_v55, %v2445_v54  ;;  %v3025_v59 = vpop.f32.mrb[31].mxu0 }
 0x252   :  { %v3430_v60 = vadd.f32 %v3429_v48, %v3367_v0  ;;  %3234 = vst [vmem:[%s5470_s2 + $0x78] sm:$0xff] %v3834_v58  ;;  %v3297_v61 = vadd.f32 %v3834_v58, %v3296_v57  ;;  %v3368_v62 = vmul.f32 %v3834_v58, %v3834_v58 }
 0x254   :  { %v3431_v63 = vadd.f32 %v3430_v60, %v3368_v62  ;;  %v2450_v1 = vpop.f32.mrb[32].mxu1 }
 0x255   :  { %v3028_v2 = vpop.f32.mrb[32].mxu0  ;;  %v2452_v3 = vpop.f32.mrb[33].mxu1 }
 0x256   :  { %v3835_v4 = vadd.f32 %v3028_v2, %v2450_v1  ;;  %v3030_v5 = vpop.f32.mrb[33].mxu0  ;;  %v2453_v6 = vpop.f32.mrb[34].mxu1 }
 0x257   :  { %v3031_v7 = vpop.f32.mrb[34].mxu0  ;;  %v2455_v8 = vpop.f32.mrb[35].mxu1 }
 0x258   :  { %3235 = vst [vmem:[%s5470_s2 + $0x80] sm:$0xff] %v3835_v4  ;;  %v3298_v9 = vadd.f32 %v3835_v4, %v3297_v61  ;;  %v3369_v10 = vmul.f32 %v3835_v4, %v3835_v4  ;;  %v3836_v11 = vadd.f32 %v3031_v7, %v2453_v6  ;;  %v3033_v12 = vpop.f32.mrb[35].mxu0 }
 0x25a   :  { %v3432_v13 = vadd.f32 %v3431_v63, %v3369_v10  ;;  %3236 = vst [vmem:[%s5470_s2 + $0x88] sm:$0xff] %v3836_v11  ;;  %v3299_v14 = vadd.f32 %v3836_v11, %v3298_v9  ;;  %v3370_v15 = vmul.f32 %v3836_v11, %v3836_v11 }
 0x25c   :  { %v3433_v16 = vadd.f32 %v3432_v13, %v3370_v15  ;;  %v2458_v17 = vpop.f32.mrb[36].mxu1 }
 0x25d   :  { %v3036_v18 = vpop.f32.mrb[36].mxu0  ;;  %v2460_v19 = vpop.f32.mrb[37].mxu1 }
 0x25e   :  { %v3837_v20 = vadd.f32 %v3036_v18, %v2458_v17  ;;  %v3038_v21 = vpop.f32.mrb[37].mxu0  ;;  %v2461_v22 = vpop.f32.mrb[38].mxu1 }
 0x25f   :  { %v3039_v23 = vpop.f32.mrb[38].mxu0  ;;  %v2463_v24 = vpop.f32.mrb[39].mxu1 }
 0x260   :  { %3237 = vst [vmem:[%s5470_s2 + $0x90] sm:$0xff] %v3837_v20  ;;  %v3300_v25 = vadd.f32 %v3837_v20, %v3299_v14  ;;  %v3371_v26 = vmul.f32 %v3837_v20, %v3837_v20  ;;  %v3838_v27 = vadd.f32 %v3039_v23, %v2461_v22  ;;  %v3041_v28 = vpop.f32.mrb[39].mxu0 }
 0x262   :  { %v3434_v29 = vadd.f32 %v3433_v16, %v3371_v26  ;;  %3238 = vst [vmem:[%s5470_s2 + $0x98] sm:$0xff] %v3838_v27  ;;  %v3301_v30 = vadd.f32 %v3838_v27, %v3300_v25  ;;  %v3372_v31 = vmul.f32 %v3838_v27, %v3838_v27 }
 0x264   :  { %v3435_v32 = vadd.f32 %v3434_v29, %v3372_v31  ;;  %v2466_v33 = vpop.f32.mrb[40].mxu1 }
 0x265   :  { %v3044_v34 = vpop.f32.mrb[40].mxu0  ;;  %v2468_v35 = vpop.f32.mrb[41].mxu1 }
 0x266   :  { %v3839_v36 = vadd.f32 %v3044_v34, %v2466_v33  ;;  %v3046_v37 = vpop.f32.mrb[41].mxu0  ;;  %v2469_v38 = vpop.f32.mrb[42].mxu1 }
 0x267   :  { %v3047_v39 = vpop.f32.mrb[42].mxu0  ;;  %v2471_v40 = vpop.f32.mrb[43].mxu1 }
 0x268   :  { %3239 = vst [vmem:[%s5470_s2 + $0xa0] sm:$0xff] %v3839_v36  ;;  %v3302_v41 = vadd.f32 %v3839_v36, %v3301_v30  ;;  %v3373_v42 = vmul.f32 %v3839_v36, %v3839_v36  ;;  %v3840_v43 = vadd.f32 %v3047_v39, %v2469_v38  ;;  %v3049_v44 = vpop.f32.mrb[43].mxu0 }
 0x26a   :  { %v3436_v45 = vadd.f32 %v3435_v32, %v3373_v42  ;;  %3240 = vst [vmem:[%s5470_s2 + $0xa8] sm:$0xff] %v3840_v43  ;;  %v3303_v46 = vadd.f32 %v3840_v43, %v3302_v41  ;;  %v3374_v47 = vmul.f32 %v3840_v43, %v3840_v43 }
 0x26c   :  { %v3437_v48 = vadd.f32 %v3436_v45, %v3374_v47  ;;  %v2474_v49 = vpop.f32.mrb[44].mxu1 }
 0x26d   :  { %v3052_v50 = vpop.f32.mrb[44].mxu0  ;;  %v2476_v51 = vpop.f32.mrb[45].mxu1 }
 0x26e   :  { %v3841_v52 = vadd.f32 %v3052_v50, %v2474_v49  ;;  %v3054_v53 = vpop.f32.mrb[45].mxu0  ;;  %v2477_v54 = vpop.f32.mrb[46].mxu1 }
 0x26f   :  { %v3055_v55 = vpop.f32.mrb[46].mxu0  ;;  %v2479_v56 = vpop.f32.mrb[47].mxu1 }
 0x270   :  { %3241 = vst [vmem:[%s5470_s2 + $0xb0] sm:$0xff] %v3841_v52  ;;  %v3304_v57 = vadd.f32 %v3841_v52, %v3303_v46  ;;  %v3375_v0 = vmul.f32 %v3841_v52, %v3841_v52  ;;  %v3842_v58 = vadd.f32 %v3055_v55, %v2477_v54  ;;  %v3057_v59 = vpop.f32.mrb[47].mxu0 }
 0x272   :  { %v3438_v60 = vadd.f32 %v3437_v48, %v3375_v0  ;;  %3242 = vst [vmem:[%s5470_s2 + $0xb8] sm:$0xff] %v3842_v58  ;;  %v3305_v61 = vadd.f32 %v3842_v58, %v3304_v57  ;;  %v3376_v62 = vmul.f32 %v3842_v58, %v3842_v58 }
 0x274   :  { %v3439_v63 = vadd.f32 %v3438_v60, %v3376_v62  ;;  %v2482_v1 = vpop.f32.mrb[48].mxu1 }
 0x275   :  { %v3060_v2 = vpop.f32.mrb[48].mxu0  ;;  %v2484_v3 = vpop.f32.mrb[49].mxu1 }
 0x276   :  { %v3843_v4 = vadd.f32 %v3060_v2, %v2482_v1  ;;  %v3062_v5 = vpop.f32.mrb[49].mxu0  ;;  %v2485_v6 = vpop.f32.mrb[50].mxu1 }
 0x277   :  { %v3063_v7 = vpop.f32.mrb[50].mxu0  ;;  %v2487_v8 = vpop.f32.mrb[51].mxu1 }
 0x278   :  { %3243 = vst [vmem:[%s5470_s2 + $0xc0] sm:$0xff] %v3843_v4  ;;  %v3306_v9 = vadd.f32 %v3843_v4, %v3305_v61  ;;  %v3377_v10 = vmul.f32 %v3843_v4, %v3843_v4  ;;  %v3844_v11 = vadd.f32 %v3063_v7, %v2485_v6  ;;  %v3065_v12 = vpop.f32.mrb[51].mxu0 }
 0x27a   :  { %v3440_v13 = vadd.f32 %v3439_v63, %v3377_v10  ;;  %3244 = vst [vmem:[%s5470_s2 + $0xc8] sm:$0xff] %v3844_v11  ;;  %v3307_v14 = vadd.f32 %v3844_v11, %v3306_v9  ;;  %v3378_v15 = vmul.f32 %v3844_v11, %v3844_v11 }
 0x27c   :  { %v3441_v16 = vadd.f32 %v3440_v13, %v3378_v15  ;;  %v2490_v17 = vpop.f32.mrb[52].mxu1 }
 0x27d   :  { %v3068_v18 = vpop.f32.mrb[52].mxu0  ;;  %v2492_v19 = vpop.f32.mrb[53].mxu1 }
 0x27e   :  { %v3845_v20 = vadd.f32 %v3068_v18, %v2490_v17  ;;  %v3070_v21 = vpop.f32.mrb[53].mxu0  ;;  %v2493_v22 = vpop.f32.mrb[54].mxu1 }
 0x27f   :  { %v3071_v23 = vpop.f32.mrb[54].mxu0  ;;  %v2495_v24 = vpop.f32.mrb[55].mxu1 }
 0x280   :  { %3245 = vst [vmem:[%s5470_s2 + $0xd0] sm:$0xff] %v3845_v20  ;;  %v3308_v25 = vadd.f32 %v3845_v20, %v3307_v14  ;;  %v3379_v26 = vmul.f32 %v3845_v20, %v3845_v20  ;;  %v3846_v27 = vadd.f32 %v3071_v23, %v2493_v22  ;;  %v3073_v28 = vpop.f32.mrb[55].mxu0 }
 0x282   :  { %v3442_v29 = vadd.f32 %v3441_v16, %v3379_v26  ;;  %3246 = vst [vmem:[%s5470_s2 + $0xd8] sm:$0xff] %v3846_v27  ;;  %v3309_v30 = vadd.f32 %v3846_v27, %v3308_v25  ;;  %v3380_v31 = vmul.f32 %v3846_v27, %v3846_v27 }
 0x284   :  { %v3443_v32 = vadd.f32 %v3442_v29, %v3380_v31  ;;  %v2498_v33 = vpop.f32.mrb[56].mxu1 }
 0x285   :  { %v3076_v34 = vpop.f32.mrb[56].mxu0  ;;  %v2500_v35 = vpop.f32.mrb[57].mxu1 }
 0x286   :  { %v3847_v36 = vadd.f32 %v3076_v34, %v2498_v33  ;;  %v3078_v37 = vpop.f32.mrb[57].mxu0  ;;  %v2501_v38 = vpop.f32.mrb[58].mxu1 }
 0x287   :  { %v3079_v39 = vpop.f32.mrb[58].mxu0  ;;  %v2503_v40 = vpop.f32.mrb[59].mxu1 }
 0x288   :  { %3247 = vst [vmem:[%s5470_s2 + $0xe0] sm:$0xff] %v3847_v36  ;;  %v3310_v41 = vadd.f32 %v3847_v36, %v3309_v30  ;;  %v3381_v42 = vmul.f32 %v3847_v36, %v3847_v36  ;;  %v3848_v43 = vadd.f32 %v3079_v39, %v2501_v38  ;;  %v3081_v44 = vpop.f32.mrb[59].mxu0 }
 0x28a   :  { %v3444_v45 = vadd.f32 %v3443_v32, %v3381_v42  ;;  %3248 = vst [vmem:[%s5470_s2 + $0xe8] sm:$0xff] %v3848_v43  ;;  %v3311_v46 = vadd.f32 %v3848_v43, %v3310_v41  ;;  %v3382_v47 = vmul.f32 %v3848_v43, %v3848_v43 }
 0x28c   :  { %v3445_v48 = vadd.f32 %v3444_v45, %v3382_v47  ;;  %v2506_v49 = vpop.f32.mrb[60].mxu1 }
 0x28d   :  { %v3084_v50 = vpop.f32.mrb[60].mxu0  ;;  %v2508_v51 = vpop.f32.mrb[61].mxu1 }
 0x28e   :  { %v3849_v52 = vadd.f32 %v3084_v50, %v2506_v49  ;;  %v3086_v53 = vpop.f32.mrb[61].mxu0  ;;  %v2509_v54 = vpop.f32.mrb[62].mxu1 }
 0x28f   :  { %v3087_v55 = vpop.f32.mrb[62].mxu0  ;;  %v2511_v56 = vpop.f32.mrb[63].mxu1 }
 0x290   :  { %3249 = vst [vmem:[%s5470_s2 + $0xf0] sm:$0xff] %v3849_v52  ;;  %v3312_v57 = vadd.f32 %v3849_v52, %v3311_v46  ;;  %v3383_v0 = vmul.f32 %v3849_v52, %v3849_v52  ;;  %v3850_v58 = vadd.f32 %v3087_v55, %v2509_v54  ;;  %v3089_v59 = vpop.f32.mrb[63].mxu0 }
 0x292   :  { %v3446_v60 = vadd.f32 %v3445_v48, %v3383_v0  ;;  %3250 = vst [vmem:[%s5470_s2 + $0xf8] sm:$0xff] %v3850_v58  ;;  %v3313_v61 = vadd.f32 %v3850_v58, %v3312_v57  ;;  %v3384_v62 = vmul.f32 %v3850_v58, %v3850_v58 }
 0x294   :  { %v3447_v63 = vadd.f32 %v3446_v60, %v3384_v62  ;;  %v2514_v1 = vpop.f32.mrb[64].mxu1 }
 0x295   :  { %v3092_v2 = vpop.f32.mrb[64].mxu0  ;;  %v2516_v3 = vpop.f32.mrb[65].mxu1 }
 0x296   :  { %v3851_v4 = vadd.f32 %v3092_v2, %v2514_v1  ;;  %v3094_v5 = vpop.f32.mrb[65].mxu0  ;;  %v2517_v6 = vpop.f32.mrb[66].mxu1 }
 0x297   :  { %v3095_v7 = vpop.f32.mrb[66].mxu0  ;;  %v2519_v8 = vpop.f32.mrb[67].mxu1 }
 0x298   :  { %3251 = vst [vmem:[%s5470_s2 + $0x100] sm:$0xff] %v3851_v4  ;;  %v3314_v9 = vadd.f32 %v3851_v4, %v3313_v61  ;;  %v3385_v10 = vmul.f32 %v3851_v4, %v3851_v4  ;;  %v3852_v11 = vadd.f32 %v3095_v7, %v2517_v6  ;;  %v3097_v12 = vpop.f32.mrb[67].mxu0 }
 0x29a   :  { %v3448_v13 = vadd.f32 %v3447_v63, %v3385_v10  ;;  %3252 = vst [vmem:[%s5470_s2 + $0x108] sm:$0xff] %v3852_v11  ;;  %v3315_v14 = vadd.f32 %v3852_v11, %v3314_v9  ;;  %v3386_v15 = vmul.f32 %v3852_v11, %v3852_v11 }
 0x29c   :  { %v3449_v16 = vadd.f32 %v3448_v13, %v3386_v15  ;;  %v2522_v17 = vpop.f32.mrb[68].mxu1 }
 0x29d   :  { %v3100_v18 = vpop.f32.mrb[68].mxu0  ;;  %v2524_v19 = vpop.f32.mrb[69].mxu1 }
 0x29e   :  { %v3853_v20 = vadd.f32 %v3100_v18, %v2522_v17  ;;  %v3102_v21 = vpop.f32.mrb[69].mxu0  ;;  %v2525_v22 = vpop.f32.mrb[70].mxu1 }
 0x29f   :  { %v3103_v23 = vpop.f32.mrb[70].mxu0  ;;  %v2527_v24 = vpop.f32.mrb[71].mxu1 }
 0x2a0   :  { %3253 = vst [vmem:[%s5470_s2 + $0x110] sm:$0xff] %v3853_v20  ;;  %v3316_v25 = vadd.f32 %v3853_v20, %v3315_v14  ;;  %v3387_v26 = vmul.f32 %v3853_v20, %v3853_v20  ;;  %v3854_v27 = vadd.f32 %v3103_v23, %v2525_v22  ;;  %v3105_v28 = vpop.f32.mrb[71].mxu0 }
 0x2a2   :  { %v3450_v29 = vadd.f32 %v3449_v16, %v3387_v26  ;;  %3254 = vst [vmem:[%s5470_s2 + $0x118] sm:$0xff] %v3854_v27  ;;  %v3317_v30 = vadd.f32 %v3854_v27, %v3316_v25  ;;  %v3388_v31 = vmul.f32 %v3854_v27, %v3854_v27 }
 0x2a4   :  { %v3451_v32 = vadd.f32 %v3450_v29, %v3388_v31  ;;  %v2530_v33 = vpop.f32.mrb[72].mxu1 }
 0x2a5   :  { %v3108_v34 = vpop.f32.mrb[72].mxu0  ;;  %v2532_v35 = vpop.f32.mrb[73].mxu1 }
 0x2a6   :  { %v3855_v36 = vadd.f32 %v3108_v34, %v2530_v33  ;;  %v3110_v37 = vpop.f32.mrb[73].mxu0  ;;  %v2533_v38 = vpop.f32.mrb[74].mxu1 }
 0x2a7   :  { %v3111_v39 = vpop.f32.mrb[74].mxu0  ;;  %v2535_v40 = vpop.f32.mrb[75].mxu1 }
 0x2a8   :  { %3255 = vst [vmem:[%s5470_s2 + $0x120] sm:$0xff] %v3855_v36  ;;  %v3318_v41 = vadd.f32 %v3855_v36, %v3317_v30  ;;  %v3389_v42 = vmul.f32 %v3855_v36, %v3855_v36  ;;  %v3856_v43 = vadd.f32 %v3111_v39, %v2533_v38  ;;  %v3113_v44 = vpop.f32.mrb[75].mxu0 }
 0x2aa   :  { %v3452_v45 = vadd.f32 %v3451_v32, %v3389_v42  ;;  %3256 = vst [vmem:[%s5470_s2 + $0x128] sm:$0xff] %v3856_v43  ;;  %v3319_v46 = vadd.f32 %v3856_v43, %v3318_v41  ;;  %v3390_v47 = vmul.f32 %v3856_v43, %v3856_v43 }
 0x2ac   :  { %v3453_v48 = vadd.f32 %v3452_v45, %v3390_v47  ;;  %v2538_v49 = vpop.f32.mrb[76].mxu1 }
 0x2ad   :  { %v3116_v50 = vpop.f32.mrb[76].mxu0  ;;  %v2540_v51 = vpop.f32.mrb[77].mxu1 }
 0x2ae   :  { %v3857_v52 = vadd.f32 %v3116_v50, %v2538_v49  ;;  %v3118_v53 = vpop.f32.mrb[77].mxu0  ;;  %v2541_v54 = vpop.f32.mrb[78].mxu1 }
 0x2af   :  { %v3119_v55 = vpop.f32.mrb[78].mxu0  ;;  %v2543_v56 = vpop.f32.mrb[79].mxu1 }
 0x2b0   :  { %3257 = vst [vmem:[%s5470_s2 + $0x130] sm:$0xff] %v3857_v52  ;;  %v3320_v57 = vadd.f32 %v3857_v52, %v3319_v46  ;;  %v3391_v0 = vmul.f32 %v3857_v52, %v3857_v52  ;;  %v3858_v58 = vadd.f32 %v3119_v55, %v2541_v54  ;;  %v3121_v59 = vpop.f32.mrb[79].mxu0 }
 0x2b2   :  { %v3454_v60 = vadd.f32 %v3453_v48, %v3391_v0  ;;  %3258 = vst [vmem:[%s5470_s2 + $0x138] sm:$0xff] %v3858_v58  ;;  %v3321_v61 = vadd.f32 %v3858_v58, %v3320_v57  ;;  %v3392_v62 = vmul.f32 %v3858_v58, %v3858_v58 }
 0x2b4   :  { %v3455_v63 = vadd.f32 %v3454_v60, %v3392_v62  ;;  %v2546_v1 = vpop.f32.mrb[80].mxu1 }
 0x2b5   :  { %v3124_v2 = vpop.f32.mrb[80].mxu0  ;;  %v2548_v3 = vpop.f32.mrb[81].mxu1 }
 0x2b6   :  { %v3859_v4 = vadd.f32 %v3124_v2, %v2546_v1  ;;  %v3126_v5 = vpop.f32.mrb[81].mxu0  ;;  %v2549_v6 = vpop.f32.mrb[82].mxu1 }
 0x2b7   :  { %v3127_v7 = vpop.f32.mrb[82].mxu0  ;;  %v2551_v8 = vpop.f32.mrb[83].mxu1 }
 0x2b8   :  { %3259 = vst [vmem:[%s5470_s2 + $0x140] sm:$0xff] %v3859_v4  ;;  %v3322_v9 = vadd.f32 %v3859_v4, %v3321_v61  ;;  %v3393_v10 = vmul.f32 %v3859_v4, %v3859_v4  ;;  %v3860_v11 = vadd.f32 %v3127_v7, %v2549_v6  ;;  %v3129_v12 = vpop.f32.mrb[83].mxu0 }
 0x2ba   :  { %v3456_v13 = vadd.f32 %v3455_v63, %v3393_v10  ;;  %3260 = vst [vmem:[%s5470_s2 + $0x148] sm:$0xff] %v3860_v11  ;;  %v3323_v14 = vadd.f32 %v3860_v11, %v3322_v9  ;;  %v3394_v15 = vmul.f32 %v3860_v11, %v3860_v11 }
 0x2bc   :  { %v3457_v16 = vadd.f32 %v3456_v13, %v3394_v15  ;;  %v2554_v17 = vpop.f32.mrb[84].mxu1 }
 0x2bd   :  { %v3132_v18 = vpop.f32.mrb[84].mxu0  ;;  %v2556_v19 = vpop.f32.mrb[85].mxu1 }
 0x2be   :  { %v3861_v20 = vadd.f32 %v3132_v18, %v2554_v17  ;;  %v3134_v21 = vpop.f32.mrb[85].mxu0  ;;  %v2557_v22 = vpop.f32.mrb[86].mxu1 }
 0x2bf   :  { %v3135_v23 = vpop.f32.mrb[86].mxu0  ;;  %v2559_v24 = vpop.f32.mrb[87].mxu1 }
 0x2c0   :  { %3261 = vst [vmem:[%s5470_s2 + $0x150] sm:$0xff] %v3861_v20  ;;  %v3324_v25 = vadd.f32 %v3861_v20, %v3323_v14  ;;  %v3395_v26 = vmul.f32 %v3861_v20, %v3861_v20  ;;  %v3862_v27 = vadd.f32 %v3135_v23, %v2557_v22  ;;  %v3137_v28 = vpop.f32.mrb[87].mxu0 }
 0x2c2   :  { %v3458_v29 = vadd.f32 %v3457_v16, %v3395_v26  ;;  %3262 = vst [vmem:[%s5470_s2 + $0x158] sm:$0xff] %v3862_v27  ;;  %v3325_v30 = vadd.f32 %v3862_v27, %v3324_v25  ;;  %v3396_v31 = vmul.f32 %v3862_v27, %v3862_v27 }
 0x2c4   :  { %v3459_v32 = vadd.f32 %v3458_v29, %v3396_v31  ;;  %v2562_v33 = vpop.f32.mrb[88].mxu1 }
 0x2c5   :  { %v3140_v34 = vpop.f32.mrb[88].mxu0  ;;  %v2564_v35 = vpop.f32.mrb[89].mxu1 }
 0x2c6   :  { %v3863_v36 = vadd.f32 %v3140_v34, %v2562_v33  ;;  %v3142_v37 = vpop.f32.mrb[89].mxu0  ;;  %v2565_v38 = vpop.f32.mrb[90].mxu1 }
 0x2c7   :  { %v3143_v39 = vpop.f32.mrb[90].mxu0  ;;  %v2567_v40 = vpop.f32.mrb[91].mxu1 }
 0x2c8   :  { %3263 = vst [vmem:[%s5470_s2 + $0x160] sm:$0xff] %v3863_v36  ;;  %v3326_v41 = vadd.f32 %v3863_v36, %v3325_v30  ;;  %v3397_v42 = vmul.f32 %v3863_v36, %v3863_v36  ;;  %v3864_v43 = vadd.f32 %v3143_v39, %v2565_v38  ;;  %v3145_v44 = vpop.f32.mrb[91].mxu0 }
 0x2ca   :  { %v3460_v45 = vadd.f32 %v3459_v32, %v3397_v42  ;;  %3264 = vst [vmem:[%s5470_s2 + $0x168] sm:$0xff] %v3864_v43  ;;  %v3327_v46 = vadd.f32 %v3864_v43, %v3326_v41  ;;  %v3398_v47 = vmul.f32 %v3864_v43, %v3864_v43 }
 0x2cc   :  { %v3461_v48 = vadd.f32 %v3460_v45, %v3398_v47  ;;  %v2570_v49 = vpop.f32.mrb[92].mxu1 }
 0x2cd   :  { %v3148_v50 = vpop.f32.mrb[92].mxu0  ;;  %v2572_v51 = vpop.f32.mrb[93].mxu1 }
 0x2ce   :  { %v3865_v52 = vadd.f32 %v3148_v50, %v2570_v49  ;;  %v3150_v53 = vpop.f32.mrb[93].mxu0  ;;  %v2573_v54 = vpop.f32.mrb[94].mxu1 }
 0x2cf   :  { %v3151_v55 = vpop.f32.mrb[94].mxu0  ;;  %v2575_v56 = vpop.f32.mrb[95].mxu1 }
 0x2d0   :  { %3265 = vst [vmem:[%s5470_s2 + $0x170] sm:$0xff] %v3865_v52  ;;  %v3328_v57 = vadd.f32 %v3865_v52, %v3327_v46  ;;  %v3399_v0 = vmul.f32 %v3865_v52, %v3865_v52  ;;  %v3866_v58 = vadd.f32 %v3151_v55, %v2573_v54  ;;  %v3153_v59 = vpop.f32.mrb[95].mxu0 }
 0x2d2   :  { %v3462_v60 = vadd.f32 %v3461_v48, %v3399_v0  ;;  %3266 = vst [vmem:[%s5470_s2 + $0x178] sm:$0xff] %v3866_v58  ;;  %v3329_v61 = vadd.f32 %v3866_v58, %v3328_v57  ;;  %v3400_v62 = vmul.f32 %v3866_v58, %v3866_v58 }
 0x2d4   :  { %v3463_v63 = vadd.f32 %v3462_v60, %v3400_v62  ;;  %v2578_v1 = vpop.f32.mrb[96].mxu1 }
 0x2d5   :  { %v3156_v2 = vpop.f32.mrb[96].mxu0  ;;  %v2580_v3 = vpop.f32.mrb[97].mxu1 }
 0x2d6   :  { %v3867_v4 = vadd.f32 %v3156_v2, %v2578_v1  ;;  %v3158_v5 = vpop.f32.mrb[97].mxu0  ;;  %v2581_v6 = vpop.f32.mrb[98].mxu1 }
 0x2d7   :  { %v3159_v7 = vpop.f32.mrb[98].mxu0  ;;  %v2583_v8 = vpop.f32.mrb[99].mxu1 }
 0x2d8   :  { %3267 = vst [vmem:[%s5470_s2 + $0x180] sm:$0xff] %v3867_v4  ;;  %v3330_v9 = vadd.f32 %v3867_v4, %v3329_v61  ;;  %v3401_v10 = vmul.f32 %v3867_v4, %v3867_v4  ;;  %v3868_v11 = vadd.f32 %v3159_v7, %v2581_v6  ;;  %v3161_v12 = vpop.f32.mrb[99].mxu0 }
 0x2da   :  { %v3464_v13 = vadd.f32 %v3463_v63, %v3401_v10  ;;  %3268 = vst [vmem:[%s5470_s2 + $0x188] sm:$0xff] %v3868_v11  ;;  %v3331_v14 = vadd.f32 %v3868_v11, %v3330_v9  ;;  %v3402_v15 = vmul.f32 %v3868_v11, %v3868_v11 }
 0x2dc   :  { %v3465_v16 = vadd.f32 %v3464_v13, %v3402_v15  ;;  %v2586_v17 = vpop.f32.mrb[100].mxu1 }
 0x2dd   :  { %v3164_v18 = vpop.f32.mrb[100].mxu0  ;;  %v2588_v19 = vpop.f32.mrb[101].mxu1 }
 0x2de   :  { %v3869_v20 = vadd.f32 %v3164_v18, %v2586_v17  ;;  %v3166_v21 = vpop.f32.mrb[101].mxu0  ;;  %v2589_v22 = vpop.f32.mrb[102].mxu1 }
 0x2df   :  { %v3167_v23 = vpop.f32.mrb[102].mxu0  ;;  %v2591_v24 = vpop.f32.mrb[103].mxu1 }
 0x2e0   :  { %3269 = vst [vmem:[%s5470_s2 + $0x190] sm:$0xff] %v3869_v20  ;;  %v3332_v25 = vadd.f32 %v3869_v20, %v3331_v14  ;;  %v3403_v26 = vmul.f32 %v3869_v20, %v3869_v20  ;;  %v3870_v27 = vadd.f32 %v3167_v23, %v2589_v22  ;;  %v3169_v28 = vpop.f32.mrb[103].mxu0 }
 0x2e2   :  { %v3466_v29 = vadd.f32 %v3465_v16, %v3403_v26  ;;  %3270 = vst [vmem:[%s5470_s2 + $0x198] sm:$0xff] %v3870_v27  ;;  %v3333_v30 = vadd.f32 %v3870_v27, %v3332_v25  ;;  %v3404_v31 = vmul.f32 %v3870_v27, %v3870_v27 }
 0x2e4   :  { %v3467_v32 = vadd.f32 %v3466_v29, %v3404_v31  ;;  %v2594_v33 = vpop.f32.mrb[104].mxu1 }
 0x2e5   :  { %v3172_v34 = vpop.f32.mrb[104].mxu0  ;;  %v2596_v35 = vpop.f32.mrb[105].mxu1 }
 0x2e6   :  { %v3871_v36 = vadd.f32 %v3172_v34, %v2594_v33  ;;  %v3174_v37 = vpop.f32.mrb[105].mxu0  ;;  %v2597_v38 = vpop.f32.mrb[106].mxu1 }
 0x2e7   :  { %v3175_v39 = vpop.f32.mrb[106].mxu0  ;;  %v2599_v40 = vpop.f32.mrb[107].mxu1 }
 0x2e8   :  { %3271 = vst [vmem:[%s5470_s2 + $0x1a0] sm:$0xff] %v3871_v36  ;;  %v3334_v41 = vadd.f32 %v3871_v36, %v3333_v30  ;;  %v3405_v42 = vmul.f32 %v3871_v36, %v3871_v36  ;;  %v3872_v43 = vadd.f32 %v3175_v39, %v2597_v38  ;;  %v3177_v44 = vpop.f32.mrb[107].mxu0 }
 0x2ea   :  { %v3468_v45 = vadd.f32 %v3467_v32, %v3405_v42  ;;  %3272 = vst [vmem:[%s5470_s2 + $0x1a8] sm:$0xff] %v3872_v43  ;;  %v3335_v46 = vadd.f32 %v3872_v43, %v3334_v41  ;;  %v3406_v47 = vmul.f32 %v3872_v43, %v3872_v43 }
 0x2ec   :  { %v3469_v48 = vadd.f32 %v3468_v45, %v3406_v47  ;;  %v2602_v49 = vpop.f32.mrb[108].mxu1 }
 0x2ed   :  { %v3180_v50 = vpop.f32.mrb[108].mxu0  ;;  %v2604_v51 = vpop.f32.mrb[109].mxu1 }
 0x2ee   :  { %v3873_v52 = vadd.f32 %v3180_v50, %v2602_v49  ;;  %v3182_v53 = vpop.f32.mrb[109].mxu0  ;;  %v2605_v54 = vpop.f32.mrb[110].mxu1 }
 0x2ef   :  { %v3183_v55 = vpop.f32.mrb[110].mxu0  ;;  %v2607_v56 = vpop.f32.mrb[111].mxu1 }
 0x2f0   :  { %3273 = vst [vmem:[%s5470_s2 + $0x1b0] sm:$0xff] %v3873_v52  ;;  %v3336_v57 = vadd.f32 %v3873_v52, %v3335_v46  ;;  %v3407_v0 = vmul.f32 %v3873_v52, %v3873_v52  ;;  %v3874_v58 = vadd.f32 %v3183_v55, %v2605_v54  ;;  %v3185_v59 = vpop.f32.mrb[111].mxu0 }
 0x2f2   :  { %v3470_v60 = vadd.f32 %v3469_v48, %v3407_v0  ;;  %3274 = vst [vmem:[%s5470_s2 + $0x1b8] sm:$0xff] %v3874_v58  ;;  %v3337_v61 = vadd.f32 %v3874_v58, %v3336_v57  ;;  %v3408_v62 = vmul.f32 %v3874_v58, %v3874_v58 }
 0x2f4   :  { %v3471_v63 = vadd.f32 %v3470_v60, %v3408_v62  ;;  %v2610_v1 = vpop.f32.mrb[112].mxu1 }
 0x2f5   :  { %v3188_v2 = vpop.f32.mrb[112].mxu0  ;;  %v2612_v3 = vpop.f32.mrb[113].mxu1 }
 0x2f6   :  { %v3875_v4 = vadd.f32 %v3188_v2, %v2610_v1  ;;  %v3190_v5 = vpop.f32.mrb[113].mxu0  ;;  %v2613_v6 = vpop.f32.mrb[114].mxu1 }
 0x2f7   :  { %v3191_v7 = vpop.f32.mrb[114].mxu0  ;;  %v2615_v8 = vpop.f32.mrb[115].mxu1 }
 0x2f8   :  { %3275 = vst [vmem:[%s5470_s2 + $0x1c0] sm:$0xff] %v3875_v4  ;;  %v3338_v9 = vadd.f32 %v3875_v4, %v3337_v61  ;;  %v3409_v10 = vmul.f32 %v3875_v4, %v3875_v4  ;;  %v3876_v11 = vadd.f32 %v3191_v7, %v2613_v6  ;;  %v3193_v12 = vpop.f32.mrb[115].mxu0 }
 0x2fa   :  { %v3472_v13 = vadd.f32 %v3471_v63, %v3409_v10  ;;  %3276 = vst [vmem:[%s5470_s2 + $0x1c8] sm:$0xff] %v3876_v11  ;;  %v3339_v14 = vadd.f32 %v3876_v11, %v3338_v9  ;;  %v3410_v15 = vmul.f32 %v3876_v11, %v3876_v11 }
 0x2fc   :  { %v3473_v16 = vadd.f32 %v3472_v13, %v3410_v15  ;;  %v2618_v17 = vpop.f32.mrb[116].mxu1 }
 0x2fd   :  { %v3196_v18 = vpop.f32.mrb[116].mxu0  ;;  %v2620_v19 = vpop.f32.mrb[117].mxu1 }
 0x2fe   :  { %v3877_v20 = vadd.f32 %v3196_v18, %v2618_v17  ;;  %v3198_v21 = vpop.f32.mrb[117].mxu0  ;;  %v2621_v22 = vpop.f32.mrb[118].mxu1 }
 0x2ff   :  { %v3199_v23 = vpop.f32.mrb[118].mxu0  ;;  %v2623_v24 = vpop.f32.mrb[119].mxu1 }
 0x300   :  { %3277 = vst [vmem:[%s5470_s2 + $0x1d0] sm:$0xff] %v3877_v20  ;;  %v3340_v25 = vadd.f32 %v3877_v20, %v3339_v14  ;;  %v3411_v26 = vmul.f32 %v3877_v20, %v3877_v20  ;;  %v3878_v27 = vadd.f32 %v3199_v23, %v2621_v22  ;;  %v3201_v28 = vpop.f32.mrb[119].mxu0 }
 0x302   :  { %v3474_v29 = vadd.f32 %v3473_v16, %v3411_v26  ;;  %3278 = vst [vmem:[%s5470_s2 + $0x1d8] sm:$0xff] %v3878_v27  ;;  %v3341_v30 = vadd.f32 %v3878_v27, %v3340_v25  ;;  %v3412_v31 = vmul.f32 %v3878_v27, %v3878_v27 }
 0x304   :  { %v3475_v32 = vadd.f32 %v3474_v29, %v3412_v31  ;;  %v2626_v33 = vpop.f32.mrb[120].mxu1 }
 0x305   :  { %v3204_v34 = vpop.f32.mrb[120].mxu0  ;;  %v2628_v35 = vpop.f32.mrb[121].mxu1 }
 0x306   :  { %v3879_v36 = vadd.f32 %v3204_v34, %v2626_v33  ;;  %v3206_v37 = vpop.f32.mrb[121].mxu0  ;;  %v2629_v38 = vpop.f32.mrb[122].mxu1 }
 0x307   :  { %v3207_v39 = vpop.f32.mrb[122].mxu0  ;;  %v2631_v40 = vpop.f32.mrb[123].mxu1 }
 0x308   :  { %3279 = vst [vmem:[%s5470_s2 + $0x1e0] sm:$0xff] %v3879_v36  ;;  %v3342_v41 = vadd.f32 %v3879_v36, %v3341_v30  ;;  %v3413_v42 = vmul.f32 %v3879_v36, %v3879_v36  ;;  %v3880_v43 = vadd.f32 %v3207_v39, %v2629_v38  ;;  %v3209_v44 = vpop.f32.mrb[123].mxu0 }
 0x30a   :  { %v3476_v45 = vadd.f32 %v3475_v32, %v3413_v42  ;;  %3280 = vst [vmem:[%s5470_s2 + $0x1e8] sm:$0xff] %v3880_v43  ;;  %v3343_v46 = vadd.f32 %v3880_v43, %v3342_v41  ;;  %v3414_v47 = vmul.f32 %v3880_v43, %v3880_v43 }
 0x30c   :  { %v3477_v48 = vadd.f32 %v3476_v45, %v3414_v47  ;;  %v2634_v49 = vpop.f32.mrb[124].mxu1 }
 0x30d   :  { %v3212_v50 = vpop.f32.mrb[124].mxu0  ;;  %v2636_v51 = vpop.f32.mrb[125].mxu1 }
 0x30e   :  { %v3881_v52 = vadd.f32 %v3212_v50, %v2634_v49  ;;  %v3214_v53 = vpop.f32.mrb[125].mxu0  ;;  %v2637_v54 = vpop.f32.mrb[126].mxu1 }
 0x30f   :  { %v3215_v55 = vpop.f32.mrb[126].mxu0  ;;  %v2639_v56 = vpop.f32.mrb[127].mxu1 }
 0x310   :  { %3281 = vst [vmem:[%s5470_s2 + $0x1f0] sm:$0xff] %v3881_v52  ;;  %v3344_v57 = vadd.f32 %v3881_v52, %v3343_v46  ;;  %v3415_v0 = vmul.f32 %v3881_v52, %v3881_v52  ;;  %v3882_v58 = vadd.f32 %v3215_v55, %v2637_v54  ;;  %v3217_v59 = vpop.f32.mrb[127].mxu0 }
 0x312   :  { %v3478_v60 = vadd.f32 %v3477_v48, %v3415_v0  ;;  %3282 = vst [vmem:[%s5470_s2 + $0x1f8] sm:$0xff] %v3882_v58  ;;  %v3345_v61 = vadd.f32 %v3882_v58, %v3344_v57  ;;  %v3416_v62 = vmul.f32 %v3882_v58, %v3882_v58 }
 0x314   :  { %v3346_v63 = vrot.slane %v3345_v61, 4  ;;  %v3479_v1 = vadd.f32 %v3478_v60, %v3416_v62 }
 0x316   :  { %v3347_v2 = vadd.f32 %v3346_v63, %v3345_v61  ;;  %v3480_v3 = vrot.slane %v3479_v1, 4 }
 0x318   :  { %v3348_v4 = vrot.slane %v3347_v2, 2  ;;  %v3481_v5 = vadd.f32 %v3480_v3, %v3479_v1 }
 0x31a   :  { %v3349_v6 = vadd.f32 %v3348_v4, %v3347_v2  ;;  %v3482_v7 = vrot.slane %v3481_v5, 2 }
 0x31c   :  { %v3350_v8 = vrot.slane %v3349_v6, 1  ;;  %v3483_v9 = vadd.f32 %v3482_v7, %v3481_v5 }
 0x31e   :  { %v3351_v10 = vadd.f32 %v3350_v8, %v3349_v6  ;;  %v3484_v11 = vrot.slane %v3483_v9, 1 }
 0x320   :  { %3352 = vst [vmem:[%s5471_s3] sm:$0x1] %v3351_v10  ;;  %v3485_v12 = vadd.f32 %v3484_v11, %v3483_v9 }
 0x322   :  { %3486 = vst [vmem:[%s5472_s4] sm:$0x1] %v3485_v12 }

// kernel: discriminator_forward.9
= control target key start
LH: loop header
LB: loop body
LE: loop exit
PB: predicated region body
PF: predicated region fallthrough
CT: control target
= control target key end

     0   :  { %s517_s12 = smov 0   ;;  %s679_s0 = inlined_call_operand.vmem [shape: f32[512,128], index: 0, kind: input, shape index: {}]   ;;  %s680_s1 = inlined_call_operand.vmem [shape: f32[1,128], index: 1, kind: input, shape index: {}]   ;;  %s681_s2 = inlined_call_operand.vmem [shape: f32[1,128], index: 2, kind: input, shape index: {}]   ;;  %s682_s3 = inlined_call_operand.vmem [shape: f32[512,128], index: 3, kind: output, shape index: {}]  }
   0x1 LB: > { %s468_s13 = sadd.s32 4294967295, %s495_s12   ;;  %p472_p0 = scmp.ge.s32.totalorder %s495_s12, 1  ;;  %s495_s12 = sphi %s517_s12, %s13_s12  }
   0x2   : > { %p138_p1 = scmp.lt.s32.totalorder %s495_s12, 3 }
   0x4   : > { %p139_p2 = pnand %p472_p0, %p138_p1 }
   0x5   : > { %s473_s14 = sshll.u32 (!%p139_p2), %s468_s13, 5  ;;  %v531_v0 = vld [vmem:[%s680_s1] ss:$0 sm:$0xff] (!%p139_p2) }
   0x6   : > { %142 = sbr.rel (%p139_p2) target bundleno = 62 (0x3e), region = 32  ;;  %p163_p3 = scmp.lt.s32.totalorder (!%p139_p2), %s473_s14, 63  ;;  %v541_v1 = vld [vmem:[%s681_s2] ss:$0 sm:$0xff] (!%p139_p2) }
   0xd   : > { %s684_s14 = smov (!%p163_p3, %s473_s14), 63 }
   0xe   : > { %s474_s15 = sshll.u32 %s684_s14, 3 }
   0xf   : > { %s536_s20 = scalar_lea.vmem %s679_s0, %s474_s15  ;;  %s569_s25 = scalar_lea.vmem %s682_s3, %s474_s15 }
  0x10   : > { %v174_v2 = vld [vmem:[%s536_s20] sm:$0xff]  ;;  %v175_v3 = vld [vmem:[%s536_s20 + $0x8] sm:$0xff]  ;;  %v176_v4 = vld [vmem:[%s536_s20 + $0x10] sm:$0xff] }
  0x11   : > { %v213_v5 = vmul.f32 %v531_v0, %v174_v2  ;;  %v214_v6 = vmul.f32 %v531_v0, %v175_v3  ;;  %v215_v7 = vmul.f32 %v531_v0, %v176_v4  ;;  %v177_v8 = vld [vmem:[%s536_s20 + $0x18] sm:$0xff]  ;;  %v178_v9 = vld [vmem:[%s536_s20 + $0x20] sm:$0xff]  ;;  %v179_v10 = vld [vmem:[%s536_s20 + $0x28] sm:$0xff] }
  0x12   : > { %v216_v11 = vmul.f32 %v531_v0, %v177_v8  ;;  %v217_v12 = vmul.f32 %v531_v0, %v178_v9  ;;  %v218_v13 = vmul.f32 %v531_v0, %v179_v10  ;;  %v180_v14 = vld [vmem:[%s536_s20 + $0x30] sm:$0xff]  ;;  %v181_v15 = vld [vmem:[%s536_s20 + $0x38] sm:$0xff]  ;;  %v182_v24 = vld [vmem:[%s536_s20 + $0x40] sm:$0xff] }
  0x13   : > { %v252_v16 = vadd.f32 %v541_v1, %v213_v5  ;;  %v253_v17 = vadd.f32 %v541_v1, %v214_v6  ;;  %v254_v18 = vadd.f32 %v541_v1, %v215_v7  ;;  %v219_v19 = vmul.f32 %v531_v0, %v180_v14  ;;  %v183_v32 = vld [vmem:[%s536_s20 + $0x48] sm:$0xff]  ;;  %v184_v33 = vld [vmem:[%s536_s20 + $0x50] sm:$0xff]  ;;  %v185_v34 = vld [vmem:[%s536_s20 + $0x58] sm:$0xff] }
  0x14   : > { %v255_v20 = vadd.f32 %v541_v1, %v216_v11  ;;  %v256_v21 = vadd.f32 %v541_v1, %v217_v12  ;;  %v257_v22 = vadd.f32 %v541_v1, %v218_v13  ;;  %v220_v23 = vmul.f32 %v531_v0, %v181_v15  ;;  %v186_v46 = vld [vmem:[%s536_s20 + $0x60] sm:$0xff]  ;;  %v187_v47 = vld [vmem:[%s536_s20 + $0x68] sm:$0xff]  ;;  %v188_v58 = vld [vmem:[%s536_s20 + $0x70] sm:$0xff] }
  0x15   : > { %vm284_vm0 = vcmp.ge.f32.partialorder %v252_v16, 0.0  ;;  %v316_v25 = vmul.f32 0.2, %v252_v16  ;;  %vm285_vm1 = vcmp.ge.f32.partialorder %v253_v17, 0.0  ;;  %v317_v26 = vmul.f32 0.2, %v253_v17 }
  0x16   : > { %vm286_vm2 = vcmp.ge.f32.partialorder %v254_v18, 0.0  ;;  %v318_v27 = vmul.f32 0.2, %v254_v18  ;;  %vm287_vm3 = vcmp.ge.f32.partialorder %v255_v20, 0.0  ;;  %v319_v28 = vmul.f32 0.2, %v255_v20 }
  0x17   : > { %v348_v29 = vsel %vm284_vm0, %v252_v16, %v316_v25  ;;  %v349_v30 = vsel %vm285_vm1, %v253_v17, %v317_v26  ;;  %vm288_vm4 = vcmp.ge.f32.partialorder %v256_v21, 0.0  ;;  %v320_v31 = vmul.f32 0.2, %v256_v21  ;;  %v189_v59 = vld [vmem:[%s536_s20 + $0x78] sm:$0xff]  ;;  %v190_v6 = vld [vmem:[%s536_s20 + $0x80] sm:$0xff]  ;;  %v191_v7 = vld [vmem:[%s536_s20 + $0x88] sm:$0xff] }
  0x18   : > { %380 = vst [vmem:[%s569_s25] sm:$0xff] %v348_v29  ;;  %381 = vst [vmem:[%s569_s25 + $0x8] sm:$0xff] %v349_v30  ;;  %v350_v35 = vsel %vm286_vm2, %v254_v18, %v318_v27  ;;  %v351_v36 = vsel %vm287_vm3, %v255_v20, %v319_v28  ;;  %vm289_vm5 = vcmp.ge.f32.partialorder %v257_v22, 0.0  ;;  %v321_v37 = vmul.f32 0.2, %v257_v22  ;;  %v192_v12 = vld [vmem:[%s536_s20 + $0x90] sm:$0xff]  ;;  %v193_v13 = vld [vmem:[%s536_s20 + $0x98] sm:$0xff] }
  0x19   : > { %382 = vst [vmem:[%s569_s25 + $0x10] sm:$0xff] %v350_v35  ;;  %383 = vst [vmem:[%s569_s25 + $0x18] sm:$0xff] %v351_v36  ;;  %v352_v38 = vsel %vm288_vm4, %v256_v21, %v320_v31  ;;  %v258_v39 = vadd.f32 %v541_v1, %v219_v19  ;;  %v259_v40 = vadd.f32 %v541_v1, %v220_v23  ;;  %v195_v25 = vld [vmem:[%s536_s20 + $0xa8] sm:$0xff]  ;;  %v196_v36 = vld [vmem:[%s536_s20 + $0xb0] sm:$0xff] }
  0x1a   : > { %v221_v41 = vmul.f32 %v531_v0, %v182_v24  ;;  %384 = vst [vmem:[%s569_s25 + $0x20] sm:$0xff] %v352_v38  ;;  %v353_v42 = vsel %vm289_vm5, %v257_v22, %v321_v37  ;;  %v222_v43 = vmul.f32 %v531_v0, %v183_v32  ;;  %v223_v44 = vmul.f32 %v531_v0, %v184_v33  ;;  %v194_v24 = vld [vmem:[%s536_s20 + $0xa0] sm:$0xff]  ;;  %v197_v37 = vld [vmem:[%s536_s20 + $0xb8] sm:$0xff] }
  0x1b   : > { %v224_v45 = vmul.f32 %v531_v0, %v185_v34  ;;  %385 = vst [vmem:[%s569_s25 + $0x28] sm:$0xff] %v353_v42  ;;  %vm290_vm6 = vcmp.ge.f32.partialorder %v258_v39, 0.0  ;;  %v322_v48 = vmul.f32 0.2, %v258_v39  ;;  %vm291_vm7 = vcmp.ge.f32.partialorder %v259_v40, 0.0 }
  0x1c   : > { %v323_v49 = vmul.f32 0.2, %v259_v40  ;;  %v260_v50 = vadd.f32 %v541_v1, %v221_v41  ;;  %v261_v51 = vadd.f32 %v541_v1, %v222_v43  ;;  %v262_v52 = vadd.f32 %v541_v1, %v223_v44 }
  0x1d   : > { %v263_v53 = vadd.f32 %v541_v1, %v224_v45  ;;  %v354_v54 = vsel %vm290_vm6, %v258_v39, %v322_v48  ;;  %v225_v56 = vmul.f32 %v531_v0, %v186_v46  ;;  %v226_v57 = vmul.f32 %v531_v0, %v187_v47  ;;  %v198_v46 = vld [vmem:[%s536_s20 + $0xc0] sm:$0xff]  ;;  %v199_v47 = vld [vmem:[%s536_s20 + $0xc8] sm:$0xff] }
  0x1e   : > { %v355_v55 = vsel %vm291_vm7, %v259_v40, %v323_v49  ;;  %386 = vst [vmem:[%s569_s25 + $0x30] sm:$0xff] %v354_v54  ;;  %vm292_vm8 = vcmp.ge.f32.partialorder %v260_v50, 0.0  ;;  %v324_v60 = vmul.f32 0.2, %v260_v50  ;;  %vm293_vm9 = vcmp.ge.f32.partialorder %v261_v51, 0.0 }
  0x1f   : > { %387 = vst [vmem:[%s569_s25 + $0x38] sm:$0xff] %v355_v55  ;;  %v325_v61 = vmul.f32 0.2, %v261_v51  ;;  %vm294_vm10 = vcmp.ge.f32.partialorder %v262_v52, 0.0  ;;  %v326_v62 = vmul.f32 0.2, %v262_v52  ;;  %v264_v4 = vadd.f32 %v541_v1, %v225_v56 }
  0x20   : > { %vm295_vm11 = vcmp.ge.f32.partialorder %v263_v53, 0.0  ;;  %v327_v63 = vmul.f32 0.2, %v263_v53  ;;  %v356_v2 = vsel %vm292_vm8, %v260_v50, %v324_v60  ;;  %v265_v5 = vadd.f32 %v541_v1, %v226_v57 }
  0x21   : > { %v357_v3 = vsel %vm293_vm9, %v261_v51, %v325_v61  ;;  %388 = vst [vmem:[%s569_s25 + $0x40] sm:$0xff] %v356_v2  ;;  %v358_v8 = vsel %vm294_vm10, %v262_v52, %v326_v62  ;;  %v227_v10 = vmul.f32 %v531_v0, %v188_v58  ;;  %v228_v11 = vmul.f32 %v531_v0, %v189_v59  ;;  %v200_v52 = vld [vmem:[%s536_s20 + $0xd0] sm:$0xff]  ;;  %v202_v2 = vld [vmem:[%s536_s20 + $0xe0] sm:$0xff] }
  0x22   : > { %389 = vst [vmem:[%s569_s25 + $0x48] sm:$0xff] %v357_v3  ;;  %v359_v9 = vsel %vm295_vm11, %v263_v53, %v327_v63  ;;  %390 = vst [vmem:[%s569_s25 + $0x50] sm:$0xff] %v358_v8  ;;  %vm296_vm12 = vcmp.ge.f32.partialorder %v264_v4, 0.0  ;;  %v328_v14 = vmul.f32 0.2, %v264_v4  ;;  %vm297_vm13 = vcmp.ge.f32.partialorder %v265_v5, 0.0 }
  0x23   : > { %391 = vst [vmem:[%s569_s25 + $0x58] sm:$0xff] %v359_v9  ;;  %v329_v15 = vmul.f32 0.2, %v265_v5  ;;  %v266_v16 = vadd.f32 %v541_v1, %v227_v10  ;;  %v267_v17 = vadd.f32 %v541_v1, %v228_v11  ;;  %v229_v18 = vmul.f32 %v531_v0, %v190_v6  ;;  %v201_v53 = vld [vmem:[%s536_s20 + $0xd8] sm:$0xff]  ;;  %v203_v3 = vld [vmem:[%s536_s20 + $0xe8] sm:$0xff] }
  0x24   : > { %v230_v19 = vmul.f32 %v531_v0, %v191_v7  ;;  %v360_v20 = vsel %vm296_vm12, %v264_v4, %v328_v14  ;;  %v231_v22 = vmul.f32 %v531_v0, %v192_v12  ;;  %v232_v23 = vmul.f32 %v531_v0, %v193_v13  ;;  %v204_v14 = vld [vmem:[%s536_s20 + $0xf0] sm:$0xff] }
  0x25   : > { %v361_v21 = vsel %vm297_vm13, %v265_v5, %v329_v15  ;;  %392 = vst [vmem:[%s569_s25 + $0x60] sm:$0xff] %v360_v20  ;;  %vm298_vm14 = vcmp.ge.f32.partialorder %v266_v16, 0.0  ;;  %v330_v26 = vmul.f32 0.2, %v266_v16  ;;  %vm299_vm15 = vcmp.ge.f32.partialorder %v267_v17, 0.0  ;;  %v205_v15 = vld [vmem:[%s536_s20 + $0xf8] sm:$0xff] }
  0x26   : > { %393 = vst [vmem:[%s569_s25 + $0x68] sm:$0xff] %v361_v21  ;;  %v331_v27 = vmul.f32 0.2, %v267_v17  ;;  %v268_v28 = vadd.f32 %v541_v1, %v229_v18  ;;  %v269_v29 = vadd.f32 %v541_v1, %v230_v19  ;;  %v270_v30 = vadd.f32 %v541_v1, %v231_v22 }
  0x27   : > { %v271_v31 = vadd.f32 %v541_v1, %v232_v23  ;;  %v362_v32 = vsel %vm298_vm14, %v266_v16, %v330_v26  ;;  %v233_v34 = vmul.f32 %v531_v0, %v194_v24  ;;  %v234_v35 = vmul.f32 %v531_v0, %v195_v25 }
  0x28   : > { %v363_v33 = vsel %vm299_vm15, %v267_v17, %v331_v27  ;;  %394 = vst [vmem:[%s569_s25 + $0x70] sm:$0xff] %v362_v32  ;;  %vm300_vm0 = vcmp.ge.f32.partialorder %v268_v28, 0.0  ;;  %v332_v38 = vmul.f32 0.2, %v268_v28  ;;  %vm301_vm1 = vcmp.ge.f32.partialorder %v269_v29, 0.0 }
  0x29   : > { %395 = vst [vmem:[%s569_s25 + $0x78] sm:$0xff] %v363_v33  ;;  %v333_v39 = vmul.f32 0.2, %v269_v29  ;;  %vm302_vm2 = vcmp.ge.f32.partialorder %v270_v30, 0.0  ;;  %v334_v40 = vmul.f32 0.2, %v270_v30  ;;  %v272_v44 = vadd.f32 %v541_v1, %v233_v34 }
  0x2a   : > { %vm303_vm3 = vcmp.ge.f32.partialorder %v271_v31, 0.0  ;;  %v335_v41 = vmul.f32 0.2, %v271_v31  ;;  %v364_v42 = vsel %vm300_vm0, %v268_v28, %v332_v38  ;;  %v273_v45 = vadd.f32 %v541_v1, %v234_v35 }
  0x2b   : > { %v365_v43 = vsel %vm301_vm1, %v269_v29, %v333_v39  ;;  %396 = vst [vmem:[%s569_s25 + $0x80] sm:$0xff] %v364_v42  ;;  %v366_v48 = vsel %vm302_vm2, %v270_v30, %v334_v40  ;;  %v235_v50 = vmul.f32 %v531_v0, %v196_v36  ;;  %v236_v51 = vmul.f32 %v531_v0, %v197_v37 }
  0x2c   : > { %397 = vst [vmem:[%s569_s25 + $0x88] sm:$0xff] %v365_v43  ;;  %v367_v49 = vsel %vm303_vm3, %v271_v31, %v335_v41  ;;  %398 = vst [vmem:[%s569_s25 + $0x90] sm:$0xff] %v366_v48  ;;  %vm304_vm4 = vcmp.ge.f32.partialorder %v272_v44, 0.0  ;;  %v336_v54 = vmul.f32 0.2, %v272_v44  ;;  %vm305_vm5 = vcmp.ge.f32.partialorder %v273_v45, 0.0 }
  0x2d   : > { %399 = vst [vmem:[%s569_s25 + $0x98] sm:$0xff] %v367_v49  ;;  %v337_v55 = vmul.f32 0.2, %v273_v45  ;;  %v274_v56 = vadd.f32 %v541_v1, %v235_v50  ;;  %v275_v57 = vadd.f32 %v541_v1, %v236_v51  ;;  %v237_v58 = vmul.f32 %v531_v0, %v198_v46 }
  0x2e   : > { %v238_v59 = vmul.f32 %v531_v0, %v199_v47  ;;  %v368_v60 = vsel %vm304_vm4, %v272_v44, %v336_v54  ;;  %v239_v62 = vmul.f32 %v531_v0, %v200_v52  ;;  %v240_v63 = vmul.f32 %v531_v0, %v201_v53 }
  0x2f   : > { %v369_v61 = vsel %vm305_vm5, %v273_v45, %v337_v55  ;;  %400 = vst [vmem:[%s569_s25 + $0xa0] sm:$0xff] %v368_v60  ;;  %vm306_vm6 = vcmp.ge.f32.partialorder %v274_v56, 0.0  ;;  %v338_v4 = vmul.f32 0.2, %v274_v56  ;;  %vm307_vm7 = vcmp.ge.f32.partialorder %v275_v57, 0.0 }
  0x30   : > { %401 = vst [vmem:[%s569_s25 + $0xa8] sm:$0xff] %v369_v61  ;;  %v339_v5 = vmul.f32 0.2, %v275_v57  ;;  %v276_v6 = vadd.f32 %v541_v1, %v237_v58  ;;  %v277_v7 = vadd.f32 %v541_v1, %v238_v59  ;;  %v278_v8 = vadd.f32 %v541_v1, %v239_v62 }
  0x31   : > { %v279_v9 = vadd.f32 %v541_v1, %v240_v63  ;;  %v370_v10 = vsel %vm306_vm6, %v274_v56, %v338_v4  ;;  %v241_v12 = vmul.f32 %v531_v0, %v202_v2  ;;  %v242_v13 = vmul.f32 %v531_v0, %v203_v3 }
  0x32   : > { %v371_v11 = vsel %vm307_vm7, %v275_v57, %v339_v5  ;;  %402 = vst [vmem:[%s569_s25 + $0xb0] sm:$0xff] %v370_v10  ;;  %vm308_vm8 = vcmp.ge.f32.partialorder %v276_v6, 0.0  ;;  %v340_v16 = vmul.f32 0.2, %v276_v6  ;;  %vm309_vm9 = vcmp.ge.f32.partialorder %v277_v7, 0.0 }
  0x33   : > { %403 = vst [vmem:[%s569_s25 + $0xb8] sm:$0xff] %v371_v11  ;;  %v341_v17 = vmul.f32 0.2, %v277_v7  ;;  %vm310_vm10 = vcmp.ge.f32.partialorder %v278_v8, 0.0  ;;  %v342_v18 = vmul.f32 0.2, %v278_v8  ;;  %v280_v22 = vadd.f32 %v541_v1, %v241_v12 }
  0x34   : > { %vm311_vm11 = vcmp.ge.f32.partialorder %v279_v9, 0.0  ;;  %v343_v19 = vmul.f32 0.2, %v279_v9  ;;  %v372_v20 = vsel %vm308_vm8, %v276_v6, %v340_v16  ;;  %v281_v23 = vadd.f32 %v541_v1, %v242_v13 }
  0x35   : > { %v373_v21 = vsel %vm309_vm9, %v277_v7, %v341_v17  ;;  %404 = vst [vmem:[%s569_s25 + $0xc0] sm:$0xff] %v372_v20  ;;  %v374_v24 = vsel %vm310_vm10, %v278_v8, %v342_v18  ;;  %v243_v26 = vmul.f32 %v531_v0, %v204_v14  ;;  %v244_v27 = vmul.f32 %v531_v0, %v205_v15 }
  0x36   : > { %405 = vst [vmem:[%s569_s25 + $0xc8] sm:$0xff] %v373_v21  ;;  %v375_v25 = vsel %vm311_vm11, %v279_v9, %v343_v19  ;;  %406 = vst [vmem:[%s569_s25 + $0xd0] sm:$0xff] %v374_v24  ;;  %vm312_vm12 = vcmp.ge.f32.partialorder %v280_v22, 0.0  ;;  %v344_v28 = vmul.f32 0.2, %v280_v22  ;;  %vm313_vm13 = vcmp.ge.f32.partialorder %v281_v23, 0.0 }
  0x37   : > { %407 = vst [vmem:[%s569_s25 + $0xd8] sm:$0xff] %v375_v25  ;;  %v345_v29 = vmul.f32 0.2, %v281_v23  ;;  %v282_v30 = vadd.f32 %v541_v1, %v243_v26  ;;  %v283_v31 = vadd.f32 %v541_v1, %v244_v27 }
  0x38   : > { %v376_v32 = vsel %vm312_vm12, %v280_v22, %v344_v28 }
  0x39   : > { %v377_v33 = vsel %vm313_vm13, %v281_v23, %v345_v29  ;;  %408 = vst [vmem:[%s569_s25 + $0xe0] sm:$0xff] %v376_v32  ;;  %vm314_vm14 = vcmp.ge.f32.partialorder %v282_v30, 0.0  ;;  %v346_v34 = vmul.f32 0.2, %v282_v30  ;;  %vm315_vm15 = vcmp.ge.f32.partialorder %v283_v31, 0.0 }
  0x3a   : > { %409 = vst [vmem:[%s569_s25 + $0xe8] sm:$0xff] %v377_v33  ;;  %v347_v0 = vmul.f32 0.2, %v283_v31 }
  0x3b   : > { %v378_v35 = vsel %vm314_vm14, %v282_v30, %v346_v34 }
  0x3c   : > { %v379_v36 = vsel %vm315_vm15, %v283_v31, %v347_v0  ;;  %410 = vst [vmem:[%s569_s25 + $0xf0] sm:$0xff] %v378_v35 }
  0x3d   : > { %411 = vst [vmem:[%s569_s25 + $0xf8] sm:$0xff] %v379_v36 }
  0x3e PF: > { %s13_s12 = sadd.s32 1, %s495_s12  }
  0x3f   : > { %p10_p4 = scmp.ge.s32.totalorder %s13_s12, 4  }
  0x41   :  { %12 = sbr.rel (!%p10_p4) target bundleno = 1 (0x1), region = 62 }

// kernel: discriminator_forward.11
= control target key start
LH: loop header
LB: loop body
LE: loop exit
PB: predicated region body
PF: predicated region fallthrough
CT: control target
= control target key end

     0   :  { %v48_v0 = vlaneseq  ;;  %s556_s1 = inlined_call_operand.vmem [shape: f32[1,256], index: 1, kind: input, shape index: {}]   ;;  %s557_s2 = inlined_call_operand.vmem [shape: f32[1,256], index: 2, kind: input, shape index: {}]   ;;  %s558_s0 = inlined_call_operand.vmem [shape: f32[128,256], index: 0, kind: input, shape index: {}]   ;;  %s559_s3 = inlined_call_operand.vmem [shape: f32[128,256], index: 3, kind: output, shape index: {}]  }
   0x1   :  { %v46_v2 = vld [vmem:[%s556_s1] sm:$0x3]  ;;  %v15_v6 = vld [vmem:[%s558_s0 + $0x8] sm:$0xff]  ;;  %v16_v8 = vld [vmem:[%s558_s0 + $0x10] sm:$0xff] }
   0x2   :  { %v49_v1 = vshrl.u32 %v48_v0, 7  ;;  %v90_v3 = vld [vmem:[%s557_s2] sm:$0x3]  ;;  %v17_v9 = vld [vmem:[%s558_s0 + $0x18] sm:$0xff]  ;;  %v19_v15 = vld [vmem:[%s558_s0 + $0x28] sm:$0xff] }
   0x3   :  { %v14_v4 = vld [vmem:[%s558_s0] sm:$0xff]  ;;  %v20_v16 = vld [vmem:[%s558_s0 + $0x30] sm:$0xff]  ;;  %v21_v17 = vld [vmem:[%s558_s0 + $0x38] sm:$0xff] }
   0x4   :  { %v50_v5 = vsub.s32 0, %v49_v1  ;;  %v54_v7 = vsub.s32 1, %v49_v1  ;;  %v18_v10 = vld [vmem:[%s558_s0 + $0x20] sm:$0xff]  ;;  %v23_v42 = vld [vmem:[%s558_s0 + $0x48] sm:$0xff]  ;;  %v24_v46 = vld [vmem:[%s558_s0 + $0x50] sm:$0xff] }
   0x5   :  { %v22_v41 = vld [vmem:[%s558_s0 + $0x40] sm:$0xff]  ;;  %v25_v47 = vld [vmem:[%s558_s0 + $0x58] sm:$0xff]  ;;  %v27_v51 = vld [vmem:[%s558_s0 + $0x68] sm:$0xff] }
   0x6   :  { %v307_v11 = vrot.slane %v46_v2, %v50_v5  ;;  %v309_v12 = vrot.slane %v90_v3, %v50_v5  ;;  %v311_v13 = vrot.slane %v46_v2, %v54_v7  ;;  %v313_v14 = vrot.slane %v90_v3, %v54_v7  ;;  %v26_v48 = vld [vmem:[%s558_s0 + $0x60] sm:$0xff]  ;;  %v28_v56 = vld [vmem:[%s558_s0 + $0x70] sm:$0xff]  ;;  %v29_v5 = vld [vmem:[%s558_s0 + $0x78] sm:$0xff] }
   0x7   :  { %v31_v7 = vld [vmem:[%s558_s0 + $0x88] sm:$0xff] }
   0x8   :  { %v58_v18 = vmul.f32 %v307_v11, %v14_v4  ;;  %v59_v19 = vmul.f32 %v311_v13, %v15_v6  ;;  %v60_v20 = vmul.f32 %v307_v11, %v16_v8  ;;  %v61_v21 = vmul.f32 %v311_v13, %v17_v9  ;;  %v30_v6 = vld [vmem:[%s558_s0 + $0x80] sm:$0xff] }
   0x9   :  { %v62_v22 = vmul.f32 %v307_v11, %v18_v10  ;;  %v63_v23 = vmul.f32 %v311_v13, %v19_v15  ;;  %v64_v24 = vmul.f32 %v307_v11, %v20_v16  ;;  %v65_v25 = vmul.f32 %v311_v13, %v21_v17 }
   0xa   :  { %v102_v26 = vadd.f32 %v309_v12, %v58_v18  ;;  %v103_v27 = vadd.f32 %v313_v14, %v59_v19  ;;  %v104_v28 = vadd.f32 %v309_v12, %v60_v20  ;;  %v105_v29 = vadd.f32 %v313_v14, %v61_v21 }
   0xb   :  { %v106_v30 = vadd.f32 %v309_v12, %v62_v22  ;;  %v107_v31 = vadd.f32 %v313_v14, %v63_v23  ;;  %v108_v32 = vadd.f32 %v309_v12, %v64_v24  ;;  %v109_v33 = vadd.f32 %v313_v14, %v65_v25  ;;  %v32_v23 = vld [vmem:[%s558_s0 + $0x90] sm:$0xff] }
   0xc   :  { %vm134_vm0 = vcmp.ge.f32.partialorder %v102_v26, 0.0  ;;  %v166_v34 = vmul.f32 0.2, %v102_v26  ;;  %vm135_vm1 = vcmp.ge.f32.partialorder %v103_v27, 0.0  ;;  %v167_v35 = vmul.f32 0.2, %v103_v27 }
   0xd   :  { %vm136_vm2 = vcmp.ge.f32.partialorder %v104_v28, 0.0  ;;  %v168_v36 = vmul.f32 0.2, %v104_v28  ;;  %vm137_vm3 = vcmp.ge.f32.partialorder %v105_v29, 0.0  ;;  %v169_v37 = vmul.f32 0.2, %v105_v29 }
   0xe   :  { %v198_v38 = vsel %vm134_vm0, %v102_v26, %v166_v34  ;;  %v199_v39 = vsel %vm135_vm1, %v103_v27, %v167_v35  ;;  %vm138_vm4 = vcmp.ge.f32.partialorder %v106_v30, 0.0  ;;  %v170_v40 = vmul.f32 0.2, %v106_v30 }
   0xf   :  { %230 = vst [vmem:[%s559_s3] sm:$0xff] %v198_v38  ;;  %231 = vst [vmem:[%s559_s3 + $0x8] sm:$0xff] %v199_v39  ;;  %v200_v43 = vsel %vm136_vm2, %v104_v28, %v168_v36  ;;  %v201_v44 = vsel %vm137_vm3, %v105_v29, %v169_v37  ;;  %vm139_vm5 = vcmp.ge.f32.partialorder %v107_v31, 0.0  ;;  %v171_v45 = vmul.f32 0.2, %v107_v31  ;;  %v33_v28 = vld [vmem:[%s558_s0 + $0x98] sm:$0xff]  ;;  %v34_v29 = vld [vmem:[%s558_s0 + $0xa0] sm:$0xff] }
  0x10   :  { %232 = vst [vmem:[%s559_s3 + $0x10] sm:$0xff] %v200_v43  ;;  %233 = vst [vmem:[%s559_s3 + $0x18] sm:$0xff] %v201_v44  ;;  %v202_v49 = vsel %vm138_vm4, %v106_v30, %v170_v40  ;;  %vm140_vm6 = vcmp.ge.f32.partialorder %v108_v32, 0.0  ;;  %v172_v50 = vmul.f32 0.2, %v108_v32  ;;  %vm141_vm7 = vcmp.ge.f32.partialorder %v109_v33, 0.0 }
  0x11   :  { %234 = vst [vmem:[%s559_s3 + $0x20] sm:$0xff] %v202_v49  ;;  %v203_v52 = vsel %vm139_vm5, %v107_v31, %v171_v45  ;;  %v173_v53 = vmul.f32 0.2, %v109_v33  ;;  %v66_v54 = vmul.f32 %v307_v11, %v22_v41  ;;  %v67_v55 = vmul.f32 %v311_v13, %v23_v42  ;;  %v35_v40 = vld [vmem:[%s558_s0 + $0xa8] sm:$0xff] }
  0x12   :  { %235 = vst [vmem:[%s559_s3 + $0x28] sm:$0xff] %v203_v52  ;;  %v204_v57 = vsel %vm140_vm6, %v108_v32, %v172_v50  ;;  %v68_v58 = vmul.f32 %v307_v11, %v24_v46  ;;  %v69_v59 = vmul.f32 %v311_v13, %v25_v47  ;;  %v70_v60 = vmul.f32 %v307_v11, %v26_v48  ;;  %v36_v50 = vld [vmem:[%s558_s0 + $0xb0] sm:$0xff]  ;;  %v38_v52 = vld [vmem:[%s558_s0 + $0xc0] sm:$0xff] }
  0x13   :  { %236 = vst [vmem:[%s559_s3 + $0x30] sm:$0xff] %v204_v57  ;;  %v205_v61 = vsel %vm141_vm7, %v109_v33, %v173_v53  ;;  %v110_v62 = vadd.f32 %v309_v12, %v66_v54  ;;  %v111_v63 = vadd.f32 %v313_v14, %v67_v55  ;;  %v71_v0 = vmul.f32 %v311_v13, %v27_v51  ;;  %v37_v51 = vld [vmem:[%s558_s0 + $0xb8] sm:$0xff] }
  0x14   :  { %237 = vst [vmem:[%s559_s3 + $0x38] sm:$0xff] %v205_v61  ;;  %v112_v1 = vadd.f32 %v309_v12, %v68_v58  ;;  %v113_v2 = vadd.f32 %v313_v14, %v69_v59  ;;  %v114_v3 = vadd.f32 %v309_v12, %v70_v60  ;;  %v72_v4 = vmul.f32 %v307_v11, %v28_v56  ;;  %v39_v58 = vld [vmem:[%s558_s0 + $0xc8] sm:$0xff] }
  0x15   :  { %vm142_vm8 = vcmp.ge.f32.partialorder %v110_v62, 0.0  ;;  %v174_v8 = vmul.f32 0.2, %v110_v62  ;;  %vm143_vm9 = vcmp.ge.f32.partialorder %v111_v63, 0.0  ;;  %v175_v9 = vmul.f32 0.2, %v111_v63 }
  0x16   :  { %vm144_vm10 = vcmp.ge.f32.partialorder %v112_v1, 0.0  ;;  %v176_v10 = vmul.f32 0.2, %v112_v1  ;;  %vm145_vm11 = vcmp.ge.f32.partialorder %v113_v2, 0.0  ;;  %v177_v15 = vmul.f32 0.2, %v113_v2 }
  0x17   :  { %v206_v16 = vsel %vm142_vm8, %v110_v62, %v174_v8  ;;  %v207_v17 = vsel %vm143_vm9, %v111_v63, %v175_v9  ;;  %vm146_vm12 = vcmp.ge.f32.partialorder %v114_v3, 0.0  ;;  %v178_v18 = vmul.f32 0.2, %v114_v3  ;;  %v40_v63 = vld [vmem:[%s558_s0 + $0xd0] sm:$0xff] }
  0x18   :  { %238 = vst [vmem:[%s559_s3 + $0x40] sm:$0xff] %v206_v16  ;;  %239 = vst [vmem:[%s559_s3 + $0x48] sm:$0xff] %v207_v17  ;;  %v208_v19 = vsel %vm144_vm10, %v112_v1, %v176_v10  ;;  %v209_v20 = vsel %vm145_vm11, %v113_v2, %v177_v15  ;;  %v115_v21 = vadd.f32 %v313_v14, %v71_v0  ;;  %v41_v0 = vld [vmem:[%s558_s0 + $0xd8] sm:$0xff]  ;;  %v42_v1 = vld [vmem:[%s558_s0 + $0xe0] sm:$0xff] }
  0x19   :  { %v116_v22 = vadd.f32 %v309_v12, %v72_v4  ;;  %240 = vst [vmem:[%s559_s3 + $0x50] sm:$0xff] %v208_v19  ;;  %241 = vst [vmem:[%s559_s3 + $0x58] sm:$0xff] %v209_v20  ;;  %v210_v24 = vsel %vm146_vm12, %v114_v3, %v178_v18  ;;  %v73_v25 = vmul.f32 %v311_v13, %v29_v5 }
  0x1a   :  { %v74_v26 = vmul.f32 %v307_v11, %v30_v6  ;;  %v75_v27 = vmul.f32 %v311_v13, %v31_v7  ;;  %242 = vst [vmem:[%s559_s3 + $0x60] sm:$0xff] %v210_v24  ;;  %vm147_vm13 = vcmp.ge.f32.partialorder %v115_v21, 0.0  ;;  %v179_v30 = vmul.f32 0.2, %v115_v21 }
  0x1b   :  { %vm148_vm14 = vcmp.ge.f32.partialorder %v116_v22, 0.0  ;;  %v180_v31 = vmul.f32 0.2, %v116_v22  ;;  %v117_v32 = vadd.f32 %v313_v14, %v73_v25  ;;  %v76_v35 = vmul.f32 %v307_v11, %v32_v23 }
  0x1c   :  { %v118_v33 = vadd.f32 %v309_v12, %v74_v26  ;;  %v119_v34 = vadd.f32 %v313_v14, %v75_v27  ;;  %v211_v36 = vsel %vm147_vm13, %v115_v21, %v179_v30  ;;  %v77_v38 = vmul.f32 %v311_v13, %v33_v28  ;;  %v43_v26 = vld [vmem:[%s558_s0 + $0xe8] sm:$0xff]  ;;  %v44_v27 = vld [vmem:[%s558_s0 + $0xf0] sm:$0xff]  ;;  %v45_v30 = vld [vmem:[%s558_s0 + $0xf8] sm:$0xff] }
  0x1d   :  { %v212_v37 = vsel %vm148_vm14, %v116_v22, %v180_v31  ;;  %v78_v39 = vmul.f32 %v307_v11, %v34_v29  ;;  %243 = vst [vmem:[%s559_s3 + $0x68] sm:$0xff] %v211_v36  ;;  %vm149_vm15 = vcmp.ge.f32.partialorder %v117_v32, 0.0  ;;  %v181_v41 = vmul.f32 0.2, %v117_v32 }
  0x1e   :  { %244 = vst [vmem:[%s559_s3 + $0x70] sm:$0xff] %v212_v37  ;;  %vm150_vm0 = vcmp.ge.f32.partialorder %v118_v33, 0.0  ;;  %v182_v42 = vmul.f32 0.2, %v118_v33  ;;  %vm151_vm1 = vcmp.ge.f32.partialorder %v119_v34, 0.0  ;;  %v120_v44 = vadd.f32 %v309_v12, %v76_v35 }
  0x1f   :  { %v183_v43 = vmul.f32 0.2, %v119_v34  ;;  %v121_v45 = vadd.f32 %v313_v14, %v77_v38  ;;  %v213_v46 = vsel %vm149_vm15, %v117_v32, %v181_v41  ;;  %v122_v48 = vadd.f32 %v309_v12, %v78_v39 }
  0x20   :  { %v214_v47 = vsel %vm150_vm0, %v118_v33, %v182_v42  ;;  %v79_v49 = vmul.f32 %v311_v13, %v35_v40  ;;  %245 = vst [vmem:[%s559_s3 + $0x78] sm:$0xff] %v213_v46  ;;  %vm152_vm2 = vcmp.ge.f32.partialorder %v120_v44, 0.0  ;;  %v184_v54 = vmul.f32 0.2, %v120_v44 }
  0x21   :  { %246 = vst [vmem:[%s559_s3 + $0x80] sm:$0xff] %v214_v47  ;;  %v215_v53 = vsel %vm151_vm1, %v119_v34, %v183_v43  ;;  %vm153_vm3 = vcmp.ge.f32.partialorder %v121_v45, 0.0  ;;  %v185_v55 = vmul.f32 0.2, %v121_v45  ;;  %vm154_vm4 = vcmp.ge.f32.partialorder %v122_v48, 0.0 }
  0x22   :  { %247 = vst [vmem:[%s559_s3 + $0x88] sm:$0xff] %v215_v53  ;;  %v186_v56 = vmul.f32 0.2, %v122_v48  ;;  %v123_v57 = vadd.f32 %v313_v14, %v79_v49  ;;  %v216_v59 = vsel %vm152_vm2, %v120_v44, %v184_v54  ;;  %v80_v60 = vmul.f32 %v307_v11, %v36_v50 }
  0x23   :  { %v81_v61 = vmul.f32 %v311_v13, %v37_v51  ;;  %v82_v62 = vmul.f32 %v307_v11, %v38_v52  ;;  %248 = vst [vmem:[%s559_s3 + $0x90] sm:$0xff] %v216_v59  ;;  %v217_v2 = vsel %vm153_vm3, %v121_v45, %v185_v55  ;;  %v83_v8 = vmul.f32 %v311_v13, %v39_v58 }
  0x24   :  { %v218_v3 = vsel %vm154_vm4, %v122_v48, %v186_v56  ;;  %vm155_vm5 = vcmp.ge.f32.partialorder %v123_v57, 0.0  ;;  %v187_v4 = vmul.f32 0.2, %v123_v57  ;;  %249 = vst [vmem:[%s559_s3 + $0x98] sm:$0xff] %v217_v2  ;;  %v124_v5 = vadd.f32 %v309_v12, %v80_v60 }
  0x25   :  { %250 = vst [vmem:[%s559_s3 + $0xa0] sm:$0xff] %v218_v3  ;;  %v125_v6 = vadd.f32 %v313_v14, %v81_v61  ;;  %v126_v7 = vadd.f32 %v309_v12, %v82_v62  ;;  %v84_v10 = vmul.f32 %v307_v11, %v40_v63  ;;  %v85_v15 = vmul.f32 %v311_v13, %v41_v0 }
  0x26   :  { %v219_v9 = vsel %vm155_vm5, %v123_v57, %v187_v4  ;;  %v86_v16 = vmul.f32 %v307_v11, %v42_v1  ;;  %vm156_vm6 = vcmp.ge.f32.partialorder %v124_v5, 0.0  ;;  %v188_v17 = vmul.f32 0.2, %v124_v5 }
  0x27   :  { %251 = vst [vmem:[%s559_s3 + $0xa8] sm:$0xff] %v219_v9  ;;  %vm157_vm7 = vcmp.ge.f32.partialorder %v125_v6, 0.0  ;;  %v189_v18 = vmul.f32 0.2, %v125_v6  ;;  %vm158_vm8 = vcmp.ge.f32.partialorder %v126_v7, 0.0  ;;  %v127_v20 = vadd.f32 %v313_v14, %v83_v8 }
  0x28   :  { %v190_v19 = vmul.f32 0.2, %v126_v7  ;;  %v128_v21 = vadd.f32 %v309_v12, %v84_v10  ;;  %v220_v22 = vsel %vm156_vm6, %v124_v5, %v188_v17  ;;  %v129_v24 = vadd.f32 %v313_v14, %v85_v15 }
  0x29   :  { %v221_v23 = vsel %vm157_vm7, %v125_v6, %v189_v18  ;;  %v130_v25 = vadd.f32 %v309_v12, %v86_v16  ;;  %252 = vst [vmem:[%s559_s3 + $0xb0] sm:$0xff] %v220_v22  ;;  %vm159_vm9 = vcmp.ge.f32.partialorder %v127_v20, 0.0  ;;  %v191_v29 = vmul.f32 0.2, %v127_v20 }
  0x2a   :  { %253 = vst [vmem:[%s559_s3 + $0xb8] sm:$0xff] %v221_v23  ;;  %v222_v28 = vsel %vm158_vm8, %v126_v7, %v190_v19  ;;  %vm160_vm10 = vcmp.ge.f32.partialorder %v128_v21, 0.0  ;;  %v192_v31 = vmul.f32 0.2, %v128_v21  ;;  %vm161_vm11 = vcmp.ge.f32.partialorder %v129_v24, 0.0 }
  0x2b   :  { %254 = vst [vmem:[%s559_s3 + $0xc0] sm:$0xff] %v222_v28  ;;  %v193_v32 = vmul.f32 0.2, %v129_v24  ;;  %vm162_vm12 = vcmp.ge.f32.partialorder %v130_v25, 0.0  ;;  %v223_v33 = vsel %vm159_vm9, %v127_v20, %v191_v29  ;;  %v194_v34 = vmul.f32 0.2, %v130_v25 }
  0x2c   :  { %v87_v35 = vmul.f32 %v311_v13, %v43_v26  ;;  %v88_v36 = vmul.f32 %v307_v11, %v44_v27  ;;  %255 = vst [vmem:[%s559_s3 + $0xc8] sm:$0xff] %v223_v33  ;;  %v224_v37 = vsel %vm160_vm10, %v128_v21, %v192_v31  ;;  %v89_v39 = vmul.f32 %v311_v13, %v45_v30 }
  0x2d   :  { %v225_v38 = vsel %vm161_vm11, %v129_v24, %v193_v32  ;;  %256 = vst [vmem:[%s559_s3 + $0xd0] sm:$0xff] %v224_v37  ;;  %v226_v40 = vsel %vm162_vm12, %v130_v25, %v194_v34 }
  0x2e   :  { %257 = vst [vmem:[%s559_s3 + $0xd8] sm:$0xff] %v225_v38  ;;  %v131_v41 = vadd.f32 %v313_v14, %v87_v35  ;;  %v132_v11 = vadd.f32 %v309_v12, %v88_v36  ;;  %258 = vst [vmem:[%s559_s3 + $0xe0] sm:$0xff] %v226_v40  ;;  %v133_v42 = vadd.f32 %v313_v14, %v89_v39 }
  0x30   :  { %vm163_vm13 = vcmp.ge.f32.partialorder %v131_v41, 0.0  ;;  %v195_v13 = vmul.f32 0.2, %v131_v41  ;;  %vm164_vm14 = vcmp.ge.f32.partialorder %v132_v11, 0.0  ;;  %v196_v43 = vmul.f32 0.2, %v132_v11 }
  0x31   :  { %vm165_vm15 = vcmp.ge.f32.partialorder %v133_v42, 0.0  ;;  %v197_v44 = vmul.f32 0.2, %v133_v42 }
  0x32   :  { %v227_v45 = vsel %vm163_vm13, %v131_v41, %v195_v13  ;;  %v228_v46 = vsel %vm164_vm14, %v132_v11, %v196_v43 }
  0x33   :  { %259 = vst [vmem:[%s559_s3 + $0xe8] sm:$0xff] %v227_v45  ;;  %260 = vst [vmem:[%s559_s3 + $0xf0] sm:$0xff] %v228_v46  ;;  %v229_v12 = vsel %vm165_vm15, %v133_v42, %v197_v44 }
  0x34   :  { %261 = vst [vmem:[%s559_s3 + $0xf8] sm:$0xff] %v229_v12 }

// kernel: discriminator_forward.10
= control target key start
LH: loop header
LB: loop body
LE: loop exit
PB: predicated region body
PF: predicated region fallthrough
CT: control target
= control target key end

     0   :  { %s5104_s15 = smov 0   ;;  %s5106_s16 = smov 0   ;;  %s6400_s0 = inlined_call_operand.vmem [shape: bf16[128,2048], index: 0, kind: input, shape index: {}]   ;;  %s6401_s1 = inlined_call_operand.vmem [shape: bf16[2048,256], index: 1, kind: input, shape index: {}]   ;;  %s6402_s2 = inlined_call_operand.vmem [shape: f32[128,256], index: 2, kind: output, shape index: {0}]   ;;  %s6403_s3 = inlined_call_operand.vmem [shape: f32[1,256], index: 3, kind: output, shape index: {1}]   ;;  %s6404_s4 = inlined_call_operand.vmem [shape: f32[1,256], index: 4, kind: output, shape index: {2}]  }
   0x1   :  { %s5108_s17 = smov 0  }
   0x2 LB: > { %s5120_s18 = sadd.s32 4294967295, %s5077_s17   ;;  %s5123_s19 = sadd.s32 1, %s5077_s17   ;;  %s5077_s17 = sphi %s5108_s17, %s6408_s17   ;;  %s5073_s16 = sphi %s5106_s16, %s6407_s16   ;;  %s5069_s15 = sphi %s5104_s15, %s6406_s15  }
   0x3   : > { %s40_s20 = ssub.s32 %s5077_s17, %s5123_s19  ;;  %s43_s21 = sadd.s32 1, %s5073_s16 }
   0x4   : > { %p41_p0 = scmp.eq.s32.totalorder %s40_s20, 0  ;;  %p50_p1 = scmp.ne.s32.totalorder %s5073_s16, %s5069_s15 }
   0x5   : > { %p51_p2 = scmp.eq.s32.totalorder %s5077_s17, 0  ;;  %p80_p3 = scmp.eq.s32.totalorder %s5120_s18, 1 }
   0x6   : > { %s5133_s22 = scalar_select %p41_p0, %s5073_s16, %s43_s21  }
   0x7   : > { %p52_p4 = por %p51_p2, %p50_p1  ;;  %p5135_p5 = por %p80_p3, %p50_p1 }
   0x8   : > { %p4125_p6 = scmp.ge.s32.totalorder %s5077_s17, 2 }
   0xa   : > { %157 = sbr.rel (%p4125_p6) target bundleno = 191 (0xbf), region = 20 }
  0x11   : > { %160 = sbr.rel (!%p52_p4) target bundleno = 191 (0xbf), region = 24  ;;  %s162_s24 = sand.u32 (%p52_p4), 1, %s5073_s16  }
  0x12   : > { %s4127_s25 = sshll.u32 (%p52_p4), %s5077_s17, 2  ;;  %s4126_s26 = sshll.u32 (%p52_p4), %s162_s24, 10 }
  0x13   : > { %s5145_s29 = scalar_lea.vmem (%p52_p4), %s6401_s1, %s4127_s25  ;;  %s5149_s30 = scalar_lea.vmem (%p52_p4), [#allocation2], %s4126_s26 }
  0x14   : > { %v182_v0 = vld [vmem:[%s5145_s29] sm:$0xf] (%p52_p4)  ;;  %v184_v1 = vld [vmem:[%s5145_s29 + $0x8] sm:$0xf] (%p52_p4)  ;;  %v186_v2 = vld [vmem:[%s5145_s29 + $0x10] sm:$0xf] (%p52_p4) }
  0x15   : > { %183 = vst [vmem:[%s5149_s30] sm:$0xf] (%p52_p4), %v182_v0  ;;  %185 = vst [vmem:[%s5149_s30 + $0x4] sm:$0xf] (%p52_p4), %v184_v1  ;;  %v188_v3 = vld [vmem:[%s5145_s29 + $0x18] sm:$0xf] (%p52_p4) }
  0x16   : > { %v190_v4 = vld [vmem:[%s5145_s29 + $0x20] sm:$0xf] (%p52_p4)  ;;  %187 = vst [vmem:[%s5149_s30 + $0x8] sm:$0xf] (%p52_p4), %v186_v2  ;;  %189 = vst [vmem:[%s5149_s30 + $0xc] sm:$0xf] (%p52_p4), %v188_v3 }
  0x17   : > { %191 = vst [vmem:[%s5149_s30 + $0x10] sm:$0xf] (%p52_p4), %v190_v4  ;;  %v192_v5 = vld [vmem:[%s5145_s29 + $0x28] sm:$0xf] (%p52_p4)  ;;  %v194_v6 = vld [vmem:[%s5145_s29 + $0x30] sm:$0xf] (%p52_p4) }
  0x18   : > { %v196_v7 = vld [vmem:[%s5145_s29 + $0x38] sm:$0xf]  ;;  %193 = vst [vmem:[%s5149_s30 + $0x14] sm:$0xf] %v192_v5  ;;  %195 = vst [vmem:[%s5149_s30 + $0x18] sm:$0xf] %v194_v6 }
  0x19   : > { %197 = vst [vmem:[%s5149_s30 + $0x1c] sm:$0xf] %v196_v7  ;;  %v198_v8 = vld [vmem:[%s5145_s29 + $0x40] sm:$0xf]  ;;  %v200_v9 = vld [vmem:[%s5145_s29 + $0x48] sm:$0xf] }
  0x1a   : > { %v202_v10 = vld [vmem:[%s5145_s29 + $0x50] sm:$0xf]  ;;  %199 = vst [vmem:[%s5149_s30 + $0x20] sm:$0xf] %v198_v8  ;;  %201 = vst [vmem:[%s5149_s30 + $0x24] sm:$0xf] %v200_v9 }
  0x1b   : > { %203 = vst [vmem:[%s5149_s30 + $0x28] sm:$0xf] %v202_v10  ;;  %v204_v11 = vld [vmem:[%s5145_s29 + $0x58] sm:$0xf]  ;;  %v206_v12 = vld [vmem:[%s5145_s29 + $0x60] sm:$0xf] }
  0x1c   : > { %v208_v13 = vld [vmem:[%s5145_s29 + $0x68] sm:$0xf]  ;;  %205 = vst [vmem:[%s5149_s30 + $0x2c] sm:$0xf] %v204_v11  ;;  %207 = vst [vmem:[%s5149_s30 + $0x30] sm:$0xf] %v206_v12 }
  0x1d   : > { %209 = vst [vmem:[%s5149_s30 + $0x34] sm:$0xf] %v208_v13  ;;  %v210_v14 = vld [vmem:[%s5145_s29 + $0x70] sm:$0xf]  ;;  %v212_v15 = vld [vmem:[%s5145_s29 + $0x78] sm:$0xf] }
  0x1e   : > { %v214_v16 = vld [vmem:[%s5145_s29 + $0x80] sm:$0xf]  ;;  %211 = vst [vmem:[%s5149_s30 + $0x38] sm:$0xf] %v210_v14  ;;  %213 = vst [vmem:[%s5149_s30 + $0x3c] sm:$0xf] %v212_v15 }
  0x1f   : > { %215 = vst [vmem:[%s5149_s30 + $0x40] sm:$0xf] %v214_v16  ;;  %v216_v17 = vld [vmem:[%s5145_s29 + $0x88] sm:$0xf]  ;;  %v218_v18 = vld [vmem:[%s5145_s29 + $0x90] sm:$0xf] }
  0x20   : > { %v220_v19 = vld [vmem:[%s5145_s29 + $0x98] sm:$0xf]  ;;  %217 = vst [vmem:[%s5149_s30 + $0x44] sm:$0xf] %v216_v17  ;;  %219 = vst [vmem:[%s5149_s30 + $0x48] sm:$0xf] %v218_v18 }
  0x21   : > { %221 = vst [vmem:[%s5149_s30 + $0x4c] sm:$0xf] %v220_v19  ;;  %v222_v20 = vld [vmem:[%s5145_s29 + $0xa0] sm:$0xf]  ;;  %v224_v21 = vld [vmem:[%s5145_s29 + $0xa8] sm:$0xf] }
  0x22   : > { %v226_v22 = vld [vmem:[%s5145_s29 + $0xb0] sm:$0xf]  ;;  %223 = vst [vmem:[%s5149_s30 + $0x50] sm:$0xf] %v222_v20  ;;  %225 = vst [vmem:[%s5149_s30 + $0x54] sm:$0xf] %v224_v21 }
  0x23   : > { %227 = vst [vmem:[%s5149_s30 + $0x58] sm:$0xf] %v226_v22  ;;  %v228_v23 = vld [vmem:[%s5145_s29 + $0xb8] sm:$0xf]  ;;  %v230_v24 = vld [vmem:[%s5145_s29 + $0xc0] sm:$0xf] }
  0x24   : > { %v232_v25 = vld [vmem:[%s5145_s29 + $0xc8] sm:$0xf]  ;;  %229 = vst [vmem:[%s5149_s30 + $0x5c] sm:$0xf] %v228_v23  ;;  %231 = vst [vmem:[%s5149_s30 + $0x60] sm:$0xf] %v230_v24 }
  0x25   : > { %233 = vst [vmem:[%s5149_s30 + $0x64] sm:$0xf] %v232_v25  ;;  %v234_v26 = vld [vmem:[%s5145_s29 + $0xd0] sm:$0xf]  ;;  %v236_v27 = vld [vmem:[%s5145_s29 + $0xd8] sm:$0xf] }
  0x26   : > { %v238_v28 = vld [vmem:[%s5145_s29 + $0xe0] sm:$0xf]  ;;  %235 = vst [vmem:[%s5149_s30 + $0x68] sm:$0xf] %v234_v26  ;;  %237 = vst [vmem:[%s5149_s30 + $0x6c] sm:$0xf] %v236_v27 }
  0x27   : > { %239 = vst [vmem:[%s5149_s30 + $0x70] sm:$0xf] %v238_v28  ;;  %v240_v29 = vld [vmem:[%s5145_s29 + $0xe8] sm:$0xf]  ;;  %v242_v30 = vld [vmem:[%s5145_s29 + $0xf0] sm:$0xf] }
  0x28   : > { %v244_v31 = vld [vmem:[%s5145_s29 + $0xf8] sm:$0xf]  ;;  %241 = vst [vmem:[%s5149_s30 + $0x74] sm:$0xf] %v240_v29  ;;  %243 = vst [vmem:[%s5149_s30 + $0x78] sm:$0xf] %v242_v30 }
  0x29   : > { %245 = vst [vmem:[%s5149_s30 + $0x7c] sm:$0xf] %v244_v31  ;;  %v246_v32 = vld [vmem:[%s5145_s29 + $0x100] sm:$0xf]  ;;  %v248_v33 = vld [vmem:[%s5145_s29 + $0x108] sm:$0xf] }
  0x2a   : > { %v250_v34 = vld [vmem:[%s5145_s29 + $0x110] sm:$0xf]  ;;  %247 = vst [vmem:[%s5149_s30 + $0x80] sm:$0xf] %v246_v32  ;;  %249 = vst [vmem:[%s5149_s30 + $0x84] sm:$0xf] %v248_v33 }
  0x2b   : > { %251 = vst [vmem:[%s5149_s30 + $0x88] sm:$0xf] %v250_v34  ;;  %v252_v35 = vld [vmem:[%s5145_s29 + $0x118] sm:$0xf]  ;;  %v254_v36 = vld [vmem:[%s5145_s29 + $0x120] sm:$0xf] }
  0x2c   : > { %v256_v37 = vld [vmem:[%s5145_s29 + $0x128] sm:$0xf]  ;;  %253 = vst [vmem:[%s5149_s30 + $0x8c] sm:$0xf] %v252_v35  ;;  %255 = vst [vmem:[%s5149_s30 + $0x90] sm:$0xf] %v254_v36 }
  0x2d   : > { %257 = vst [vmem:[%s5149_s30 + $0x94] sm:$0xf] %v256_v37  ;;  %v258_v38 = vld [vmem:[%s5145_s29 + $0x130] sm:$0xf]  ;;  %v260_v39 = vld [vmem:[%s5145_s29 + $0x138] sm:$0xf] }
  0x2e   : > { %v262_v40 = vld [vmem:[%s5145_s29 + $0x140] sm:$0xf]  ;;  %259 = vst [vmem:[%s5149_s30 + $0x98] sm:$0xf] %v258_v38  ;;  %261 = vst [vmem:[%s5149_s30 + $0x9c] sm:$0xf] %v260_v39 }
  0x2f   : > { %263 = vst [vmem:[%s5149_s30 + $0xa0] sm:$0xf] %v262_v40  ;;  %v264_v41 = vld [vmem:[%s5145_s29 + $0x148] sm:$0xf]  ;;  %v266_v42 = vld [vmem:[%s5145_s29 + $0x150] sm:$0xf] }
  0x30   : > { %v268_v43 = vld [vmem:[%s5145_s29 + $0x158] sm:$0xf]  ;;  %265 = vst [vmem:[%s5149_s30 + $0xa4] sm:$0xf] %v264_v41  ;;  %267 = vst [vmem:[%s5149_s30 + $0xa8] sm:$0xf] %v266_v42 }
  0x31   : > { %269 = vst [vmem:[%s5149_s30 + $0xac] sm:$0xf] %v268_v43  ;;  %v270_v44 = vld [vmem:[%s5145_s29 + $0x160] sm:$0xf]  ;;  %v272_v45 = vld [vmem:[%s5145_s29 + $0x168] sm:$0xf] }
  0x32   : > { %v274_v46 = vld [vmem:[%s5145_s29 + $0x170] sm:$0xf]  ;;  %271 = vst [vmem:[%s5149_s30 + $0xb0] sm:$0xf] %v270_v44  ;;  %273 = vst [vmem:[%s5149_s30 + $0xb4] sm:$0xf] %v272_v45 }
  0x33   : > { %275 = vst [vmem:[%s5149_s30 + $0xb8] sm:$0xf] %v274_v46  ;;  %v276_v47 = vld [vmem:[%s5145_s29 + $0x178] sm:$0xf]  ;;  %v278_v48 = vld [vmem:[%s5145_s29 + $0x180] sm:$0xf] }
  0x34   : > { %v280_v49 = vld [vmem:[%s5145_s29 + $0x188] sm:$0xf]  ;;  %277 = vst [vmem:[%s5149_s30 + $0xbc] sm:$0xf] %v276_v47  ;;  %279 = vst [vmem:[%s5149_s30 + $0xc0] sm:$0xf] %v278_v48 }
  0x35   : > { %281 = vst [vmem:[%s5149_s30 + $0xc4] sm:$0xf] %v280_v49  ;;  %v282_v50 = vld [vmem:[%s5145_s29 + $0x190] sm:$0xf]  ;;  %v284_v51 = vld [vmem:[%s5145_s29 + $0x198] sm:$0xf] }
  0x36   : > { %v286_v52 = vld [vmem:[%s5145_s29 + $0x1a0] sm:$0xf]  ;;  %283 = vst [vmem:[%s5149_s30 + $0xc8] sm:$0xf] %v282_v50  ;;  %285 = vst [vmem:[%s5149_s30 + $0xcc] sm:$0xf] %v284_v51 }
  0x37   : > { %287 = vst [vmem:[%s5149_s30 + $0xd0] sm:$0xf] %v286_v52  ;;  %v288_v53 = vld [vmem:[%s5145_s29 + $0x1a8] sm:$0xf]  ;;  %v290_v54 = vld [vmem:[%s5145_s29 + $0x1b0] sm:$0xf] }
  0x38   : > { %v292_v55 = vld [vmem:[%s5145_s29 + $0x1b8] sm:$0xf]  ;;  %289 = vst [vmem:[%s5149_s30 + $0xd4] sm:$0xf] %v288_v53  ;;  %291 = vst [vmem:[%s5149_s30 + $0xd8] sm:$0xf] %v290_v54 }
  0x39   : > { %293 = vst [vmem:[%s5149_s30 + $0xdc] sm:$0xf] %v292_v55  ;;  %v294_v56 = vld [vmem:[%s5145_s29 + $0x1c0] sm:$0xf]  ;;  %v296_v57 = vld [vmem:[%s5145_s29 + $0x1c8] sm:$0xf] }
  0x3a   : > { %v298_v58 = vld [vmem:[%s5145_s29 + $0x1d0] sm:$0xf]  ;;  %295 = vst [vmem:[%s5149_s30 + $0xe0] sm:$0xf] %v294_v56  ;;  %297 = vst [vmem:[%s5149_s30 + $0xe4] sm:$0xf] %v296_v57 }
  0x3b   : > { %299 = vst [vmem:[%s5149_s30 + $0xe8] sm:$0xf] %v298_v58  ;;  %v300_v59 = vld [vmem:[%s5145_s29 + $0x1d8] sm:$0xf]  ;;  %v302_v60 = vld [vmem:[%s5145_s29 + $0x1e0] sm:$0xf] }
  0x3c   : > { %v304_v61 = vld [vmem:[%s5145_s29 + $0x1e8] sm:$0xf]  ;;  %301 = vst [vmem:[%s5149_s30 + $0xec] sm:$0xf] %v300_v59  ;;  %303 = vst [vmem:[%s5149_s30 + $0xf0] sm:$0xf] %v302_v60 }
  0x3d   : > { %305 = vst [vmem:[%s5149_s30 + $0xf4] sm:$0xf] %v304_v61  ;;  %v306_v62 = vld [vmem:[%s5145_s29 + $0x1f0] sm:$0xf]  ;;  %v308_v63 = vld [vmem:[%s5145_s29 + $0x1f8] sm:$0xf] }
  0x3e   : > { %v310_v0 = vld [vmem:[%s5145_s29 + $0x200] sm:$0xf]  ;;  %307 = vst [vmem:[%s5149_s30 + $0xf8] sm:$0xf] %v306_v62  ;;  %309 = vst [vmem:[%s5149_s30 + $0xfc] sm:$0xf] %v308_v63 }
  0x3f   : > { %311 = vst [vmem:[%s5149_s30 + $0x100] sm:$0xf] %v310_v0  ;;  %v312_v1 = vld [vmem:[%s5145_s29 + $0x208] sm:$0xf]  ;;  %v314_v2 = vld [vmem:[%s5145_s29 + $0x210] sm:$0xf] }
  0x40   : > { %v316_v3 = vld [vmem:[%s5145_s29 + $0x218] sm:$0xf]  ;;  %313 = vst [vmem:[%s5149_s30 + $0x104] sm:$0xf] %v312_v1  ;;  %315 = vst [vmem:[%s5149_s30 + $0x108] sm:$0xf] %v314_v2 }
  0x41   : > { %317 = vst [vmem:[%s5149_s30 + $0x10c] sm:$0xf] %v316_v3  ;;  %v318_v4 = vld [vmem:[%s5145_s29 + $0x220] sm:$0xf]  ;;  %v320_v5 = vld [vmem:[%s5145_s29 + $0x228] sm:$0xf] }
  0x42   : > { %v322_v6 = vld [vmem:[%s5145_s29 + $0x230] sm:$0xf]  ;;  %319 = vst [vmem:[%s5149_s30 + $0x110] sm:$0xf] %v318_v4  ;;  %321 = vst [vmem:[%s5149_s30 + $0x114] sm:$0xf] %v320_v5 }
  0x43   : > { %323 = vst [vmem:[%s5149_s30 + $0x118] sm:$0xf] %v322_v6  ;;  %v324_v7 = vld [vmem:[%s5145_s29 + $0x238] sm:$0xf]  ;;  %v326_v8 = vld [vmem:[%s5145_s29 + $0x240] sm:$0xf] }
  0x44   : > { %v328_v9 = vld [vmem:[%s5145_s29 + $0x248] sm:$0xf]  ;;  %325 = vst [vmem:[%s5149_s30 + $0x11c] sm:$0xf] %v324_v7  ;;  %327 = vst [vmem:[%s5149_s30 + $0x120] sm:$0xf] %v326_v8 }
  0x45   : > { %329 = vst [vmem:[%s5149_s30 + $0x124] sm:$0xf] %v328_v9  ;;  %v330_v10 = vld [vmem:[%s5145_s29 + $0x250] sm:$0xf]  ;;  %v332_v11 = vld [vmem:[%s5145_s29 + $0x258] sm:$0xf] }
  0x46   : > { %v334_v12 = vld [vmem:[%s5145_s29 + $0x260] sm:$0xf]  ;;  %331 = vst [vmem:[%s5149_s30 + $0x128] sm:$0xf] %v330_v10  ;;  %333 = vst [vmem:[%s5149_s30 + $0x12c] sm:$0xf] %v332_v11 }
  0x47   : > { %335 = vst [vmem:[%s5149_s30 + $0x130] sm:$0xf] %v334_v12  ;;  %v336_v13 = vld [vmem:[%s5145_s29 + $0x268] sm:$0xf]  ;;  %v338_v14 = vld [vmem:[%s5145_s29 + $0x270] sm:$0xf] }
  0x48   : > { %v340_v15 = vld [vmem:[%s5145_s29 + $0x278] sm:$0xf]  ;;  %337 = vst [vmem:[%s5149_s30 + $0x134] sm:$0xf] %v336_v13  ;;  %339 = vst [vmem:[%s5149_s30 + $0x138] sm:$0xf] %v338_v14 }
  0x49   : > { %341 = vst [vmem:[%s5149_s30 + $0x13c] sm:$0xf] %v340_v15  ;;  %v342_v16 = vld [vmem:[%s5145_s29 + $0x280] sm:$0xf]  ;;  %v344_v17 = vld [vmem:[%s5145_s29 + $0x288] sm:$0xf] }
  0x4a   : > { %v346_v18 = vld [vmem:[%s5145_s29 + $0x290] sm:$0xf]  ;;  %343 = vst [vmem:[%s5149_s30 + $0x140] sm:$0xf] %v342_v16  ;;  %345 = vst [vmem:[%s5149_s30 + $0x144] sm:$0xf] %v344_v17 }
  0x4b   : > { %347 = vst [vmem:[%s5149_s30 + $0x148] sm:$0xf] %v346_v18  ;;  %v348_v19 = vld [vmem:[%s5145_s29 + $0x298] sm:$0xf]  ;;  %v350_v20 = vld [vmem:[%s5145_s29 + $0x2a0] sm:$0xf] }
  0x4c   : > { %v352_v21 = vld [vmem:[%s5145_s29 + $0x2a8] sm:$0xf]  ;;  %349 = vst [vmem:[%s5149_s30 + $0x14c] sm:$0xf] %v348_v19  ;;  %351 = vst [vmem:[%s5149_s30 + $0x150] sm:$0xf] %v350_v20 }
  0x4d   : > { %353 = vst [vmem:[%s5149_s30 + $0x154] sm:$0xf] %v352_v21  ;;  %v354_v22 = vld [vmem:[%s5145_s29 + $0x2b0] sm:$0xf]  ;;  %v356_v23 = vld [vmem:[%s5145_s29 + $0x2b8] sm:$0xf] }
  0x4e   : > { %v358_v24 = vld [vmem:[%s5145_s29 + $0x2c0] sm:$0xf]  ;;  %355 = vst [vmem:[%s5149_s30 + $0x158] sm:$0xf] %v354_v22  ;;  %357 = vst [vmem:[%s5149_s30 + $0x15c] sm:$0xf] %v356_v23 }
  0x4f   : > { %359 = vst [vmem:[%s5149_s30 + $0x160] sm:$0xf] %v358_v24  ;;  %v360_v25 = vld [vmem:[%s5145_s29 + $0x2c8] sm:$0xf]  ;;  %v362_v26 = vld [vmem:[%s5145_s29 + $0x2d0] sm:$0xf] }
  0x50   : > { %v364_v27 = vld [vmem:[%s5145_s29 + $0x2d8] sm:$0xf]  ;;  %361 = vst [vmem:[%s5149_s30 + $0x164] sm:$0xf] %v360_v25  ;;  %363 = vst [vmem:[%s5149_s30 + $0x168] sm:$0xf] %v362_v26 }
  0x51   : > { %365 = vst [vmem:[%s5149_s30 + $0x16c] sm:$0xf] %v364_v27  ;;  %v366_v28 = vld [vmem:[%s5145_s29 + $0x2e0] sm:$0xf]  ;;  %v368_v29 = vld [vmem:[%s5145_s29 + $0x2e8] sm:$0xf] }
  0x52   : > { %v370_v30 = vld [vmem:[%s5145_s29 + $0x2f0] sm:$0xf]  ;;  %367 = vst [vmem:[%s5149_s30 + $0x170] sm:$0xf] %v366_v28  ;;  %369 = vst [vmem:[%s5149_s30 + $0x174] sm:$0xf] %v368_v29 }
  0x53   : > { %371 = vst [vmem:[%s5149_s30 + $0x178] sm:$0xf] %v370_v30  ;;  %v372_v31 = vld [vmem:[%s5145_s29 + $0x2f8] sm:$0xf]  ;;  %v374_v32 = vld [vmem:[%s5145_s29 + $0x300] sm:$0xf] }
  0x54   : > { %v376_v33 = vld [vmem:[%s5145_s29 + $0x308] sm:$0xf]  ;;  %373 = vst [vmem:[%s5149_s30 + $0x17c] sm:$0xf] %v372_v31  ;;  %375 = vst [vmem:[%s5149_s30 + $0x180] sm:$0xf] %v374_v32 }
  0x55   : > { %377 = vst [vmem:[%s5149_s30 + $0x184] sm:$0xf] %v376_v33  ;;  %v378_v34 = vld [vmem:[%s5145_s29 + $0x310] sm:$0xf]  ;;  %v380_v35 = vld [vmem:[%s5145_s29 + $0x318] sm:$0xf] }
  0x56   : > { %v382_v36 = vld [vmem:[%s5145_s29 + $0x320] sm:$0xf]  ;;  %379 = vst [vmem:[%s5149_s30 + $0x188] sm:$0xf] %v378_v34  ;;  %381 = vst [vmem:[%s5149_s30 + $0x18c] sm:$0xf] %v380_v35 }
  0x57   : > { %383 = vst [vmem:[%s5149_s30 + $0x190] sm:$0xf] %v382_v36  ;;  %v384_v37 = vld [vmem:[%s5145_s29 + $0x328] sm:$0xf]  ;;  %v386_v38 = vld [vmem:[%s5145_s29 + $0x330] sm:$0xf] }
  0x58   : > { %v388_v39 = vld [vmem:[%s5145_s29 + $0x338] sm:$0xf]  ;;  %385 = vst [vmem:[%s5149_s30 + $0x194] sm:$0xf] %v384_v37  ;;  %387 = vst [vmem:[%s5149_s30 + $0x198] sm:$0xf] %v386_v38 }
  0x59   : > { %389 = vst [vmem:[%s5149_s30 + $0x19c] sm:$0xf] %v388_v39  ;;  %v390_v40 = vld [vmem:[%s5145_s29 + $0x340] sm:$0xf]  ;;  %v392_v41 = vld [vmem:[%s5145_s29 + $0x348] sm:$0xf] }
  0x5a   : > { %v394_v42 = vld [vmem:[%s5145_s29 + $0x350] sm:$0xf]  ;;  %391 = vst [vmem:[%s5149_s30 + $0x1a0] sm:$0xf] %v390_v40  ;;  %393 = vst [vmem:[%s5149_s30 + $0x1a4] sm:$0xf] %v392_v41 }
  0x5b   : > { %395 = vst [vmem:[%s5149_s30 + $0x1a8] sm:$0xf] %v394_v42  ;;  %v396_v43 = vld [vmem:[%s5145_s29 + $0x358] sm:$0xf]  ;;  %v398_v44 = vld [vmem:[%s5145_s29 + $0x360] sm:$0xf] }
  0x5c   : > { %v400_v45 = vld [vmem:[%s5145_s29 + $0x368] sm:$0xf]  ;;  %397 = vst [vmem:[%s5149_s30 + $0x1ac] sm:$0xf] %v396_v43  ;;  %399 = vst [vmem:[%s5149_s30 + $0x1b0] sm:$0xf] %v398_v44 }
  0x5d   : > { %401 = vst [vmem:[%s5149_s30 + $0x1b4] sm:$0xf] %v400_v45  ;;  %v402_v46 = vld [vmem:[%s5145_s29 + $0x370] sm:$0xf]  ;;  %v404_v47 = vld [vmem:[%s5145_s29 + $0x378] sm:$0xf] }
  0x5e   : > { %v406_v48 = vld [vmem:[%s5145_s29 + $0x380] sm:$0xf]  ;;  %403 = vst [vmem:[%s5149_s30 + $0x1b8] sm:$0xf] %v402_v46  ;;  %405 = vst [vmem:[%s5149_s30 + $0x1bc] sm:$0xf] %v404_v47 }
  0x5f   : > { %407 = vst [vmem:[%s5149_s30 + $0x1c0] sm:$0xf] %v406_v48  ;;  %v408_v49 = vld [vmem:[%s5145_s29 + $0x388] sm:$0xf]  ;;  %v410_v50 = vld [vmem:[%s5145_s29 + $0x390] sm:$0xf] }
  0x60   : > { %v412_v51 = vld [vmem:[%s5145_s29 + $0x398] sm:$0xf]  ;;  %409 = vst [vmem:[%s5149_s30 + $0x1c4] sm:$0xf] %v408_v49  ;;  %411 = vst [vmem:[%s5149_s30 + $0x1c8] sm:$0xf] %v410_v50 }
  0x61   : > { %413 = vst [vmem:[%s5149_s30 + $0x1cc] sm:$0xf] %v412_v51  ;;  %v414_v52 = vld [vmem:[%s5145_s29 + $0x3a0] sm:$0xf]  ;;  %v416_v53 = vld [vmem:[%s5145_s29 + $0x3a8] sm:$0xf] }
  0x62   : > { %v418_v54 = vld [vmem:[%s5145_s29 + $0x3b0] sm:$0xf]  ;;  %415 = vst [vmem:[%s5149_s30 + $0x1d0] sm:$0xf] %v414_v52  ;;  %417 = vst [vmem:[%s5149_s30 + $0x1d4] sm:$0xf] %v416_v53 }
  0x63   : > { %419 = vst [vmem:[%s5149_s30 + $0x1d8] sm:$0xf] %v418_v54  ;;  %v420_v55 = vld [vmem:[%s5145_s29 + $0x3b8] sm:$0xf]  ;;  %v422_v56 = vld [vmem:[%s5145_s29 + $0x3c0] sm:$0xf] }
  0x64   : > { %v424_v57 = vld [vmem:[%s5145_s29 + $0x3c8] sm:$0xf]  ;;  %421 = vst [vmem:[%s5149_s30 + $0x1dc] sm:$0xf] %v420_v55  ;;  %423 = vst [vmem:[%s5149_s30 + $0x1e0] sm:$0xf] %v422_v56 }
  0x65   : > { %425 = vst [vmem:[%s5149_s30 + $0x1e4] sm:$0xf] %v424_v57  ;;  %v426_v58 = vld [vmem:[%s5145_s29 + $0x3d0] sm:$0xf]  ;;  %v428_v59 = vld [vmem:[%s5145_s29 + $0x3d8] sm:$0xf] }
  0x66   : > { %v430_v60 = vld [vmem:[%s5145_s29 + $0x3e0] sm:$0xf]  ;;  %427 = vst [vmem:[%s5149_s30 + $0x1e8] sm:$0xf] %v426_v58  ;;  %429 = vst [vmem:[%s5149_s30 + $0x1ec] sm:$0xf] %v428_v59 }
  0x67   : > { %431 = vst [vmem:[%s5149_s30 + $0x1f0] sm:$0xf] %v430_v60  ;;  %v432_v61 = vld [vmem:[%s5145_s29 + $0x3e8] sm:$0xf]  ;;  %v434_v62 = vld [vmem:[%s5145_s29 + $0x3f0] sm:$0xf] }
  0x68   : > { %v436_v63 = vld [vmem:[%s5145_s29 + $0x3f8] sm:$0xf]  ;;  %433 = vst [vmem:[%s5149_s30 + $0x1f4] sm:$0xf] %v432_v61  ;;  %435 = vst [vmem:[%s5149_s30 + $0x1f8] sm:$0xf] %v434_v62 }
  0x69   : > { %437 = vst [vmem:[%s5149_s30 + $0x1fc] sm:$0xf] %v436_v63  ;;  %v438_v0 = vld [vmem:[%s5145_s29 + $0x400] sm:$0xf]  ;;  %v440_v1 = vld [vmem:[%s5145_s29 + $0x408] sm:$0xf] }
  0x6a   : > { %v442_v2 = vld [vmem:[%s5145_s29 + $0x410] sm:$0xf]  ;;  %439 = vst [vmem:[%s5149_s30 + $0x200] sm:$0xf] %v438_v0  ;;  %441 = vst [vmem:[%s5149_s30 + $0x204] sm:$0xf] %v440_v1 }
  0x6b   : > { %443 = vst [vmem:[%s5149_s30 + $0x208] sm:$0xf] %v442_v2  ;;  %v444_v3 = vld [vmem:[%s5145_s29 + $0x418] sm:$0xf]  ;;  %v446_v4 = vld [vmem:[%s5145_s29 + $0x420] sm:$0xf] }
  0x6c   : > { %v448_v5 = vld [vmem:[%s5145_s29 + $0x428] sm:$0xf]  ;;  %445 = vst [vmem:[%s5149_s30 + $0x20c] sm:$0xf] %v444_v3  ;;  %447 = vst [vmem:[%s5149_s30 + $0x210] sm:$0xf] %v446_v4 }
  0x6d   : > { %449 = vst [vmem:[%s5149_s30 + $0x214] sm:$0xf] %v448_v5  ;;  %v450_v6 = vld [vmem:[%s5145_s29 + $0x430] sm:$0xf]  ;;  %v452_v7 = vld [vmem:[%s5145_s29 + $0x438] sm:$0xf] }
  0x6e   : > { %v454_v8 = vld [vmem:[%s5145_s29 + $0x440] sm:$0xf]  ;;  %451 = vst [vmem:[%s5149_s30 + $0x218] sm:$0xf] %v450_v6  ;;  %453 = vst [vmem:[%s5149_s30 + $0x21c] sm:$0xf] %v452_v7 }
  0x6f   : > { %455 = vst [vmem:[%s5149_s30 + $0x220] sm:$0xf] %v454_v8  ;;  %v456_v9 = vld [vmem:[%s5145_s29 + $0x448] sm:$0xf]  ;;  %v458_v10 = vld [vmem:[%s5145_s29 + $0x450] sm:$0xf] }
  0x70   : > { %v460_v11 = vld [vmem:[%s5145_s29 + $0x458] sm:$0xf]  ;;  %457 = vst [vmem:[%s5149_s30 + $0x224] sm:$0xf] %v456_v9  ;;  %459 = vst [vmem:[%s5149_s30 + $0x228] sm:$0xf] %v458_v10 }
  0x71   : > { %461 = vst [vmem:[%s5149_s30 + $0x22c] sm:$0xf] %v460_v11  ;;  %v462_v12 = vld [vmem:[%s5145_s29 + $0x460] sm:$0xf]  ;;  %v464_v13 = vld [vmem:[%s5145_s29 + $0x468] sm:$0xf] }
  0x72   : > { %v466_v14 = vld [vmem:[%s5145_s29 + $0x470] sm:$0xf]  ;;  %463 = vst [vmem:[%s5149_s30 + $0x230] sm:$0xf] %v462_v12  ;;  %465 = vst [vmem:[%s5149_s30 + $0x234] sm:$0xf] %v464_v13 }
  0x73   : > { %467 = vst [vmem:[%s5149_s30 + $0x238] sm:$0xf] %v466_v14  ;;  %v468_v15 = vld [vmem:[%s5145_s29 + $0x478] sm:$0xf]  ;;  %v470_v16 = vld [vmem:[%s5145_s29 + $0x480] sm:$0xf] }
  0x74   : > { %v472_v17 = vld [vmem:[%s5145_s29 + $0x488] sm:$0xf]  ;;  %469 = vst [vmem:[%s5149_s30 + $0x23c] sm:$0xf] %v468_v15  ;;  %471 = vst [vmem:[%s5149_s30 + $0x240] sm:$0xf] %v470_v16 }
  0x75   : > { %473 = vst [vmem:[%s5149_s30 + $0x244] sm:$0xf] %v472_v17  ;;  %v474_v18 = vld [vmem:[%s5145_s29 + $0x490] sm:$0xf]  ;;  %v476_v19 = vld [vmem:[%s5145_s29 + $0x498] sm:$0xf] }
  0x76   : > { %v478_v20 = vld [vmem:[%s5145_s29 + $0x4a0] sm:$0xf]  ;;  %475 = vst [vmem:[%s5149_s30 + $0x248] sm:$0xf] %v474_v18  ;;  %477 = vst [vmem:[%s5149_s30 + $0x24c] sm:$0xf] %v476_v19 }
  0x77   : > { %479 = vst [vmem:[%s5149_s30 + $0x250] sm:$0xf] %v478_v20  ;;  %v480_v21 = vld [vmem:[%s5145_s29 + $0x4a8] sm:$0xf]  ;;  %v482_v22 = vld [vmem:[%s5145_s29 + $0x4b0] sm:$0xf] }
  0x78   : > { %v484_v23 = vld [vmem:[%s5145_s29 + $0x4b8] sm:$0xf]  ;;  %481 = vst [vmem:[%s5149_s30 + $0x254] sm:$0xf] %v480_v21  ;;  %483 = vst [vmem:[%s5149_s30 + $0x258] sm:$0xf] %v482_v22 }
  0x79   : > { %485 = vst [vmem:[%s5149_s30 + $0x25c] sm:$0xf] %v484_v23  ;;  %v486_v24 = vld [vmem:[%s5145_s29 + $0x4c0] sm:$0xf]  ;;  %v488_v25 = vld [vmem:[%s5145_s29 + $0x4c8] sm:$0xf] }
  0x7a   : > { %v490_v26 = vld [vmem:[%s5145_s29 + $0x4d0] sm:$0xf]  ;;  %487 = vst [vmem:[%s5149_s30 + $0x260] sm:$0xf] %v486_v24  ;;  %489 = vst [vmem:[%s5149_s30 + $0x264] sm:$0xf] %v488_v25 }
  0x7b   : > { %491 = vst [vmem:[%s5149_s30 + $0x268] sm:$0xf] %v490_v26  ;;  %v492_v27 = vld [vmem:[%s5145_s29 + $0x4d8] sm:$0xf]  ;;  %v494_v28 = vld [vmem:[%s5145_s29 + $0x4e0] sm:$0xf] }
  0x7c   : > { %v496_v29 = vld [vmem:[%s5145_s29 + $0x4e8] sm:$0xf]  ;;  %493 = vst [vmem:[%s5149_s30 + $0x26c] sm:$0xf] %v492_v27  ;;  %495 = vst [vmem:[%s5149_s30 + $0x270] sm:$0xf] %v494_v28 }
  0x7d   : > { %497 = vst [vmem:[%s5149_s30 + $0x274] sm:$0xf] %v496_v29  ;;  %v498_v30 = vld [vmem:[%s5145_s29 + $0x4f0] sm:$0xf]  ;;  %v500_v31 = vld [vmem:[%s5145_s29 + $0x4f8] sm:$0xf] }
  0x7e   : > { %v502_v32 = vld [vmem:[%s5145_s29 + $0x500] sm:$0xf]  ;;  %499 = vst [vmem:[%s5149_s30 + $0x278] sm:$0xf] %v498_v30  ;;  %501 = vst [vmem:[%s5149_s30 + $0x27c] sm:$0xf] %v500_v31 }
  0x7f   : > { %503 = vst [vmem:[%s5149_s30 + $0x280] sm:$0xf] %v502_v32  ;;  %v504_v33 = vld [vmem:[%s5145_s29 + $0x508] sm:$0xf]  ;;  %v506_v34 = vld [vmem:[%s5145_s29 + $0x510] sm:$0xf] }
  0x80   : > { %v508_v35 = vld [vmem:[%s5145_s29 + $0x518] sm:$0xf]  ;;  %505 = vst [vmem:[%s5149_s30 + $0x284] sm:$0xf] %v504_v33  ;;  %507 = vst [vmem:[%s5149_s30 + $0x288] sm:$0xf] %v506_v34 }
  0x81   : > { %509 = vst [vmem:[%s5149_s30 + $0x28c] sm:$0xf] %v508_v35  ;;  %v510_v36 = vld [vmem:[%s5145_s29 + $0x520] sm:$0xf]  ;;  %v512_v37 = vld [vmem:[%s5145_s29 + $0x528] sm:$0xf] }
  0x82   : > { %v514_v38 = vld [vmem:[%s5145_s29 + $0x530] sm:$0xf]  ;;  %511 = vst [vmem:[%s5149_s30 + $0x290] sm:$0xf] %v510_v36  ;;  %513 = vst [vmem:[%s5149_s30 + $0x294] sm:$0xf] %v512_v37 }
  0x83   : > { %515 = vst [vmem:[%s5149_s30 + $0x298] sm:$0xf] %v514_v38  ;;  %v516_v39 = vld [vmem:[%s5145_s29 + $0x538] sm:$0xf]  ;;  %v518_v40 = vld [vmem:[%s5145_s29 + $0x540] sm:$0xf] }
  0x84   : > { %v520_v41 = vld [vmem:[%s5145_s29 + $0x548] sm:$0xf]  ;;  %517 = vst [vmem:[%s5149_s30 + $0x29c] sm:$0xf] %v516_v39  ;;  %519 = vst [vmem:[%s5149_s30 + $0x2a0] sm:$0xf] %v518_v40 }
  0x85   : > { %521 = vst [vmem:[%s5149_s30 + $0x2a4] sm:$0xf] %v520_v41  ;;  %v522_v42 = vld [vmem:[%s5145_s29 + $0x550] sm:$0xf]  ;;  %v524_v43 = vld [vmem:[%s5145_s29 + $0x558] sm:$0xf] }
  0x86   : > { %v526_v44 = vld [vmem:[%s5145_s29 + $0x560] sm:$0xf]  ;;  %523 = vst [vmem:[%s5149_s30 + $0x2a8] sm:$0xf] %v522_v42  ;;  %525 = vst [vmem:[%s5149_s30 + $0x2ac] sm:$0xf] %v524_v43 }
  0x87   : > { %527 = vst [vmem:[%s5149_s30 + $0x2b0] sm:$0xf] %v526_v44  ;;  %v528_v45 = vld [vmem:[%s5145_s29 + $0x568] sm:$0xf]  ;;  %v530_v46 = vld [vmem:[%s5145_s29 + $0x570] sm:$0xf] }
  0x88   : > { %v532_v47 = vld [vmem:[%s5145_s29 + $0x578] sm:$0xf]  ;;  %529 = vst [vmem:[%s5149_s30 + $0x2b4] sm:$0xf] %v528_v45  ;;  %531 = vst [vmem:[%s5149_s30 + $0x2b8] sm:$0xf] %v530_v46 }
  0x89   : > { %533 = vst [vmem:[%s5149_s30 + $0x2bc] sm:$0xf] %v532_v47  ;;  %v534_v48 = vld [vmem:[%s5145_s29 + $0x580] sm:$0xf]  ;;  %v536_v49 = vld [vmem:[%s5145_s29 + $0x588] sm:$0xf] }
  0x8a   : > { %v538_v50 = vld [vmem:[%s5145_s29 + $0x590] sm:$0xf]  ;;  %535 = vst [vmem:[%s5149_s30 + $0x2c0] sm:$0xf] %v534_v48  ;;  %537 = vst [vmem:[%s5149_s30 + $0x2c4] sm:$0xf] %v536_v49 }
  0x8b   : > { %539 = vst [vmem:[%s5149_s30 + $0x2c8] sm:$0xf] %v538_v50  ;;  %v540_v51 = vld [vmem:[%s5145_s29 + $0x598] sm:$0xf]  ;;  %v542_v52 = vld [vmem:[%s5145_s29 + $0x5a0] sm:$0xf] }
  0x8c   : > { %v544_v53 = vld [vmem:[%s5145_s29 + $0x5a8] sm:$0xf]  ;;  %541 = vst [vmem:[%s5149_s30 + $0x2cc] sm:$0xf] %v540_v51  ;;  %543 = vst [vmem:[%s5149_s30 + $0x2d0] sm:$0xf] %v542_v52 }
  0x8d   : > { %545 = vst [vmem:[%s5149_s30 + $0x2d4] sm:$0xf] %v544_v53  ;;  %v546_v54 = vld [vmem:[%s5145_s29 + $0x5b0] sm:$0xf]  ;;  %v548_v55 = vld [vmem:[%s5145_s29 + $0x5b8] sm:$0xf] }
  0x8e   : > { %v550_v56 = vld [vmem:[%s5145_s29 + $0x5c0] sm:$0xf]  ;;  %547 = vst [vmem:[%s5149_s30 + $0x2d8] sm:$0xf] %v546_v54  ;;  %549 = vst [vmem:[%s5149_s30 + $0x2dc] sm:$0xf] %v548_v55 }
  0x8f   : > { %551 = vst [vmem:[%s5149_s30 + $0x2e0] sm:$0xf] %v550_v56  ;;  %v552_v57 = vld [vmem:[%s5145_s29 + $0x5c8] sm:$0xf]  ;;  %v554_v58 = vld [vmem:[%s5145_s29 + $0x5d0] sm:$0xf] }
  0x90   : > { %v556_v59 = vld [vmem:[%s5145_s29 + $0x5d8] sm:$0xf]  ;;  %553 = vst [vmem:[%s5149_s30 + $0x2e4] sm:$0xf] %v552_v57  ;;  %555 = vst [vmem:[%s5149_s30 + $0x2e8] sm:$0xf] %v554_v58 }
  0x91   : > { %557 = vst [vmem:[%s5149_s30 + $0x2ec] sm:$0xf] %v556_v59  ;;  %v558_v60 = vld [vmem:[%s5145_s29 + $0x5e0] sm:$0xf]  ;;  %v560_v61 = vld [vmem:[%s5145_s29 + $0x5e8] sm:$0xf] }
  0x92   : > { %v562_v62 = vld [vmem:[%s5145_s29 + $0x5f0] sm:$0xf]  ;;  %559 = vst [vmem:[%s5149_s30 + $0x2f0] sm:$0xf] %v558_v60  ;;  %561 = vst [vmem:[%s5149_s30 + $0x2f4] sm:$0xf] %v560_v61 }
  0x93   : > { %563 = vst [vmem:[%s5149_s30 + $0x2f8] sm:$0xf] %v562_v62  ;;  %v564_v63 = vld [vmem:[%s5145_s29 + $0x5f8] sm:$0xf]  ;;  %v566_v0 = vld [vmem:[%s5145_s29 + $0x600] sm:$0xf] }
  0x94   : > { %v568_v1 = vld [vmem:[%s5145_s29 + $0x608] sm:$0xf]  ;;  %565 = vst [vmem:[%s5149_s30 + $0x2fc] sm:$0xf] %v564_v63  ;;  %567 = vst [vmem:[%s5149_s30 + $0x300] sm:$0xf] %v566_v0 }
  0x95   : > { %569 = vst [vmem:[%s5149_s30 + $0x304] sm:$0xf] %v568_v1  ;;  %v570_v2 = vld [vmem:[%s5145_s29 + $0x610] sm:$0xf]  ;;  %v572_v3 = vld [vmem:[%s5145_s29 + $0x618] sm:$0xf] }
  0x96   : > { %v574_v4 = vld [vmem:[%s5145_s29 + $0x620] sm:$0xf]  ;;  %571 = vst [vmem:[%s5149_s30 + $0x308] sm:$0xf] %v570_v2  ;;  %573 = vst [vmem:[%s5149_s30 + $0x30c] sm:$0xf] %v572_v3 }
  0x97   : > { %575 = vst [vmem:[%s5149_s30 + $0x310] sm:$0xf] %v574_v4  ;;  %v576_v5 = vld [vmem:[%s5145_s29 + $0x628] sm:$0xf]  ;;  %v578_v6 = vld [vmem:[%s5145_s29 + $0x630] sm:$0xf] }
  0x98   : > { %v580_v7 = vld [vmem:[%s5145_s29 + $0x638] sm:$0xf]  ;;  %577 = vst [vmem:[%s5149_s30 + $0x314] sm:$0xf] %v576_v5  ;;  %579 = vst [vmem:[%s5149_s30 + $0x318] sm:$0xf] %v578_v6 }
  0x99   : > { %581 = vst [vmem:[%s5149_s30 + $0x31c] sm:$0xf] %v580_v7  ;;  %v582_v8 = vld [vmem:[%s5145_s29 + $0x640] sm:$0xf]  ;;  %v584_v9 = vld [vmem:[%s5145_s29 + $0x648] sm:$0xf] }
  0x9a   : > { %v586_v10 = vld [vmem:[%s5145_s29 + $0x650] sm:$0xf]  ;;  %583 = vst [vmem:[%s5149_s30 + $0x320] sm:$0xf] %v582_v8  ;;  %585 = vst [vmem:[%s5149_s30 + $0x324] sm:$0xf] %v584_v9 }
  0x9b   : > { %587 = vst [vmem:[%s5149_s30 + $0x328] sm:$0xf] %v586_v10  ;;  %v588_v11 = vld [vmem:[%s5145_s29 + $0x658] sm:$0xf]  ;;  %v590_v12 = vld [vmem:[%s5145_s29 + $0x660] sm:$0xf] }
  0x9c   : > { %v592_v13 = vld [vmem:[%s5145_s29 + $0x668] sm:$0xf]  ;;  %589 = vst [vmem:[%s5149_s30 + $0x32c] sm:$0xf] %v588_v11  ;;  %591 = vst [vmem:[%s5149_s30 + $0x330] sm:$0xf] %v590_v12 }
  0x9d   : > { %593 = vst [vmem:[%s5149_s30 + $0x334] sm:$0xf] %v592_v13  ;;  %v594_v14 = vld [vmem:[%s5145_s29 + $0x670] sm:$0xf]  ;;  %v596_v15 = vld [vmem:[%s5145_s29 + $0x678] sm:$0xf] }
  0x9e   : > { %v598_v16 = vld [vmem:[%s5145_s29 + $0x680] sm:$0xf]  ;;  %595 = vst [vmem:[%s5149_s30 + $0x338] sm:$0xf] %v594_v14  ;;  %597 = vst [vmem:[%s5149_s30 + $0x33c] sm:$0xf] %v596_v15 }
  0x9f   : > { %599 = vst [vmem:[%s5149_s30 + $0x340] sm:$0xf] %v598_v16  ;;  %v600_v17 = vld [vmem:[%s5145_s29 + $0x688] sm:$0xf]  ;;  %v602_v18 = vld [vmem:[%s5145_s29 + $0x690] sm:$0xf] }
  0xa0   : > { %v604_v19 = vld [vmem:[%s5145_s29 + $0x698] sm:$0xf]  ;;  %601 = vst [vmem:[%s5149_s30 + $0x344] sm:$0xf] %v600_v17  ;;  %603 = vst [vmem:[%s5149_s30 + $0x348] sm:$0xf] %v602_v18 }
  0xa1   : > { %605 = vst [vmem:[%s5149_s30 + $0x34c] sm:$0xf] %v604_v19  ;;  %v606_v20 = vld [vmem:[%s5145_s29 + $0x6a0] sm:$0xf]  ;;  %v608_v21 = vld [vmem:[%s5145_s29 + $0x6a8] sm:$0xf] }
  0xa2   : > { %v610_v22 = vld [vmem:[%s5145_s29 + $0x6b0] sm:$0xf]  ;;  %607 = vst [vmem:[%s5149_s30 + $0x350] sm:$0xf] %v606_v20  ;;  %609 = vst [vmem:[%s5149_s30 + $0x354] sm:$0xf] %v608_v21 }
  0xa3   : > { %611 = vst [vmem:[%s5149_s30 + $0x358] sm:$0xf] %v610_v22  ;;  %v612_v23 = vld [vmem:[%s5145_s29 + $0x6b8] sm:$0xf]  ;;  %v614_v24 = vld [vmem:[%s5145_s29 + $0x6c0] sm:$0xf] }
  0xa4   : > { %v616_v25 = vld [vmem:[%s5145_s29 + $0x6c8] sm:$0xf]  ;;  %613 = vst [vmem:[%s5149_s30 + $0x35c] sm:$0xf] %v612_v23  ;;  %615 = vst [vmem:[%s5149_s30 + $0x360] sm:$0xf] %v614_v24 }
  0xa5   : > { %617 = vst [vmem:[%s5149_s30 + $0x364] sm:$0xf] %v616_v25  ;;  %v618_v26 = vld [vmem:[%s5145_s29 + $0x6d0] sm:$0xf]  ;;  %v620_v27 = vld [vmem:[%s5145_s29 + $0x6d8] sm:$0xf] }
  0xa6   : > { %v622_v28 = vld [vmem:[%s5145_s29 + $0x6e0] sm:$0xf]  ;;  %619 = vst [vmem:[%s5149_s30 + $0x368] sm:$0xf] %v618_v26  ;;  %621 = vst [vmem:[%s5149_s30 + $0x36c] sm:$0xf] %v620_v27 }
  0xa7   : > { %623 = vst [vmem:[%s5149_s30 + $0x370] sm:$0xf] %v622_v28  ;;  %v624_v29 = vld [vmem:[%s5145_s29 + $0x6e8] sm:$0xf]  ;;  %v626_v30 = vld [vmem:[%s5145_s29 + $0x6f0] sm:$0xf] }
  0xa8   : > { %v628_v31 = vld [vmem:[%s5145_s29 + $0x6f8] sm:$0xf]  ;;  %625 = vst [vmem:[%s5149_s30 + $0x374] sm:$0xf] %v624_v29  ;;  %627 = vst [vmem:[%s5149_s30 + $0x378] sm:$0xf] %v626_v30 }
  0xa9   : > { %629 = vst [vmem:[%s5149_s30 + $0x37c] sm:$0xf] %v628_v31  ;;  %v630_v32 = vld [vmem:[%s5145_s29 + $0x700] sm:$0xf]  ;;  %v632_v33 = vld [vmem:[%s5145_s29 + $0x708] sm:$0xf] }
  0xaa   : > { %v634_v34 = vld [vmem:[%s5145_s29 + $0x710] sm:$0xf]  ;;  %631 = vst [vmem:[%s5149_s30 + $0x380] sm:$0xf] %v630_v32  ;;  %633 = vst [vmem:[%s5149_s30 + $0x384] sm:$0xf] %v632_v33 }
  0xab   : > { %635 = vst [vmem:[%s5149_s30 + $0x388] sm:$0xf] %v634_v34  ;;  %v636_v35 = vld [vmem:[%s5145_s29 + $0x718] sm:$0xf]  ;;  %v638_v36 = vld [vmem:[%s5145_s29 + $0x720] sm:$0xf] }
  0xac   : > { %v640_v37 = vld [vmem:[%s5145_s29 + $0x728] sm:$0xf]  ;;  %637 = vst [vmem:[%s5149_s30 + $0x38c] sm:$0xf] %v636_v35  ;;  %639 = vst [vmem:[%s5149_s30 + $0x390] sm:$0xf] %v638_v36 }
  0xad   : > { %641 = vst [vmem:[%s5149_s30 + $0x394] sm:$0xf] %v640_v37  ;;  %v642_v38 = vld [vmem:[%s5145_s29 + $0x730] sm:$0xf]  ;;  %v644_v39 = vld [vmem:[%s5145_s29 + $0x738] sm:$0xf] }
  0xae   : > { %v646_v40 = vld [vmem:[%s5145_s29 + $0x740] sm:$0xf]  ;;  %643 = vst [vmem:[%s5149_s30 + $0x398] sm:$0xf] %v642_v38  ;;  %645 = vst [vmem:[%s5149_s30 + $0x39c] sm:$0xf] %v644_v39 }
  0xaf   : > { %647 = vst [vmem:[%s5149_s30 + $0x3a0] sm:$0xf] %v646_v40  ;;  %v648_v41 = vld [vmem:[%s5145_s29 + $0x748] sm:$0xf]  ;;  %v650_v42 = vld [vmem:[%s5145_s29 + $0x750] sm:$0xf] }
  0xb0   : > { %v652_v43 = vld [vmem:[%s5145_s29 + $0x758] sm:$0xf]  ;;  %649 = vst [vmem:[%s5149_s30 + $0x3a4] sm:$0xf] %v648_v41  ;;  %651 = vst [vmem:[%s5149_s30 + $0x3a8] sm:$0xf] %v650_v42 }
  0xb1   : > { %653 = vst [vmem:[%s5149_s30 + $0x3ac] sm:$0xf] %v652_v43  ;;  %v654_v44 = vld [vmem:[%s5145_s29 + $0x760] sm:$0xf]  ;;  %v656_v45 = vld [vmem:[%s5145_s29 + $0x768] sm:$0xf] }
  0xb2   : > { %v658_v46 = vld [vmem:[%s5145_s29 + $0x770] sm:$0xf]  ;;  %655 = vst [vmem:[%s5149_s30 + $0x3b0] sm:$0xf] %v654_v44  ;;  %657 = vst [vmem:[%s5149_s30 + $0x3b4] sm:$0xf] %v656_v45 }
  0xb3   : > { %659 = vst [vmem:[%s5149_s30 + $0x3b8] sm:$0xf] %v658_v46  ;;  %v660_v47 = vld [vmem:[%s5145_s29 + $0x778] sm:$0xf]  ;;  %v662_v48 = vld [vmem:[%s5145_s29 + $0x780] sm:$0xf] }
  0xb4   : > { %v664_v49 = vld [vmem:[%s5145_s29 + $0x788] sm:$0xf]  ;;  %661 = vst [vmem:[%s5149_s30 + $0x3bc] sm:$0xf] %v660_v47  ;;  %663 = vst [vmem:[%s5149_s30 + $0x3c0] sm:$0xf] %v662_v48 }
  0xb5   : > { %665 = vst [vmem:[%s5149_s30 + $0x3c4] sm:$0xf] %v664_v49  ;;  %v666_v50 = vld [vmem:[%s5145_s29 + $0x790] sm:$0xf]  ;;  %v668_v51 = vld [vmem:[%s5145_s29 + $0x798] sm:$0xf] }
  0xb6   : > { %v670_v52 = vld [vmem:[%s5145_s29 + $0x7a0] sm:$0xf]  ;;  %667 = vst [vmem:[%s5149_s30 + $0x3c8] sm:$0xf] %v666_v50  ;;  %669 = vst [vmem:[%s5149_s30 + $0x3cc] sm:$0xf] %v668_v51 }
  0xb7   : > { %671 = vst [vmem:[%s5149_s30 + $0x3d0] sm:$0xf] %v670_v52  ;;  %v672_v53 = vld [vmem:[%s5145_s29 + $0x7a8] sm:$0xf]  ;;  %v674_v54 = vld [vmem:[%s5145_s29 + $0x7b0] sm:$0xf] }
  0xb8   : > { %v676_v55 = vld [vmem:[%s5145_s29 + $0x7b8] sm:$0xf]  ;;  %673 = vst [vmem:[%s5149_s30 + $0x3d4] sm:$0xf] %v672_v53  ;;  %675 = vst [vmem:[%s5149_s30 + $0x3d8] sm:$0xf] %v674_v54 }
  0xb9   : > { %677 = vst [vmem:[%s5149_s30 + $0x3dc] sm:$0xf] %v676_v55  ;;  %v678_v56 = vld [vmem:[%s5145_s29 + $0x7c0] sm:$0xf]  ;;  %v680_v57 = vld [vmem:[%s5145_s29 + $0x7c8] sm:$0xf] }
  0xba   : > { %v682_v58 = vld [vmem:[%s5145_s29 + $0x7d0] sm:$0xf]  ;;  %679 = vst [vmem:[%s5149_s30 + $0x3e0] sm:$0xf] %v678_v56  ;;  %681 = vst [vmem:[%s5149_s30 + $0x3e4] sm:$0xf] %v680_v57 }
  0xbb   : > { %683 = vst [vmem:[%s5149_s30 + $0x3e8] sm:$0xf] %v682_v58  ;;  %v684_v59 = vld [vmem:[%s5145_s29 + $0x7d8] sm:$0xf]  ;;  %v686_v60 = vld [vmem:[%s5145_s29 + $0x7e0] sm:$0xf] }
  0xbc   : > { %v688_v61 = vld [vmem:[%s5145_s29 + $0x7e8] sm:$0xf]  ;;  %685 = vst [vmem:[%s5149_s30 + $0x3ec] sm:$0xf] %v684_v59  ;;  %687 = vst [vmem:[%s5149_s30 + $0x3f0] sm:$0xf] %v686_v60 }
  0xbd   : > { %689 = vst [vmem:[%s5149_s30 + $0x3f4] sm:$0xf] %v688_v61  ;;  %v690_v62 = vld [vmem:[%s5145_s29 + $0x7f0] sm:$0xf]  ;;  %v692_v63 = vld [vmem:[%s5145_s29 + $0x7f8] sm:$0xf] }
  0xbe   : > { %691 = vst [vmem:[%s5149_s30 + $0x3f8] sm:$0xf] %v690_v62  ;;  %693 = vst [vmem:[%s5149_s30 + $0x3fc] sm:$0xf] %v692_v63 }
  0xbf PF: > { %p4128_p7 = scmp.ge.s32.totalorder %s5077_s17, 1  ;;  %p1227_p8 = scmp.lt.s32.totalorder %s5077_s17, 3 }
  0xc1   : > { %p1228_p9 = pnand %p4128_p7, %p1227_p8 }
  0xc2   : > { %s1234_s5 = sand.u32 (!%p1228_p9), 1, %s5069_s15   ;;  %v5667_v0 = vld [vmem:[%s6400_s0] sm:$0xff] (!%p1228_p9)  ;;  %v5677_v2 = vld [vmem:[%s6400_s0 + $0x8] sm:$0xff] (!%p1228_p9)  ;;  %p1264_p10 = scmp.lt.s32.totalorder (!%p1228_p9), %s5120_s18, 1 }
  0xc3   : > { %1231 = sbr.rel (%p1228_p9) target bundleno = 717 (0x2cd), region = 65  ;;  %v5672_v1 = vld [vmem:[%s6400_s0 + $0x40] sm:$0xff] (!%p1228_p9)  ;;  %s4129_s12 = sshll.u32 (!%p1228_p9), %s1234_s5, 10  ;;  %v5686_v4 = vld [vmem:[%s6400_s0 + $0x48] sm:$0xff] (!%p1228_p9) }
  0xc4   : > { %v4132_v3 = vcombine.high (!%p1228_p9), %v5667_v0, %v5672_v1  ;;  %v4134_v5 = vcombine.high (!%p1228_p9), %v5677_v2, %v5686_v4  ;;  %s5690_s17 = scalar_lea.vmem (!%p1228_p9), [#allocation2], %s4129_s12  ;;  %v1287_v35 = vld [vmem:[%s6400_s0 + $0x80] sm:$0xff] (!%p1228_p9)  ;;  %v1288_v38 = vld [vmem:[%s6400_s0 + $0x88] sm:$0xff] (!%p1228_p9)  ;;  %v4131_v42 = vcombine.low (!%p1228_p9), %v5667_v0, %v5672_v1  ;;  %v4133_v43 = vcombine.low (!%p1228_p9), %v5677_v2, %v5686_v4 }
  0xc5   : > { %v4927_v6 = vld [vmem:[%s5690_s17 + $0x40] sm:$0xff] (!%p1228_p9)   ;;  %v4931_v10 = vld [vmem:[%s5690_s17 + $0x48] sm:$0xff] (!%p1228_p9)   ;;  %v4935_v14 = vld [vmem:[%s5690_s17 + $0x50] sm:$0xff] (!%p1228_p9)  }
  0xc6   : > { %3095 = vmatprep.mubr.bf16.mxu0 (!%p1228_p9), %v4132_v3  ;;  %v4928_v7 = vld [vmem:[%s5690_s17 + $0xc0] sm:$0xff] (!%p1228_p9)   ;;  %3192 = vmatprep.mubr.bf16.mxu1 (!%p1228_p9), %v4134_v5  ;;  %v4932_v11 = vld [vmem:[%s5690_s17 + $0xc8] sm:$0xff] (!%p1228_p9)   ;;  %v4936_v15 = vld [vmem:[%s5690_s17 + $0xd0] sm:$0xff] (!%p1228_p9)  }
  0xc7   : > { %4391 = vmatprep.subr.bf16.mxu0 (!%p1228_p9), %v4927_v6  ;;  %v4929_v8 = vld [vmem:[%s5690_s17] sm:$0xff] (!%p1228_p9)   ;;  %4455 = vmatprep.subr.bf16.mxu1 (!%p1228_p9), %v4928_v7  ;;  %v4933_v12 = vld [vmem:[%s5690_s17 + $0x8] sm:$0xff] (!%p1228_p9)   ;;  %v4937_v16 = vld [vmem:[%s5690_s17 + $0x10] sm:$0xff] (!%p1228_p9)  }
  0xc8   : > { %v4930_v9 = vld [vmem:[%s5690_s17 + $0x80] sm:$0xff] (!%p1228_p9)   ;;  %4392 = vmatpush3.bf16.msra.mxu0 (!%p1228_p9), %v4929_v8  ;;  %v4934_v13 = vld [vmem:[%s5690_s17 + $0x88] sm:$0xff] (!%p1228_p9)   ;;  %v4938_v17 = vld [vmem:[%s5690_s17 + $0x90] sm:$0xff] (!%p1228_p9)  }
  0xc9   : > { %4456 = vmatpush3.bf16.msra.mxu1 (!%p1228_p9), %v4930_v9  ;;  %4393 = vmatprep.subr.bf16.mxu0 (!%p1228_p9), %v4931_v10  ;;  %v4939_v18 = vld [vmem:[%s5690_s17 + $0x58] sm:$0xff] (!%p1228_p9)   ;;  %v4943_v22 = vld [vmem:[%s5690_s17 + $0x60] sm:$0xff] (!%p1228_p9)   ;;  %v4947_v26 = vld [vmem:[%s5690_s17 + $0x68] sm:$0xff] (!%p1228_p9)  }
  0xca   : > { %4457 = vmatprep.subr.bf16.mxu1 %v4932_v11  ;;  %v4940_v19 = vld [vmem:[%s5690_s17 + $0xd8] sm:$0xff]   ;;  %v4944_v23 = vld [vmem:[%s5690_s17 + $0xe0] sm:$0xff]   ;;  %v4948_v27 = vld [vmem:[%s5690_s17 + $0xe8] sm:$0xff]   ;;  %s1265_s15 = scalar_select %p1264_p10, %s5120_s18, 1 }
  0xcb   : > { %v4941_v20 = vld [vmem:[%s5690_s17 + $0x18] sm:$0xff]   ;;  %v4945_v24 = vld [vmem:[%s5690_s17 + $0x20] sm:$0xff]   ;;  %v4949_v28 = vld [vmem:[%s5690_s17 + $0x28] sm:$0xff]   ;;  %s4388_s13 = sshll.u32 (%p5135_p5), %s5120_s18, 3 }
  0xcc   : > { %4394 = vmatpush3.bf16.msra.mxu0 %v4933_v12  ;;  %v4942_v21 = vld [vmem:[%s5690_s17 + $0x98] sm:$0xff]   ;;  %v4946_v25 = vld [vmem:[%s5690_s17 + $0xa0] sm:$0xff]   ;;  %v4950_v29 = vld [vmem:[%s5690_s17 + $0xa8] sm:$0xff]   ;;  %s1266_s9 = scalar_lea.vmem %s6403_s3, %s1265_s15  ;;  %s1269_s12 = scalar_lea.vmem %s6404_s4, %s1265_s15 }
  0xcd   : > { %4458 = vmatpush3.bf16.msra.mxu1 %v4934_v13  ;;  %4395 = vmatprep.subr.bf16.mxu0 %v4935_v14  ;;  %v4951_v30 = vld [vmem:[%s5690_s17 + $0x70] sm:$0xff]   ;;  %v4955_v34 = vld [vmem:[%s5690_s17 + $0x78] sm:$0xff]   ;;  %v1295_v36 = vld [vmem:[%s6400_s0 + $0xc0] sm:$0xff]  ;;  %s3929_s21 = scalar_lea.vmem (%p5135_p5), %s6402_s2, %s4388_s13 }
  0xce   : > { %4459 = vmatprep.subr.bf16.mxu1 %v4936_v15  ;;  %v4952_v31 = vld [vmem:[%s5690_s17 + $0xf0] sm:$0xff]   ;;  %v4956_v37 = vld [vmem:[%s5690_s17 + $0xf8] sm:$0xff]   ;;  %v1296_v39 = vld [vmem:[%s6400_s0 + $0xc8] sm:$0xff]  ;;  %v4148_v46 = vcombine.high %v1287_v35, %v1295_v36  ;;  %v4147_v54 = vcombine.low %v1287_v35, %v1295_v36 }
  0xcf   : > { %v4953_v32 = vld [vmem:[%s5690_s17 + $0x30] sm:$0xff]   ;;  %v4957_v40 = vld [vmem:[%s5690_s17 + $0x38] sm:$0xff]   ;;  %v4959_v44 = vld [vmem:[%s5690_s17 + $0x140] sm:$0xff]   ;;  %v4150_v48 = vcombine.high %v1288_v38, %v1296_v39  ;;  %v4149_v56 = vcombine.low %v1288_v38, %v1296_v39 }
  0xd0   : > { %4396 = vmatpush3.bf16.msra.mxu0 %v4937_v16  ;;  %v4954_v33 = vld [vmem:[%s5690_s17 + $0xb0] sm:$0xff]   ;;  %v4958_v41 = vld [vmem:[%s5690_s17 + $0xb8] sm:$0xff]   ;;  %v4960_v45 = vld [vmem:[%s5690_s17 + $0x100] sm:$0xff]  }
  0xd1   : > { %4460 = vmatpush3.bf16.msra.mxu1 %v4938_v17  ;;  %4397 = vmatprep.subr.bf16.mxu0 %v4939_v18  ;;  %v4961_v47 = vld [vmem:[%s5690_s17 + $0x1c0] sm:$0xff]   ;;  %v4963_v50 = vld [vmem:[%s5690_s17 + $0x148] sm:$0xff]   ;;  %v4967_v62 = vld [vmem:[%s5690_s17 + $0x150] sm:$0xff]  }
  0xd2   : > { %4461 = vmatprep.subr.bf16.mxu1 %v4940_v19  ;;  %v4962_v49 = vld [vmem:[%s5690_s17 + $0x180] sm:$0xff]   ;;  %v4964_v52 = vld [vmem:[%s5690_s17 + $0x108] sm:$0xff]   ;;  %v4968_v63 = vld [vmem:[%s5690_s17 + $0x110] sm:$0xff]  }
  0xd3   : > { %v1303_v51 = vld [vmem:[%s6400_s0 + $0x100] sm:$0xff]  ;;  %v4965_v53 = vld [vmem:[%s5690_s17 + $0x1c8] sm:$0xff]   ;;  %v4969_v0 = vld [vmem:[%s5690_s17 + $0x1d0] sm:$0xff]  }
  0xd4   : > { %4398 = vmatpush3.bf16.msra.mxu0 %v4941_v20  ;;  %v4966_v55 = vld [vmem:[%s5690_s17 + $0x188] sm:$0xff]   ;;  %v1311_v57 = vld [vmem:[%s6400_s0 + $0x140] sm:$0xff]  ;;  %v4970_v1 = vld [vmem:[%s5690_s17 + $0x190] sm:$0xff]  }
  0xd5   : > { %4462 = vmatpush3.bf16.msra.mxu1 %v4942_v21  ;;  %4399 = vmatprep.subr.bf16.mxu0 %v4943_v22  ;;  %v1304_v58 = vld [vmem:[%s6400_s0 + $0x108] sm:$0xff]  ;;  %v4164_v60 = vcombine.high %v1303_v51, %v1311_v57  ;;  %v1319_v2 = vld [vmem:[%s6400_s0 + $0x180] sm:$0xff]  ;;  %v4163_v6 = vcombine.low %v1303_v51, %v1311_v57  ;;  %v4971_v7 = vld [vmem:[%s5690_s17 + $0x158] sm:$0xff]  }
  0xd6   : > { %4463 = vmatprep.subr.bf16.mxu1 %v4944_v23  ;;  %v1312_v59 = vld [vmem:[%s6400_s0 + $0x148] sm:$0xff]  ;;  %v1327_v3 = vld [vmem:[%s6400_s0 + $0x1c0] sm:$0xff]  ;;  %v4972_v10 = vld [vmem:[%s5690_s17 + $0x118] sm:$0xff]  }
  0xd7   : > { %v4166_v61 = vcombine.high %v1304_v58, %v1312_v59  ;;  %v1320_v4 = vld [vmem:[%s6400_s0 + $0x188] sm:$0xff]  ;;  %v4165_v8 = vcombine.low %v1304_v58, %v1312_v59  ;;  %v4180_v9 = vcombine.high %v1319_v2, %v1327_v3  ;;  %v4973_v12 = vld [vmem:[%s5690_s17 + $0x1d8] sm:$0xff]   ;;  %v1335_v14 = vld [vmem:[%s6400_s0 + $0x200] sm:$0xff]  ;;  %v4179_v21 = vcombine.low %v1319_v2, %v1327_v3 }
  0xd8   : > { %4400 = vmatpush3.bf16.msra.mxu0 %v4945_v24  ;;  %v1328_v5 = vld [vmem:[%s6400_s0 + $0x1c8] sm:$0xff]  ;;  %v4974_v13 = vld [vmem:[%s5690_s17 + $0x198] sm:$0xff]   ;;  %v1343_v15 = vld [vmem:[%s6400_s0 + $0x240] sm:$0xff] }
  0xd9   : > { %4464 = vmatpush3.bf16.msra.mxu1 %v4946_v25  ;;  %4401 = vmatprep.subr.bf16.mxu0 %v4947_v26  ;;  %v4182_v11 = vcombine.high %v1320_v4, %v1328_v5  ;;  %v1336_v16 = vld [vmem:[%s6400_s0 + $0x208] sm:$0xff]  ;;  %v4975_v18 = vld [vmem:[%s5690_s17 + $0x160] sm:$0xff]   ;;  %v4181_v23 = vcombine.low %v1320_v4, %v1328_v5  ;;  %v4196_v24 = vcombine.high %v1335_v14, %v1343_v15  ;;  %v4983_v35 = vld [vmem:[%s5690_s17 + $0x170] sm:$0xff]  }
  0xda   : > { %4465 = vmatprep.subr.bf16.mxu1 %v4948_v27  ;;  %v1344_v17 = vld [vmem:[%s6400_s0 + $0x248] sm:$0xff]  ;;  %v4976_v19 = vld [vmem:[%s5690_s17 + $0x120] sm:$0xff]   ;;  %v4984_v38 = vld [vmem:[%s5690_s17 + $0x130] sm:$0xff]  }
  0xdb   : > { %v4977_v20 = vld [vmem:[%s5690_s17 + $0x1e0] sm:$0xff]   ;;  %v4198_v25 = vcombine.high %v1336_v16, %v1344_v17  ;;  %v4979_v26 = vld [vmem:[%s5690_s17 + $0x168] sm:$0xff]   ;;  %v4197_v36 = vcombine.low %v1336_v16, %v1344_v17  ;;  %v1274_v2 = vld [vmem:[%s6400_s0 + $0x18] sm:$0xff] }
  0xdc   : > { %4402 = vmatpush3.bf16.msra.mxu0 %v4949_v28  ;;  %v4978_v22 = vld [vmem:[%s5690_s17 + $0x1a0] sm:$0xff]   ;;  %v4980_v27 = vld [vmem:[%s5690_s17 + $0x128] sm:$0xff]   ;;  %v1282_v3 = vld [vmem:[%s6400_s0 + $0x58] sm:$0xff] }
  0xdd   : > { %4466 = vmatpush3.bf16.msra.mxu1 %v4950_v29  ;;  %4403 = vmatprep.subr.bf16.mxu0 %v4951_v30  ;;  %v4981_v28 = vld [vmem:[%s5690_s17 + $0x1e8] sm:$0xff]   ;;  %v1351_v30 = vld [vmem:[%s6400_s0 + $0x280] sm:$0xff] }
  0xde   : > { %4467 = vmatprep.subr.bf16.mxu1 %v4952_v31  ;;  %v4982_v29 = vld [vmem:[%s5690_s17 + $0x1a8] sm:$0xff]   ;;  %v1359_v31 = vld [vmem:[%s6400_s0 + $0x2c0] sm:$0xff] }
  0xdf   : > { %v1391_v57 = vld [vmem:[%s6400_s0 + $0x3c0] sm:$0xff]  ;;  %v1384_v58 = vld [vmem:[%s6400_s0 + $0x388] sm:$0xff] }
  0xe0   : > { %4404 = vmatpush3.bf16.msra.mxu0 %v4953_v32  ;;  %v1352_v32 = vld [vmem:[%s6400_s0 + $0x288] sm:$0xff] }
  0xe1   : > { %4468 = vmatpush3.bf16.msra.mxu1 %v4954_v33  ;;  %4405 = vmatprep.subr.bf16.mxu0 %v4955_v34  ;;  %v1360_v33 = vld [vmem:[%s6400_s0 + $0x2c8] sm:$0xff]  ;;  %v4195_v34 = vcombine.low %v1335_v14, %v1343_v15  ;;  %v4992_v14 = vld [vmem:[%s5690_s17 + $0x200] sm:$0xff]  }
  0xe2   : > { %4469 = vmatprep.subr.bf16.mxu1 %v4956_v37  ;;  %v4212_v37 = vcombine.high %v1351_v30, %v1359_v31  ;;  %v4214_v39 = vcombine.high %v1352_v32, %v1360_v33  ;;  %v4213_v51 = vcombine.low %v1352_v32, %v1360_v33  ;;  %v1392_v59 = vld [vmem:[%s6400_s0 + $0x3c8] sm:$0xff]  ;;  %v4994_v15 = vld [vmem:[%s5690_s17 + $0x280] sm:$0xff]   ;;  %v5002_v33 = vld [vmem:[%s5690_s17 + $0x290] sm:$0xff]  }
  0xe3   : > { %v4245_v5 = vcombine.low %v1384_v58, %v1392_v59 }
  0xe4   : > { %4406 = vmatpush3.bf16.msra.mxu0 %v4957_v40  ;;  %v4985_v40 = vld [vmem:[%s5690_s17 + $0x1f0] sm:$0xff]  }
  0xe5   : > { %4470 = vmatpush3.bf16.msra.mxu1 %v4958_v41  ;;  %4519 = vmatprep.subr.bf16.mxu0 %v4959_v44  ;;  %v4986_v41 = vld [vmem:[%s5690_s17 + $0x1b0] sm:$0xff]   ;;  %v1368_v44 = vld [vmem:[%s6400_s0 + $0x308] sm:$0xff] }
  0xe6   : > { %4583 = vmatprep.subr.bf16.mxu1 %v4961_v47  ;;  %v4988_v47 = vld [vmem:[%s5690_s17 + $0x138] sm:$0xff]  }
  0xe7   : > { %3096 = vmatmul.mubr.bf16.vlgmr.msra.gmra.mrb[0].mxu0 %v4131_v42  ;;  %v1367_v42 = vld [vmem:[%s6400_s0 + $0x300] sm:$0xff] }
  0xe8   : > { %3193 = vmatmul.mubr.bf16.vlgmr.msra.gmra.mrb[0].mxu1 %v4133_v43  ;;  %4520 = vmatpush3.bf16.msra.mxu0 %v4960_v45  ;;  %v1375_v43 = vld [vmem:[%s6400_s0 + $0x340] sm:$0xff]  ;;  %v1376_v45 = vld [vmem:[%s6400_s0 + $0x348] sm:$0xff] }
  0xe9   : > { %3103 = vmatprep.mubr.bf16.mxu0 %v4148_v46  ;;  %4584 = vmatpush3.bf16.msra.mxu1 %v4962_v49  ;;  %v4987_v46 = vld [vmem:[%s5690_s17 + $0x178] sm:$0xff]   ;;  %v4211_v49 = vcombine.low %v1351_v30, %v1359_v31  ;;  %v5000_v31 = vld [vmem:[%s5690_s17 + $0x210] sm:$0xff]  }
  0xea   : > { %3200 = vmatprep.mubr.bf16.mxu1 %v4150_v48  ;;  %4521 = vmatprep.subr.bf16.mxu0 %v4963_v50  ;;  %v4989_v48 = vld [vmem:[%s5690_s17 + $0x1f8] sm:$0xff]  }
  0xeb   : > { %4585 = vmatprep.subr.bf16.mxu1 %v4965_v53  ;;  %v4990_v50 = vld [vmem:[%s5690_s17 + $0x1b8] sm:$0xff]   ;;  %v4230_v53 = vcombine.high %v1368_v44, %v1376_v45 }
  0xec   : > { %4522 = vmatpush3.bf16.msra.mxu0 %v4964_v52  ;;  %v4228_v52 = vcombine.high %v1367_v42, %v1375_v43 }
  0xed   : > { %4586 = vmatpush3.bf16.msra.mxu1 %v4966_v55  ;;  %4523 = vmatprep.subr.bf16.mxu0 %v4967_v62  ;;  %v4993_v55 = vld [vmem:[%s5690_s17 + $0x2c0] sm:$0xff]  }
  0xee   : > { %4587 = vmatprep.subr.bf16.mxu1 %v4969_v0  ;;  %v1273_v0 = vld [vmem:[%s6400_s0 + $0x10] sm:$0xff] }
  0xef   : > { %3104 = vmatmul.mubr.bf16.gmra.mrb[4].mxu0 %v4147_v54  ;;  %v4991_v54 = vld [vmem:[%s5690_s17 + $0x240] sm:$0xff]  }
  0xf0   : > { %3201 = vmatmul.mubr.bf16.gmra.mrb[4].mxu1 %v4149_v56  ;;  %3111 = vmatprep.mubr.bf16.mxu0 %v4164_v60  ;;  %v1383_v56 = vld [vmem:[%s6400_s0 + $0x380] sm:$0xff]  ;;  %v4227_v60 = vcombine.low %v1367_v42, %v1375_v43 }
  0xf1   : > { %3208 = vmatprep.mubr.bf16.mxu1 %v4166_v61  ;;  %4524 = vmatpush3.bf16.msra.mxu0 %v4968_v63  ;;  %v4229_v61 = vcombine.low %v1368_v44, %v1376_v45  ;;  %v4244_v62 = vcombine.high %v1383_v56, %v1391_v57  ;;  %v4246_v63 = vcombine.high %v1384_v58, %v1392_v59  ;;  %v5007_v42 = vld [vmem:[%s5690_s17 + $0x260] sm:$0xff]   ;;  %v5015_v58 = vld [vmem:[%s5690_s17 + $0x270] sm:$0xff]  }
  0xf2   : > { %4588 = vmatpush3.bf16.msra.mxu1 %v4970_v1  ;;  %4525 = vmatprep.subr.bf16.mxu0 %v4971_v7  ;;  %v1281_v1 = vld [vmem:[%s6400_s0 + $0x50] sm:$0xff]  ;;  %v4243_v4 = vcombine.low %v1383_v56, %v1391_v57  ;;  %v4138_v7 = vcombine.high %v1274_v2, %v1282_v3  ;;  %v5009_v44 = vld [vmem:[%s5690_s17 + $0x2e0] sm:$0xff]   ;;  %v5012_v56 = vld [vmem:[%s5690_s17 + $0x228] sm:$0xff]  }
  0xf3   : > { %4589 = vmatprep.subr.bf16.mxu1 %v4973_v12  ;;  %v1298_v12 = vld [vmem:[%s6400_s0 + $0xd8] sm:$0xff]  ;;  %v5014_v57 = vld [vmem:[%s5690_s17 + $0x2a8] sm:$0xff]  }
  0xf5   : > { %4526 = vmatpush3.bf16.msra.mxu0 %v4972_v10  ;;  %v1290_v10 = vld [vmem:[%s6400_s0 + $0x98] sm:$0xff] }
  0xf6   : > { %4590 = vmatpush3.bf16.msra.mxu1 %v4974_v13  ;;  %4527 = vmatprep.subr.bf16.mxu0 %v4975_v18  ;;  %v4137_v13 = vcombine.low %v1274_v2, %v1282_v3  ;;  %v4154_v17 = vcombine.high %v1290_v10, %v1298_v12  ;;  %v4995_v18 = vld [vmem:[%s5690_s17 + $0x248] sm:$0xff]   ;;  %v5019_v2 = vld [vmem:[%s5690_s17 + $0x278] sm:$0xff]   ;;  %v1353_v3 = vld [vmem:[%s6400_s0 + $0x290] sm:$0xff] }
  0xf7   : > { %3112 = vmatmul.mubr.bf16.gmra.mrb[8].mxu0 %v4163_v6  ;;  %4591 = vmatprep.subr.bf16.mxu1 %v4977_v20  ;;  %v4136_v6 = vcombine.high %v1273_v0, %v1281_v1  ;;  %v4997_v20 = vld [vmem:[%s5690_s17 + $0x2c8] sm:$0xff]  }
  0xf8   : > { %3209 = vmatmul.mubr.bf16.gmra.mrb[8].mxu1 %v4165_v8  ;;  %3119 = vmatprep.mubr.bf16.mxu0 %v4180_v9  ;;  %v1289_v8 = vld [vmem:[%s6400_s0 + $0x90] sm:$0xff] }
  0xf9   : > { %3216 = vmatprep.mubr.bf16.mxu1 %v4182_v11  ;;  %4528 = vmatpush3.bf16.msra.mxu0 %v4976_v19  ;;  %v1297_v9 = vld [vmem:[%s6400_s0 + $0xd0] sm:$0xff]  ;;  %v4135_v11 = vcombine.low %v1273_v0, %v1281_v1  ;;  %v4996_v19 = vld [vmem:[%s5690_s17 + $0x208] sm:$0xff]  }
  0xfa   : > { %4592 = vmatpush3.bf16.msra.mxu1 %v4978_v22  ;;  %4529 = vmatprep.subr.bf16.mxu0 %v4979_v26  ;;  %v4152_v16 = vcombine.high %v1289_v8, %v1297_v9  ;;  %v1305_v22 = vld [vmem:[%s6400_s0 + $0x110] sm:$0xff] }
  0xfb   : > { %4593 = vmatprep.subr.bf16.mxu1 %v4981_v28  ;;  %v4999_v26 = vld [vmem:[%s5690_s17 + $0x250] sm:$0xff]   ;;  %v4151_v28 = vcombine.low %v1289_v8, %v1297_v9  ;;  %v5020_v8 = vld [vmem:[%s5690_s17 + $0x238] sm:$0xff]  }
  0xfc   : > { %v5018_v1 = vld [vmem:[%s5690_s17 + $0x2b0] sm:$0xff]   ;;  %v5022_v9 = vld [vmem:[%s5690_s17 + $0x2b8] sm:$0xff]  }
  0xfd   : > { %4530 = vmatpush3.bf16.msra.mxu0 %v4980_v27  ;;  %v5001_v27 = vld [vmem:[%s5690_s17 + $0x2d0] sm:$0xff]  }
  0xfe   : > { %4594 = vmatpush3.bf16.msra.mxu1 %v4982_v29  ;;  %4531 = vmatprep.subr.bf16.mxu0 %v4983_v35  ;;  %v4153_v29 = vcombine.low %v1290_v10, %v1298_v12  ;;  %v1321_v35 = vld [vmem:[%s6400_s0 + $0x190] sm:$0xff]  ;;  %v5023_v10 = vld [vmem:[%s5690_s17 + $0x340] sm:$0xff]  }
  0xff   : > { %3120 = vmatmul.mubr.bf16.gmra.mrb[12].mxu0 %v4179_v21  ;;  %4595 = vmatprep.subr.bf16.mxu1 %v4985_v40  ;;  %v4998_v21 = vld [vmem:[%s5690_s17 + $0x288] sm:$0xff]   ;;  %v5004_v40 = vld [vmem:[%s5690_s17 + $0x218] sm:$0xff]   ;;  %v5025_v12 = vld [vmem:[%s5690_s17 + $0x3c0] sm:$0xff]  }
 0x100   : > { %3217 = vmatmul.mubr.bf16.gmra.mrb[12].mxu1 %v4181_v23  ;;  %3127 = vmatprep.mubr.bf16.mxu0 %v4196_v24  ;;  %v1313_v23 = vld [vmem:[%s6400_s0 + $0x150] sm:$0xff]  ;;  %v1306_v24 = vld [vmem:[%s6400_s0 + $0x118] sm:$0xff] }
 0x101   : > { %3224 = vmatprep.mubr.bf16.mxu1 %v4198_v25  ;;  %4532 = vmatpush3.bf16.msra.mxu0 %v4984_v38  ;;  %v1314_v25 = vld [vmem:[%s6400_s0 + $0x158] sm:$0xff]  ;;  %v4168_v30 = vcombine.high %v1305_v22, %v1313_v23  ;;  %v4167_v43 = vcombine.low %v1305_v22, %v1313_v23 }
 0x102   : > { %4596 = vmatpush3.bf16.msra.mxu1 %v4986_v41  ;;  %4533 = vmatprep.subr.bf16.mxu0 %v4987_v46  ;;  %v4170_v32 = vcombine.high %v1306_v24, %v1314_v25  ;;  %v1322_v38 = vld [vmem:[%s6400_s0 + $0x198] sm:$0xff]  ;;  %v4169_v45 = vcombine.low %v1306_v24, %v1314_v25  ;;  %v1385_v24 = vld [vmem:[%s6400_s0 + $0x390] sm:$0xff] }
 0x103   : > { %4597 = vmatprep.subr.bf16.mxu1 %v4989_v48  ;;  %v5006_v41 = vld [vmem:[%s5690_s17 + $0x298] sm:$0xff]   ;;  %v5008_v48 = vld [vmem:[%s5690_s17 + $0x220] sm:$0xff]   ;;  %v1393_v25 = vld [vmem:[%s6400_s0 + $0x3d0] sm:$0xff] }
 0x105   : > { %4534 = vmatpush3.bf16.msra.mxu0 %v4988_v47 }
 0x106   : > { %4598 = vmatpush3.bf16.msra.mxu1 %v4990_v50  ;;  %4647 = vmatprep.subr.bf16.mxu0 %v4991_v54  ;;  %v5011_v50 = vld [vmem:[%s5690_s17 + $0x268] sm:$0xff]   ;;  %v1338_v54 = vld [vmem:[%s6400_s0 + $0x218] sm:$0xff] }
 0x107   : > { %3128 = vmatmul.mubr.bf16.gmra.mrb[16].mxu0 %v4195_v34  ;;  %4711 = vmatprep.subr.bf16.mxu1 %v4993_v55  ;;  %v5003_v34 = vld [vmem:[%s5690_s17 + $0x258] sm:$0xff]  }
 0x108   : > { %3225 = vmatmul.mubr.bf16.gmra.mrb[16].mxu1 %v4197_v36  ;;  %3135 = vmatprep.mubr.bf16.mxu0 %v4212_v37  ;;  %v1329_v36 = vld [vmem:[%s6400_s0 + $0x1d0] sm:$0xff]  ;;  %v5005_v37 = vld [vmem:[%s5690_s17 + $0x2d8] sm:$0xff]  }
 0x109   : > { %3232 = vmatprep.mubr.bf16.mxu1 %v4214_v39  ;;  %v1330_v39 = vld [vmem:[%s6400_s0 + $0x1d8] sm:$0xff]  ;;  %v4184_v46 = vcombine.high %v1321_v35, %v1329_v36  ;;  %v4183_v59 = vcombine.low %v1321_v35, %v1329_v36  ;;  %v1284_v35 = vld [vmem:[%s6400_s0 + $0x68] sm:$0xff]  ;;  %v4247_v36 = vcombine.low %v1385_v24, %v1393_v25 }
 0x10a   : > { %v4186_v47 = vcombine.high %v1322_v38, %v1330_v39  ;;  %v1346_v55 = vld [vmem:[%s6400_s0 + $0x258] sm:$0xff] }
 0x10b   : > { %v4202_v0 = vcombine.high %v1338_v54, %v1346_v55 }
 0x10f   : > { %3136 = vmatmul.mubr.bf16.gmra.mrb[20].mxu0 %v4211_v49  ;;  %v5010_v49 = vld [vmem:[%s5690_s17 + $0x2a0] sm:$0xff]  }
 0x110   : > { %3233 = vmatmul.mubr.bf16.gmra.mrb[20].mxu1 %v4213_v51  ;;  %3143 = vmatprep.mubr.bf16.mxu0 %v4228_v52  ;;  %v1337_v51 = vld [vmem:[%s6400_s0 + $0x210] sm:$0xff] }
 0x111   : > { %3240 = vmatprep.mubr.bf16.mxu1 %v4230_v53  ;;  %v1345_v52 = vld [vmem:[%s6400_s0 + $0x250] sm:$0xff]  ;;  %v5013_v53 = vld [vmem:[%s5690_s17 + $0x2e8] sm:$0xff]  }
 0x117   : > { %3144 = vmatmul.mubr.bf16.gmra.mrb[24].mxu0 %v4227_v60  ;;  %v5017_v60 = vld [vmem:[%s5690_s17 + $0x2f0] sm:$0xff]  }
 0x118   : > { %3241 = vmatmul.mubr.bf16.gmra.mrb[24].mxu1 %v4229_v61  ;;  %3151 = vmatprep.mubr.bf16.mxu0 %v4244_v62  ;;  %v4185_v61 = vcombine.low %v1322_v38, %v1330_v39  ;;  %v4200_v62 = vcombine.high %v1337_v51, %v1345_v52 }
 0x119   : > { %3248 = vmatprep.mubr.bf16.mxu1 %v4246_v63  ;;  %v5016_v63 = vld [vmem:[%s5690_s17 + $0x230] sm:$0xff]  }
 0x11f   : > { %3152 = vmatmul.mubr.bf16.gmra.mrb[28].mxu0 %v4243_v4  ;;  %v1361_v4 = vld [vmem:[%s6400_s0 + $0x2d0] sm:$0xff] }
 0x120   : > { %3249 = vmatmul.mubr.bf16.gmra.mrb[28].mxu1 %v4245_v5  ;;  %3289 = vmatprep.mubr.bf16.mxu0 %v4136_v6  ;;  %v5021_v5 = vld [vmem:[%s5690_s17 + $0x2f8] sm:$0xff]  }
 0x121   : > { %3386 = vmatprep.mubr.bf16.mxu1 %v4138_v7  ;;  %v1354_v6 = vld [vmem:[%s6400_s0 + $0x298] sm:$0xff] }
 0x122   : > { %v1362_v7 = vld [vmem:[%s6400_s0 + $0x2d8] sm:$0xff] }
 0x127   : > { %3290 = vmatmul.mubr.bf16.vlgmr.msra.gmra.mrb[32].mxu0 %v4135_v11  ;;  %v4199_v11 = vcombine.low %v1337_v51, %v1345_v52  ;;  %v5029_v51 = vld [vmem:[%s5690_s17 + $0x3c8] sm:$0xff]  }
 0x128   : > { %3387 = vmatmul.mubr.bf16.vlgmr.msra.gmra.mrb[32].mxu1 %v4137_v13  ;;  %4648 = vmatpush3.bf16.msra.mxu0 %v4992_v14  ;;  %v4201_v13 = vcombine.low %v1338_v54, %v1346_v55  ;;  %v4216_v14 = vcombine.high %v1353_v3, %v1361_v4  ;;  %v5028_v52 = vld [vmem:[%s5690_s17 + $0x308] sm:$0xff]   ;;  %v1307_v54 = vld [vmem:[%s6400_s0 + $0x120] sm:$0xff] }
 0x129   : > { %4712 = vmatpush3.bf16.msra.mxu1 %v4994_v15  ;;  %3297 = vmatprep.mubr.bf16.mxu0 %v4152_v16  ;;  %v4218_v15 = vcombine.high %v1354_v6, %v1362_v7  ;;  %v1369_v16 = vld [vmem:[%s6400_s0 + $0x310] sm:$0xff]  ;;  %v1315_v55 = vld [vmem:[%s6400_s0 + $0x160] sm:$0xff] }
 0x12a   : > { %3394 = vmatprep.mubr.bf16.mxu1 %v4154_v17  ;;  %4649 = vmatprep.subr.bf16.mxu0 %v4995_v18  ;;  %v1377_v17 = vld [vmem:[%s6400_s0 + $0x350] sm:$0xff]  ;;  %v1370_v18 = vld [vmem:[%s6400_s0 + $0x318] sm:$0xff] }
 0x12b   : > { %4713 = vmatprep.subr.bf16.mxu1 %v4997_v20  ;;  %v4215_v20 = vcombine.low %v1353_v3, %v1361_v4  ;;  %v4232_v22 = vcombine.high %v1369_v16, %v1377_v17  ;;  %v5037_v3 = vld [vmem:[%s5690_s17 + $0x3d8] sm:$0xff]   ;;  %v1323_v4 = vld [vmem:[%s6400_s0 + $0x1a0] sm:$0xff] }
 0x12c   : > { %4650 = vmatpush3.bf16.msra.mxu0 %v4996_v19  ;;  %v1378_v19 = vld [vmem:[%s6400_s0 + $0x358] sm:$0xff] }
 0x12d   : > { %4714 = vmatpush3.bf16.msra.mxu1 %v4998_v21  ;;  %4651 = vmatprep.subr.bf16.mxu0 %v4999_v26  ;;  %v4217_v21 = vcombine.low %v1354_v6, %v1362_v7  ;;  %v4234_v23 = vcombine.high %v1370_v18, %v1378_v19  ;;  %v1386_v26 = vld [vmem:[%s6400_s0 + $0x398] sm:$0xff]  ;;  %v1324_v6 = vld [vmem:[%s6400_s0 + $0x1a8] sm:$0xff] }
 0x12e   : > { %4715 = vmatprep.subr.bf16.mxu1 %v5001_v27  ;;  %v1394_v27 = vld [vmem:[%s6400_s0 + $0x3d8] sm:$0xff] }
 0x12f   : > { %3298 = vmatmul.mubr.bf16.gmra.mrb[36].mxu0 %v4151_v28  ;;  %v4231_v28 = vcombine.low %v1369_v16, %v1377_v17  ;;  %v5036_v7 = vld [vmem:[%s5690_s17 + $0x318] sm:$0xff]   ;;  %v5040_v16 = vld [vmem:[%s5690_s17 + $0x320] sm:$0xff]  }
 0x130   : > { %3395 = vmatmul.mubr.bf16.gmra.mrb[36].mxu1 %v4153_v29  ;;  %3305 = vmatprep.mubr.bf16.mxu0 %v4168_v30  ;;  %v4233_v29 = vcombine.low %v1370_v18, %v1378_v19  ;;  %v4248_v30 = vcombine.high %v1385_v24, %v1393_v25  ;;  %v5042_v17 = vld [vmem:[%s5690_s17 + $0x3a0] sm:$0xff]   ;;  %v5043_v18 = vld [vmem:[%s5690_s17 + $0x368] sm:$0xff]  }
 0x131   : > { %3402 = vmatprep.mubr.bf16.mxu1 %v4170_v32  ;;  %4652 = vmatpush3.bf16.msra.mxu0 %v5000_v31  ;;  %v4250_v31 = vcombine.high %v1386_v26, %v1394_v27  ;;  %v1275_v32 = vld [vmem:[%s6400_s0 + $0x20] sm:$0xff]  ;;  %v5045_v19 = vld [vmem:[%s5690_s17 + $0x3e8] sm:$0xff]  }
 0x132   : > { %4716 = vmatpush3.bf16.msra.mxu1 %v5002_v33  ;;  %4653 = vmatprep.subr.bf16.mxu0 %v5003_v34  ;;  %v1283_v33 = vld [vmem:[%s6400_s0 + $0x60] sm:$0xff]  ;;  %v1276_v34 = vld [vmem:[%s6400_s0 + $0x28] sm:$0xff] }
 0x133   : > { %4717 = vmatprep.subr.bf16.mxu1 %v5005_v37  ;;  %v4249_v37 = vcombine.low %v1386_v26, %v1394_v27  ;;  %v4140_v38 = vcombine.high %v1275_v32, %v1283_v33  ;;  %v4142_v39 = vcombine.high %v1276_v34, %v1284_v35  ;;  %v1348_v24 = vld [vmem:[%s6400_s0 + $0x268] sm:$0xff]  ;;  %v5047_v26 = vld [vmem:[%s5690_s17 + $0x370] sm:$0xff]  }
 0x134   : > { %v5046_v25 = vld [vmem:[%s5690_s17 + $0x3a8] sm:$0xff]  }
 0x135   : > { %4654 = vmatpush3.bf16.msra.mxu0 %v5004_v40  ;;  %v1291_v40 = vld [vmem:[%s6400_s0 + $0xa0] sm:$0xff] }
 0x136   : > { %4718 = vmatpush3.bf16.msra.mxu1 %v5006_v41  ;;  %4655 = vmatprep.subr.bf16.mxu0 %v5007_v42  ;;  %v1299_v41 = vld [vmem:[%s6400_s0 + $0xe0] sm:$0xff]  ;;  %v4139_v42 = vcombine.low %v1275_v32, %v1283_v33  ;;  %v5048_v32 = vld [vmem:[%s5690_s17 + $0x330] sm:$0xff]  }
 0x137   : > { %3306 = vmatmul.mubr.bf16.gmra.mrb[40].mxu0 %v4167_v43  ;;  %4719 = vmatprep.subr.bf16.mxu1 %v5009_v44  ;;  %v1292_v43 = vld [vmem:[%s6400_s0 + $0xa8] sm:$0xff]  ;;  %v5050_v33 = vld [vmem:[%s5690_s17 + $0x3b0] sm:$0xff]  }
 0x138   : > { %3403 = vmatmul.mubr.bf16.gmra.mrb[40].mxu1 %v4169_v45  ;;  %3313 = vmatprep.mubr.bf16.mxu0 %v4184_v46  ;;  %v1300_v44 = vld [vmem:[%s6400_s0 + $0xe8] sm:$0xff]  ;;  %v4141_v45 = vcombine.low %v1276_v34, %v1284_v35  ;;  %v5024_v46 = vld [vmem:[%s5690_s17 + $0x300] sm:$0xff]   ;;  %v5051_v34 = vld [vmem:[%s5690_s17 + $0x378] sm:$0xff]  }
 0x139   : > { %3410 = vmatprep.mubr.bf16.mxu1 %v4186_v47  ;;  %4656 = vmatpush3.bf16.msra.mxu0 %v5008_v48  ;;  %v5026_v47 = vld [vmem:[%s5690_s17 + $0x380] sm:$0xff]   ;;  %v4156_v48 = vcombine.high %v1291_v40, %v1299_v41  ;;  %v5053_v35 = vld [vmem:[%s5690_s17 + $0x3f8] sm:$0xff]  }
 0x13a   : > { %4720 = vmatpush3.bf16.msra.mxu1 %v5010_v49  ;;  %4657 = vmatprep.subr.bf16.mxu0 %v5011_v50  ;;  %v4158_v49 = vcombine.high %v1292_v43, %v1300_v44  ;;  %v5027_v50 = vld [vmem:[%s5690_s17 + $0x348] sm:$0xff]  }
 0x13b   : > { %4721 = vmatprep.subr.bf16.mxu1 %v5013_v53  ;;  %v5030_v53 = vld [vmem:[%s5690_s17 + $0x388] sm:$0xff]  }
 0x13d   : > { %4658 = vmatpush3.bf16.msra.mxu0 %v5012_v56  ;;  %v5031_v56 = vld [vmem:[%s5690_s17 + $0x350] sm:$0xff]  }
 0x13e   : > { %4722 = vmatpush3.bf16.msra.mxu1 %v5014_v57  ;;  %4659 = vmatprep.subr.bf16.mxu0 %v5015_v58  ;;  %v1308_v57 = vld [vmem:[%s6400_s0 + $0x128] sm:$0xff] }
 0x13f   : > { %3314 = vmatmul.mubr.bf16.gmra.mrb[44].mxu0 %v4183_v59  ;;  %4723 = vmatprep.subr.bf16.mxu1 %v5017_v60  ;;  %v1316_v58 = vld [vmem:[%s6400_s0 + $0x168] sm:$0xff]  ;;  %v5033_v59 = vld [vmem:[%s5690_s17 + $0x3d0] sm:$0xff]   ;;  %v4155_v60 = vcombine.low %v1291_v40, %v1299_v41  ;;  %v5054_v41 = vld [vmem:[%s5690_s17 + $0x3b8] sm:$0xff]  }
 0x140   : > { %3411 = vmatmul.mubr.bf16.gmra.mrb[44].mxu1 %v4185_v61  ;;  %3321 = vmatprep.mubr.bf16.mxu0 %v4200_v62  ;;  %v4157_v61 = vcombine.low %v1292_v43, %v1300_v44  ;;  %v4172_v62 = vcombine.high %v1307_v54, %v1315_v55  ;;  %v1364_v40 = vld [vmem:[%s6400_s0 + $0x2e8] sm:$0xff] }
 0x141   : > { %3418 = vmatprep.mubr.bf16.mxu1 %v4202_v0  ;;  %4660 = vmatpush3.bf16.msra.mxu0 %v5016_v63  ;;  %v4174_v63 = vcombine.high %v1308_v57, %v1316_v58  ;;  %v5032_v0 = vld [vmem:[%s5690_s17 + $0x310] sm:$0xff]  }
 0x142   : > { %4724 = vmatpush3.bf16.msra.mxu1 %v5018_v1  ;;  %4661 = vmatprep.subr.bf16.mxu0 %v5019_v2  ;;  %v5034_v1 = vld [vmem:[%s5690_s17 + $0x390] sm:$0xff]   ;;  %v5035_v2 = vld [vmem:[%s5690_s17 + $0x358] sm:$0xff]  }
 0x143   : > { %4725 = vmatprep.subr.bf16.mxu1 %v5021_v5  ;;  %v1331_v5 = vld [vmem:[%s6400_s0 + $0x1e0] sm:$0xff] }
 0x144   : > { %v4187_v27 = vcombine.low %v1323_v4, %v1331_v5 }
 0x145   : > { %4662 = vmatpush3.bf16.msra.mxu0 %v5020_v8  ;;  %v1332_v8 = vld [vmem:[%s6400_s0 + $0x1e8] sm:$0xff] }
 0x146   : > { %4726 = vmatpush3.bf16.msra.mxu1 %v5022_v9  ;;  %4775 = vmatprep.subr.bf16.mxu0 %v5023_v10  ;;  %v5038_v9 = vld [vmem:[%s5690_s17 + $0x398] sm:$0xff]   ;;  %v5039_v10 = vld [vmem:[%s5690_s17 + $0x360] sm:$0xff]  }
 0x147   : > { %3322 = vmatmul.mubr.bf16.gmra.mrb[48].mxu0 %v4199_v11  ;;  %4839 = vmatprep.subr.bf16.mxu1 %v5025_v12  ;;  %v4171_v11 = vcombine.low %v1307_v54, %v1315_v55  ;;  %v5041_v12 = vld [vmem:[%s5690_s17 + $0x3e0] sm:$0xff]  }
 0x148   : > { %3419 = vmatmul.mubr.bf16.gmra.mrb[48].mxu1 %v4201_v13  ;;  %3329 = vmatprep.mubr.bf16.mxu0 %v4216_v14  ;;  %v4173_v13 = vcombine.low %v1308_v57, %v1316_v58  ;;  %v4188_v14 = vcombine.high %v1323_v4, %v1331_v5  ;;  %v1387_v54 = vld [vmem:[%s6400_s0 + $0x3a0] sm:$0xff]  ;;  %v1396_v57 = vld [vmem:[%s6400_s0 + $0x3e8] sm:$0xff] }
 0x149   : > { %3426 = vmatprep.mubr.bf16.mxu1 %v4218_v15  ;;  %v4190_v15 = vcombine.high %v1324_v6, %v1332_v8  ;;  %v1395_v55 = vld [vmem:[%s6400_s0 + $0x3e0] sm:$0xff] }
 0x14f   : > { %3330 = vmatmul.mubr.bf16.gmra.mrb[52].mxu0 %v4215_v20  ;;  %v1339_v20 = vld [vmem:[%s6400_s0 + $0x220] sm:$0xff] }
 0x150   : > { %3427 = vmatmul.mubr.bf16.gmra.mrb[52].mxu1 %v4217_v21  ;;  %3337 = vmatprep.mubr.bf16.mxu0 %v4232_v22  ;;  %v1347_v21 = vld [vmem:[%s6400_s0 + $0x260] sm:$0xff]  ;;  %v1340_v22 = vld [vmem:[%s6400_s0 + $0x228] sm:$0xff] }
 0x151   : > { %3434 = vmatprep.mubr.bf16.mxu1 %v4234_v23  ;;  %v5044_v23 = vld [vmem:[%s5690_s17 + $0x328] sm:$0xff]   ;;  %v4205_v43 = vcombine.low %v1340_v22, %v1348_v24 }
 0x157   : > { %3338 = vmatmul.mubr.bf16.gmra.mrb[56].mxu0 %v4231_v28  ;;  %v5049_v28 = vld [vmem:[%s5690_s17 + $0x3f0] sm:$0xff]  }
 0x158   : > { %3435 = vmatmul.mubr.bf16.gmra.mrb[56].mxu1 %v4233_v29  ;;  %3345 = vmatprep.mubr.bf16.mxu0 %v4248_v30  ;;  %v4189_v29 = vcombine.low %v1324_v6, %v1332_v8  ;;  %v4204_v30 = vcombine.high %v1339_v20, %v1347_v21  ;;  %v1293_v6 = vld [vmem:[%s6400_s0 + $0xb0] sm:$0xff]  ;;  %v1294_v8 = vld [vmem:[%s6400_s0 + $0xb8] sm:$0xff] }
 0x159   : > { %3442 = vmatprep.mubr.bf16.mxu1 %v4250_v31  ;;  %v4206_v31 = vcombine.high %v1340_v22, %v1348_v24  ;;  %v1325_v22 = vld [vmem:[%s6400_s0 + $0x1b0] sm:$0xff]  ;;  %v1326_v24 = vld [vmem:[%s6400_s0 + $0x1b8] sm:$0xff] }
 0x15f   : > { %3346 = vmatmul.mubr.bf16.gmra.mrb[60].mxu0 %v4247_v36  ;;  %v1355_v36 = vld [vmem:[%s6400_s0 + $0x2a0] sm:$0xff] }
 0x160   : > { %3443 = vmatmul.mubr.bf16.gmra.mrb[60].mxu1 %v4249_v37  ;;  %3483 = vmatprep.mubr.bf16.mxu0 %v4140_v38  ;;  %v1363_v37 = vld [vmem:[%s6400_s0 + $0x2e0] sm:$0xff]  ;;  %v5052_v38 = vld [vmem:[%s5690_s17 + $0x338] sm:$0xff]   ;;  %s4130_s17 = sshll.u32 %s1234_s5, 7 }
 0x161   : > { %3580 = vmatprep.mubr.bf16.mxu1 %v4142_v39  ;;  %v1356_v39 = vld [vmem:[%s6400_s0 + $0x2a8] sm:$0xff]  ;;  %v4220_v44 = vcombine.high %v1355_v36, %v1363_v37  ;;  %s6328_s7 = scalar_lea.vmem [#allocation3], %s4130_s17 }
 0x167   : > { %3484 = vmatmul.mubr.bf16.vlgmr.msra.gmra.mrb[64].mxu0 %v4139_v42  ;;  %v4203_v42 = vcombine.low %v1339_v20, %v1347_v21 }
 0x168   : > { %3581 = vmatmul.mubr.bf16.vlgmr.msra.gmra.mrb[64].mxu1 %v4141_v45  ;;  %4776 = vmatpush3.bf16.msra.mxu0 %v5024_v46  ;;  %v4222_v45 = vcombine.high %v1356_v39, %v1364_v40  ;;  %v1371_v46 = vld [vmem:[%s6400_s0 + $0x320] sm:$0xff] }
 0x169   : > { %4840 = vmatpush3.bf16.msra.mxu1 %v5026_v47  ;;  %3491 = vmatprep.mubr.bf16.mxu0 %v4156_v48  ;;  %v1379_v47 = vld [vmem:[%s6400_s0 + $0x360] sm:$0xff]  ;;  %v1372_v48 = vld [vmem:[%s6400_s0 + $0x328] sm:$0xff] }
 0x16a   : > { %3588 = vmatprep.mubr.bf16.mxu1 %v4158_v49  ;;  %4777 = vmatprep.subr.bf16.mxu0 %v5027_v50  ;;  %v1380_v49 = vld [vmem:[%s6400_s0 + $0x368] sm:$0xff]  ;;  %v4219_v50 = vcombine.low %v1355_v36, %v1363_v37  ;;  %v4235_v58 = vcombine.low %v1371_v46, %v1379_v47 }
 0x16b   : > { %4841 = vmatprep.subr.bf16.mxu1 %v5029_v51  ;;  %v4221_v51 = vcombine.low %v1356_v39, %v1364_v40 }
 0x16c   : > { %4778 = vmatpush3.bf16.msra.mxu0 %v5028_v52  ;;  %v4236_v52 = vcombine.high %v1371_v46, %v1379_v47 }
 0x16d   : > { %4842 = vmatpush3.bf16.msra.mxu1 %v5030_v53  ;;  %4779 = vmatprep.subr.bf16.mxu0 %v5031_v56  ;;  %v4238_v53 = vcombine.high %v1372_v48, %v1380_v49  ;;  %v1388_v56 = vld [vmem:[%s6400_s0 + $0x3a8] sm:$0xff] }
 0x16e   : > { %4843 = vmatprep.subr.bf16.mxu1 %v5033_v59  ;;  %v4237_v59 = vcombine.low %v1372_v48, %v1380_v49 }
 0x16f   : > { %3492 = vmatmul.mubr.bf16.gmra.mrb[68].mxu0 %v4155_v60  ;;  %v4252_v60 = vcombine.high %v1387_v54, %v1395_v55 }
 0x170   : > { %3589 = vmatmul.mubr.bf16.gmra.mrb[68].mxu1 %v4157_v61  ;;  %3499 = vmatprep.mubr.bf16.mxu0 %v4172_v62  ;;  %v4254_v61 = vcombine.high %v1388_v56, %v1396_v57  ;;  %v1277_v62 = vld [vmem:[%s6400_s0 + $0x30] sm:$0xff] }
 0x171   : > { %3596 = vmatprep.mubr.bf16.mxu1 %v4174_v63  ;;  %4780 = vmatpush3.bf16.msra.mxu0 %v5032_v0  ;;  %v1285_v63 = vld [vmem:[%s6400_s0 + $0x70] sm:$0xff]  ;;  %v1278_v0 = vld [vmem:[%s6400_s0 + $0x38] sm:$0xff] }
 0x172   : > { %4844 = vmatpush3.bf16.msra.mxu1 %v5034_v1  ;;  %4781 = vmatprep.subr.bf16.mxu0 %v5035_v2  ;;  %v1286_v1 = vld [vmem:[%s6400_s0 + $0x78] sm:$0xff]  ;;  %v4251_v2 = vcombine.low %v1387_v54, %v1395_v55  ;;  %v4144_v4 = vcombine.high %v1277_v62, %v1285_v63 }
 0x173   : > { %4845 = vmatprep.subr.bf16.mxu1 %v5037_v3  ;;  %v4253_v3 = vcombine.low %v1388_v56, %v1396_v57  ;;  %v4146_v5 = vcombine.high %v1278_v0, %v1286_v1  ;;  %v1358_v55 = vld [vmem:[%s6400_s0 + $0x2b8] sm:$0xff] }
 0x174   : > { %v1366_v56 = vld [vmem:[%s6400_s0 + $0x2f8] sm:$0xff] }
 0x175   : > { %4782 = vmatpush3.bf16.msra.mxu0 %v5036_v7  ;;  %v1301_v7 = vld [vmem:[%s6400_s0 + $0xf0] sm:$0xff] }
 0x176   : > { %4846 = vmatpush3.bf16.msra.mxu1 %v5038_v9  ;;  %4783 = vmatprep.subr.bf16.mxu0 %v5039_v10  ;;  %v1302_v9 = vld [vmem:[%s6400_s0 + $0xf8] sm:$0xff]  ;;  %v4143_v10 = vcombine.low %v1277_v62, %v1285_v63 }
 0x177   : > { %3500 = vmatmul.mubr.bf16.gmra.mrb[72].mxu0 %v4171_v11  ;;  %4847 = vmatprep.subr.bf16.mxu1 %v5041_v12  ;;  %v4145_v11 = vcombine.low %v1278_v0, %v1286_v1  ;;  %v4160_v12 = vcombine.high %v1293_v6, %v1301_v7 }
 0x178   : > { %3597 = vmatmul.mubr.bf16.gmra.mrb[72].mxu1 %v4173_v13  ;;  %3507 = vmatprep.mubr.bf16.mxu0 %v4188_v14  ;;  %v4162_v13 = vcombine.high %v1294_v8, %v1302_v9  ;;  %v1309_v14 = vld [vmem:[%s6400_s0 + $0x130] sm:$0xff] }
 0x179   : > { %3604 = vmatprep.mubr.bf16.mxu1 %v4190_v15  ;;  %4784 = vmatpush3.bf16.msra.mxu0 %v5040_v16  ;;  %v1317_v15 = vld [vmem:[%s6400_s0 + $0x170] sm:$0xff]  ;;  %v1310_v16 = vld [vmem:[%s6400_s0 + $0x138] sm:$0xff] }
 0x17a   : > { %4848 = vmatpush3.bf16.msra.mxu1 %v5042_v17  ;;  %4785 = vmatprep.subr.bf16.mxu0 %v5043_v18  ;;  %v1318_v17 = vld [vmem:[%s6400_s0 + $0x178] sm:$0xff]  ;;  %v4159_v18 = vcombine.low %v1293_v6, %v1301_v7  ;;  %v4176_v20 = vcombine.high %v1309_v14, %v1317_v15 }
 0x17b   : > { %4849 = vmatprep.subr.bf16.mxu1 %v5045_v19  ;;  %v4161_v19 = vcombine.low %v1294_v8, %v1302_v9  ;;  %v4178_v21 = vcombine.high %v1310_v16, %v1318_v17 }
 0x17d   : > { %4786 = vmatpush3.bf16.msra.mxu0 %v5044_v23  ;;  %v1333_v23 = vld [vmem:[%s6400_s0 + $0x1f0] sm:$0xff] }
 0x17e   : > { %4850 = vmatpush3.bf16.msra.mxu1 %v5046_v25  ;;  %4787 = vmatprep.subr.bf16.mxu0 %v5047_v26  ;;  %v1334_v25 = vld [vmem:[%s6400_s0 + $0x1f8] sm:$0xff]  ;;  %v4175_v26 = vcombine.low %v1309_v14, %v1317_v15  ;;  %v4191_v37 = vcombine.low %v1325_v22, %v1333_v23 }
 0x17f   : > { %3508 = vmatmul.mubr.bf16.gmra.mrb[76].mxu0 %v4187_v27  ;;  %4851 = vmatprep.subr.bf16.mxu1 %v5049_v28  ;;  %v4177_v27 = vcombine.low %v1310_v16, %v1318_v17  ;;  %v4192_v28 = vcombine.high %v1325_v22, %v1333_v23  ;;  %v1382_v14 = vld [vmem:[%s6400_s0 + $0x378] sm:$0xff] }
 0x180   : > { %3605 = vmatmul.mubr.bf16.gmra.mrb[76].mxu1 %v4189_v29  ;;  %3515 = vmatprep.mubr.bf16.mxu0 %v4204_v30  ;;  %v4194_v29 = vcombine.high %v1326_v24, %v1334_v25  ;;  %v1341_v30 = vld [vmem:[%s6400_s0 + $0x230] sm:$0xff] }
 0x181   : > { %3612 = vmatprep.mubr.bf16.mxu1 %v4206_v31  ;;  %4788 = vmatpush3.bf16.msra.mxu0 %v5048_v32  ;;  %v1349_v31 = vld [vmem:[%s6400_s0 + $0x270] sm:$0xff] }
 0x182   : > { %4852 = vmatpush3.bf16.msra.mxu1 %v5050_v33  ;;  %4789 = vmatprep.subr.bf16.mxu0 %v5051_v34  ;;  %v1342_v33 = vld [vmem:[%s6400_s0 + $0x238] sm:$0xff] }
 0x183   : > { %4853 = vmatprep.subr.bf16.mxu1 %v5053_v35  ;;  %v1350_v34 = vld [vmem:[%s6400_s0 + $0x278] sm:$0xff] }
 0x184   : > { %v4210_v46 = vcombine.high %v1342_v33, %v1350_v34  ;;  %v4209_v63 = vcombine.low %v1342_v33, %v1350_v34  ;;  %v1397_v33 = vld [vmem:[%s6400_s0 + $0x3f0] sm:$0xff] }
 0x185   : > { %4790 = vmatpush3.bf16.msra.mxu0 %v5052_v38 }
 0x186   : > { %4854 = vmatpush3.bf16.msra.mxu1 %v5054_v41  ;;  %v4193_v41 = vcombine.low %v1326_v24, %v1334_v25 }
 0x187   : > { %3516 = vmatmul.mubr.bf16.gmra.mrb[80].mxu0 %v4203_v42  ;;  %v4208_v42 = vcombine.high %v1341_v30, %v1349_v31 }
 0x188   : > { %3613 = vmatmul.mubr.bf16.gmra.mrb[80].mxu1 %v4205_v43  ;;  %3523 = vmatprep.mubr.bf16.mxu0 %v4220_v44 }
 0x189   : > { %3620 = vmatprep.mubr.bf16.mxu1 %v4222_v45 }
 0x18f   : > { %3524 = vmatmul.mubr.bf16.gmra.mrb[84].mxu0 %v4219_v50 }
 0x190   : > { %3621 = vmatmul.mubr.bf16.gmra.mrb[84].mxu1 %v4221_v51  ;;  %3531 = vmatprep.mubr.bf16.mxu0 %v4236_v52  ;;  %v1357_v52 = vld [vmem:[%s6400_s0 + $0x2b0] sm:$0xff] }
 0x191   : > { %3628 = vmatprep.mubr.bf16.mxu1 %v4238_v53  ;;  %v1365_v53 = vld [vmem:[%s6400_s0 + $0x2f0] sm:$0xff] }
 0x192   : > { %v4224_v0 = vcombine.high %v1357_v52, %v1365_v53  ;;  %v4223_v17 = vcombine.low %v1357_v52, %v1365_v53 }
 0x197   : > { %3532 = vmatmul.mubr.bf16.gmra.mrb[88].mxu0 %v4235_v58 }
 0x198   : > { %3629 = vmatmul.mubr.bf16.gmra.mrb[88].mxu1 %v4237_v59  ;;  %3539 = vmatprep.mubr.bf16.mxu0 %v4252_v60  ;;  %v4207_v59 = vcombine.low %v1341_v30, %v1349_v31 }
 0x199   : > { %3636 = vmatprep.mubr.bf16.mxu1 %v4254_v61 }
 0x19f   : > { %3540 = vmatmul.mubr.bf16.gmra.mrb[92].mxu0 %v4251_v2 }
 0x1a0   : > { %3637 = vmatmul.mubr.bf16.gmra.mrb[92].mxu1 %v4253_v3  ;;  %3677 = vmatprep.mubr.bf16.mxu0 %v4144_v4  ;;  %v4226_v4 = vcombine.high %v1358_v55, %v1366_v56 }
 0x1a1   : > { %3774 = vmatprep.mubr.bf16.mxu1 %v4146_v5 }
 0x1a7   : > { %3678 = vmatmul.mubr.bf16.vlgmr.msra.gmra.mrb[96].mxu0 %v4143_v10  ;;  %v1373_v10 = vld [vmem:[%s6400_s0 + $0x330] sm:$0xff] }
 0x1a8   : > { %3775 = vmatmul.mubr.bf16.vlgmr.msra.gmra.mrb[96].mxu1 %v4145_v11  ;;  %3685 = vmatprep.mubr.bf16.mxu0 %v4160_v12  ;;  %v1381_v11 = vld [vmem:[%s6400_s0 + $0x370] sm:$0xff] }
 0x1a9   : > { %3782 = vmatprep.mubr.bf16.mxu1 %v4162_v13  ;;  %v1374_v13 = vld [vmem:[%s6400_s0 + $0x338] sm:$0xff]  ;;  %v4240_v22 = vcombine.high %v1373_v10, %v1381_v11 }
 0x1af   : > { %3686 = vmatmul.mubr.bf16.gmra.mrb[100].mxu0 %v4159_v18 }
 0x1b0   : > { %3783 = vmatmul.mubr.bf16.gmra.mrb[100].mxu1 %v4161_v19  ;;  %3693 = vmatprep.mubr.bf16.mxu0 %v4176_v20 }
 0x1b1   : > { %3790 = vmatprep.mubr.bf16.mxu1 %v4178_v21  ;;  %v4225_v21 = vcombine.low %v1358_v55, %v1366_v56 }
 0x1b7   : > { %3694 = vmatmul.mubr.bf16.gmra.mrb[104].mxu0 %v4175_v26  ;;  %v4242_v26 = vcombine.high %v1374_v13, %v1382_v14 }
 0x1b8   : > { %3791 = vmatmul.mubr.bf16.gmra.mrb[104].mxu1 %v4177_v27  ;;  %3701 = vmatprep.mubr.bf16.mxu0 %v4192_v28 }
 0x1b9   : > { %3798 = vmatprep.mubr.bf16.mxu1 %v4194_v29 }
 0x1ba   : > { %v4407_v32 = vpop.f32.mrb[0].mxu0 }
 0x1bb   : > { %v4471_v35 = vpop.f32.mrb[0].mxu1  ;;  %v4408_v36 = vpop.f32.mrb[1].mxu0 }
 0x1bc   : > { %v4409_v38 = vadd.f32 %v4408_v36, %v4407_v32  ;;  %v4472_v39 = vpop.f32.mrb[1].mxu1  ;;  %v4410_v40 = vpop.f32.mrb[2].mxu0  ;;  %v1389_v32 = vld [vmem:[%s6400_s0 + $0x3b0] sm:$0xff]  ;;  %v1398_v36 = vld [vmem:[%s6400_s0 + $0x3f8] sm:$0xff] }
 0x1bd   : > { %v4473_v43 = vadd.f32 %v4472_v39, %v4471_v35  ;;  %v4474_v44 = vpop.f32.mrb[2].mxu1  ;;  %v4411_v45 = vpop.f32.mrb[3].mxu0  ;;  %v1390_v35 = vld [vmem:[%s6400_s0 + $0x3b8] sm:$0xff]  ;;  %v4239_v39 = vcombine.low %v1373_v10, %v1381_v11 }
 0x1be   : > { %v4412_v47 = vadd.f32 %v4411_v45, %v4410_v40  ;;  %v4475_v48 = vpop.f32.mrb[3].mxu1 }
 0x1bf   : > { %v6160_v49 = vadd.f32 %v4473_v43, %v4409_v38  ;;  %v4476_v50 = vadd.f32 %v4475_v48, %v4474_v44  ;;  %3702 = vmatmul.mubr.bf16.gmra.mrb[108].mxu0 %v4191_v37  ;;  %v4241_v43 = vcombine.low %v1374_v13, %v1382_v14  ;;  %v4256_v44 = vcombine.high %v1389_v32, %v1397_v33 }
 0x1c0   : > { %3799 = vmatmul.mubr.bf16.gmra.mrb[108].mxu1 %v4193_v41  ;;  %3709 = vmatprep.mubr.bf16.mxu0 %v4208_v42  ;;  %v4258_v48 = vcombine.high %v1390_v35, %v1398_v36 }
 0x1c1   : > { %v6162_v51 = vadd.f32 %v4476_v50, %v4412_v47  ;;  %3806 = vmatprep.mubr.bf16.mxu1 %v4210_v46 }
 0x1c2   : > { %v4413_v54 = vpop.f32.mrb[4].mxu0 }
 0x1c3   : > { %v4477_v57 = vpop.f32.mrb[4].mxu1  ;;  %v4414_v58 = vpop.f32.mrb[5].mxu0 }
 0x1c4   : > { %v4415_v60 = vadd.f32 %v4414_v58, %v4413_v54  ;;  %v4478_v61 = vpop.f32.mrb[5].mxu1  ;;  %v4416_v62 = vpop.f32.mrb[6].mxu0 }
 0x1c5   : > { %v4479_v1 = vadd.f32 %v4478_v61, %v4477_v57  ;;  %v4480_v2 = vpop.f32.mrb[6].mxu1  ;;  %v4417_v3 = vpop.f32.mrb[7].mxu0 }
 0x1c6   : > { %v4418_v5 = vadd.f32 %v4417_v3, %v4416_v62  ;;  %v4481_v6 = vpop.f32.mrb[7].mxu1 }
 0x1c7   : > { %v6176_v7 = vadd.f32 %v4479_v1, %v4415_v60  ;;  %v4482_v8 = vadd.f32 %v4481_v6, %v4480_v2  ;;  %3710 = vmatmul.mubr.bf16.gmra.mrb[112].mxu0 %v4207_v59  ;;  %v4255_v59 = vcombine.low %v1389_v32, %v1397_v33 }
 0x1c8   : > { %3807 = vmatmul.mubr.bf16.gmra.mrb[112].mxu1 %v4209_v63  ;;  %3717 = vmatprep.mubr.bf16.mxu0 %v4224_v0  ;;  %v4257_v63 = vcombine.low %v1390_v35, %v1398_v36 }
 0x1c9   : > { %v6178_v9 = vadd.f32 %v4482_v8, %v4418_v5  ;;  %3814 = vmatprep.mubr.bf16.mxu1 %v4226_v4 }
 0x1ca   : > { %v4419_v12 = vpop.f32.mrb[8].mxu0 }
 0x1cb   : > { %v4483_v15 = vpop.f32.mrb[8].mxu1  ;;  %v4420_v16 = vpop.f32.mrb[9].mxu0 }
 0x1cc   : > { %v4421_v18 = vadd.f32 %v4420_v16, %v4419_v12  ;;  %v4484_v19 = vpop.f32.mrb[9].mxu1  ;;  %v4422_v20 = vpop.f32.mrb[10].mxu0 }
 0x1cd   : > { %v4485_v23 = vadd.f32 %v4484_v19, %v4483_v15  ;;  %v4486_v24 = vpop.f32.mrb[10].mxu1  ;;  %v4423_v25 = vpop.f32.mrb[11].mxu0 }
 0x1ce   : > { %v4424_v27 = vadd.f32 %v4423_v25, %v4422_v20  ;;  %v4487_v28 = vpop.f32.mrb[11].mxu1 }
 0x1cf   : > { %v6192_v29 = vadd.f32 %v4485_v23, %v4421_v18  ;;  %v4488_v30 = vadd.f32 %v4487_v28, %v4486_v24  ;;  %3718 = vmatmul.mubr.bf16.gmra.mrb[116].mxu0 %v4223_v17 }
 0x1d0   : > { %3815 = vmatmul.mubr.bf16.gmra.mrb[116].mxu1 %v4225_v21  ;;  %3725 = vmatprep.mubr.bf16.mxu0 %v4240_v22 }
 0x1d1   : > { %v6194_v31 = vadd.f32 %v4488_v30, %v4424_v27  ;;  %3822 = vmatprep.mubr.bf16.mxu1 %v4242_v26 }
 0x1d2   : > { %v4425_v34 = vpop.f32.mrb[12].mxu0 }
 0x1d3   : > { %v4489_v37 = vpop.f32.mrb[12].mxu1  ;;  %v4426_v38 = vpop.f32.mrb[13].mxu0 }
 0x1d4   : > { %v4427_v40 = vadd.f32 %v4426_v38, %v4425_v34  ;;  %v4490_v41 = vpop.f32.mrb[13].mxu1  ;;  %v4428_v42 = vpop.f32.mrb[14].mxu0 }
 0x1d5   : > { %v4491_v45 = vadd.f32 %v4490_v41, %v4489_v37  ;;  %v4492_v46 = vpop.f32.mrb[14].mxu1  ;;  %v4429_v47 = vpop.f32.mrb[15].mxu0 }
 0x1d6   : > { %v4430_v50 = vadd.f32 %v4429_v47, %v4428_v42  ;;  %v4493_v52 = vpop.f32.mrb[15].mxu1 }
 0x1d7   : > { %v6208_v53 = vadd.f32 %v4491_v45, %v4427_v40  ;;  %v4494_v54 = vadd.f32 %v4493_v52, %v4492_v46  ;;  %3726 = vmatmul.mubr.bf16.gmra.mrb[120].mxu0 %v4239_v39 }
 0x1d8   : > { %3823 = vmatmul.mubr.bf16.gmra.mrb[120].mxu1 %v4241_v43  ;;  %3733 = vmatprep.mubr.bf16.mxu0 %v4256_v44 }
 0x1d9   : > { %v6210_v55 = vadd.f32 %v4494_v54, %v4430_v50  ;;  %3830 = vmatprep.mubr.bf16.mxu1 %v4258_v48 }
 0x1da   : > { %v4431_v56 = vpop.f32.mrb[16].mxu0 }
 0x1db   : > { %v4495_v57 = vpop.f32.mrb[16].mxu1  ;;  %v4432_v58 = vpop.f32.mrb[17].mxu0 }
 0x1dc   : > { %v4433_v60 = vadd.f32 %v4432_v58, %v4431_v56  ;;  %v4496_v61 = vpop.f32.mrb[17].mxu1  ;;  %v4434_v62 = vpop.f32.mrb[18].mxu0 }
 0x1dd   : > { %v4497_v0 = vadd.f32 %v4496_v61, %v4495_v57  ;;  %v4498_v1 = vpop.f32.mrb[18].mxu1  ;;  %v4435_v2 = vpop.f32.mrb[19].mxu0 }
 0x1de   : > { %v4436_v3 = vadd.f32 %v4435_v2, %v4434_v62  ;;  %v4499_v4 = vpop.f32.mrb[19].mxu1 }
 0x1df   : > { %v6212_v5 = vadd.f32 %v4497_v0, %v4433_v60  ;;  %v4500_v6 = vadd.f32 %v4499_v4, %v4498_v1  ;;  %3734 = vmatmul.mubr.bf16.gmra.mrb[124].mxu0 %v4255_v59 }
 0x1e0   : > { %3831 = vmatmul.mubr.bf16.gmra.mrb[124].mxu1 %v4257_v63 }
 0x1e1   : > { %v6214_v8 = vadd.f32 %v4500_v6, %v4436_v3 }
 0x1e2   : > { %v4437_v10 = vpop.f32.mrb[20].mxu0 }
 0x1e3   : > { %v4501_v11 = vpop.f32.mrb[20].mxu1  ;;  %v4438_v12 = vpop.f32.mrb[21].mxu0 }
 0x1e4   : > { %v4439_v13 = vadd.f32 %v4438_v12, %v4437_v10  ;;  %v4502_v14 = vpop.f32.mrb[21].mxu1  ;;  %v4440_v15 = vpop.f32.mrb[22].mxu0 }
 0x1e5   : > { %v4503_v16 = vadd.f32 %v4502_v14, %v4501_v11  ;;  %v4504_v17 = vpop.f32.mrb[22].mxu1  ;;  %v4441_v18 = vpop.f32.mrb[23].mxu0 }
 0x1e6   : > { %v4442_v19 = vadd.f32 %v4441_v18, %v4440_v15  ;;  %v4505_v20 = vpop.f32.mrb[23].mxu1 }
 0x1e7   : > { %v6216_v21 = vadd.f32 %v4503_v16, %v4439_v13  ;;  %v4506_v22 = vadd.f32 %v4505_v20, %v4504_v17 }
 0x1e9   : > { %v6218_v23 = vadd.f32 %v4506_v22, %v4442_v19 }
 0x1ea   : > { %v4443_v24 = vpop.f32.mrb[24].mxu0 }
 0x1eb   : > { %v4507_v25 = vpop.f32.mrb[24].mxu1  ;;  %v4444_v26 = vpop.f32.mrb[25].mxu0 }
 0x1ec   : > { %v4445_v27 = vadd.f32 %v4444_v26, %v4443_v24  ;;  %v4508_v28 = vpop.f32.mrb[25].mxu1  ;;  %v4446_v30 = vpop.f32.mrb[26].mxu0 }
 0x1ed   : > { %v4509_v32 = vadd.f32 %v4508_v28, %v4507_v25  ;;  %v4510_v33 = vpop.f32.mrb[26].mxu1  ;;  %v4447_v34 = vpop.f32.mrb[27].mxu0 }
 0x1ee   : > { %v4448_v35 = vadd.f32 %v4447_v34, %v4446_v30  ;;  %v4511_v36 = vpop.f32.mrb[27].mxu1 }
 0x1ef   : > { %v6220_v37 = vadd.f32 %v4509_v32, %v4445_v27  ;;  %v4512_v38 = vadd.f32 %v4511_v36, %v4510_v33 }
 0x1f1   : > { %v6222_v39 = vadd.f32 %v4512_v38, %v4448_v35 }
 0x1f2   : > { %v4449_v40 = vpop.f32.mrb[28].mxu0 }
 0x1f3   : > { %v4513_v41 = vpop.f32.mrb[28].mxu1  ;;  %v4450_v42 = vpop.f32.mrb[29].mxu0 }
 0x1f4   : > { %v4451_v43 = vadd.f32 %v4450_v42, %v4449_v40  ;;  %v4514_v44 = vpop.f32.mrb[29].mxu1  ;;  %v4452_v45 = vpop.f32.mrb[30].mxu0 }
 0x1f5   : > { %v4515_v46 = vadd.f32 %v4514_v44, %v4513_v41  ;;  %v4516_v47 = vpop.f32.mrb[30].mxu1  ;;  %v4453_v48 = vpop.f32.mrb[31].mxu0 }
 0x1f6   : > { %v4454_v50 = vadd.f32 %v4453_v48, %v4452_v45  ;;  %v4517_v52 = vpop.f32.mrb[31].mxu1 }
 0x1f7   : > { %v6224_v54 = vadd.f32 %v4515_v46, %v4451_v43  ;;  %v4518_v56 = vadd.f32 %v4517_v52, %v4516_v47 }
 0x1f9   : > { %v6226_v57 = vadd.f32 %v4518_v56, %v4454_v50 }
 0x1fa   : > { %v4535_v58 = vpop.f32.mrb[32].mxu0 }
 0x1fb   : > { %v4599_v59 = vpop.f32.mrb[32].mxu1  ;;  %v4536_v60 = vpop.f32.mrb[33].mxu0 }
 0x1fc   : > { %v4537_v61 = vadd.f32 %v4536_v60, %v4535_v58  ;;  %v4600_v62 = vpop.f32.mrb[33].mxu1  ;;  %v4538_v63 = vpop.f32.mrb[34].mxu0 }
 0x1fd   : > { %v4601_v0 = vadd.f32 %v4600_v62, %v4599_v59  ;;  %v4602_v1 = vpop.f32.mrb[34].mxu1  ;;  %v4539_v2 = vpop.f32.mrb[35].mxu0 }
 0x1fe   : > { %v3292_v3 = vadd.f32 %v4537_v61, %v6160_v49  ;;  %v4540_v4 = vadd.f32 %v4539_v2, %v4538_v63  ;;  %v4603_v6 = vpop.f32.mrb[35].mxu1 }
 0x1ff   : > { %v4604_v10 = vadd.f32 %v4603_v6, %v4602_v1 }
 0x200   : > { %v6229_v11 = vadd.f32 %v4601_v0, %v3292_v3  ;;  %v3295_v12 = vadd.f32 %v4540_v4, %v6162_v51 }
 0x202   : > { %v6232_v13 = vadd.f32 %v4604_v10, %v3295_v12  ;;  %v4541_v14 = vpop.f32.mrb[36].mxu0 }
 0x203   : > { %v4605_v15 = vpop.f32.mrb[36].mxu1  ;;  %v4542_v16 = vpop.f32.mrb[37].mxu0 }
 0x204   : > { %v4543_v17 = vadd.f32 %v4542_v16, %v4541_v14  ;;  %v4606_v18 = vpop.f32.mrb[37].mxu1  ;;  %v4544_v19 = vpop.f32.mrb[38].mxu0 }
 0x205   : > { %v4607_v20 = vadd.f32 %v4606_v18, %v4605_v15  ;;  %v4608_v22 = vpop.f32.mrb[38].mxu1  ;;  %v4545_v24 = vpop.f32.mrb[39].mxu0 }
 0x206   : > { %v3300_v49 = vadd.f32 %v4543_v17, %v6176_v7  ;;  %v4546_v25 = vadd.f32 %v4545_v24, %v4544_v19  ;;  %v4609_v26 = vpop.f32.mrb[39].mxu1 }
 0x207   : > { %v4610_v27 = vadd.f32 %v4609_v26, %v4608_v22 }
 0x208   : > { %v6235_v28 = vadd.f32 %v4607_v20, %v3300_v49  ;;  %v3303_v51 = vadd.f32 %v4546_v25, %v6178_v9 }
 0x20a   : > { %v6238_v30 = vadd.f32 %v4610_v27, %v3303_v51  ;;  %v4547_v32 = vpop.f32.mrb[40].mxu0 }
 0x20b   : > { %v4611_v33 = vpop.f32.mrb[40].mxu1  ;;  %v4548_v34 = vpop.f32.mrb[41].mxu0 }
 0x20c   : > { %v4549_v35 = vadd.f32 %v4548_v34, %v4547_v32  ;;  %v4612_v36 = vpop.f32.mrb[41].mxu1  ;;  %v4550_v38 = vpop.f32.mrb[42].mxu0 }
 0x20d   : > { %v4613_v40 = vadd.f32 %v4612_v36, %v4611_v33  ;;  %v4614_v41 = vpop.f32.mrb[42].mxu1  ;;  %v4551_v42 = vpop.f32.mrb[43].mxu0 }
 0x20e   : > { %v3308_v7 = vadd.f32 %v4549_v35, %v6192_v29  ;;  %v4552_v43 = vadd.f32 %v4551_v42, %v4550_v38  ;;  %v4615_v44 = vpop.f32.mrb[43].mxu1 }
 0x20f   : > { %v4616_v45 = vadd.f32 %v4615_v44, %v4614_v41 }
 0x210   : > { %v6241_v46 = vadd.f32 %v4613_v40, %v3308_v7  ;;  %v3311_v9 = vadd.f32 %v4552_v43, %v6194_v31 }
 0x212   : > { %v6244_v47 = vadd.f32 %v4616_v45, %v3311_v9  ;;  %v4553_v48 = vpop.f32.mrb[44].mxu0 }
 0x213   : > { %v4617_v50 = vpop.f32.mrb[44].mxu1  ;;  %v4554_v52 = vpop.f32.mrb[45].mxu0 }
 0x214   : > { %v4555_v56 = vadd.f32 %v4554_v52, %v4553_v48  ;;  %v4618_v58 = vpop.f32.mrb[45].mxu1  ;;  %v4556_v59 = vpop.f32.mrb[46].mxu0 }
 0x215   : > { %v4619_v60 = vadd.f32 %v4618_v58, %v4617_v50  ;;  %v4620_v61 = vpop.f32.mrb[46].mxu1  ;;  %v4557_v62 = vpop.f32.mrb[47].mxu0 }
 0x216   : > { %v3316_v29 = vadd.f32 %v4555_v56, %v6208_v53  ;;  %v4558_v63 = vadd.f32 %v4557_v62, %v4556_v59  ;;  %v4621_v0 = vpop.f32.mrb[47].mxu1 }
 0x217   : > { %v4622_v1 = vadd.f32 %v4621_v0, %v4620_v61 }
 0x218   : > { %v6247_v2 = vadd.f32 %v4619_v60, %v3316_v29  ;;  %v3319_v31 = vadd.f32 %v4558_v63, %v6210_v55 }
 0x21a   : > { %v6250_v3 = vadd.f32 %v4622_v1, %v3319_v31  ;;  %v4559_v4 = vpop.f32.mrb[48].mxu0 }
 0x21b   : > { %v4623_v6 = vpop.f32.mrb[48].mxu1  ;;  %v4560_v10 = vpop.f32.mrb[49].mxu0 }
 0x21c   : > { %v4561_v12 = vadd.f32 %v4560_v10, %v4559_v4  ;;  %v4624_v14 = vpop.f32.mrb[49].mxu1  ;;  %v4562_v15 = vpop.f32.mrb[50].mxu0 }
 0x21d   : > { %v4625_v16 = vadd.f32 %v4624_v14, %v4623_v6  ;;  %v4626_v17 = vpop.f32.mrb[50].mxu1  ;;  %v4563_v18 = vpop.f32.mrb[51].mxu0 }
 0x21e   : > { %v3324_v53 = vadd.f32 %v4561_v12, %v6212_v5  ;;  %v4564_v19 = vadd.f32 %v4563_v18, %v4562_v15  ;;  %v4627_v20 = vpop.f32.mrb[51].mxu1 }
 0x21f   : > { %v4628_v22 = vadd.f32 %v4627_v20, %v4626_v17 }
 0x220   : > { %v6253_v24 = vadd.f32 %v4625_v16, %v3324_v53  ;;  %v3327_v55 = vadd.f32 %v4564_v19, %v6214_v8 }
 0x222   : > { %v6256_v49 = vadd.f32 %v4628_v22, %v3327_v55  ;;  %v4565_v25 = vpop.f32.mrb[52].mxu0 }
 0x223   : > { %v4629_v26 = vpop.f32.mrb[52].mxu1  ;;  %v4566_v27 = vpop.f32.mrb[53].mxu0 }
 0x224   : > { %v4567_v51 = vadd.f32 %v4566_v27, %v4565_v25  ;;  %v4630_v32 = vpop.f32.mrb[53].mxu1  ;;  %v4568_v33 = vpop.f32.mrb[54].mxu0 }
 0x225   : > { %v4631_v34 = vadd.f32 %v4630_v32, %v4629_v26  ;;  %v4632_v35 = vpop.f32.mrb[54].mxu1  ;;  %v4569_v36 = vpop.f32.mrb[55].mxu0 }
 0x226   : > { %v3332_v5 = vadd.f32 %v4567_v51, %v6216_v21  ;;  %v4570_v38 = vadd.f32 %v4569_v36, %v4568_v33  ;;  %v4633_v40 = vpop.f32.mrb[55].mxu1 }
 0x227   : > { %v4634_v41 = vadd.f32 %v4633_v40, %v4632_v35 }
 0x228   : > { %v6259_v42 = vadd.f32 %v4631_v34, %v3332_v5  ;;  %v3335_v8 = vadd.f32 %v4570_v38, %v6218_v23 }
 0x22a   : > { %v6262_v7 = vadd.f32 %v4634_v41, %v3335_v8  ;;  %v4571_v43 = vpop.f32.mrb[56].mxu0 }
 0x22b   : > { %v4635_v44 = vpop.f32.mrb[56].mxu1  ;;  %v4572_v45 = vpop.f32.mrb[57].mxu0 }
 0x22c   : > { %v4573_v9 = vadd.f32 %v4572_v45, %v4571_v43  ;;  %v4636_v48 = vpop.f32.mrb[57].mxu1  ;;  %v4574_v50 = vpop.f32.mrb[58].mxu0 }
 0x22d   : > { %v4637_v52 = vadd.f32 %v4636_v48, %v4635_v44  ;;  %v4638_v56 = vpop.f32.mrb[58].mxu1  ;;  %v4575_v58 = vpop.f32.mrb[59].mxu0 }
 0x22e   : > { %v3340_v21 = vadd.f32 %v4573_v9, %v6220_v37  ;;  %v4576_v59 = vadd.f32 %v4575_v58, %v4574_v50  ;;  %v4639_v60 = vpop.f32.mrb[59].mxu1 }
 0x22f   : > { %v4640_v61 = vadd.f32 %v4639_v60, %v4638_v56 }
 0x230   : > { %v6265_v62 = vadd.f32 %v4637_v52, %v3340_v21  ;;  %v3343_v23 = vadd.f32 %v4576_v59, %v6222_v39 }
 0x232   : > { %v6268_v29 = vadd.f32 %v4640_v61, %v3343_v23  ;;  %v4577_v63 = vpop.f32.mrb[60].mxu0 }
 0x233   : > { %v4641_v0 = vpop.f32.mrb[60].mxu1  ;;  %v4578_v1 = vpop.f32.mrb[61].mxu0 }
 0x234   : > { %v4579_v31 = vadd.f32 %v4578_v1, %v4577_v63  ;;  %v4642_v4 = vpop.f32.mrb[61].mxu1  ;;  %v4580_v6 = vpop.f32.mrb[62].mxu0 }
 0x235   : > { %v4643_v10 = vadd.f32 %v4642_v4, %v4641_v0  ;;  %v4644_v12 = vpop.f32.mrb[62].mxu1  ;;  %v4581_v14 = vpop.f32.mrb[63].mxu0 }
 0x236   : > { %v3348_v37 = vadd.f32 %v4579_v31, %v6224_v54  ;;  %v4582_v15 = vadd.f32 %v4581_v14, %v4580_v6  ;;  %v4645_v16 = vpop.f32.mrb[63].mxu1 }
 0x237   : > { %v4646_v17 = vadd.f32 %v4645_v16, %v4644_v12 }
 0x238   : > { %v6271_v18 = vadd.f32 %v4643_v10, %v3348_v37  ;;  %v3351_v39 = vadd.f32 %v4582_v15, %v6226_v57 }
 0x23a   : > { %v6274_v53 = vadd.f32 %v4646_v17, %v3351_v39  ;;  %v4663_v19 = vpop.f32.mrb[64].mxu0 }
 0x23b   : > { %v4727_v20 = vpop.f32.mrb[64].mxu1  ;;  %v4664_v22 = vpop.f32.mrb[65].mxu0 }
 0x23c   : > { %v4665_v55 = vadd.f32 %v4664_v22, %v4663_v19  ;;  %v4728_v25 = vpop.f32.mrb[65].mxu1  ;;  %v4666_v26 = vpop.f32.mrb[66].mxu0 }
 0x23d   : > { %v4729_v27 = vadd.f32 %v4728_v25, %v4727_v20  ;;  %v4730_v51 = vpop.f32.mrb[66].mxu1  ;;  %v4667_v32 = vpop.f32.mrb[67].mxu0 }
 0x23e   : > { %v3486_v54 = vadd.f32 %v4665_v55, %v6229_v11  ;;  %v4668_v33 = vadd.f32 %v4667_v32, %v4666_v26  ;;  %v4731_v34 = vpop.f32.mrb[67].mxu1 }
 0x23f   : > { %v4732_v35 = vadd.f32 %v4731_v34, %v4730_v51 }
 0x240   : > { %v6277_v36 = vadd.f32 %v4729_v27, %v3486_v54  ;;  %v3489_v57 = vadd.f32 %v4668_v33, %v6232_v13 }
 0x242   : > { %v6280_v5 = vadd.f32 %v4732_v35, %v3489_v57  ;;  %v4669_v38 = vpop.f32.mrb[68].mxu0 }
 0x243   : > { %v4733_v40 = vpop.f32.mrb[68].mxu1  ;;  %v4670_v41 = vpop.f32.mrb[69].mxu0 }
 0x244   : > { %v4671_v8 = vadd.f32 %v4670_v41, %v4669_v38  ;;  %v4734_v43 = vpop.f32.mrb[69].mxu1  ;;  %v4672_v44 = vpop.f32.mrb[70].mxu0 }
 0x245   : > { %v4735_v45 = vadd.f32 %v4734_v43, %v4733_v40  ;;  %v4736_v9 = vpop.f32.mrb[70].mxu1  ;;  %v4673_v48 = vpop.f32.mrb[71].mxu0 }
 0x246   : > { %v3494_v11 = vadd.f32 %v4671_v8, %v6235_v28  ;;  %v4674_v50 = vadd.f32 %v4673_v48, %v4672_v44  ;;  %v4737_v52 = vpop.f32.mrb[71].mxu1 }
 0x247   : > { %v4738_v56 = vadd.f32 %v4737_v52, %v4736_v9 }
 0x248   : > { %v6283_v58 = vadd.f32 %v4735_v45, %v3494_v11  ;;  %v3497_v13 = vadd.f32 %v4674_v50, %v6238_v30 }
 0x24a   : > { %v6286_v21 = vadd.f32 %v4738_v56, %v3497_v13  ;;  %v4675_v59 = vpop.f32.mrb[72].mxu0 }
 0x24b   : > { %v4739_v60 = vpop.f32.mrb[72].mxu1  ;;  %v4676_v61 = vpop.f32.mrb[73].mxu0 }
 0x24c   : > { %v4677_v23 = vadd.f32 %v4676_v61, %v4675_v59  ;;  %v4740_v63 = vpop.f32.mrb[73].mxu1  ;;  %v4678_v0 = vpop.f32.mrb[74].mxu0 }
 0x24d   : > { %v4741_v1 = vadd.f32 %v4740_v63, %v4739_v60  ;;  %v4742_v31 = vpop.f32.mrb[74].mxu1  ;;  %v4679_v4 = vpop.f32.mrb[75].mxu0 }
 0x24e   : > { %v3502_v28 = vadd.f32 %v4677_v23, %v6241_v46  ;;  %v4680_v6 = vadd.f32 %v4679_v4, %v4678_v0  ;;  %v4743_v10 = vpop.f32.mrb[75].mxu1 }
 0x24f   : > { %v4744_v12 = vadd.f32 %v4743_v10, %v4742_v31 }
 0x250   : > { %v6289_v14 = vadd.f32 %v4741_v1, %v3502_v28  ;;  %v3505_v30 = vadd.f32 %v4680_v6, %v6244_v47 }
 0x252   : > { %v6292_v37 = vadd.f32 %v4744_v12, %v3505_v30  ;;  %v4681_v15 = vpop.f32.mrb[76].mxu0 }
 0x253   : > { %v4745_v16 = vpop.f32.mrb[76].mxu1  ;;  %v4682_v17 = vpop.f32.mrb[77].mxu0 }
 0x254   : > { %v4683_v39 = vadd.f32 %v4682_v17, %v4681_v15  ;;  %v4746_v19 = vpop.f32.mrb[77].mxu1  ;;  %v4684_v20 = vpop.f32.mrb[78].mxu0 }
 0x255   : > { %v4747_v22 = vadd.f32 %v4746_v19, %v4745_v16  ;;  %v4748_v55 = vpop.f32.mrb[78].mxu1  ;;  %v4685_v25 = vpop.f32.mrb[79].mxu0 }
 0x256   : > { %v3510_v46 = vadd.f32 %v4683_v39, %v6247_v2  ;;  %v4686_v26 = vadd.f32 %v4685_v25, %v4684_v20  ;;  %v4749_v27 = vpop.f32.mrb[79].mxu1 }
 0x257   : > { %v4750_v51 = vadd.f32 %v4749_v27, %v4748_v55 }
 0x258   : > { %v6295_v32 = vadd.f32 %v4747_v22, %v3510_v46  ;;  %v3513_v47 = vadd.f32 %v4686_v26, %v6250_v3 }
 0x25a   : > { %v6298_v54 = vadd.f32 %v4750_v51, %v3513_v47  ;;  %v4687_v33 = vpop.f32.mrb[80].mxu0 }
 0x25b   : > { %v4751_v34 = vpop.f32.mrb[80].mxu1  ;;  %v4688_v35 = vpop.f32.mrb[81].mxu0 }
 0x25c   : > { %v4689_v57 = vadd.f32 %v4688_v35, %v4687_v33  ;;  %v4752_v38 = vpop.f32.mrb[81].mxu1  ;;  %v4690_v40 = vpop.f32.mrb[82].mxu0 }
 0x25d   : > { %v4753_v41 = vadd.f32 %v4752_v38, %v4751_v34  ;;  %v4754_v8 = vpop.f32.mrb[82].mxu1  ;;  %v4691_v43 = vpop.f32.mrb[83].mxu0 }
 0x25e   : > { %v3518_v2 = vadd.f32 %v4689_v57, %v6253_v24  ;;  %v4692_v44 = vadd.f32 %v4691_v43, %v4690_v40  ;;  %v4755_v45 = vpop.f32.mrb[83].mxu1 }
 0x25f   : > { %v4756_v9 = vadd.f32 %v4755_v45, %v4754_v8 }
 0x260   : > { %v6301_v48 = vadd.f32 %v4753_v41, %v3518_v2  ;;  %v3521_v3 = vadd.f32 %v4692_v44, %v6256_v49 }
 0x262   : > { %v6304_v11 = vadd.f32 %v4756_v9, %v3521_v3  ;;  %v4693_v50 = vpop.f32.mrb[84].mxu0 }
 0x263   : > { %v4757_v52 = vpop.f32.mrb[84].mxu1  ;;  %v4694_v56 = vpop.f32.mrb[85].mxu0 }
 0x264   : > { %v4695_v13 = vadd.f32 %v4694_v56, %v4693_v50  ;;  %v4758_v59 = vpop.f32.mrb[85].mxu1  ;;  %v4696_v60 = vpop.f32.mrb[86].mxu0 }
 0x265   : > { %v4759_v61 = vadd.f32 %v4758_v59, %v4757_v52  ;;  %v4760_v23 = vpop.f32.mrb[86].mxu1  ;;  %v4697_v63 = vpop.f32.mrb[87].mxu0 }
 0x266   : > { %v3526_v24 = vadd.f32 %v4695_v13, %v6259_v42  ;;  %v4698_v0 = vadd.f32 %v4697_v63, %v4696_v60  ;;  %v4761_v1 = vpop.f32.mrb[87].mxu1 }
 0x267   : > { %v4762_v31 = vadd.f32 %v4761_v1, %v4760_v23 }
 0x268   : > { %v6307_v4 = vadd.f32 %v4759_v61, %v3526_v24  ;;  %v3529_v49 = vadd.f32 %v4698_v0, %v6262_v7 }
 0x26a   : > { %v6310_v28 = vadd.f32 %v4762_v31, %v3529_v49  ;;  %v4699_v6 = vpop.f32.mrb[88].mxu0 }
 0x26b   : > { %v4763_v10 = vpop.f32.mrb[88].mxu1  ;;  %v4700_v12 = vpop.f32.mrb[89].mxu0 }
 0x26c   : > { %v4701_v30 = vadd.f32 %v4700_v12, %v4699_v6  ;;  %v4764_v15 = vpop.f32.mrb[89].mxu1  ;;  %v4702_v16 = vpop.f32.mrb[90].mxu0 }
 0x26d   : > { %v4765_v17 = vadd.f32 %v4764_v15, %v4763_v10  ;;  %v4766_v39 = vpop.f32.mrb[90].mxu1  ;;  %v4703_v19 = vpop.f32.mrb[91].mxu0 }
 0x26e   : > { %v3534_v42 = vadd.f32 %v4701_v30, %v6265_v62  ;;  %v4704_v20 = vadd.f32 %v4703_v19, %v4702_v16  ;;  %v4767_v22 = vpop.f32.mrb[91].mxu1 }
 0x26f   : > { %v4768_v55 = vadd.f32 %v4767_v22, %v4766_v39 }
 0x270   : > { %v6313_v25 = vadd.f32 %v4765_v17, %v3534_v42  ;;  %v3537_v7 = vadd.f32 %v4704_v20, %v6268_v29 }
 0x272   : > { %v6316_v46 = vadd.f32 %v4768_v55, %v3537_v7  ;;  %v4705_v26 = vpop.f32.mrb[92].mxu0 }
 0x273   : > { %v4769_v27 = vpop.f32.mrb[92].mxu1  ;;  %v4706_v51 = vpop.f32.mrb[93].mxu0 }
 0x274   : > { %v4707_v47 = vadd.f32 %v4706_v51, %v4705_v26  ;;  %v4770_v33 = vpop.f32.mrb[93].mxu1  ;;  %v4708_v34 = vpop.f32.mrb[94].mxu0 }
 0x275   : > { %v4771_v35 = vadd.f32 %v4770_v33, %v4769_v27  ;;  %v4772_v57 = vpop.f32.mrb[94].mxu1  ;;  %v4709_v38 = vpop.f32.mrb[95].mxu0 }
 0x276   : > { %v3542_v62 = vadd.f32 %v4707_v47, %v6271_v18  ;;  %v4710_v40 = vadd.f32 %v4709_v38, %v4708_v34  ;;  %v4773_v41 = vpop.f32.mrb[95].mxu1 }
 0x277   : > { %v4774_v8 = vadd.f32 %v4773_v41, %v4772_v57 }
 0x278   : > { %v6319_v43 = vadd.f32 %v4771_v35, %v3542_v62  ;;  %v3545_v29 = vadd.f32 %v4710_v40, %v6274_v53 }
 0x27a   : > { %v6322_v2 = vadd.f32 %v4774_v8, %v3545_v29  ;;  %v4791_v44 = vpop.f32.mrb[96].mxu0 }
 0x27b   : > { %v4855_v45 = vpop.f32.mrb[96].mxu1  ;;  %v4792_v9 = vpop.f32.mrb[97].mxu0 }
 0x27c   : > { %v4793_v3 = vadd.f32 %v4792_v9, %v4791_v44  ;;  %v4856_v50 = vpop.f32.mrb[97].mxu1  ;;  %v4794_v52 = vpop.f32.mrb[98].mxu0 }
 0x27d   : > { %v4857_v56 = vadd.f32 %v4856_v50, %v4855_v45  ;;  %v4858_v13 = vpop.f32.mrb[98].mxu1  ;;  %v4795_v18 = vpop.f32.mrb[99].mxu0 }
 0x27e   : > { %v3680_v59 = vadd.f32 %v4793_v3, %v6277_v36  ;;  %v4796_v60 = vadd.f32 %v4795_v18, %v4794_v52  ;;  %v4859_v61 = vpop.f32.mrb[99].mxu1 }
 0x27f   : > { %v4860_v23 = vadd.f32 %v4859_v61, %v4858_v13 }
 0x280   : > { %v3777_v63 = vadd.f32 %v4857_v56, %v3680_v59  ;;  %v3683_v53 = vadd.f32 %v4796_v60, %v6280_v5 }
 0x282   : > { %3839 = vst [vmem:[%s6328_s7] sm:$0xff] %v3777_v63  ;;  %v3780_v24 = vadd.f32 %v4860_v23, %v3683_v53  ;;  %v4797_v0 = vpop.f32.mrb[100].mxu0  ;;  %v3877_v49 = vmul.f32 %v3777_v63, %v3777_v63 }
 0x283   : > { %v4861_v1 = vpop.f32.mrb[100].mxu1  ;;  %v4798_v31 = vpop.f32.mrb[101].mxu0 }
 0x284   : > { %3840 = vst [vmem:[%s6328_s7 + $0x8] sm:$0xff] %v3780_v24  ;;  %v3855_v6 = vadd.f32 %v3780_v24, %v3777_v63  ;;  %v3878_v36 = vmul.f32 %v3780_v24, %v3780_v24  ;;  %v4799_v10 = vadd.f32 %v4798_v31, %v4797_v0  ;;  %v4862_v12 = vpop.f32.mrb[101].mxu1  ;;  %v4800_v30 = vpop.f32.mrb[102].mxu0 }
 0x285   : > { %v4863_v15 = vadd.f32 %v4862_v12, %v4861_v1  ;;  %v4864_v16 = vpop.f32.mrb[102].mxu1  ;;  %v4801_v5 = vpop.f32.mrb[103].mxu0 }
 0x286   : > { %v3893_v17 = vadd.f32 %v3878_v36, %v3877_v49  ;;  %v3688_v39 = vadd.f32 %v4799_v10, %v6283_v58  ;;  %v4802_v19 = vadd.f32 %v4801_v5, %v4800_v30  ;;  %v4865_v42 = vpop.f32.mrb[103].mxu1 }
 0x287   : > { %v4866_v20 = vadd.f32 %v4865_v42, %v4864_v16 }
 0x288   : > { %v3785_v22 = vadd.f32 %v4863_v15, %v3688_v39  ;;  %v3691_v55 = vadd.f32 %v4802_v19, %v6286_v21 }
 0x28a   : > { %3841 = vst [vmem:[%s6328_s7 + $0x10] sm:$0xff] %v3785_v22  ;;  %v3856_v7 = vadd.f32 %v3855_v6, %v3785_v22  ;;  %v3879_v26 = vmul.f32 %v3785_v22, %v3785_v22  ;;  %v3788_v27 = vadd.f32 %v4866_v20, %v3691_v55  ;;  %v4803_v51 = vpop.f32.mrb[104].mxu0 }
 0x28b   : > { %v4867_v47 = vpop.f32.mrb[104].mxu1  ;;  %v4804_v33 = vpop.f32.mrb[105].mxu0 }
 0x28c   : > { %v3894_v34 = vadd.f32 %v3893_v17, %v3879_v26  ;;  %3842 = vst [vmem:[%s6328_s7 + $0x18] sm:$0xff] %v3788_v27  ;;  %v3857_v35 = vadd.f32 %v3856_v7, %v3788_v27  ;;  %v3880_v57 = vmul.f32 %v3788_v27, %v3788_v27  ;;  %v4805_v38 = vadd.f32 %v4804_v33, %v4803_v51  ;;  %v4868_v58 = vpop.f32.mrb[105].mxu1  ;;  %v4806_v62 = vpop.f32.mrb[106].mxu0 }
 0x28d   : > { %v4869_v40 = vadd.f32 %v4868_v58, %v4867_v47  ;;  %v4870_v41 = vpop.f32.mrb[106].mxu1  ;;  %v4807_v8 = vpop.f32.mrb[107].mxu0 }
 0x28e   : > { %v3895_v21 = vadd.f32 %v3894_v34, %v3880_v57  ;;  %v3696_v29 = vadd.f32 %v4805_v38, %v6289_v14  ;;  %v4808_v44 = vadd.f32 %v4807_v8, %v4806_v62  ;;  %v4871_v45 = vpop.f32.mrb[107].mxu1 }
 0x28f   : > { %v4872_v9 = vadd.f32 %v4871_v45, %v4870_v41 }
 0x290   : > { %v3793_v3 = vadd.f32 %v4869_v40, %v3696_v29  ;;  %v3699_v50 = vadd.f32 %v4808_v44, %v6292_v37 }
 0x292   : > { %3843 = vst [vmem:[%s6328_s7 + $0x20] sm:$0xff] %v3793_v3  ;;  %v3858_v52 = vadd.f32 %v3857_v35, %v3793_v3  ;;  %v3881_v56 = vmul.f32 %v3793_v3, %v3793_v3  ;;  %v3796_v13 = vadd.f32 %v4872_v9, %v3699_v50  ;;  %v4809_v18 = vpop.f32.mrb[108].mxu0 }
 0x293   : > { %v4873_v59 = vpop.f32.mrb[108].mxu1  ;;  %v4810_v60 = vpop.f32.mrb[109].mxu0 }
 0x294   : > { %v3896_v61 = vadd.f32 %v3895_v21, %v3881_v56  ;;  %3844 = vst [vmem:[%s6328_s7 + $0x28] sm:$0xff] %v3796_v13  ;;  %v3859_v23 = vadd.f32 %v3858_v52, %v3796_v13  ;;  %v3882_v63 = vmul.f32 %v3796_v13, %v3796_v13  ;;  %v4811_v53 = vadd.f32 %v4810_v60, %v4809_v18  ;;  %v4874_v14 = vpop.f32.mrb[109].mxu1  ;;  %v4812_v24 = vpop.f32.mrb[110].mxu0 }
 0x295   : > { %v4875_v0 = vadd.f32 %v4874_v14, %v4873_v59  ;;  %v4876_v1 = vpop.f32.mrb[110].mxu1  ;;  %v4813_v31 = vpop.f32.mrb[111].mxu0 }
 0x296   : > { %v3897_v37 = vadd.f32 %v3896_v61, %v3882_v63  ;;  %v3704_v49 = vadd.f32 %v4811_v53, %v6295_v32  ;;  %v4814_v6 = vadd.f32 %v4813_v31, %v4812_v24  ;;  %v4877_v36 = vpop.f32.mrb[111].mxu1 }
 0x297   : > { %v4878_v10 = vadd.f32 %v4877_v36, %v4876_v1 }
 0x298   : > { %v3801_v12 = vadd.f32 %v4875_v0, %v3704_v49  ;;  %v3707_v30 = vadd.f32 %v4814_v6, %v6298_v54 }
 0x29a   : > { %3845 = vst [vmem:[%s6328_s7 + $0x30] sm:$0xff] %v3801_v12  ;;  %v3860_v15 = vadd.f32 %v3859_v23, %v3801_v12  ;;  %v3883_v16 = vmul.f32 %v3801_v12, %v3801_v12  ;;  %v3804_v5 = vadd.f32 %v4878_v10, %v3707_v30  ;;  %v4815_v17 = vpop.f32.mrb[112].mxu0 }
 0x29b   : > { %v4879_v39 = vpop.f32.mrb[112].mxu1  ;;  %v4816_v19 = vpop.f32.mrb[113].mxu0 }
 0x29c   : > { %v3898_v42 = vadd.f32 %v3897_v37, %v3883_v16  ;;  %3846 = vst [vmem:[%s6328_s7 + $0x38] sm:$0xff] %v3804_v5  ;;  %v3861_v20 = vadd.f32 %v3860_v15, %v3804_v5  ;;  %v3884_v22 = vmul.f32 %v3804_v5, %v3804_v5  ;;  %v4817_v55 = vadd.f32 %v4816_v19, %v4815_v17  ;;  %v4880_v32 = vpop.f32.mrb[113].mxu1  ;;  %v4818_v7 = vpop.f32.mrb[114].mxu0 }
 0x29d   : > { %v4881_v26 = vadd.f32 %v4880_v32, %v4879_v39  ;;  %v4882_v27 = vpop.f32.mrb[114].mxu1  ;;  %v4819_v51 = vpop.f32.mrb[115].mxu0 }
 0x29e   : > { %v3899_v54 = vadd.f32 %v3898_v42, %v3884_v22  ;;  %v3712_v47 = vadd.f32 %v4817_v55, %v6301_v48  ;;  %v4820_v33 = vadd.f32 %v4819_v51, %v4818_v7  ;;  %v4883_v34 = vpop.f32.mrb[115].mxu1 }
 0x29f   : > { %v4884_v35 = vadd.f32 %v4883_v34, %v4882_v27 }
 0x2a0   : > { %v3809_v57 = vadd.f32 %v4881_v26, %v3712_v47  ;;  %v3715_v38 = vadd.f32 %v4820_v33, %v6304_v11 }
 0x2a2   : > { %3847 = vst [vmem:[%s6328_s7 + $0x40] sm:$0xff] %v3809_v57  ;;  %v3862_v58 = vadd.f32 %v3861_v20, %v3809_v57  ;;  %v3885_v62 = vmul.f32 %v3809_v57, %v3809_v57  ;;  %v3812_v40 = vadd.f32 %v4884_v35, %v3715_v38  ;;  %v4821_v41 = vpop.f32.mrb[116].mxu0 }
 0x2a3   : > { %v4885_v8 = vpop.f32.mrb[116].mxu1  ;;  %v4822_v21 = vpop.f32.mrb[117].mxu0 }
 0x2a4   : > { %v3900_v29 = vadd.f32 %v3899_v54, %v3885_v62  ;;  %3848 = vst [vmem:[%s6328_s7 + $0x48] sm:$0xff] %v3812_v40  ;;  %v3863_v44 = vadd.f32 %v3862_v58, %v3812_v40  ;;  %v3886_v45 = vmul.f32 %v3812_v40, %v3812_v40  ;;  %v4823_v9 = vadd.f32 %v4822_v21, %v4821_v41  ;;  %v4886_v48 = vpop.f32.mrb[117].mxu1  ;;  %v4824_v3 = vpop.f32.mrb[118].mxu0 }
 0x2a5   : > { %v4887_v50 = vadd.f32 %v4886_v48, %v4885_v8  ;;  %v4888_v52 = vpop.f32.mrb[118].mxu1  ;;  %v4825_v56 = vpop.f32.mrb[119].mxu0 }
 0x2a6   : > { %v3901_v11 = vadd.f32 %v3900_v29, %v3886_v45  ;;  %v3720_v13 = vadd.f32 %v4823_v9, %v6307_v4  ;;  %v4826_v18 = vadd.f32 %v4825_v56, %v4824_v3  ;;  %v4889_v59 = vpop.f32.mrb[119].mxu1 }
 0x2a7   : > { %v4890_v60 = vadd.f32 %v4889_v59, %v4888_v52 }
 0x2a8   : > { %v3817_v61 = vadd.f32 %v4887_v50, %v3720_v13  ;;  %v3723_v23 = vadd.f32 %v4826_v18, %v6310_v28 }
 0x2aa   : > { %3849 = vst [vmem:[%s6328_s7 + $0x50] sm:$0xff] %v3817_v61  ;;  %v3864_v63 = vadd.f32 %v3863_v44, %v3817_v61  ;;  %v3887_v53 = vmul.f32 %v3817_v61, %v3817_v61  ;;  %v3820_v14 = vadd.f32 %v4890_v60, %v3723_v23  ;;  %v4827_v24 = vpop.f32.mrb[120].mxu0  ;;  %v3987_v23 = vld [vmem:[%s6328_s7] sm:$0xff] (%p5135_p5) }
 0x2ab   : > { %v4891_v0 = vpop.f32.mrb[120].mxu1  ;;  %v4828_v1 = vpop.f32.mrb[121].mxu0  ;;  %3988 = vst [vmem:[%s3929_s21] sm:$0xff] (%p5135_p5), %v3987_v23 }
 0x2ac   : > { %v3902_v31 = vadd.f32 %v3901_v11, %v3887_v53  ;;  %3850 = vst [vmem:[%s6328_s7 + $0x58] sm:$0xff] %v3820_v14  ;;  %v3865_v37 = vadd.f32 %v3864_v63, %v3820_v14  ;;  %v3888_v49 = vmul.f32 %v3820_v14, %v3820_v14  ;;  %v4829_v6 = vadd.f32 %v4828_v1, %v4827_v24  ;;  %v4892_v4 = vpop.f32.mrb[121].mxu1  ;;  %v4830_v36 = vpop.f32.mrb[122].mxu0  ;;  %v3989_v63 = vld [vmem:[%s6328_s7 + $0x8] sm:$0xff] (%p5135_p5)  ;;  %v3991_v53 = vld [vmem:[%s6328_s7 + $0x10] sm:$0xff] (%p5135_p5)  ;;  %v3993_v14 = vld [vmem:[%s6328_s7 + $0x18] sm:$0xff] (%p5135_p5) }
 0x2ad   : > { %v4893_v10 = vadd.f32 %v4892_v4, %v4891_v0  ;;  %v4894_v12 = vpop.f32.mrb[122].mxu1  ;;  %v4831_v30 = vpop.f32.mrb[123].mxu0  ;;  %v3995_v24 = vld [vmem:[%s6328_s7 + $0x20] sm:$0xff] (%p5135_p5)  ;;  %v3997_v0 = vld [vmem:[%s6328_s7 + $0x28] sm:$0xff] (%p5135_p5)  ;;  %3990 = vst [vmem:[%s3929_s21 + $0x10] sm:$0xff] (%p5135_p5), %v3989_v63  ;;  %3992 = vst [vmem:[%s3929_s21 + $0x20] sm:$0xff] (%p5135_p5), %v3991_v53 }
 0x2ae   : > { %v3903_v28 = vadd.f32 %v3902_v31, %v3888_v49  ;;  %v3728_v15 = vadd.f32 %v4829_v6, %v6313_v25  ;;  %v4832_v16 = vadd.f32 %v4831_v30, %v4830_v36  ;;  %v4895_v5 = vpop.f32.mrb[123].mxu1  ;;  %3994 = vst [vmem:[%s3929_s21 + $0x30] sm:$0xff] (%p5135_p5), %v3993_v14  ;;  %3996 = vst [vmem:[%s3929_s21 + $0x40] sm:$0xff] (%p5135_p5), %v3995_v24  ;;  %v3999_v1 = vld [vmem:[%s6328_s7 + $0x30] sm:$0xff] (%p5135_p5)  ;;  %v4001_v31 = vld [vmem:[%s6328_s7 + $0x38] sm:$0xff] (%p5135_p5) }
 0x2af   : > { %v4896_v17 = vadd.f32 %v4895_v5, %v4894_v12  ;;  %3998 = vst [vmem:[%s3929_s21 + $0x50] sm:$0xff] (%p5135_p5), %v3997_v0  ;;  %4000 = vst [vmem:[%s3929_s21 + $0x60] sm:$0xff] (%p5135_p5), %v3999_v1  ;;  %v4005_v49 = vld [vmem:[%s6328_s7 + $0x48] sm:$0xff] (%p5135_p5) }
 0x2b0   : > { %v3825_v39 = vadd.f32 %v4893_v10, %v3728_v15  ;;  %v3731_v19 = vadd.f32 %v4832_v16, %v6316_v46  ;;  %4002 = vst [vmem:[%s3929_s21 + $0x70] sm:$0xff] (%p5135_p5), %v4001_v31  ;;  %4006 = vst [vmem:[%s3929_s21 + $0x90] sm:$0xff] (%p5135_p5), %v4005_v49 }
 0x2b1   : > { %v4007_v6 = vld [vmem:[%s6328_s7 + $0x50] sm:$0xff] (%p5135_p5) }
 0x2b2   : > { %3851 = vst [vmem:[%s6328_s7 + $0x60] sm:$0xff] %v3825_v39  ;;  %v3866_v42 = vadd.f32 %v3865_v37, %v3825_v39  ;;  %v3889_v20 = vmul.f32 %v3825_v39, %v3825_v39  ;;  %v3828_v22 = vadd.f32 %v4896_v17, %v3731_v19  ;;  %v4833_v55 = vpop.f32.mrb[124].mxu0  ;;  %v4003_v37 = vld [vmem:[%s6328_s7 + $0x40] sm:$0xff] (%p5135_p5)  ;;  %4008 = vst [vmem:[%s3929_s21 + $0xa0] sm:$0xff] (%p5135_p5), %v4007_v6 }
 0x2b3   : > { %v4897_v32 = vpop.f32.mrb[124].mxu1  ;;  %v4834_v7 = vpop.f32.mrb[125].mxu0  ;;  %4004 = vst [vmem:[%s3929_s21 + $0x80] sm:$0xff] (%p5135_p5), %v4003_v37  ;;  %v4009_v4 = vld [vmem:[%s6328_s7 + $0x58] sm:$0xff] (%p5135_p5) }
 0x2b4   : > { %v3904_v26 = vadd.f32 %v3903_v28, %v3889_v20  ;;  %3852 = vst [vmem:[%s6328_s7 + $0x68] sm:$0xff] %v3828_v22  ;;  %v3867_v27 = vadd.f32 %v3866_v42, %v3828_v22  ;;  %v3890_v51 = vmul.f32 %v3828_v22, %v3828_v22  ;;  %v4835_v54 = vadd.f32 %v4834_v7, %v4833_v55  ;;  %v4898_v25 = vpop.f32.mrb[125].mxu1  ;;  %v4836_v47 = vpop.f32.mrb[126].mxu0 }
 0x2b5   : > { %v4899_v33 = vadd.f32 %v4898_v25, %v4897_v32  ;;  %v4900_v34 = vpop.f32.mrb[126].mxu1  ;;  %v4837_v35 = vpop.f32.mrb[127].mxu0  ;;  %4010 = vst [vmem:[%s3929_s21 + $0xb0] sm:$0xff] (%p5135_p5), %v4009_v4 }
 0x2b6   : > { %v3905_v46 = vadd.f32 %v3904_v26, %v3890_v51  ;;  %v3736_v57 = vadd.f32 %v4835_v54, %v6319_v43  ;;  %v4838_v38 = vadd.f32 %v4837_v35, %v4836_v47  ;;  %v4901_v58 = vpop.f32.mrb[127].mxu1 }
 0x2b7   : > { %v4902_v62 = vadd.f32 %v4901_v58, %v4900_v34 }
 0x2b8   : > { %v3833_v40 = vadd.f32 %v4899_v33, %v3736_v57  ;;  %v3739_v41 = vadd.f32 %v4838_v38, %v6322_v2 }
 0x2b9   : > { %v4011_v36 = vld [vmem:[%s6328_s7 + $0x60] sm:$0xff] (%p5135_p5) }
 0x2ba   : > { %3853 = vst [vmem:[%s6328_s7 + $0x70] sm:$0xff] %v3833_v40  ;;  %v3868_v8 = vadd.f32 %v3867_v27, %v3833_v40  ;;  %v3891_v21 = vmul.f32 %v3833_v40, %v3833_v40  ;;  %v3836_v29 = vadd.f32 %v4902_v62, %v3739_v41  ;;  %4012 = vst [vmem:[%s3929_s21 + $0xc0] sm:$0xff] (%p5135_p5), %v4011_v36 }
 0x2bb   : > { %v4013_v10 = vld [vmem:[%s6328_s7 + $0x68] sm:$0xff] (%p5135_p5) }
 0x2bc   : > { %v3906_v44 = vadd.f32 %v3905_v46, %v3891_v21  ;;  %3854 = vst [vmem:[%s6328_s7 + $0x78] sm:$0xff] %v3836_v29  ;;  %v3869_v45 = vadd.f32 %v3868_v8, %v3836_v29  ;;  %v3892_v9 = vmul.f32 %v3836_v29, %v3836_v29  ;;  %4014 = vst [vmem:[%s3929_s21 + $0xd0] sm:$0xff] (%p5135_p5), %v4013_v10 }
 0x2be   : > { %v3870_v48 = vrot.slane %v3869_v45, 4  ;;  %v3907_v3 = vadd.f32 %v3906_v44, %v3892_v9 }
 0x2c0   : > { %v3871_v43 = vadd.f32 %v3870_v48, %v3869_v45  ;;  %v3908_v50 = vrot.slane %v3907_v3, 4 }
 0x2c1   : > { %v4015_v12 = vld [vmem:[%s6328_s7 + $0x70] sm:$0xff] (%p5135_p5) }
 0x2c2   : > { %v3872_v52 = vrot.slane %v3871_v43, 2  ;;  %v3909_v56 = vadd.f32 %v3908_v50, %v3907_v3  ;;  %4016 = vst [vmem:[%s3929_s21 + $0xe0] sm:$0xff] (%p5135_p5), %v4015_v12 }
 0x2c3   : > { %v4017_v30 = vld [vmem:[%s6328_s7 + $0x78] sm:$0xff] (%p5135_p5) }
 0x2c4   : > { %v3873_v11 = vadd.f32 %v3872_v52, %v3871_v43  ;;  %v3910_v13 = vrot.slane %v3909_v56, 2  ;;  %4018 = vst [vmem:[%s3929_s21 + $0xf0] sm:$0xff] (%p5135_p5), %v4017_v30 }
 0x2c6   : > { %v3874_v2 = vrot.slane %v3873_v11, 1  ;;  %v3911_v18 = vadd.f32 %v3910_v13, %v3909_v56  ;;  %3927 = sbr.rel (!%p5135_p5) target bundleno = 717 (0x2cd), region = 73 }
 0x2c8   : > { %v3875_v59 = vadd.f32 %v3874_v2, %v3873_v11  ;;  %v3912_v60 = vrot.slane %v3911_v18, 1 }
 0x2ca   : > { %3876 = vst [vmem:[%s1266_s9] sm:$0x1] %v3875_v59  ;;  %v3913_v61 = vadd.f32 %v3912_v60, %v3911_v18 }
 0x2cc   : > { %3914 = vst [vmem:[%s1269_s12] sm:$0x1] %v3913_v61 }
 0x2cd PF: > { %p12_p11 = scmp.ge.s32.totalorder %s5123_s19, 4   ;;  %s6406_s15 = smov %s5073_s16 }
 0x2ce   : > { %s6407_s16 = smov %s5133_s22  ;;  %s6408_s17 = smov %s5123_s19 }
 0x2cf   :  { %14 = sbr.rel (!%p12_p11) target bundleno = 2 (0x2), region = 166 }

// kernel: discriminator_forward.13
= control target key start
LH: loop header
LB: loop body
LE: loop exit
PB: predicated region body
PF: predicated region fallthrough
CT: control target
= control target key end

     0   :  { %v32_v0 = vlaneseq  ;;  %s344_s1 = inlined_call_operand.vmem [shape: f32[1,512], index: 1, kind: input, shape index: {}]   ;;  %s345_s2 = inlined_call_operand.vmem [shape: f32[1,512], index: 2, kind: input, shape index: {}]   ;;  %s346_s0 = inlined_call_operand.vmem [shape: f32[32,512], index: 0, kind: input, shape index: {}]   ;;  %s347_s3 = inlined_call_operand.vmem [shape: f32[32,512], index: 3, kind: output, shape index: {}]  }
   0x1   :  { %v30_v2 = vld [vmem:[%s344_s1] sm:$0xf]  ;;  %v15_v6 = vld [vmem:[%s346_s0 + $0x8] sm:$0xff]  ;;  %v16_v10 = vld [vmem:[%s346_s0 + $0x10] sm:$0xff] }
   0x2   :  { %v33_v1 = vshrl.u32 %v32_v0, 7  ;;  %v68_v3 = vld [vmem:[%s345_s2] sm:$0xf]  ;;  %v19_v12 = vld [vmem:[%s346_s0 + $0x28] sm:$0xff]  ;;  %v17_v17 = vld [vmem:[%s346_s0 + $0x18] sm:$0xff] }
   0x3   :  { %v14_v4 = vld [vmem:[%s346_s0] sm:$0xff]  ;;  %v20_v18 = vld [vmem:[%s346_s0 + $0x30] sm:$0xff]  ;;  %v21_v19 = vld [vmem:[%s346_s0 + $0x38] sm:$0xff] }
   0x4   :  { %v34_v5 = vsub.s32 0, %v33_v1  ;;  %v38_v7 = vsub.s32 1, %v33_v1  ;;  %v42_v8 = vsub.s32 2, %v33_v1  ;;  %v46_v9 = vsub.s32 3, %v33_v1  ;;  %v18_v11 = vld [vmem:[%s346_s0 + $0x20] sm:$0xff]  ;;  %v23_v48 = vld [vmem:[%s346_s0 + $0x48] sm:$0xff] }
   0x5   :  { %v22_v47 = vld [vmem:[%s346_s0 + $0x40] sm:$0xff]  ;;  %v24_v52 = vld [vmem:[%s346_s0 + $0x50] sm:$0xff]  ;;  %v25_v53 = vld [vmem:[%s346_s0 + $0x58] sm:$0xff] }
   0x6   :  { %v215_v13 = vrot.slane %v30_v2, %v34_v5  ;;  %v217_v14 = vrot.slane %v68_v3, %v34_v5  ;;  %v219_v15 = vrot.slane %v30_v2, %v38_v7  ;;  %v221_v16 = vrot.slane %v68_v3, %v38_v7  ;;  %v26_v54 = vld [vmem:[%s346_s0 + $0x60] sm:$0xff]  ;;  %v27_v57 = vld [vmem:[%s346_s0 + $0x68] sm:$0xff]  ;;  %v28_v62 = vld [vmem:[%s346_s0 + $0x70] sm:$0xff] }
   0x7   :  { %v232_v20 = vrot.slane %v30_v2, %v42_v8  ;;  %v234_v21 = vrot.slane %v68_v3, %v42_v8  ;;  %v236_v22 = vrot.slane %v30_v2, %v46_v9  ;;  %v238_v23 = vrot.slane %v68_v3, %v46_v9 }
   0x8   :  { %v52_v24 = vmul.f32 %v215_v13, %v14_v4  ;;  %v53_v25 = vmul.f32 %v219_v15, %v15_v6  ;;  %v56_v26 = vmul.f32 %v215_v13, %v18_v11  ;;  %v57_v27 = vmul.f32 %v219_v15, %v19_v12  ;;  %v29_v11 = vld [vmem:[%s346_s0 + $0x78] sm:$0xff] }
   0x9   :  { %v54_v28 = vmul.f32 %v232_v20, %v16_v10  ;;  %v55_v29 = vmul.f32 %v236_v22, %v17_v17  ;;  %v58_v30 = vmul.f32 %v232_v20, %v20_v18  ;;  %v59_v31 = vmul.f32 %v236_v22, %v21_v19 }
   0xa   :  { %v90_v32 = vadd.f32 %v217_v14, %v52_v24  ;;  %v91_v33 = vadd.f32 %v221_v16, %v53_v25  ;;  %v94_v34 = vadd.f32 %v217_v14, %v56_v26  ;;  %v95_v35 = vadd.f32 %v221_v16, %v57_v27 }
   0xb   :  { %v92_v36 = vadd.f32 %v234_v21, %v54_v28  ;;  %v93_v37 = vadd.f32 %v238_v23, %v55_v29  ;;  %v96_v38 = vadd.f32 %v234_v21, %v58_v30  ;;  %v97_v39 = vadd.f32 %v238_v23, %v59_v31 }
   0xc   :  { %vm106_vm0 = vcmp.ge.f32.partialorder %v90_v32, 0.0  ;;  %v122_v40 = vmul.f32 0.2, %v90_v32  ;;  %vm107_vm1 = vcmp.ge.f32.partialorder %v91_v33, 0.0  ;;  %v123_v41 = vmul.f32 0.2, %v91_v33 }
   0xd   :  { %vm108_vm2 = vcmp.ge.f32.partialorder %v92_v36, 0.0  ;;  %v124_v42 = vmul.f32 0.2, %v92_v36  ;;  %vm109_vm3 = vcmp.ge.f32.partialorder %v93_v37, 0.0  ;;  %v125_v43 = vmul.f32 0.2, %v93_v37 }
   0xe   :  { %v138_v44 = vsel %vm106_vm0, %v90_v32, %v122_v40  ;;  %v139_v45 = vsel %vm107_vm1, %v91_v33, %v123_v41  ;;  %vm110_vm4 = vcmp.ge.f32.partialorder %v94_v34, 0.0  ;;  %v126_v46 = vmul.f32 0.2, %v94_v34 }
   0xf   :  { %154 = vst [vmem:[%s347_s3] sm:$0xff] %v138_v44  ;;  %155 = vst [vmem:[%s347_s3 + $0x8] sm:$0xff] %v139_v45  ;;  %v140_v49 = vsel %vm108_vm2, %v92_v36, %v124_v42  ;;  %v141_v50 = vsel %vm109_vm3, %v93_v37, %v125_v43  ;;  %vm111_vm5 = vcmp.ge.f32.partialorder %v95_v35, 0.0  ;;  %v127_v51 = vmul.f32 0.2, %v95_v35 }
  0x10   :  { %156 = vst [vmem:[%s347_s3 + $0x10] sm:$0xff] %v140_v49  ;;  %157 = vst [vmem:[%s347_s3 + $0x18] sm:$0xff] %v141_v50  ;;  %v142_v55 = vsel %vm110_vm4, %v94_v34, %v126_v46  ;;  %vm112_vm6 = vcmp.ge.f32.partialorder %v96_v38, 0.0  ;;  %v128_v56 = vmul.f32 0.2, %v96_v38  ;;  %vm113_vm7 = vcmp.ge.f32.partialorder %v97_v39, 0.0 }
  0x11   :  { %158 = vst [vmem:[%s347_s3 + $0x20] sm:$0xff] %v142_v55  ;;  %v143_v58 = vsel %vm111_vm5, %v95_v35, %v127_v51  ;;  %v129_v59 = vmul.f32 0.2, %v97_v39  ;;  %v60_v60 = vmul.f32 %v215_v13, %v22_v47  ;;  %v61_v61 = vmul.f32 %v219_v15, %v23_v48 }
  0x12   :  { %159 = vst [vmem:[%s347_s3 + $0x28] sm:$0xff] %v143_v58  ;;  %v144_v63 = vsel %vm112_vm6, %v96_v38, %v128_v56  ;;  %v62_v0 = vmul.f32 %v232_v20, %v24_v52  ;;  %v63_v1 = vmul.f32 %v236_v22, %v25_v53  ;;  %v64_v2 = vmul.f32 %v215_v13, %v26_v54 }
  0x13   :  { %160 = vst [vmem:[%s347_s3 + $0x30] sm:$0xff] %v144_v63  ;;  %v145_v3 = vsel %vm113_vm7, %v97_v39, %v129_v59  ;;  %v98_v4 = vadd.f32 %v217_v14, %v60_v60  ;;  %v99_v5 = vadd.f32 %v221_v16, %v61_v61  ;;  %v65_v6 = vmul.f32 %v219_v15, %v27_v57 }
  0x14   :  { %161 = vst [vmem:[%s347_s3 + $0x38] sm:$0xff] %v145_v3  ;;  %v100_v7 = vadd.f32 %v234_v21, %v62_v0  ;;  %v101_v8 = vadd.f32 %v238_v23, %v63_v1  ;;  %v102_v9 = vadd.f32 %v217_v14, %v64_v2  ;;  %v66_v10 = vmul.f32 %v232_v20, %v28_v62 }
  0x15   :  { %vm114_vm8 = vcmp.ge.f32.partialorder %v98_v4, 0.0  ;;  %v130_v12 = vmul.f32 0.2, %v98_v4  ;;  %vm115_vm9 = vcmp.ge.f32.partialorder %v99_v5, 0.0  ;;  %v131_v13 = vmul.f32 0.2, %v99_v5 }
  0x16   :  { %vm116_vm10 = vcmp.ge.f32.partialorder %v100_v7, 0.0  ;;  %v132_v15 = vmul.f32 0.2, %v100_v7  ;;  %vm117_vm11 = vcmp.ge.f32.partialorder %v101_v8, 0.0  ;;  %v133_v17 = vmul.f32 0.2, %v101_v8 }
  0x17   :  { %v146_v18 = vsel %vm114_vm8, %v98_v4, %v130_v12  ;;  %v147_v19 = vsel %vm115_vm9, %v99_v5, %v131_v13  ;;  %vm118_vm12 = vcmp.ge.f32.partialorder %v102_v9, 0.0  ;;  %v134_v24 = vmul.f32 0.2, %v102_v9 }
  0x18   :  { %162 = vst [vmem:[%s347_s3 + $0x40] sm:$0xff] %v146_v18  ;;  %163 = vst [vmem:[%s347_s3 + $0x48] sm:$0xff] %v147_v19  ;;  %v148_v14 = vsel %vm116_vm10, %v100_v7, %v132_v15  ;;  %v149_v20 = vsel %vm117_vm11, %v101_v8, %v133_v17  ;;  %v103_v25 = vadd.f32 %v221_v16, %v65_v6 }
  0x19   :  { %v104_v26 = vadd.f32 %v234_v21, %v66_v10  ;;  %164 = vst [vmem:[%s347_s3 + $0x50] sm:$0xff] %v148_v14  ;;  %165 = vst [vmem:[%s347_s3 + $0x58] sm:$0xff] %v149_v20  ;;  %v150_v27 = vsel %vm118_vm12, %v102_v9, %v134_v24  ;;  %v67_v28 = vmul.f32 %v236_v22, %v29_v11 }
  0x1a   :  { %166 = vst [vmem:[%s347_s3 + $0x60] sm:$0xff] %v150_v27  ;;  %vm119_vm13 = vcmp.ge.f32.partialorder %v103_v25, 0.0  ;;  %v135_v29 = vmul.f32 0.2, %v103_v25 }
  0x1b   :  { %vm120_vm14 = vcmp.ge.f32.partialorder %v104_v26, 0.0  ;;  %v136_v16 = vmul.f32 0.2, %v104_v26  ;;  %v105_v21 = vadd.f32 %v238_v23, %v67_v28 }
  0x1c   :  { %v151_v30 = vsel %vm119_vm13, %v103_v25, %v135_v29 }
  0x1d   :  { %v152_v31 = vsel %vm120_vm14, %v104_v26, %v136_v16  ;;  %167 = vst [vmem:[%s347_s3 + $0x68] sm:$0xff] %v151_v30  ;;  %vm121_vm15 = vcmp.ge.f32.partialorder %v105_v21, 0.0  ;;  %v137_v22 = vmul.f32 0.2, %v105_v21 }
  0x1e   :  { %168 = vst [vmem:[%s347_s3 + $0x70] sm:$0xff] %v152_v31 }
  0x1f   :  { %v153_v32 = vsel %vm121_vm15, %v105_v21, %v137_v22 }
  0x20   :  { %169 = vst [vmem:[%s347_s3 + $0x78] sm:$0xff] %v153_v32 }

// kernel: discriminator_forward.12
= control target key start
LH: loop header
LB: loop body
LE: loop exit
PB: predicated region body
PF: predicated region fallthrough
CT: control target
= control target key end

     0   :  { %s10501_s15 = smov 0   ;;  %s10503_s16 = smov 0   ;;  %s12458_s0 = inlined_call_operand.vmem [shape: bf16[32,4096], index: 0, kind: input, shape index: {}]   ;;  %s12459_s1 = inlined_call_operand.vmem [shape: bf16[4096,512], index: 1, kind: input, shape index: {}]   ;;  %s12460_s2 = inlined_call_operand.vmem [shape: f32[32,512], index: 2, kind: output, shape index: {0}]   ;;  %s12461_s3 = inlined_call_operand.vmem [shape: f32[1,512], index: 3, kind: output, shape index: {1}]   ;;  %s12462_s4 = inlined_call_operand.vmem [shape: f32[1,512], index: 4, kind: output, shape index: {2}]  }
   0x1   :  { %s10505_s17 = smov 0  }
   0x2 LB: > { %s10517_s18 = sadd.s32 4294967295, %s10473_s17   ;;  %s10520_s19 = sadd.s32 1, %s10473_s17   ;;  %s10473_s17 = sphi %s10505_s17, %s12466_s17   ;;  %s10469_s16 = sphi %s10503_s16, %s12465_s16   ;;  %s10465_s15 = sphi %s10501_s15, %s12464_s15  }
   0x3   : > { %s40_s20 = ssub.s32 %s10473_s17, %s10520_s19  ;;  %s43_s21 = sadd.s32 1, %s10469_s16 }
   0x4   : > { %p41_p0 = scmp.eq.s32.totalorder %s40_s20, 0  ;;  %p50_p1 = scmp.ne.s32.totalorder %s10469_s16, %s10465_s15 }
   0x5   : > { %p51_p2 = scmp.eq.s32.totalorder %s10473_s17, 0  ;;  %p80_p3 = scmp.eq.s32.totalorder %s10517_s18, 1 }
   0x6   : > { %s10530_s22 = scalar_select %p41_p0, %s10469_s16, %s43_s21  }
   0x7   : > { %p52_p4 = por %p51_p2, %p50_p1  ;;  %p10532_p5 = por %p80_p3, %p50_p1 }
   0x8   : > { %p8946_p6 = scmp.ge.s32.totalorder %s10473_s17, 2 }
   0xa   : > { %157 = sbr.rel (%p8946_p6) target bundleno = 277 (0x115), region = 20 }
  0x11   : > { %160 = sbr.rel (!%p52_p4) target bundleno = 277 (0x115), region = 24  ;;  %s162_s24 = sand.u32 (%p52_p4), 1, %s10469_s16  }
  0x12   : > { %s9536_s25 = sshll.u32 (%p52_p4), %s10473_s17, 3  ;;  %s8947_s26 = sshll.u32 (%p52_p4), %s162_s24, 12 }
  0x13   : > { %s10542_s29 = scalar_lea.vmem (%p52_p4), %s12459_s1, %s9536_s25  ;;  %s10547_s30 = scalar_lea.vmem (%p52_p4), [#allocation2], %s8947_s26 }
  0x14   : > { %v1220_v0 = vld [vmem:[%s10542_s29] sm:$0xff] (%p52_p4)  ;;  %v1222_v1 = vld [vmem:[%s10542_s29 + $0x10] sm:$0xff] (%p52_p4) }
  0x15   : > { %v1224_v2 = vld [vmem:[%s10542_s29 + $0x20] sm:$0xff] (%p52_p4)  ;;  %1221 = vst [vmem:[%s10547_s30] sm:$0xff] (%p52_p4), %v1220_v0  ;;  %1223 = vst [vmem:[%s10547_s30 + $0x8] sm:$0xff] (%p52_p4), %v1222_v1  ;;  %v1226_v3 = vld [vmem:[%s10542_s29 + $0x30] sm:$0xff] (%p52_p4) }
  0x16   : > { %1225 = vst [vmem:[%s10547_s30 + $0x10] sm:$0xff] (%p52_p4), %v1224_v2  ;;  %v1228_v4 = vld [vmem:[%s10542_s29 + $0x40] sm:$0xff] (%p52_p4)  ;;  %v1230_v5 = vld [vmem:[%s10542_s29 + $0x50] sm:$0xff] (%p52_p4)  ;;  %1227 = vst [vmem:[%s10547_s30 + $0x18] sm:$0xff] (%p52_p4), %v1226_v3 }
  0x17   : > { %1229 = vst [vmem:[%s10547_s30 + $0x20] sm:$0xff] (%p52_p4), %v1228_v4  ;;  %1231 = vst [vmem:[%s10547_s30 + $0x28] sm:$0xff] (%p52_p4), %v1230_v5  ;;  %v1232_v6 = vld [vmem:[%s10542_s29 + $0x60] sm:$0xff] (%p52_p4)  ;;  %v1234_v7 = vld [vmem:[%s10542_s29 + $0x70] sm:$0xff] (%p52_p4) }
  0x18   : > { %v1236_v8 = vld [vmem:[%s10542_s29 + $0x80] sm:$0xff]  ;;  %1233 = vst [vmem:[%s10547_s30 + $0x30] sm:$0xff] %v1232_v6  ;;  %1235 = vst [vmem:[%s10547_s30 + $0x38] sm:$0xff] %v1234_v7  ;;  %v1238_v9 = vld [vmem:[%s10542_s29 + $0x90] sm:$0xff] }
  0x19   : > { %1237 = vst [vmem:[%s10547_s30 + $0x40] sm:$0xff] %v1236_v8  ;;  %v1240_v10 = vld [vmem:[%s10542_s29 + $0xa0] sm:$0xff]  ;;  %v1242_v11 = vld [vmem:[%s10542_s29 + $0xb0] sm:$0xff]  ;;  %1239 = vst [vmem:[%s10547_s30 + $0x48] sm:$0xff] %v1238_v9 }
  0x1a   : > { %1241 = vst [vmem:[%s10547_s30 + $0x50] sm:$0xff] %v1240_v10  ;;  %1243 = vst [vmem:[%s10547_s30 + $0x58] sm:$0xff] %v1242_v11  ;;  %v1244_v12 = vld [vmem:[%s10542_s29 + $0xc0] sm:$0xff]  ;;  %v1246_v13 = vld [vmem:[%s10542_s29 + $0xd0] sm:$0xff] }
  0x1b   : > { %v1248_v14 = vld [vmem:[%s10542_s29 + $0xe0] sm:$0xff]  ;;  %1245 = vst [vmem:[%s10547_s30 + $0x60] sm:$0xff] %v1244_v12  ;;  %1247 = vst [vmem:[%s10547_s30 + $0x68] sm:$0xff] %v1246_v13  ;;  %v1250_v15 = vld [vmem:[%s10542_s29 + $0xf0] sm:$0xff] }
  0x1c   : > { %1249 = vst [vmem:[%s10547_s30 + $0x70] sm:$0xff] %v1248_v14  ;;  %v1252_v16 = vld [vmem:[%s10542_s29 + $0x100] sm:$0xff]  ;;  %v1254_v17 = vld [vmem:[%s10542_s29 + $0x110] sm:$0xff]  ;;  %1251 = vst [vmem:[%s10547_s30 + $0x78] sm:$0xff] %v1250_v15 }
  0x1d   : > { %1253 = vst [vmem:[%s10547_s30 + $0x80] sm:$0xff] %v1252_v16  ;;  %1255 = vst [vmem:[%s10547_s30 + $0x88] sm:$0xff] %v1254_v17  ;;  %v1256_v18 = vld [vmem:[%s10542_s29 + $0x120] sm:$0xff]  ;;  %v1258_v19 = vld [vmem:[%s10542_s29 + $0x130] sm:$0xff] }
  0x1e   : > { %v1260_v20 = vld [vmem:[%s10542_s29 + $0x140] sm:$0xff]  ;;  %1257 = vst [vmem:[%s10547_s30 + $0x90] sm:$0xff] %v1256_v18  ;;  %1259 = vst [vmem:[%s10547_s30 + $0x98] sm:$0xff] %v1258_v19  ;;  %v1262_v21 = vld [vmem:[%s10542_s29 + $0x150] sm:$0xff] }
  0x1f   : > { %1261 = vst [vmem:[%s10547_s30 + $0xa0] sm:$0xff] %v1260_v20  ;;  %v1264_v22 = vld [vmem:[%s10542_s29 + $0x160] sm:$0xff]  ;;  %v1266_v23 = vld [vmem:[%s10542_s29 + $0x170] sm:$0xff]  ;;  %1263 = vst [vmem:[%s10547_s30 + $0xa8] sm:$0xff] %v1262_v21 }
  0x20   : > { %1265 = vst [vmem:[%s10547_s30 + $0xb0] sm:$0xff] %v1264_v22  ;;  %1267 = vst [vmem:[%s10547_s30 + $0xb8] sm:$0xff] %v1266_v23  ;;  %v1268_v24 = vld [vmem:[%s10542_s29 + $0x180] sm:$0xff]  ;;  %v1270_v25 = vld [vmem:[%s10542_s29 + $0x190] sm:$0xff] }
  0x21   : > { %v1272_v26 = vld [vmem:[%s10542_s29 + $0x1a0] sm:$0xff]  ;;  %1269 = vst [vmem:[%s10547_s30 + $0xc0] sm:$0xff] %v1268_v24  ;;  %1271 = vst [vmem:[%s10547_s30 + $0xc8] sm:$0xff] %v1270_v25  ;;  %v1274_v27 = vld [vmem:[%s10542_s29 + $0x1b0] sm:$0xff] }
  0x22   : > { %1273 = vst [vmem:[%s10547_s30 + $0xd0] sm:$0xff] %v1272_v26  ;;  %v1276_v28 = vld [vmem:[%s10542_s29 + $0x1c0] sm:$0xff]  ;;  %v1278_v29 = vld [vmem:[%s10542_s29 + $0x1d0] sm:$0xff]  ;;  %1275 = vst [vmem:[%s10547_s30 + $0xd8] sm:$0xff] %v1274_v27 }
  0x23   : > { %1277 = vst [vmem:[%s10547_s30 + $0xe0] sm:$0xff] %v1276_v28  ;;  %1279 = vst [vmem:[%s10547_s30 + $0xe8] sm:$0xff] %v1278_v29  ;;  %v1280_v30 = vld [vmem:[%s10542_s29 + $0x1e0] sm:$0xff]  ;;  %v1282_v31 = vld [vmem:[%s10542_s29 + $0x1f0] sm:$0xff] }
  0x24   : > { %v1284_v32 = vld [vmem:[%s10542_s29 + $0x200] sm:$0xff]  ;;  %1281 = vst [vmem:[%s10547_s30 + $0xf0] sm:$0xff] %v1280_v30  ;;  %1283 = vst [vmem:[%s10547_s30 + $0xf8] sm:$0xff] %v1282_v31  ;;  %v1286_v33 = vld [vmem:[%s10542_s29 + $0x210] sm:$0xff] }
  0x25   : > { %1285 = vst [vmem:[%s10547_s30 + $0x100] sm:$0xff] %v1284_v32  ;;  %v1288_v34 = vld [vmem:[%s10542_s29 + $0x220] sm:$0xff]  ;;  %v1290_v35 = vld [vmem:[%s10542_s29 + $0x230] sm:$0xff]  ;;  %1287 = vst [vmem:[%s10547_s30 + $0x108] sm:$0xff] %v1286_v33 }
  0x26   : > { %1289 = vst [vmem:[%s10547_s30 + $0x110] sm:$0xff] %v1288_v34  ;;  %1291 = vst [vmem:[%s10547_s30 + $0x118] sm:$0xff] %v1290_v35  ;;  %v1292_v36 = vld [vmem:[%s10542_s29 + $0x240] sm:$0xff]  ;;  %v1294_v37 = vld [vmem:[%s10542_s29 + $0x250] sm:$0xff] }
  0x27   : > { %v1296_v38 = vld [vmem:[%s10542_s29 + $0x260] sm:$0xff]  ;;  %1293 = vst [vmem:[%s10547_s30 + $0x120] sm:$0xff] %v1292_v36  ;;  %1295 = vst [vmem:[%s10547_s30 + $0x128] sm:$0xff] %v1294_v37  ;;  %v1298_v39 = vld [vmem:[%s10542_s29 + $0x270] sm:$0xff] }
  0x28   : > { %1297 = vst [vmem:[%s10547_s30 + $0x130] sm:$0xff] %v1296_v38  ;;  %v1300_v40 = vld [vmem:[%s10542_s29 + $0x280] sm:$0xff]  ;;  %v1302_v41 = vld [vmem:[%s10542_s29 + $0x290] sm:$0xff]  ;;  %1299 = vst [vmem:[%s10547_s30 + $0x138] sm:$0xff] %v1298_v39 }
  0x29   : > { %1301 = vst [vmem:[%s10547_s30 + $0x140] sm:$0xff] %v1300_v40  ;;  %1303 = vst [vmem:[%s10547_s30 + $0x148] sm:$0xff] %v1302_v41  ;;  %v1304_v42 = vld [vmem:[%s10542_s29 + $0x2a0] sm:$0xff]  ;;  %v1306_v43 = vld [vmem:[%s10542_s29 + $0x2b0] sm:$0xff] }
  0x2a   : > { %v1308_v44 = vld [vmem:[%s10542_s29 + $0x2c0] sm:$0xff]  ;;  %1305 = vst [vmem:[%s10547_s30 + $0x150] sm:$0xff] %v1304_v42  ;;  %1307 = vst [vmem:[%s10547_s30 + $0x158] sm:$0xff] %v1306_v43  ;;  %v1310_v45 = vld [vmem:[%s10542_s29 + $0x2d0] sm:$0xff] }
  0x2b   : > { %1309 = vst [vmem:[%s10547_s30 + $0x160] sm:$0xff] %v1308_v44  ;;  %v1312_v46 = vld [vmem:[%s10542_s29 + $0x2e0] sm:$0xff]  ;;  %v1314_v47 = vld [vmem:[%s10542_s29 + $0x2f0] sm:$0xff]  ;;  %1311 = vst [vmem:[%s10547_s30 + $0x168] sm:$0xff] %v1310_v45 }
  0x2c   : > { %1313 = vst [vmem:[%s10547_s30 + $0x170] sm:$0xff] %v1312_v46  ;;  %1315 = vst [vmem:[%s10547_s30 + $0x178] sm:$0xff] %v1314_v47  ;;  %v1316_v48 = vld [vmem:[%s10542_s29 + $0x300] sm:$0xff]  ;;  %v1318_v49 = vld [vmem:[%s10542_s29 + $0x310] sm:$0xff] }
  0x2d   : > { %v1320_v50 = vld [vmem:[%s10542_s29 + $0x320] sm:$0xff]  ;;  %1317 = vst [vmem:[%s10547_s30 + $0x180] sm:$0xff] %v1316_v48  ;;  %1319 = vst [vmem:[%s10547_s30 + $0x188] sm:$0xff] %v1318_v49  ;;  %v1322_v51 = vld [vmem:[%s10542_s29 + $0x330] sm:$0xff] }
  0x2e   : > { %1321 = vst [vmem:[%s10547_s30 + $0x190] sm:$0xff] %v1320_v50  ;;  %v1324_v52 = vld [vmem:[%s10542_s29 + $0x340] sm:$0xff]  ;;  %v1326_v53 = vld [vmem:[%s10542_s29 + $0x350] sm:$0xff]  ;;  %1323 = vst [vmem:[%s10547_s30 + $0x198] sm:$0xff] %v1322_v51 }
  0x2f   : > { %1325 = vst [vmem:[%s10547_s30 + $0x1a0] sm:$0xff] %v1324_v52  ;;  %1327 = vst [vmem:[%s10547_s30 + $0x1a8] sm:$0xff] %v1326_v53  ;;  %v1328_v54 = vld [vmem:[%s10542_s29 + $0x360] sm:$0xff]  ;;  %v1330_v55 = vld [vmem:[%s10542_s29 + $0x370] sm:$0xff] }
  0x30   : > { %v1332_v56 = vld [vmem:[%s10542_s29 + $0x380] sm:$0xff]  ;;  %1329 = vst [vmem:[%s10547_s30 + $0x1b0] sm:$0xff] %v1328_v54  ;;  %1331 = vst [vmem:[%s10547_s30 + $0x1b8] sm:$0xff] %v1330_v55  ;;  %v1334_v57 = vld [vmem:[%s10542_s29 + $0x390] sm:$0xff] }
  0x31   : > { %1333 = vst [vmem:[%s10547_s30 + $0x1c0] sm:$0xff] %v1332_v56  ;;  %v1336_v58 = vld [vmem:[%s10542_s29 + $0x3a0] sm:$0xff]  ;;  %v1338_v59 = vld [vmem:[%s10542_s29 + $0x3b0] sm:$0xff]  ;;  %1335 = vst [vmem:[%s10547_s30 + $0x1c8] sm:$0xff] %v1334_v57 }
  0x32   : > { %1337 = vst [vmem:[%s10547_s30 + $0x1d0] sm:$0xff] %v1336_v58  ;;  %1339 = vst [vmem:[%s10547_s30 + $0x1d8] sm:$0xff] %v1338_v59  ;;  %v1340_v60 = vld [vmem:[%s10542_s29 + $0x3c0] sm:$0xff]  ;;  %v1342_v61 = vld [vmem:[%s10542_s29 + $0x3d0] sm:$0xff] }
  0x33   : > { %v1344_v62 = vld [vmem:[%s10542_s29 + $0x3e0] sm:$0xff]  ;;  %1341 = vst [vmem:[%s10547_s30 + $0x1e0] sm:$0xff] %v1340_v60  ;;  %1343 = vst [vmem:[%s10547_s30 + $0x1e8] sm:$0xff] %v1342_v61  ;;  %v1346_v63 = vld [vmem:[%s10542_s29 + $0x3f0] sm:$0xff] }
  0x34   : > { %1345 = vst [vmem:[%s10547_s30 + $0x1f0] sm:$0xff] %v1344_v62  ;;  %v1348_v0 = vld [vmem:[%s10542_s29 + $0x400] sm:$0xff]  ;;  %v1350_v1 = vld [vmem:[%s10542_s29 + $0x410] sm:$0xff]  ;;  %1347 = vst [vmem:[%s10547_s30 + $0x1f8] sm:$0xff] %v1346_v63 }
  0x35   : > { %1349 = vst [vmem:[%s10547_s30 + $0x200] sm:$0xff] %v1348_v0  ;;  %1351 = vst [vmem:[%s10547_s30 + $0x208] sm:$0xff] %v1350_v1  ;;  %v1352_v2 = vld [vmem:[%s10542_s29 + $0x420] sm:$0xff]  ;;  %v1354_v3 = vld [vmem:[%s10542_s29 + $0x430] sm:$0xff] }
  0x36   : > { %v1356_v4 = vld [vmem:[%s10542_s29 + $0x440] sm:$0xff]  ;;  %1353 = vst [vmem:[%s10547_s30 + $0x210] sm:$0xff] %v1352_v2  ;;  %1355 = vst [vmem:[%s10547_s30 + $0x218] sm:$0xff] %v1354_v3  ;;  %v1358_v5 = vld [vmem:[%s10542_s29 + $0x450] sm:$0xff] }
  0x37   : > { %1357 = vst [vmem:[%s10547_s30 + $0x220] sm:$0xff] %v1356_v4  ;;  %v1360_v6 = vld [vmem:[%s10542_s29 + $0x460] sm:$0xff]  ;;  %v1362_v7 = vld [vmem:[%s10542_s29 + $0x470] sm:$0xff]  ;;  %1359 = vst [vmem:[%s10547_s30 + $0x228] sm:$0xff] %v1358_v5 }
  0x38   : > { %1361 = vst [vmem:[%s10547_s30 + $0x230] sm:$0xff] %v1360_v6  ;;  %1363 = vst [vmem:[%s10547_s30 + $0x238] sm:$0xff] %v1362_v7  ;;  %v1364_v8 = vld [vmem:[%s10542_s29 + $0x480] sm:$0xff]  ;;  %v1366_v9 = vld [vmem:[%s10542_s29 + $0x490] sm:$0xff] }
  0x39   : > { %v1368_v10 = vld [vmem:[%s10542_s29 + $0x4a0] sm:$0xff]  ;;  %1365 = vst [vmem:[%s10547_s30 + $0x240] sm:$0xff] %v1364_v8  ;;  %1367 = vst [vmem:[%s10547_s30 + $0x248] sm:$0xff] %v1366_v9  ;;  %v1370_v11 = vld [vmem:[%s10542_s29 + $0x4b0] sm:$0xff] }
  0x3a   : > { %1369 = vst [vmem:[%s10547_s30 + $0x250] sm:$0xff] %v1368_v10  ;;  %v1372_v12 = vld [vmem:[%s10542_s29 + $0x4c0] sm:$0xff]  ;;  %v1374_v13 = vld [vmem:[%s10542_s29 + $0x4d0] sm:$0xff]  ;;  %1371 = vst [vmem:[%s10547_s30 + $0x258] sm:$0xff] %v1370_v11 }
  0x3b   : > { %1373 = vst [vmem:[%s10547_s30 + $0x260] sm:$0xff] %v1372_v12  ;;  %1375 = vst [vmem:[%s10547_s30 + $0x268] sm:$0xff] %v1374_v13  ;;  %v1376_v14 = vld [vmem:[%s10542_s29 + $0x4e0] sm:$0xff]  ;;  %v1378_v15 = vld [vmem:[%s10542_s29 + $0x4f0] sm:$0xff] }
  0x3c   : > { %v1380_v16 = vld [vmem:[%s10542_s29 + $0x500] sm:$0xff]  ;;  %1377 = vst [vmem:[%s10547_s30 + $0x270] sm:$0xff] %v1376_v14  ;;  %1379 = vst [vmem:[%s10547_s30 + $0x278] sm:$0xff] %v1378_v15  ;;  %v1382_v17 = vld [vmem:[%s10542_s29 + $0x510] sm:$0xff] }
  0x3d   : > { %1381 = vst [vmem:[%s10547_s30 + $0x280] sm:$0xff] %v1380_v16  ;;  %v1384_v18 = vld [vmem:[%s10542_s29 + $0x520] sm:$0xff]  ;;  %v1386_v19 = vld [vmem:[%s10542_s29 + $0x530] sm:$0xff]  ;;  %1383 = vst [vmem:[%s10547_s30 + $0x288] sm:$0xff] %v1382_v17 }
  0x3e   : > { %1385 = vst [vmem:[%s10547_s30 + $0x290] sm:$0xff] %v1384_v18  ;;  %1387 = vst [vmem:[%s10547_s30 + $0x298] sm:$0xff] %v1386_v19  ;;  %v1388_v20 = vld [vmem:[%s10542_s29 + $0x540] sm:$0xff]  ;;  %v1390_v21 = vld [vmem:[%s10542_s29 + $0x550] sm:$0xff] }
  0x3f   : > { %v1392_v22 = vld [vmem:[%s10542_s29 + $0x560] sm:$0xff]  ;;  %1389 = vst [vmem:[%s10547_s30 + $0x2a0] sm:$0xff] %v1388_v20  ;;  %1391 = vst [vmem:[%s10547_s30 + $0x2a8] sm:$0xff] %v1390_v21  ;;  %v1394_v23 = vld [vmem:[%s10542_s29 + $0x570] sm:$0xff] }
  0x40   : > { %1393 = vst [vmem:[%s10547_s30 + $0x2b0] sm:$0xff] %v1392_v22  ;;  %v1396_v24 = vld [vmem:[%s10542_s29 + $0x580] sm:$0xff]  ;;  %v1398_v25 = vld [vmem:[%s10542_s29 + $0x590] sm:$0xff]  ;;  %1395 = vst [vmem:[%s10547_s30 + $0x2b8] sm:$0xff] %v1394_v23 }
  0x41   : > { %1397 = vst [vmem:[%s10547_s30 + $0x2c0] sm:$0xff] %v1396_v24  ;;  %1399 = vst [vmem:[%s10547_s30 + $0x2c8] sm:$0xff] %v1398_v25  ;;  %v1400_v26 = vld [vmem:[%s10542_s29 + $0x5a0] sm:$0xff]  ;;  %v1402_v27 = vld [vmem:[%s10542_s29 + $0x5b0] sm:$0xff] }
  0x42   : > { %v1404_v28 = vld [vmem:[%s10542_s29 + $0x5c0] sm:$0xff]  ;;  %1401 = vst [vmem:[%s10547_s30 + $0x2d0] sm:$0xff] %v1400_v26  ;;  %1403 = vst [vmem:[%s10547_s30 + $0x2d8] sm:$0xff] %v1402_v27  ;;  %v1406_v29 = vld [vmem:[%s10542_s29 + $0x5d0] sm:$0xff] }
  0x43   : > { %1405 = vst [vmem:[%s10547_s30 + $0x2e0] sm:$0xff] %v1404_v28  ;;  %v1408_v30 = vld [vmem:[%s10542_s29 + $0x5e0] sm:$0xff]  ;;  %v1410_v31 = vld [vmem:[%s10542_s29 + $0x5f0] sm:$0xff]  ;;  %1407 = vst [vmem:[%s10547_s30 + $0x2e8] sm:$0xff] %v1406_v29 }
  0x44   : > { %1409 = vst [vmem:[%s10547_s30 + $0x2f0] sm:$0xff] %v1408_v30  ;;  %1411 = vst [vmem:[%s10547_s30 + $0x2f8] sm:$0xff] %v1410_v31  ;;  %v1412_v32 = vld [vmem:[%s10542_s29 + $0x600] sm:$0xff]  ;;  %v1414_v33 = vld [vmem:[%s10542_s29 + $0x610] sm:$0xff] }
  0x45   : > { %v1416_v34 = vld [vmem:[%s10542_s29 + $0x620] sm:$0xff]  ;;  %1413 = vst [vmem:[%s10547_s30 + $0x300] sm:$0xff] %v1412_v32  ;;  %1415 = vst [vmem:[%s10547_s30 + $0x308] sm:$0xff] %v1414_v33  ;;  %v1418_v35 = vld [vmem:[%s10542_s29 + $0x630] sm:$0xff] }
  0x46   : > { %1417 = vst [vmem:[%s10547_s30 + $0x310] sm:$0xff] %v1416_v34  ;;  %v1420_v36 = vld [vmem:[%s10542_s29 + $0x640] sm:$0xff]  ;;  %v1422_v37 = vld [vmem:[%s10542_s29 + $0x650] sm:$0xff]  ;;  %1419 = vst [vmem:[%s10547_s30 + $0x318] sm:$0xff] %v1418_v35 }
  0x47   : > { %1421 = vst [vmem:[%s10547_s30 + $0x320] sm:$0xff] %v1420_v36  ;;  %1423 = vst [vmem:[%s10547_s30 + $0x328] sm:$0xff] %v1422_v37  ;;  %v1424_v38 = vld [vmem:[%s10542_s29 + $0x660] sm:$0xff]  ;;  %v1426_v39 = vld [vmem:[%s10542_s29 + $0x670] sm:$0xff] }
  0x48   : > { %v1428_v40 = vld [vmem:[%s10542_s29 + $0x680] sm:$0xff]  ;;  %1425 = vst [vmem:[%s10547_s30 + $0x330] sm:$0xff] %v1424_v38  ;;  %1427 = vst [vmem:[%s10547_s30 + $0x338] sm:$0xff] %v1426_v39  ;;  %v1430_v41 = vld [vmem:[%s10542_s29 + $0x690] sm:$0xff] }
  0x49   : > { %1429 = vst [vmem:[%s10547_s30 + $0x340] sm:$0xff] %v1428_v40  ;;  %v1432_v42 = vld [vmem:[%s10542_s29 + $0x6a0] sm:$0xff]  ;;  %v1434_v43 = vld [vmem:[%s10542_s29 + $0x6b0] sm:$0xff]  ;;  %1431 = vst [vmem:[%s10547_s30 + $0x348] sm:$0xff] %v1430_v41 }
  0x4a   : > { %1433 = vst [vmem:[%s10547_s30 + $0x350] sm:$0xff] %v1432_v42  ;;  %1435 = vst [vmem:[%s10547_s30 + $0x358] sm:$0xff] %v1434_v43  ;;  %v1436_v44 = vld [vmem:[%s10542_s29 + $0x6c0] sm:$0xff]  ;;  %v1438_v45 = vld [vmem:[%s10542_s29 + $0x6d0] sm:$0xff] }
  0x4b   : > { %v1440_v46 = vld [vmem:[%s10542_s29 + $0x6e0] sm:$0xff]  ;;  %1437 = vst [vmem:[%s10547_s30 + $0x360] sm:$0xff] %v1436_v44  ;;  %1439 = vst [vmem:[%s10547_s30 + $0x368] sm:$0xff] %v1438_v45  ;;  %v1442_v47 = vld [vmem:[%s10542_s29 + $0x6f0] sm:$0xff] }
  0x4c   : > { %1441 = vst [vmem:[%s10547_s30 + $0x370] sm:$0xff] %v1440_v46  ;;  %v1444_v48 = vld [vmem:[%s10542_s29 + $0x700] sm:$0xff]  ;;  %v1446_v49 = vld [vmem:[%s10542_s29 + $0x710] sm:$0xff]  ;;  %1443 = vst [vmem:[%s10547_s30 + $0x378] sm:$0xff] %v1442_v47 }
  0x4d   : > { %1445 = vst [vmem:[%s10547_s30 + $0x380] sm:$0xff] %v1444_v48  ;;  %1447 = vst [vmem:[%s10547_s30 + $0x388] sm:$0xff] %v1446_v49  ;;  %v1448_v50 = vld [vmem:[%s10542_s29 + $0x720] sm:$0xff]  ;;  %v1450_v51 = vld [vmem:[%s10542_s29 + $0x730] sm:$0xff] }
  0x4e   : > { %v1452_v52 = vld [vmem:[%s10542_s29 + $0x740] sm:$0xff]  ;;  %1449 = vst [vmem:[%s10547_s30 + $0x390] sm:$0xff] %v1448_v50  ;;  %1451 = vst [vmem:[%s10547_s30 + $0x398] sm:$0xff] %v1450_v51  ;;  %v1454_v53 = vld [vmem:[%s10542_s29 + $0x750] sm:$0xff] }
  0x4f   : > { %1453 = vst [vmem:[%s10547_s30 + $0x3a0] sm:$0xff] %v1452_v52  ;;  %v1456_v54 = vld [vmem:[%s10542_s29 + $0x760] sm:$0xff]  ;;  %v1458_v55 = vld [vmem:[%s10542_s29 + $0x770] sm:$0xff]  ;;  %1455 = vst [vmem:[%s10547_s30 + $0x3a8] sm:$0xff] %v1454_v53 }
  0x50   : > { %1457 = vst [vmem:[%s10547_s30 + $0x3b0] sm:$0xff] %v1456_v54  ;;  %1459 = vst [vmem:[%s10547_s30 + $0x3b8] sm:$0xff] %v1458_v55  ;;  %v1460_v56 = vld [vmem:[%s10542_s29 + $0x780] sm:$0xff]  ;;  %v1462_v57 = vld [vmem:[%s10542_s29 + $0x790] sm:$0xff] }
  0x51   : > { %v1464_v58 = vld [vmem:[%s10542_s29 + $0x7a0] sm:$0xff]  ;;  %1461 = vst [vmem:[%s10547_s30 + $0x3c0] sm:$0xff] %v1460_v56  ;;  %1463 = vst [vmem:[%s10547_s30 + $0x3c8] sm:$0xff] %v1462_v57  ;;  %v1466_v59 = vld [vmem:[%s10542_s29 + $0x7b0] sm:$0xff] }
  0x52   : > { %1465 = vst [vmem:[%s10547_s30 + $0x3d0] sm:$0xff] %v1464_v58  ;;  %v1468_v60 = vld [vmem:[%s10542_s29 + $0x7c0] sm:$0xff]  ;;  %v1470_v61 = vld [vmem:[%s10542_s29 + $0x7d0] sm:$0xff]  ;;  %1467 = vst [vmem:[%s10547_s30 + $0x3d8] sm:$0xff] %v1466_v59 }
  0x53   : > { %1469 = vst [vmem:[%s10547_s30 + $0x3e0] sm:$0xff] %v1468_v60  ;;  %1471 = vst [vmem:[%s10547_s30 + $0x3e8] sm:$0xff] %v1470_v61  ;;  %v1472_v62 = vld [vmem:[%s10542_s29 + $0x7e0] sm:$0xff]  ;;  %v1474_v63 = vld [vmem:[%s10542_s29 + $0x7f0] sm:$0xff] }
  0x54   : > { %v1476_v0 = vld [vmem:[%s10542_s29 + $0x800] sm:$0xff]  ;;  %1473 = vst [vmem:[%s10547_s30 + $0x3f0] sm:$0xff] %v1472_v62  ;;  %1475 = vst [vmem:[%s10547_s30 + $0x3f8] sm:$0xff] %v1474_v63  ;;  %v1478_v1 = vld [vmem:[%s10542_s29 + $0x810] sm:$0xff] }
  0x55   : > { %1477 = vst [vmem:[%s10547_s30 + $0x400] sm:$0xff] %v1476_v0  ;;  %v1480_v2 = vld [vmem:[%s10542_s29 + $0x820] sm:$0xff]  ;;  %v1482_v3 = vld [vmem:[%s10542_s29 + $0x830] sm:$0xff]  ;;  %1479 = vst [vmem:[%s10547_s30 + $0x408] sm:$0xff] %v1478_v1 }
  0x56   : > { %1481 = vst [vmem:[%s10547_s30 + $0x410] sm:$0xff] %v1480_v2  ;;  %1483 = vst [vmem:[%s10547_s30 + $0x418] sm:$0xff] %v1482_v3  ;;  %v1484_v4 = vld [vmem:[%s10542_s29 + $0x840] sm:$0xff]  ;;  %v1486_v5 = vld [vmem:[%s10542_s29 + $0x850] sm:$0xff] }
  0x57   : > { %v1488_v6 = vld [vmem:[%s10542_s29 + $0x860] sm:$0xff]  ;;  %1485 = vst [vmem:[%s10547_s30 + $0x420] sm:$0xff] %v1484_v4  ;;  %1487 = vst [vmem:[%s10547_s30 + $0x428] sm:$0xff] %v1486_v5  ;;  %v1490_v7 = vld [vmem:[%s10542_s29 + $0x870] sm:$0xff] }
  0x58   : > { %1489 = vst [vmem:[%s10547_s30 + $0x430] sm:$0xff] %v1488_v6  ;;  %v1492_v8 = vld [vmem:[%s10542_s29 + $0x880] sm:$0xff]  ;;  %v1494_v9 = vld [vmem:[%s10542_s29 + $0x890] sm:$0xff]  ;;  %1491 = vst [vmem:[%s10547_s30 + $0x438] sm:$0xff] %v1490_v7 }
  0x59   : > { %1493 = vst [vmem:[%s10547_s30 + $0x440] sm:$0xff] %v1492_v8  ;;  %1495 = vst [vmem:[%s10547_s30 + $0x448] sm:$0xff] %v1494_v9  ;;  %v1496_v10 = vld [vmem:[%s10542_s29 + $0x8a0] sm:$0xff]  ;;  %v1498_v11 = vld [vmem:[%s10542_s29 + $0x8b0] sm:$0xff] }
  0x5a   : > { %v1500_v12 = vld [vmem:[%s10542_s29 + $0x8c0] sm:$0xff]  ;;  %1497 = vst [vmem:[%s10547_s30 + $0x450] sm:$0xff] %v1496_v10  ;;  %1499 = vst [vmem:[%s10547_s30 + $0x458] sm:$0xff] %v1498_v11  ;;  %v1502_v13 = vld [vmem:[%s10542_s29 + $0x8d0] sm:$0xff] }
  0x5b   : > { %1501 = vst [vmem:[%s10547_s30 + $0x460] sm:$0xff] %v1500_v12  ;;  %v1504_v14 = vld [vmem:[%s10542_s29 + $0x8e0] sm:$0xff]  ;;  %v1506_v15 = vld [vmem:[%s10542_s29 + $0x8f0] sm:$0xff]  ;;  %1503 = vst [vmem:[%s10547_s30 + $0x468] sm:$0xff] %v1502_v13 }
  0x5c   : > { %1505 = vst [vmem:[%s10547_s30 + $0x470] sm:$0xff] %v1504_v14  ;;  %1507 = vst [vmem:[%s10547_s30 + $0x478] sm:$0xff] %v1506_v15  ;;  %v1508_v16 = vld [vmem:[%s10542_s29 + $0x900] sm:$0xff]  ;;  %v1510_v17 = vld [vmem:[%s10542_s29 + $0x910] sm:$0xff] }
  0x5d   : > { %v1512_v18 = vld [vmem:[%s10542_s29 + $0x920] sm:$0xff]  ;;  %1509 = vst [vmem:[%s10547_s30 + $0x480] sm:$0xff] %v1508_v16  ;;  %1511 = vst [vmem:[%s10547_s30 + $0x488] sm:$0xff] %v1510_v17  ;;  %v1514_v19 = vld [vmem:[%s10542_s29 + $0x930] sm:$0xff] }
  0x5e   : > { %1513 = vst [vmem:[%s10547_s30 + $0x490] sm:$0xff] %v1512_v18  ;;  %v1516_v20 = vld [vmem:[%s10542_s29 + $0x940] sm:$0xff]  ;;  %v1518_v21 = vld [vmem:[%s10542_s29 + $0x950] sm:$0xff]  ;;  %1515 = vst [vmem:[%s10547_s30 + $0x498] sm:$0xff] %v1514_v19 }
  0x5f   : > { %1517 = vst [vmem:[%s10547_s30 + $0x4a0] sm:$0xff] %v1516_v20  ;;  %1519 = vst [vmem:[%s10547_s30 + $0x4a8] sm:$0xff] %v1518_v21  ;;  %v1520_v22 = vld [vmem:[%s10542_s29 + $0x960] sm:$0xff]  ;;  %v1522_v23 = vld [vmem:[%s10542_s29 + $0x970] sm:$0xff] }
  0x60   : > { %v1524_v24 = vld [vmem:[%s10542_s29 + $0x980] sm:$0xff]  ;;  %1521 = vst [vmem:[%s10547_s30 + $0x4b0] sm:$0xff] %v1520_v22  ;;  %1523 = vst [vmem:[%s10547_s30 + $0x4b8] sm:$0xff] %v1522_v23  ;;  %v1526_v25 = vld [vmem:[%s10542_s29 + $0x990] sm:$0xff] }
  0x61   : > { %1525 = vst [vmem:[%s10547_s30 + $0x4c0] sm:$0xff] %v1524_v24  ;;  %v1528_v26 = vld [vmem:[%s10542_s29 + $0x9a0] sm:$0xff]  ;;  %v1530_v27 = vld [vmem:[%s10542_s29 + $0x9b0] sm:$0xff]  ;;  %1527 = vst [vmem:[%s10547_s30 + $0x4c8] sm:$0xff] %v1526_v25 }
  0x62   : > { %1529 = vst [vmem:[%s10547_s30 + $0x4d0] sm:$0xff] %v1528_v26  ;;  %1531 = vst [vmem:[%s10547_s30 + $0x4d8] sm:$0xff] %v1530_v27  ;;  %v1532_v28 = vld [vmem:[%s10542_s29 + $0x9c0] sm:$0xff]  ;;  %v1534_v29 = vld [vmem:[%s10542_s29 + $0x9d0] sm:$0xff] }
  0x63   : > { %v1536_v30 = vld [vmem:[%s10542_s29 + $0x9e0] sm:$0xff]  ;;  %1533 = vst [vmem:[%s10547_s30 + $0x4e0] sm:$0xff] %v1532_v28  ;;  %1535 = vst [vmem:[%s10547_s30 + $0x4e8] sm:$0xff] %v1534_v29  ;;  %v1538_v31 = vld [vmem:[%s10542_s29 + $0x9f0] sm:$0xff] }
  0x64   : > { %1537 = vst [vmem:[%s10547_s30 + $0x4f0] sm:$0xff] %v1536_v30  ;;  %v1540_v32 = vld [vmem:[%s10542_s29 + $0xa00] sm:$0xff]  ;;  %v1542_v33 = vld [vmem:[%s10542_s29 + $0xa10] sm:$0xff]  ;;  %1539 = vst [vmem:[%s10547_s30 + $0x4f8] sm:$0xff] %v1538_v31 }
  0x65   : > { %1541 = vst [vmem:[%s10547_s30 + $0x500] sm:$0xff] %v1540_v32  ;;  %1543 = vst [vmem:[%s10547_s30 + $0x508] sm:$0xff] %v1542_v33  ;;  %v1544_v34 = vld [vmem:[%s10542_s29 + $0xa20] sm:$0xff]  ;;  %v1546_v35 = vld [vmem:[%s10542_s29 + $0xa30] sm:$0xff] }
  0x66   : > { %v1548_v36 = vld [vmem:[%s10542_s29 + $0xa40] sm:$0xff]  ;;  %1545 = vst [vmem:[%s10547_s30 + $0x510] sm:$0xff] %v1544_v34  ;;  %1547 = vst [vmem:[%s10547_s30 + $0x518] sm:$0xff] %v1546_v35  ;;  %v1550_v37 = vld [vmem:[%s10542_s29 + $0xa50] sm:$0xff] }
  0x67   : > { %1549 = vst [vmem:[%s10547_s30 + $0x520] sm:$0xff] %v1548_v36  ;;  %v1552_v38 = vld [vmem:[%s10542_s29 + $0xa60] sm:$0xff]  ;;  %v1554_v39 = vld [vmem:[%s10542_s29 + $0xa70] sm:$0xff]  ;;  %1551 = vst [vmem:[%s10547_s30 + $0x528] sm:$0xff] %v1550_v37 }
  0x68   : > { %1553 = vst [vmem:[%s10547_s30 + $0x530] sm:$0xff] %v1552_v38  ;;  %1555 = vst [vmem:[%s10547_s30 + $0x538] sm:$0xff] %v1554_v39  ;;  %v1556_v40 = vld [vmem:[%s10542_s29 + $0xa80] sm:$0xff]  ;;  %v1558_v41 = vld [vmem:[%s10542_s29 + $0xa90] sm:$0xff] }
  0x69   : > { %v1560_v42 = vld [vmem:[%s10542_s29 + $0xaa0] sm:$0xff]  ;;  %1557 = vst [vmem:[%s10547_s30 + $0x540] sm:$0xff] %v1556_v40  ;;  %1559 = vst [vmem:[%s10547_s30 + $0x548] sm:$0xff] %v1558_v41  ;;  %v1562_v43 = vld [vmem:[%s10542_s29 + $0xab0] sm:$0xff] }
  0x6a   : > { %1561 = vst [vmem:[%s10547_s30 + $0x550] sm:$0xff] %v1560_v42  ;;  %v1564_v44 = vld [vmem:[%s10542_s29 + $0xac0] sm:$0xff]  ;;  %v1566_v45 = vld [vmem:[%s10542_s29 + $0xad0] sm:$0xff]  ;;  %1563 = vst [vmem:[%s10547_s30 + $0x558] sm:$0xff] %v1562_v43 }
  0x6b   : > { %1565 = vst [vmem:[%s10547_s30 + $0x560] sm:$0xff] %v1564_v44  ;;  %1567 = vst [vmem:[%s10547_s30 + $0x568] sm:$0xff] %v1566_v45  ;;  %v1568_v46 = vld [vmem:[%s10542_s29 + $0xae0] sm:$0xff]  ;;  %v1570_v47 = vld [vmem:[%s10542_s29 + $0xaf0] sm:$0xff] }
  0x6c   : > { %v1572_v48 = vld [vmem:[%s10542_s29 + $0xb00] sm:$0xff]  ;;  %1569 = vst [vmem:[%s10547_s30 + $0x570] sm:$0xff] %v1568_v46  ;;  %1571 = vst [vmem:[%s10547_s30 + $0x578] sm:$0xff] %v1570_v47  ;;  %v1574_v49 = vld [vmem:[%s10542_s29 + $0xb10] sm:$0xff] }
  0x6d   : > { %1573 = vst [vmem:[%s10547_s30 + $0x580] sm:$0xff] %v1572_v48  ;;  %v1576_v50 = vld [vmem:[%s10542_s29 + $0xb20] sm:$0xff]  ;;  %v1578_v51 = vld [vmem:[%s10542_s29 + $0xb30] sm:$0xff]  ;;  %1575 = vst [vmem:[%s10547_s30 + $0x588] sm:$0xff] %v1574_v49 }
  0x6e   : > { %1577 = vst [vmem:[%s10547_s30 + $0x590] sm:$0xff] %v1576_v50  ;;  %1579 = vst [vmem:[%s10547_s30 + $0x598] sm:$0xff] %v1578_v51  ;;  %v1580_v52 = vld [vmem:[%s10542_s29 + $0xb40] sm:$0xff]  ;;  %v1582_v53 = vld [vmem:[%s10542_s29 + $0xb50] sm:$0xff] }
  0x6f   : > { %v1584_v54 = vld [vmem:[%s10542_s29 + $0xb60] sm:$0xff]  ;;  %1581 = vst [vmem:[%s10547_s30 + $0x5a0] sm:$0xff] %v1580_v52  ;;  %1583 = vst [vmem:[%s10547_s30 + $0x5a8] sm:$0xff] %v1582_v53  ;;  %v1586_v55 = vld [vmem:[%s10542_s29 + $0xb70] sm:$0xff] }
  0x70   : > { %1585 = vst [vmem:[%s10547_s30 + $0x5b0] sm:$0xff] %v1584_v54  ;;  %v1588_v56 = vld [vmem:[%s10542_s29 + $0xb80] sm:$0xff]  ;;  %v1590_v57 = vld [vmem:[%s10542_s29 + $0xb90] sm:$0xff]  ;;  %1587 = vst [vmem:[%s10547_s30 + $0x5b8] sm:$0xff] %v1586_v55 }
  0x71   : > { %1589 = vst [vmem:[%s10547_s30 + $0x5c0] sm:$0xff] %v1588_v56  ;;  %1591 = vst [vmem:[%s10547_s30 + $0x5c8] sm:$0xff] %v1590_v57  ;;  %v1592_v58 = vld [vmem:[%s10542_s29 + $0xba0] sm:$0xff]  ;;  %v1594_v59 = vld [vmem:[%s10542_s29 + $0xbb0] sm:$0xff] }
  0x72   : > { %v1596_v60 = vld [vmem:[%s10542_s29 + $0xbc0] sm:$0xff]  ;;  %1593 = vst [vmem:[%s10547_s30 + $0x5d0] sm:$0xff] %v1592_v58  ;;  %1595 = vst [vmem:[%s10547_s30 + $0x5d8] sm:$0xff] %v1594_v59  ;;  %v1598_v61 = vld [vmem:[%s10542_s29 + $0xbd0] sm:$0xff] }
  0x73   : > { %1597 = vst [vmem:[%s10547_s30 + $0x5e0] sm:$0xff] %v1596_v60  ;;  %v1600_v62 = vld [vmem:[%s10542_s29 + $0xbe0] sm:$0xff]  ;;  %v1602_v63 = vld [vmem:[%s10542_s29 + $0xbf0] sm:$0xff]  ;;  %1599 = vst [vmem:[%s10547_s30 + $0x5e8] sm:$0xff] %v1598_v61 }
  0x74   : > { %1601 = vst [vmem:[%s10547_s30 + $0x5f0] sm:$0xff] %v1600_v62  ;;  %1603 = vst [vmem:[%s10547_s30 + $0x5f8] sm:$0xff] %v1602_v63  ;;  %v1604_v0 = vld [vmem:[%s10542_s29 + $0xc00] sm:$0xff]  ;;  %v1606_v1 = vld [vmem:[%s10542_s29 + $0xc10] sm:$0xff] }
  0x75   : > { %v1608_v2 = vld [vmem:[%s10542_s29 + $0xc20] sm:$0xff]  ;;  %1605 = vst [vmem:[%s10547_s30 + $0x600] sm:$0xff] %v1604_v0  ;;  %1607 = vst [vmem:[%s10547_s30 + $0x608] sm:$0xff] %v1606_v1  ;;  %v1610_v3 = vld [vmem:[%s10542_s29 + $0xc30] sm:$0xff] }
  0x76   : > { %1609 = vst [vmem:[%s10547_s30 + $0x610] sm:$0xff] %v1608_v2  ;;  %v1612_v4 = vld [vmem:[%s10542_s29 + $0xc40] sm:$0xff]  ;;  %v1614_v5 = vld [vmem:[%s10542_s29 + $0xc50] sm:$0xff]  ;;  %1611 = vst [vmem:[%s10547_s30 + $0x618] sm:$0xff] %v1610_v3 }
  0x77   : > { %1613 = vst [vmem:[%s10547_s30 + $0x620] sm:$0xff] %v1612_v4  ;;  %1615 = vst [vmem:[%s10547_s30 + $0x628] sm:$0xff] %v1614_v5  ;;  %v1616_v6 = vld [vmem:[%s10542_s29 + $0xc60] sm:$0xff]  ;;  %v1618_v7 = vld [vmem:[%s10542_s29 + $0xc70] sm:$0xff] }
  0x78   : > { %v1620_v8 = vld [vmem:[%s10542_s29 + $0xc80] sm:$0xff]  ;;  %1617 = vst [vmem:[%s10547_s30 + $0x630] sm:$0xff] %v1616_v6  ;;  %1619 = vst [vmem:[%s10547_s30 + $0x638] sm:$0xff] %v1618_v7  ;;  %v1622_v9 = vld [vmem:[%s10542_s29 + $0xc90] sm:$0xff] }
  0x79   : > { %1621 = vst [vmem:[%s10547_s30 + $0x640] sm:$0xff] %v1620_v8  ;;  %v1624_v10 = vld [vmem:[%s10542_s29 + $0xca0] sm:$0xff]  ;;  %v1626_v11 = vld [vmem:[%s10542_s29 + $0xcb0] sm:$0xff]  ;;  %1623 = vst [vmem:[%s10547_s30 + $0x648] sm:$0xff] %v1622_v9 }
  0x7a   : > { %1625 = vst [vmem:[%s10547_s30 + $0x650] sm:$0xff] %v1624_v10  ;;  %1627 = vst [vmem:[%s10547_s30 + $0x658] sm:$0xff] %v1626_v11  ;;  %v1628_v12 = vld [vmem:[%s10542_s29 + $0xcc0] sm:$0xff]  ;;  %v1630_v13 = vld [vmem:[%s10542_s29 + $0xcd0] sm:$0xff] }
  0x7b   : > { %v1632_v14 = vld [vmem:[%s10542_s29 + $0xce0] sm:$0xff]  ;;  %1629 = vst [vmem:[%s10547_s30 + $0x660] sm:$0xff] %v1628_v12  ;;  %1631 = vst [vmem:[%s10547_s30 + $0x668] sm:$0xff] %v1630_v13  ;;  %v1634_v15 = vld [vmem:[%s10542_s29 + $0xcf0] sm:$0xff] }
  0x7c   : > { %1633 = vst [vmem:[%s10547_s30 + $0x670] sm:$0xff] %v1632_v14  ;;  %v1636_v16 = vld [vmem:[%s10542_s29 + $0xd00] sm:$0xff]  ;;  %v1638_v17 = vld [vmem:[%s10542_s29 + $0xd10] sm:$0xff]  ;;  %1635 = vst [vmem:[%s10547_s30 + $0x678] sm:$0xff] %v1634_v15 }
  0x7d   : > { %1637 = vst [vmem:[%s10547_s30 + $0x680] sm:$0xff] %v1636_v16  ;;  %1639 = vst [vmem:[%s10547_s30 + $0x688] sm:$0xff] %v1638_v17  ;;  %v1640_v18 = vld [vmem:[%s10542_s29 + $0xd20] sm:$0xff]  ;;  %v1642_v19 = vld [vmem:[%s10542_s29 + $0xd30] sm:$0xff] }
  0x7e   : > { %v1644_v20 = vld [vmem:[%s10542_s29 + $0xd40] sm:$0xff]  ;;  %1641 = vst [vmem:[%s10547_s30 + $0x690] sm:$0xff] %v1640_v18  ;;  %1643 = vst [vmem:[%s10547_s30 + $0x698] sm:$0xff] %v1642_v19  ;;  %v1646_v21 = vld [vmem:[%s10542_s29 + $0xd50] sm:$0xff] }
  0x7f   : > { %1645 = vst [vmem:[%s10547_s30 + $0x6a0] sm:$0xff] %v1644_v20  ;;  %v1648_v22 = vld [vmem:[%s10542_s29 + $0xd60] sm:$0xff]  ;;  %v1650_v23 = vld [vmem:[%s10542_s29 + $0xd70] sm:$0xff]  ;;  %1647 = vst [vmem:[%s10547_s30 + $0x6a8] sm:$0xff] %v1646_v21 }
  0x80   : > { %1649 = vst [vmem:[%s10547_s30 + $0x6b0] sm:$0xff] %v1648_v22  ;;  %1651 = vst [vmem:[%s10547_s30 + $0x6b8] sm:$0xff] %v1650_v23  ;;  %v1652_v24 = vld [vmem:[%s10542_s29 + $0xd80] sm:$0xff]  ;;  %v1654_v25 = vld [vmem:[%s10542_s29 + $0xd90] sm:$0xff] }
  0x81   : > { %v1656_v26 = vld [vmem:[%s10542_s29 + $0xda0] sm:$0xff]  ;;  %1653 = vst [vmem:[%s10547_s30 + $0x6c0] sm:$0xff] %v1652_v24  ;;  %1655 = vst [vmem:[%s10547_s30 + $0x6c8] sm:$0xff] %v1654_v25  ;;  %v1658_v27 = vld [vmem:[%s10542_s29 + $0xdb0] sm:$0xff] }
  0x82   : > { %1657 = vst [vmem:[%s10547_s30 + $0x6d0] sm:$0xff] %v1656_v26  ;;  %v1660_v28 = vld [vmem:[%s10542_s29 + $0xdc0] sm:$0xff]  ;;  %v1662_v29 = vld [vmem:[%s10542_s29 + $0xdd0] sm:$0xff]  ;;  %1659 = vst [vmem:[%s10547_s30 + $0x6d8] sm:$0xff] %v1658_v27 }
  0x83   : > { %1661 = vst [vmem:[%s10547_s30 + $0x6e0] sm:$0xff] %v1660_v28  ;;  %1663 = vst [vmem:[%s10547_s30 + $0x6e8] sm:$0xff] %v1662_v29  ;;  %v1664_v30 = vld [vmem:[%s10542_s29 + $0xde0] sm:$0xff]  ;;  %v1666_v31 = vld [vmem:[%s10542_s29 + $0xdf0] sm:$0xff] }
  0x84   : > { %v1668_v32 = vld [vmem:[%s10542_s29 + $0xe00] sm:$0xff]  ;;  %1665 = vst [vmem:[%s10547_s30 + $0x6f0] sm:$0xff] %v1664_v30  ;;  %1667 = vst [vmem:[%s10547_s30 + $0x6f8] sm:$0xff] %v1666_v31  ;;  %v1670_v33 = vld [vmem:[%s10542_s29 + $0xe10] sm:$0xff] }
  0x85   : > { %1669 = vst [vmem:[%s10547_s30 + $0x700] sm:$0xff] %v1668_v32  ;;  %v1672_v34 = vld [vmem:[%s10542_s29 + $0xe20] sm:$0xff]  ;;  %v1674_v35 = vld [vmem:[%s10542_s29 + $0xe30] sm:$0xff]  ;;  %1671 = vst [vmem:[%s10547_s30 + $0x708] sm:$0xff] %v1670_v33 }
  0x86   : > { %1673 = vst [vmem:[%s10547_s30 + $0x710] sm:$0xff] %v1672_v34  ;;  %1675 = vst [vmem:[%s10547_s30 + $0x718] sm:$0xff] %v1674_v35  ;;  %v1676_v36 = vld [vmem:[%s10542_s29 + $0xe40] sm:$0xff]  ;;  %v1678_v37 = vld [vmem:[%s10542_s29 + $0xe50] sm:$0xff] }
  0x87   : > { %v1680_v38 = vld [vmem:[%s10542_s29 + $0xe60] sm:$0xff]  ;;  %1677 = vst [vmem:[%s10547_s30 + $0x720] sm:$0xff] %v1676_v36  ;;  %1679 = vst [vmem:[%s10547_s30 + $0x728] sm:$0xff] %v1678_v37  ;;  %v1682_v39 = vld [vmem:[%s10542_s29 + $0xe70] sm:$0xff] }
  0x88   : > { %1681 = vst [vmem:[%s10547_s30 + $0x730] sm:$0xff] %v1680_v38  ;;  %v1684_v40 = vld [vmem:[%s10542_s29 + $0xe80] sm:$0xff]  ;;  %v1686_v41 = vld [vmem:[%s10542_s29 + $0xe90] sm:$0xff]  ;;  %1683 = vst [vmem:[%s10547_s30 + $0x738] sm:$0xff] %v1682_v39 }
  0x89   : > { %1685 = vst [vmem:[%s10547_s30 + $0x740] sm:$0xff] %v1684_v40  ;;  %1687 = vst [vmem:[%s10547_s30 + $0x748] sm:$0xff] %v1686_v41  ;;  %v1688_v42 = vld [vmem:[%s10542_s29 + $0xea0] sm:$0xff]  ;;  %v1690_v43 = vld [vmem:[%s10542_s29 + $0xeb0] sm:$0xff] }
  0x8a   : > { %v1692_v44 = vld [vmem:[%s10542_s29 + $0xec0] sm:$0xff]  ;;  %1689 = vst [vmem:[%s10547_s30 + $0x750] sm:$0xff] %v1688_v42  ;;  %1691 = vst [vmem:[%s10547_s30 + $0x758] sm:$0xff] %v1690_v43  ;;  %v1694_v45 = vld [vmem:[%s10542_s29 + $0xed0] sm:$0xff] }
  0x8b   : > { %1693 = vst [vmem:[%s10547_s30 + $0x760] sm:$0xff] %v1692_v44  ;;  %v1696_v46 = vld [vmem:[%s10542_s29 + $0xee0] sm:$0xff]  ;;  %v1698_v47 = vld [vmem:[%s10542_s29 + $0xef0] sm:$0xff]  ;;  %1695 = vst [vmem:[%s10547_s30 + $0x768] sm:$0xff] %v1694_v45 }
  0x8c   : > { %1697 = vst [vmem:[%s10547_s30 + $0x770] sm:$0xff] %v1696_v46  ;;  %1699 = vst [vmem:[%s10547_s30 + $0x778] sm:$0xff] %v1698_v47  ;;  %v1700_v48 = vld [vmem:[%s10542_s29 + $0xf00] sm:$0xff]  ;;  %v1702_v49 = vld [vmem:[%s10542_s29 + $0xf10] sm:$0xff] }
  0x8d   : > { %v1704_v50 = vld [vmem:[%s10542_s29 + $0xf20] sm:$0xff]  ;;  %1701 = vst [vmem:[%s10547_s30 + $0x780] sm:$0xff] %v1700_v48  ;;  %1703 = vst [vmem:[%s10547_s30 + $0x788] sm:$0xff] %v1702_v49  ;;  %v1706_v51 = vld [vmem:[%s10542_s29 + $0xf30] sm:$0xff] }
  0x8e   : > { %1705 = vst [vmem:[%s10547_s30 + $0x790] sm:$0xff] %v1704_v50  ;;  %v1708_v52 = vld [vmem:[%s10542_s29 + $0xf40] sm:$0xff]  ;;  %v1710_v53 = vld [vmem:[%s10542_s29 + $0xf50] sm:$0xff]  ;;  %1707 = vst [vmem:[%s10547_s30 + $0x798] sm:$0xff] %v1706_v51 }
  0x8f   : > { %1709 = vst [vmem:[%s10547_s30 + $0x7a0] sm:$0xff] %v1708_v52  ;;  %1711 = vst [vmem:[%s10547_s30 + $0x7a8] sm:$0xff] %v1710_v53  ;;  %v1712_v54 = vld [vmem:[%s10542_s29 + $0xf60] sm:$0xff]  ;;  %v1714_v55 = vld [vmem:[%s10542_s29 + $0xf70] sm:$0xff] }
  0x90   : > { %v1716_v56 = vld [vmem:[%s10542_s29 + $0xf80] sm:$0xff]  ;;  %1713 = vst [vmem:[%s10547_s30 + $0x7b0] sm:$0xff] %v1712_v54  ;;  %1715 = vst [vmem:[%s10547_s30 + $0x7b8] sm:$0xff] %v1714_v55  ;;  %v1718_v57 = vld [vmem:[%s10542_s29 + $0xf90] sm:$0xff] }
  0x91   : > { %1717 = vst [vmem:[%s10547_s30 + $0x7c0] sm:$0xff] %v1716_v56  ;;  %v1720_v58 = vld [vmem:[%s10542_s29 + $0xfa0] sm:$0xff]  ;;  %v1722_v59 = vld [vmem:[%s10542_s29 + $0xfb0] sm:$0xff]  ;;  %1719 = vst [vmem:[%s10547_s30 + $0x7c8] sm:$0xff] %v1718_v57 }
  0x92   : > { %1721 = vst [vmem:[%s10547_s30 + $0x7d0] sm:$0xff] %v1720_v58  ;;  %1723 = vst [vmem:[%s10547_s30 + $0x7d8] sm:$0xff] %v1722_v59  ;;  %v1724_v60 = vld [vmem:[%s10542_s29 + $0xfc0] sm:$0xff]  ;;  %v1726_v61 = vld [vmem:[%s10542_s29 + $0xfd0] sm:$0xff] }
  0x93   : > { %v1728_v62 = vld [vmem:[%s10542_s29 + $0xfe0] sm:$0xff]  ;;  %1725 = vst [vmem:[%s10547_s30 + $0x7e0] sm:$0xff] %v1724_v60  ;;  %1727 = vst [vmem:[%s10547_s30 + $0x7e8] sm:$0xff] %v1726_v61  ;;  %v1730_v63 = vld [vmem:[%s10542_s29 + $0xff0] sm:$0xff] }
  0x94   : > { %1729 = vst [vmem:[%s10547_s30 + $0x7f0] sm:$0xff] %v1728_v62  ;;  %v1732_v0 = vld [vmem:[%s10542_s29 + $0x1000] sm:$0xff]  ;;  %v1734_v1 = vld [vmem:[%s10542_s29 + $0x1010] sm:$0xff]  ;;  %1731 = vst [vmem:[%s10547_s30 + $0x7f8] sm:$0xff] %v1730_v63 }
  0x95   : > { %1733 = vst [vmem:[%s10547_s30 + $0x800] sm:$0xff] %v1732_v0  ;;  %1735 = vst [vmem:[%s10547_s30 + $0x808] sm:$0xff] %v1734_v1  ;;  %v1736_v2 = vld [vmem:[%s10542_s29 + $0x1020] sm:$0xff]  ;;  %v1738_v3 = vld [vmem:[%s10542_s29 + $0x1030] sm:$0xff] }
  0x96   : > { %v1740_v4 = vld [vmem:[%s10542_s29 + $0x1040] sm:$0xff]  ;;  %1737 = vst [vmem:[%s10547_s30 + $0x810] sm:$0xff] %v1736_v2  ;;  %1739 = vst [vmem:[%s10547_s30 + $0x818] sm:$0xff] %v1738_v3  ;;  %v1742_v5 = vld [vmem:[%s10542_s29 + $0x1050] sm:$0xff] }
  0x97   : > { %1741 = vst [vmem:[%s10547_s30 + $0x820] sm:$0xff] %v1740_v4  ;;  %v1744_v6 = vld [vmem:[%s10542_s29 + $0x1060] sm:$0xff]  ;;  %v1746_v7 = vld [vmem:[%s10542_s29 + $0x1070] sm:$0xff]  ;;  %1743 = vst [vmem:[%s10547_s30 + $0x828] sm:$0xff] %v1742_v5 }
  0x98   : > { %1745 = vst [vmem:[%s10547_s30 + $0x830] sm:$0xff] %v1744_v6  ;;  %1747 = vst [vmem:[%s10547_s30 + $0x838] sm:$0xff] %v1746_v7  ;;  %v1748_v8 = vld [vmem:[%s10542_s29 + $0x1080] sm:$0xff]  ;;  %v1750_v9 = vld [vmem:[%s10542_s29 + $0x1090] sm:$0xff] }
  0x99   : > { %v1752_v10 = vld [vmem:[%s10542_s29 + $0x10a0] sm:$0xff]  ;;  %1749 = vst [vmem:[%s10547_s30 + $0x840] sm:$0xff] %v1748_v8  ;;  %1751 = vst [vmem:[%s10547_s30 + $0x848] sm:$0xff] %v1750_v9  ;;  %v1754_v11 = vld [vmem:[%s10542_s29 + $0x10b0] sm:$0xff] }
  0x9a   : > { %1753 = vst [vmem:[%s10547_s30 + $0x850] sm:$0xff] %v1752_v10  ;;  %v1756_v12 = vld [vmem:[%s10542_s29 + $0x10c0] sm:$0xff]  ;;  %v1758_v13 = vld [vmem:[%s10542_s29 + $0x10d0] sm:$0xff]  ;;  %1755 = vst [vmem:[%s10547_s30 + $0x858] sm:$0xff] %v1754_v11 }
  0x9b   : > { %1757 = vst [vmem:[%s10547_s30 + $0x860] sm:$0xff] %v1756_v12  ;;  %1759 = vst [vmem:[%s10547_s30 + $0x868] sm:$0xff] %v1758_v13  ;;  %v1760_v14 = vld [vmem:[%s10542_s29 + $0x10e0] sm:$0xff]  ;;  %v1762_v15 = vld [vmem:[%s10542_s29 + $0x10f0] sm:$0xff] }
  0x9c   : > { %v1764_v16 = vld [vmem:[%s10542_s29 + $0x1100] sm:$0xff]  ;;  %1761 = vst [vmem:[%s10547_s30 + $0x870] sm:$0xff] %v1760_v14  ;;  %1763 = vst [vmem:[%s10547_s30 + $0x878] sm:$0xff] %v1762_v15  ;;  %v1766_v17 = vld [vmem:[%s10542_s29 + $0x1110] sm:$0xff] }
  0x9d   : > { %1765 = vst [vmem:[%s10547_s30 + $0x880] sm:$0xff] %v1764_v16  ;;  %v1768_v18 = vld [vmem:[%s10542_s29 + $0x1120] sm:$0xff]  ;;  %v1770_v19 = vld [vmem:[%s10542_s29 + $0x1130] sm:$0xff]  ;;  %1767 = vst [vmem:[%s10547_s30 + $0x888] sm:$0xff] %v1766_v17 }
  0x9e   : > { %1769 = vst [vmem:[%s10547_s30 + $0x890] sm:$0xff] %v1768_v18  ;;  %1771 = vst [vmem:[%s10547_s30 + $0x898] sm:$0xff] %v1770_v19  ;;  %v1772_v20 = vld [vmem:[%s10542_s29 + $0x1140] sm:$0xff]  ;;  %v1774_v21 = vld [vmem:[%s10542_s29 + $0x1150] sm:$0xff] }
  0x9f   : > { %v1776_v22 = vld [vmem:[%s10542_s29 + $0x1160] sm:$0xff]  ;;  %1773 = vst [vmem:[%s10547_s30 + $0x8a0] sm:$0xff] %v1772_v20  ;;  %1775 = vst [vmem:[%s10547_s30 + $0x8a8] sm:$0xff] %v1774_v21  ;;  %v1778_v23 = vld [vmem:[%s10542_s29 + $0x1170] sm:$0xff] }
  0xa0   : > { %1777 = vst [vmem:[%s10547_s30 + $0x8b0] sm:$0xff] %v1776_v22  ;;  %v1780_v24 = vld [vmem:[%s10542_s29 + $0x1180] sm:$0xff]  ;;  %v1782_v25 = vld [vmem:[%s10542_s29 + $0x1190] sm:$0xff]  ;;  %1779 = vst [vmem:[%s10547_s30 + $0x8b8] sm:$0xff] %v1778_v23 }
  0xa1   : > { %1781 = vst [vmem:[%s10547_s30 + $0x8c0] sm:$0xff] %v1780_v24  ;;  %1783 = vst [vmem:[%s10547_s30 + $0x8c8] sm:$0xff] %v1782_v25  ;;  %v1784_v26 = vld [vmem:[%s10542_s29 + $0x11a0] sm:$0xff]  ;;  %v1786_v27 = vld [vmem:[%s10542_s29 + $0x11b0] sm:$0xff] }
  0xa2   : > { %v1788_v28 = vld [vmem:[%s10542_s29 + $0x11c0] sm:$0xff]  ;;  %1785 = vst [vmem:[%s10547_s30 + $0x8d0] sm:$0xff] %v1784_v26  ;;  %1787 = vst [vmem:[%s10547_s30 + $0x8d8] sm:$0xff] %v1786_v27  ;;  %v1790_v29 = vld [vmem:[%s10542_s29 + $0x11d0] sm:$0xff] }
  0xa3   : > { %1789 = vst [vmem:[%s10547_s30 + $0x8e0] sm:$0xff] %v1788_v28  ;;  %v1792_v30 = vld [vmem:[%s10542_s29 + $0x11e0] sm:$0xff]  ;;  %v1794_v31 = vld [vmem:[%s10542_s29 + $0x11f0] sm:$0xff]  ;;  %1791 = vst [vmem:[%s10547_s30 + $0x8e8] sm:$0xff] %v1790_v29 }
  0xa4   : > { %1793 = vst [vmem:[%s10547_s30 + $0x8f0] sm:$0xff] %v1792_v30  ;;  %1795 = vst [vmem:[%s10547_s30 + $0x8f8] sm:$0xff] %v1794_v31  ;;  %v1796_v32 = vld [vmem:[%s10542_s29 + $0x1200] sm:$0xff]  ;;  %v1798_v33 = vld [vmem:[%s10542_s29 + $0x1210] sm:$0xff] }
  0xa5   : > { %v1800_v34 = vld [vmem:[%s10542_s29 + $0x1220] sm:$0xff]  ;;  %1797 = vst [vmem:[%s10547_s30 + $0x900] sm:$0xff] %v1796_v32  ;;  %1799 = vst [vmem:[%s10547_s30 + $0x908] sm:$0xff] %v1798_v33  ;;  %v1802_v35 = vld [vmem:[%s10542_s29 + $0x1230] sm:$0xff] }
  0xa6   : > { %1801 = vst [vmem:[%s10547_s30 + $0x910] sm:$0xff] %v1800_v34  ;;  %v1804_v36 = vld [vmem:[%s10542_s29 + $0x1240] sm:$0xff]  ;;  %v1806_v37 = vld [vmem:[%s10542_s29 + $0x1250] sm:$0xff]  ;;  %1803 = vst [vmem:[%s10547_s30 + $0x918] sm:$0xff] %v1802_v35 }
  0xa7   : > { %1805 = vst [vmem:[%s10547_s30 + $0x920] sm:$0xff] %v1804_v36  ;;  %1807 = vst [vmem:[%s10547_s30 + $0x928] sm:$0xff] %v1806_v37  ;;  %v1808_v38 = vld [vmem:[%s10542_s29 + $0x1260] sm:$0xff]  ;;  %v1810_v39 = vld [vmem:[%s10542_s29 + $0x1270] sm:$0xff] }
  0xa8   : > { %v1812_v40 = vld [vmem:[%s10542_s29 + $0x1280] sm:$0xff]  ;;  %1809 = vst [vmem:[%s10547_s30 + $0x930] sm:$0xff] %v1808_v38  ;;  %1811 = vst [vmem:[%s10547_s30 + $0x938] sm:$0xff] %v1810_v39  ;;  %v1814_v41 = vld [vmem:[%s10542_s29 + $0x1290] sm:$0xff] }
  0xa9   : > { %1813 = vst [vmem:[%s10547_s30 + $0x940] sm:$0xff] %v1812_v40  ;;  %v1816_v42 = vld [vmem:[%s10542_s29 + $0x12a0] sm:$0xff]  ;;  %v1818_v43 = vld [vmem:[%s10542_s29 + $0x12b0] sm:$0xff]  ;;  %1815 = vst [vmem:[%s10547_s30 + $0x948] sm:$0xff] %v1814_v41 }
  0xaa   : > { %1817 = vst [vmem:[%s10547_s30 + $0x950] sm:$0xff] %v1816_v42  ;;  %1819 = vst [vmem:[%s10547_s30 + $0x958] sm:$0xff] %v1818_v43  ;;  %v1820_v44 = vld [vmem:[%s10542_s29 + $0x12c0] sm:$0xff]  ;;  %v1822_v45 = vld [vmem:[%s10542_s29 + $0x12d0] sm:$0xff] }
  0xab   : > { %v1824_v46 = vld [vmem:[%s10542_s29 + $0x12e0] sm:$0xff]  ;;  %1821 = vst [vmem:[%s10547_s30 + $0x960] sm:$0xff] %v1820_v44  ;;  %1823 = vst [vmem:[%s10547_s30 + $0x968] sm:$0xff] %v1822_v45  ;;  %v1826_v47 = vld [vmem:[%s10542_s29 + $0x12f0] sm:$0xff] }
  0xac   : > { %1825 = vst [vmem:[%s10547_s30 + $0x970] sm:$0xff] %v1824_v46  ;;  %v1828_v48 = vld [vmem:[%s10542_s29 + $0x1300] sm:$0xff]  ;;  %v1830_v49 = vld [vmem:[%s10542_s29 + $0x1310] sm:$0xff]  ;;  %1827 = vst [vmem:[%s10547_s30 + $0x978] sm:$0xff] %v1826_v47 }
  0xad   : > { %1829 = vst [vmem:[%s10547_s30 + $0x980] sm:$0xff] %v1828_v48  ;;  %1831 = vst [vmem:[%s10547_s30 + $0x988] sm:$0xff] %v1830_v49  ;;  %v1832_v50 = vld [vmem:[%s10542_s29 + $0x1320] sm:$0xff]  ;;  %v1834_v51 = vld [vmem:[%s10542_s29 + $0x1330] sm:$0xff] }
  0xae   : > { %v1836_v52 = vld [vmem:[%s10542_s29 + $0x1340] sm:$0xff]  ;;  %1833 = vst [vmem:[%s10547_s30 + $0x990] sm:$0xff] %v1832_v50  ;;  %1835 = vst [vmem:[%s10547_s30 + $0x998] sm:$0xff] %v1834_v51  ;;  %v1838_v53 = vld [vmem:[%s10542_s29 + $0x1350] sm:$0xff] }
  0xaf   : > { %1837 = vst [vmem:[%s10547_s30 + $0x9a0] sm:$0xff] %v1836_v52  ;;  %v1840_v54 = vld [vmem:[%s10542_s29 + $0x1360] sm:$0xff]  ;;  %v1842_v55 = vld [vmem:[%s10542_s29 + $0x1370] sm:$0xff]  ;;  %1839 = vst [vmem:[%s10547_s30 + $0x9a8] sm:$0xff] %v1838_v53 }
  0xb0   : > { %1841 = vst [vmem:[%s10547_s30 + $0x9b0] sm:$0xff] %v1840_v54  ;;  %1843 = vst [vmem:[%s10547_s30 + $0x9b8] sm:$0xff] %v1842_v55  ;;  %v1844_v56 = vld [vmem:[%s10542_s29 + $0x1380] sm:$0xff]  ;;  %v1846_v57 = vld [vmem:[%s10542_s29 + $0x1390] sm:$0xff] }
  0xb1   : > { %v1848_v58 = vld [vmem:[%s10542_s29 + $0x13a0] sm:$0xff]  ;;  %1845 = vst [vmem:[%s10547_s30 + $0x9c0] sm:$0xff] %v1844_v56  ;;  %1847 = vst [vmem:[%s10547_s30 + $0x9c8] sm:$0xff] %v1846_v57  ;;  %v1850_v59 = vld [vmem:[%s10542_s29 + $0x13b0] sm:$0xff] }
  0xb2   : > { %1849 = vst [vmem:[%s10547_s30 + $0x9d0] sm:$0xff] %v1848_v58  ;;  %v1852_v60 = vld [vmem:[%s10542_s29 + $0x13c0] sm:$0xff]  ;;  %v1854_v61 = vld [vmem:[%s10542_s29 + $0x13d0] sm:$0xff]  ;;  %1851 = vst [vmem:[%s10547_s30 + $0x9d8] sm:$0xff] %v1850_v59 }
  0xb3   : > { %1853 = vst [vmem:[%s10547_s30 + $0x9e0] sm:$0xff] %v1852_v60  ;;  %1855 = vst [vmem:[%s10547_s30 + $0x9e8] sm:$0xff] %v1854_v61  ;;  %v1856_v62 = vld [vmem:[%s10542_s29 + $0x13e0] sm:$0xff]  ;;  %v1858_v63 = vld [vmem:[%s10542_s29 + $0x13f0] sm:$0xff] }
  0xb4   : > { %v1860_v0 = vld [vmem:[%s10542_s29 + $0x1400] sm:$0xff]  ;;  %1857 = vst [vmem:[%s10547_s30 + $0x9f0] sm:$0xff] %v1856_v62  ;;  %1859 = vst [vmem:[%s10547_s30 + $0x9f8] sm:$0xff] %v1858_v63  ;;  %v1862_v1 = vld [vmem:[%s10542_s29 + $0x1410] sm:$0xff] }
  0xb5   : > { %1861 = vst [vmem:[%s10547_s30 + $0xa00] sm:$0xff] %v1860_v0  ;;  %v1864_v2 = vld [vmem:[%s10542_s29 + $0x1420] sm:$0xff]  ;;  %v1866_v3 = vld [vmem:[%s10542_s29 + $0x1430] sm:$0xff]  ;;  %1863 = vst [vmem:[%s10547_s30 + $0xa08] sm:$0xff] %v1862_v1 }
  0xb6   : > { %1865 = vst [vmem:[%s10547_s30 + $0xa10] sm:$0xff] %v1864_v2  ;;  %1867 = vst [vmem:[%s10547_s30 + $0xa18] sm:$0xff] %v1866_v3  ;;  %v1868_v4 = vld [vmem:[%s10542_s29 + $0x1440] sm:$0xff]  ;;  %v1870_v5 = vld [vmem:[%s10542_s29 + $0x1450] sm:$0xff] }
  0xb7   : > { %v1872_v6 = vld [vmem:[%s10542_s29 + $0x1460] sm:$0xff]  ;;  %1869 = vst [vmem:[%s10547_s30 + $0xa20] sm:$0xff] %v1868_v4  ;;  %1871 = vst [vmem:[%s10547_s30 + $0xa28] sm:$0xff] %v1870_v5  ;;  %v1874_v7 = vld [vmem:[%s10542_s29 + $0x1470] sm:$0xff] }
  0xb8   : > { %1873 = vst [vmem:[%s10547_s30 + $0xa30] sm:$0xff] %v1872_v6  ;;  %v1876_v8 = vld [vmem:[%s10542_s29 + $0x1480] sm:$0xff]  ;;  %v1878_v9 = vld [vmem:[%s10542_s29 + $0x1490] sm:$0xff]  ;;  %1875 = vst [vmem:[%s10547_s30 + $0xa38] sm:$0xff] %v1874_v7 }
  0xb9   : > { %1877 = vst [vmem:[%s10547_s30 + $0xa40] sm:$0xff] %v1876_v8  ;;  %1879 = vst [vmem:[%s10547_s30 + $0xa48] sm:$0xff] %v1878_v9  ;;  %v1880_v10 = vld [vmem:[%s10542_s29 + $0x14a0] sm:$0xff]  ;;  %v1882_v11 = vld [vmem:[%s10542_s29 + $0x14b0] sm:$0xff] }
  0xba   : > { %v1884_v12 = vld [vmem:[%s10542_s29 + $0x14c0] sm:$0xff]  ;;  %1881 = vst [vmem:[%s10547_s30 + $0xa50] sm:$0xff] %v1880_v10  ;;  %1883 = vst [vmem:[%s10547_s30 + $0xa58] sm:$0xff] %v1882_v11  ;;  %v1886_v13 = vld [vmem:[%s10542_s29 + $0x14d0] sm:$0xff] }
  0xbb   : > { %1885 = vst [vmem:[%s10547_s30 + $0xa60] sm:$0xff] %v1884_v12  ;;  %v1888_v14 = vld [vmem:[%s10542_s29 + $0x14e0] sm:$0xff]  ;;  %v1890_v15 = vld [vmem:[%s10542_s29 + $0x14f0] sm:$0xff]  ;;  %1887 = vst [vmem:[%s10547_s30 + $0xa68] sm:$0xff] %v1886_v13 }
  0xbc   : > { %1889 = vst [vmem:[%s10547_s30 + $0xa70] sm:$0xff] %v1888_v14  ;;  %1891 = vst [vmem:[%s10547_s30 + $0xa78] sm:$0xff] %v1890_v15  ;;  %v1892_v16 = vld [vmem:[%s10542_s29 + $0x1500] sm:$0xff]  ;;  %v1894_v17 = vld [vmem:[%s10542_s29 + $0x1510] sm:$0xff] }
  0xbd   : > { %v1896_v18 = vld [vmem:[%s10542_s29 + $0x1520] sm:$0xff]  ;;  %1893 = vst [vmem:[%s10547_s30 + $0xa80] sm:$0xff] %v1892_v16  ;;  %1895 = vst [vmem:[%s10547_s30 + $0xa88] sm:$0xff] %v1894_v17  ;;  %v1898_v19 = vld [vmem:[%s10542_s29 + $0x1530] sm:$0xff] }
  0xbe   : > { %1897 = vst [vmem:[%s10547_s30 + $0xa90] sm:$0xff] %v1896_v18  ;;  %v1900_v20 = vld [vmem:[%s10542_s29 + $0x1540] sm:$0xff]  ;;  %v1902_v21 = vld [vmem:[%s10542_s29 + $0x1550] sm:$0xff]  ;;  %1899 = vst [vmem:[%s10547_s30 + $0xa98] sm:$0xff] %v1898_v19 }
  0xbf   : > { %1901 = vst [vmem:[%s10547_s30 + $0xaa0] sm:$0xff] %v1900_v20  ;;  %1903 = vst [vmem:[%s10547_s30 + $0xaa8] sm:$0xff] %v1902_v21  ;;  %v1904_v22 = vld [vmem:[%s10542_s29 + $0x1560] sm:$0xff]  ;;  %v1906_v23 = vld [vmem:[%s10542_s29 + $0x1570] sm:$0xff] }
  0xc0   : > { %v1908_v24 = vld [vmem:[%s10542_s29 + $0x1580] sm:$0xff]  ;;  %1905 = vst [vmem:[%s10547_s30 + $0xab0] sm:$0xff] %v1904_v22  ;;  %1907 = vst [vmem:[%s10547_s30 + $0xab8] sm:$0xff] %v1906_v23  ;;  %v1910_v25 = vld [vmem:[%s10542_s29 + $0x1590] sm:$0xff] }
  0xc1   : > { %1909 = vst [vmem:[%s10547_s30 + $0xac0] sm:$0xff] %v1908_v24  ;;  %v1912_v26 = vld [vmem:[%s10542_s29 + $0x15a0] sm:$0xff]  ;;  %v1914_v27 = vld [vmem:[%s10542_s29 + $0x15b0] sm:$0xff]  ;;  %1911 = vst [vmem:[%s10547_s30 + $0xac8] sm:$0xff] %v1910_v25 }
  0xc2   : > { %1913 = vst [vmem:[%s10547_s30 + $0xad0] sm:$0xff] %v1912_v26  ;;  %1915 = vst [vmem:[%s10547_s30 + $0xad8] sm:$0xff] %v1914_v27  ;;  %v1916_v28 = vld [vmem:[%s10542_s29 + $0x15c0] sm:$0xff]  ;;  %v1918_v29 = vld [vmem:[%s10542_s29 + $0x15d0] sm:$0xff] }
  0xc3   : > { %v1920_v30 = vld [vmem:[%s10542_s29 + $0x15e0] sm:$0xff]  ;;  %1917 = vst [vmem:[%s10547_s30 + $0xae0] sm:$0xff] %v1916_v28  ;;  %1919 = vst [vmem:[%s10547_s30 + $0xae8] sm:$0xff] %v1918_v29  ;;  %v1922_v31 = vld [vmem:[%s10542_s29 + $0x15f0] sm:$0xff] }
  0xc4   : > { %1921 = vst [vmem:[%s10547_s30 + $0xaf0] sm:$0xff] %v1920_v30  ;;  %v1924_v32 = vld [vmem:[%s10542_s29 + $0x1600] sm:$0xff]  ;;  %v1926_v33 = vld [vmem:[%s10542_s29 + $0x1610] sm:$0xff]  ;;  %1923 = vst [vmem:[%s10547_s30 + $0xaf8] sm:$0xff] %v1922_v31 }
  0xc5   : > { %1925 = vst [vmem:[%s10547_s30 + $0xb00] sm:$0xff] %v1924_v32  ;;  %1927 = vst [vmem:[%s10547_s30 + $0xb08] sm:$0xff] %v1926_v33  ;;  %v1928_v34 = vld [vmem:[%s10542_s29 + $0x1620] sm:$0xff]  ;;  %v1930_v35 = vld [vmem:[%s10542_s29 + $0x1630] sm:$0xff] }
  0xc6   : > { %v1932_v36 = vld [vmem:[%s10542_s29 + $0x1640] sm:$0xff]  ;;  %1929 = vst [vmem:[%s10547_s30 + $0xb10] sm:$0xff] %v1928_v34  ;;  %1931 = vst [vmem:[%s10547_s30 + $0xb18] sm:$0xff] %v1930_v35  ;;  %v1934_v37 = vld [vmem:[%s10542_s29 + $0x1650] sm:$0xff] }
  0xc7   : > { %1933 = vst [vmem:[%s10547_s30 + $0xb20] sm:$0xff] %v1932_v36  ;;  %v1936_v38 = vld [vmem:[%s10542_s29 + $0x1660] sm:$0xff]  ;;  %v1938_v39 = vld [vmem:[%s10542_s29 + $0x1670] sm:$0xff]  ;;  %1935 = vst [vmem:[%s10547_s30 + $0xb28] sm:$0xff] %v1934_v37 }
  0xc8   : > { %1937 = vst [vmem:[%s10547_s30 + $0xb30] sm:$0xff] %v1936_v38  ;;  %1939 = vst [vmem:[%s10547_s30 + $0xb38] sm:$0xff] %v1938_v39  ;;  %v1940_v40 = vld [vmem:[%s10542_s29 + $0x1680] sm:$0xff]  ;;  %v1942_v41 = vld [vmem:[%s10542_s29 + $0x1690] sm:$0xff] }
  0xc9   : > { %v1944_v42 = vld [vmem:[%s10542_s29 + $0x16a0] sm:$0xff]  ;;  %1941 = vst [vmem:[%s10547_s30 + $0xb40] sm:$0xff] %v1940_v40  ;;  %1943 = vst [vmem:[%s10547_s30 + $0xb48] sm:$0xff] %v1942_v41  ;;  %v1946_v43 = vld [vmem:[%s10542_s29 + $0x16b0] sm:$0xff] }
  0xca   : > { %1945 = vst [vmem:[%s10547_s30 + $0xb50] sm:$0xff] %v1944_v42  ;;  %v1948_v44 = vld [vmem:[%s10542_s29 + $0x16c0] sm:$0xff]  ;;  %v1950_v45 = vld [vmem:[%s10542_s29 + $0x16d0] sm:$0xff]  ;;  %1947 = vst [vmem:[%s10547_s30 + $0xb58] sm:$0xff] %v1946_v43 }
  0xcb   : > { %1949 = vst [vmem:[%s10547_s30 + $0xb60] sm:$0xff] %v1948_v44  ;;  %1951 = vst [vmem:[%s10547_s30 + $0xb68] sm:$0xff] %v1950_v45  ;;  %v1952_v46 = vld [vmem:[%s10542_s29 + $0x16e0] sm:$0xff]  ;;  %v1954_v47 = vld [vmem:[%s10542_s29 + $0x16f0] sm:$0xff] }
  0xcc   : > { %v1956_v48 = vld [vmem:[%s10542_s29 + $0x1700] sm:$0xff]  ;;  %1953 = vst [vmem:[%s10547_s30 + $0xb70] sm:$0xff] %v1952_v46  ;;  %1955 = vst [vmem:[%s10547_s30 + $0xb78] sm:$0xff] %v1954_v47  ;;  %v1958_v49 = vld [vmem:[%s10542_s29 + $0x1710] sm:$0xff] }
  0xcd   : > { %1957 = vst [vmem:[%s10547_s30 + $0xb80] sm:$0xff] %v1956_v48  ;;  %v1960_v50 = vld [vmem:[%s10542_s29 + $0x1720] sm:$0xff]  ;;  %v1962_v51 = vld [vmem:[%s10542_s29 + $0x1730] sm:$0xff]  ;;  %1959 = vst [vmem:[%s10547_s30 + $0xb88] sm:$0xff] %v1958_v49 }
  0xce   : > { %1961 = vst [vmem:[%s10547_s30 + $0xb90] sm:$0xff] %v1960_v50  ;;  %1963 = vst [vmem:[%s10547_s30 + $0xb98] sm:$0xff] %v1962_v51  ;;  %v1964_v52 = vld [vmem:[%s10542_s29 + $0x1740] sm:$0xff]  ;;  %v1966_v53 = vld [vmem:[%s10542_s29 + $0x1750] sm:$0xff] }
  0xcf   : > { %v1968_v54 = vld [vmem:[%s10542_s29 + $0x1760] sm:$0xff]  ;;  %1965 = vst [vmem:[%s10547_s30 + $0xba0] sm:$0xff] %v1964_v52  ;;  %1967 = vst [vmem:[%s10547_s30 + $0xba8] sm:$0xff] %v1966_v53  ;;  %v1970_v55 = vld [vmem:[%s10542_s29 + $0x1770] sm:$0xff] }
  0xd0   : > { %1969 = vst [vmem:[%s10547_s30 + $0xbb0] sm:$0xff] %v1968_v54  ;;  %v1972_v56 = vld [vmem:[%s10542_s29 + $0x1780] sm:$0xff]  ;;  %v1974_v57 = vld [vmem:[%s10542_s29 + $0x1790] sm:$0xff]  ;;  %1971 = vst [vmem:[%s10547_s30 + $0xbb8] sm:$0xff] %v1970_v55 }
  0xd1   : > { %1973 = vst [vmem:[%s10547_s30 + $0xbc0] sm:$0xff] %v1972_v56  ;;  %1975 = vst [vmem:[%s10547_s30 + $0xbc8] sm:$0xff] %v1974_v57  ;;  %v1976_v58 = vld [vmem:[%s10542_s29 + $0x17a0] sm:$0xff]  ;;  %v1978_v59 = vld [vmem:[%s10542_s29 + $0x17b0] sm:$0xff] }
  0xd2   : > { %v1980_v60 = vld [vmem:[%s10542_s29 + $0x17c0] sm:$0xff]  ;;  %1977 = vst [vmem:[%s10547_s30 + $0xbd0] sm:$0xff] %v1976_v58  ;;  %1979 = vst [vmem:[%s10547_s30 + $0xbd8] sm:$0xff] %v1978_v59  ;;  %v1982_v61 = vld [vmem:[%s10542_s29 + $0x17d0] sm:$0xff] }
  0xd3   : > { %1981 = vst [vmem:[%s10547_s30 + $0xbe0] sm:$0xff] %v1980_v60  ;;  %v1984_v62 = vld [vmem:[%s10542_s29 + $0x17e0] sm:$0xff]  ;;  %v1986_v63 = vld [vmem:[%s10542_s29 + $0x17f0] sm:$0xff]  ;;  %1983 = vst [vmem:[%s10547_s30 + $0xbe8] sm:$0xff] %v1982_v61 }
  0xd4   : > { %1985 = vst [vmem:[%s10547_s30 + $0xbf0] sm:$0xff] %v1984_v62  ;;  %1987 = vst [vmem:[%s10547_s30 + $0xbf8] sm:$0xff] %v1986_v63  ;;  %v1988_v0 = vld [vmem:[%s10542_s29 + $0x1800] sm:$0xff]  ;;  %v1990_v1 = vld [vmem:[%s10542_s29 + $0x1810] sm:$0xff] }
  0xd5   : > { %v1992_v2 = vld [vmem:[%s10542_s29 + $0x1820] sm:$0xff]  ;;  %1989 = vst [vmem:[%s10547_s30 + $0xc00] sm:$0xff] %v1988_v0  ;;  %1991 = vst [vmem:[%s10547_s30 + $0xc08] sm:$0xff] %v1990_v1  ;;  %v1994_v3 = vld [vmem:[%s10542_s29 + $0x1830] sm:$0xff] }
  0xd6   : > { %1993 = vst [vmem:[%s10547_s30 + $0xc10] sm:$0xff] %v1992_v2  ;;  %v1996_v4 = vld [vmem:[%s10542_s29 + $0x1840] sm:$0xff]  ;;  %v1998_v5 = vld [vmem:[%s10542_s29 + $0x1850] sm:$0xff]  ;;  %1995 = vst [vmem:[%s10547_s30 + $0xc18] sm:$0xff] %v1994_v3 }
  0xd7   : > { %1997 = vst [vmem:[%s10547_s30 + $0xc20] sm:$0xff] %v1996_v4  ;;  %1999 = vst [vmem:[%s10547_s30 + $0xc28] sm:$0xff] %v1998_v5  ;;  %v2000_v6 = vld [vmem:[%s10542_s29 + $0x1860] sm:$0xff]  ;;  %v2002_v7 = vld [vmem:[%s10542_s29 + $0x1870] sm:$0xff] }
  0xd8   : > { %v2004_v8 = vld [vmem:[%s10542_s29 + $0x1880] sm:$0xff]  ;;  %2001 = vst [vmem:[%s10547_s30 + $0xc30] sm:$0xff] %v2000_v6  ;;  %2003 = vst [vmem:[%s10547_s30 + $0xc38] sm:$0xff] %v2002_v7  ;;  %v2006_v9 = vld [vmem:[%s10542_s29 + $0x1890] sm:$0xff] }
  0xd9   : > { %2005 = vst [vmem:[%s10547_s30 + $0xc40] sm:$0xff] %v2004_v8  ;;  %v2008_v10 = vld [vmem:[%s10542_s29 + $0x18a0] sm:$0xff]  ;;  %v2010_v11 = vld [vmem:[%s10542_s29 + $0x18b0] sm:$0xff]  ;;  %2007 = vst [vmem:[%s10547_s30 + $0xc48] sm:$0xff] %v2006_v9 }
  0xda   : > { %2009 = vst [vmem:[%s10547_s30 + $0xc50] sm:$0xff] %v2008_v10  ;;  %2011 = vst [vmem:[%s10547_s30 + $0xc58] sm:$0xff] %v2010_v11  ;;  %v2012_v12 = vld [vmem:[%s10542_s29 + $0x18c0] sm:$0xff]  ;;  %v2014_v13 = vld [vmem:[%s10542_s29 + $0x18d0] sm:$0xff] }
  0xdb   : > { %v2016_v14 = vld [vmem:[%s10542_s29 + $0x18e0] sm:$0xff]  ;;  %2013 = vst [vmem:[%s10547_s30 + $0xc60] sm:$0xff] %v2012_v12  ;;  %2015 = vst [vmem:[%s10547_s30 + $0xc68] sm:$0xff] %v2014_v13  ;;  %v2018_v15 = vld [vmem:[%s10542_s29 + $0x18f0] sm:$0xff] }
  0xdc   : > { %2017 = vst [vmem:[%s10547_s30 + $0xc70] sm:$0xff] %v2016_v14  ;;  %v2020_v16 = vld [vmem:[%s10542_s29 + $0x1900] sm:$0xff]  ;;  %v2022_v17 = vld [vmem:[%s10542_s29 + $0x1910] sm:$0xff]  ;;  %2019 = vst [vmem:[%s10547_s30 + $0xc78] sm:$0xff] %v2018_v15 }
  0xdd   : > { %2021 = vst [vmem:[%s10547_s30 + $0xc80] sm:$0xff] %v2020_v16  ;;  %2023 = vst [vmem:[%s10547_s30 + $0xc88] sm:$0xff] %v2022_v17  ;;  %v2024_v18 = vld [vmem:[%s10542_s29 + $0x1920] sm:$0xff]  ;;  %v2026_v19 = vld [vmem:[%s10542_s29 + $0x1930] sm:$0xff] }
  0xde   : > { %v2028_v20 = vld [vmem:[%s10542_s29 + $0x1940] sm:$0xff]  ;;  %2025 = vst [vmem:[%s10547_s30 + $0xc90] sm:$0xff] %v2024_v18  ;;  %2027 = vst [vmem:[%s10547_s30 + $0xc98] sm:$0xff] %v2026_v19  ;;  %v2030_v21 = vld [vmem:[%s10542_s29 + $0x1950] sm:$0xff] }
  0xdf   : > { %2029 = vst [vmem:[%s10547_s30 + $0xca0] sm:$0xff] %v2028_v20  ;;  %v2032_v22 = vld [vmem:[%s10542_s29 + $0x1960] sm:$0xff]  ;;  %v2034_v23 = vld [vmem:[%s10542_s29 + $0x1970] sm:$0xff]  ;;  %2031 = vst [vmem:[%s10547_s30 + $0xca8] sm:$0xff] %v2030_v21 }
  0xe0   : > { %2033 = vst [vmem:[%s10547_s30 + $0xcb0] sm:$0xff] %v2032_v22  ;;  %2035 = vst [vmem:[%s10547_s30 + $0xcb8] sm:$0xff] %v2034_v23  ;;  %v2036_v24 = vld [vmem:[%s10542_s29 + $0x1980] sm:$0xff]  ;;  %v2038_v25 = vld [vmem:[%s10542_s29 + $0x1990] sm:$0xff] }
  0xe1   : > { %v2040_v26 = vld [vmem:[%s10542_s29 + $0x19a0] sm:$0xff]  ;;  %2037 = vst [vmem:[%s10547_s30 + $0xcc0] sm:$0xff] %v2036_v24  ;;  %2039 = vst [vmem:[%s10547_s30 + $0xcc8] sm:$0xff] %v2038_v25  ;;  %v2042_v27 = vld [vmem:[%s10542_s29 + $0x19b0] sm:$0xff] }
  0xe2   : > { %2041 = vst [vmem:[%s10547_s30 + $0xcd0] sm:$0xff] %v2040_v26  ;;  %v2044_v28 = vld [vmem:[%s10542_s29 + $0x19c0] sm:$0xff]  ;;  %v2046_v29 = vld [vmem:[%s10542_s29 + $0x19d0] sm:$0xff]  ;;  %2043 = vst [vmem:[%s10547_s30 + $0xcd8] sm:$0xff] %v2042_v27 }
  0xe3   : > { %2045 = vst [vmem:[%s10547_s30 + $0xce0] sm:$0xff] %v2044_v28  ;;  %2047 = vst [vmem:[%s10547_s30 + $0xce8] sm:$0xff] %v2046_v29  ;;  %v2048_v30 = vld [vmem:[%s10542_s29 + $0x19e0] sm:$0xff]  ;;  %v2050_v31 = vld [vmem:[%s10542_s29 + $0x19f0] sm:$0xff] }
  0xe4   : > { %v2052_v32 = vld [vmem:[%s10542_s29 + $0x1a00] sm:$0xff]  ;;  %2049 = vst [vmem:[%s10547_s30 + $0xcf0] sm:$0xff] %v2048_v30  ;;  %2051 = vst [vmem:[%s10547_s30 + $0xcf8] sm:$0xff] %v2050_v31  ;;  %v2054_v33 = vld [vmem:[%s10542_s29 + $0x1a10] sm:$0xff] }
  0xe5   : > { %2053 = vst [vmem:[%s10547_s30 + $0xd00] sm:$0xff] %v2052_v32  ;;  %v2056_v34 = vld [vmem:[%s10542_s29 + $0x1a20] sm:$0xff]  ;;  %v2058_v35 = vld [vmem:[%s10542_s29 + $0x1a30] sm:$0xff]  ;;  %2055 = vst [vmem:[%s10547_s30 + $0xd08] sm:$0xff] %v2054_v33 }
  0xe6   : > { %2057 = vst [vmem:[%s10547_s30 + $0xd10] sm:$0xff] %v2056_v34  ;;  %2059 = vst [vmem:[%s10547_s30 + $0xd18] sm:$0xff] %v2058_v35  ;;  %v2060_v36 = vld [vmem:[%s10542_s29 + $0x1a40] sm:$0xff]  ;;  %v2062_v37 = vld [vmem:[%s10542_s29 + $0x1a50] sm:$0xff] }
  0xe7   : > { %v2064_v38 = vld [vmem:[%s10542_s29 + $0x1a60] sm:$0xff]  ;;  %2061 = vst [vmem:[%s10547_s30 + $0xd20] sm:$0xff] %v2060_v36  ;;  %2063 = vst [vmem:[%s10547_s30 + $0xd28] sm:$0xff] %v2062_v37  ;;  %v2066_v39 = vld [vmem:[%s10542_s29 + $0x1a70] sm:$0xff] }
  0xe8   : > { %2065 = vst [vmem:[%s10547_s30 + $0xd30] sm:$0xff] %v2064_v38  ;;  %v2068_v40 = vld [vmem:[%s10542_s29 + $0x1a80] sm:$0xff]  ;;  %v2070_v41 = vld [vmem:[%s10542_s29 + $0x1a90] sm:$0xff]  ;;  %2067 = vst [vmem:[%s10547_s30 + $0xd38] sm:$0xff] %v2066_v39 }
  0xe9   : > { %2069 = vst [vmem:[%s10547_s30 + $0xd40] sm:$0xff] %v2068_v40  ;;  %2071 = vst [vmem:[%s10547_s30 + $0xd48] sm:$0xff] %v2070_v41  ;;  %v2072_v42 = vld [vmem:[%s10542_s29 + $0x1aa0] sm:$0xff]  ;;  %v2074_v43 = vld [vmem:[%s10542_s29 + $0x1ab0] sm:$0xff] }
  0xea   : > { %v2076_v44 = vld [vmem:[%s10542_s29 + $0x1ac0] sm:$0xff]  ;;  %2073 = vst [vmem:[%s10547_s30 + $0xd50] sm:$0xff] %v2072_v42  ;;  %2075 = vst [vmem:[%s10547_s30 + $0xd58] sm:$0xff] %v2074_v43  ;;  %v2078_v45 = vld [vmem:[%s10542_s29 + $0x1ad0] sm:$0xff] }
  0xeb   : > { %2077 = vst [vmem:[%s10547_s30 + $0xd60] sm:$0xff] %v2076_v44  ;;  %v2080_v46 = vld [vmem:[%s10542_s29 + $0x1ae0] sm:$0xff]  ;;  %v2082_v47 = vld [vmem:[%s10542_s29 + $0x1af0] sm:$0xff]  ;;  %2079 = vst [vmem:[%s10547_s30 + $0xd68] sm:$0xff] %v2078_v45 }
  0xec   : > { %2081 = vst [vmem:[%s10547_s30 + $0xd70] sm:$0xff] %v2080_v46  ;;  %2083 = vst [vmem:[%s10547_s30 + $0xd78] sm:$0xff] %v2082_v47  ;;  %v2084_v48 = vld [vmem:[%s10542_s29 + $0x1b00] sm:$0xff]  ;;  %v2086_v49 = vld [vmem:[%s10542_s29 + $0x1b10] sm:$0xff] }
  0xed   : > { %v2088_v50 = vld [vmem:[%s10542_s29 + $0x1b20] sm:$0xff]  ;;  %2085 = vst [vmem:[%s10547_s30 + $0xd80] sm:$0xff] %v2084_v48  ;;  %2087 = vst [vmem:[%s10547_s30 + $0xd88] sm:$0xff] %v2086_v49  ;;  %v2090_v51 = vld [vmem:[%s10542_s29 + $0x1b30] sm:$0xff] }
  0xee   : > { %2089 = vst [vmem:[%s10547_s30 + $0xd90] sm:$0xff] %v2088_v50  ;;  %v2092_v52 = vld [vmem:[%s10542_s29 + $0x1b40] sm:$0xff]  ;;  %v2094_v53 = vld [vmem:[%s10542_s29 + $0x1b50] sm:$0xff]  ;;  %2091 = vst [vmem:[%s10547_s30 + $0xd98] sm:$0xff] %v2090_v51 }
  0xef   : > { %2093 = vst [vmem:[%s10547_s30 + $0xda0] sm:$0xff] %v2092_v52  ;;  %2095 = vst [vmem:[%s10547_s30 + $0xda8] sm:$0xff] %v2094_v53  ;;  %v2096_v54 = vld [vmem:[%s10542_s29 + $0x1b60] sm:$0xff]  ;;  %v2098_v55 = vld [vmem:[%s10542_s29 + $0x1b70] sm:$0xff] }
  0xf0   : > { %v2100_v56 = vld [vmem:[%s10542_s29 + $0x1b80] sm:$0xff]  ;;  %2097 = vst [vmem:[%s10547_s30 + $0xdb0] sm:$0xff] %v2096_v54  ;;  %2099 = vst [vmem:[%s10547_s30 + $0xdb8] sm:$0xff] %v2098_v55  ;;  %v2102_v57 = vld [vmem:[%s10542_s29 + $0x1b90] sm:$0xff] }
  0xf1   : > { %2101 = vst [vmem:[%s10547_s30 + $0xdc0] sm:$0xff] %v2100_v56  ;;  %v2104_v58 = vld [vmem:[%s10542_s29 + $0x1ba0] sm:$0xff]  ;;  %v2106_v59 = vld [vmem:[%s10542_s29 + $0x1bb0] sm:$0xff]  ;;  %2103 = vst [vmem:[%s10547_s30 + $0xdc8] sm:$0xff] %v2102_v57 }
  0xf2   : > { %2105 = vst [vmem:[%s10547_s30 + $0xdd0] sm:$0xff] %v2104_v58  ;;  %2107 = vst [vmem:[%s10547_s30 + $0xdd8] sm:$0xff] %v2106_v59  ;;  %v2108_v60 = vld [vmem:[%s10542_s29 + $0x1bc0] sm:$0xff]  ;;  %v2110_v61 = vld [vmem:[%s10542_s29 + $0x1bd0] sm:$0xff] }
  0xf3   : > { %v2112_v62 = vld [vmem:[%s10542_s29 + $0x1be0] sm:$0xff]  ;;  %2109 = vst [vmem:[%s10547_s30 + $0xde0] sm:$0xff] %v2108_v60  ;;  %2111 = vst [vmem:[%s10547_s30 + $0xde8] sm:$0xff] %v2110_v61  ;;  %v2114_v63 = vld [vmem:[%s10542_s29 + $0x1bf0] sm:$0xff] }
  0xf4   : > { %2113 = vst [vmem:[%s10547_s30 + $0xdf0] sm:$0xff] %v2112_v62  ;;  %v2116_v0 = vld [vmem:[%s10542_s29 + $0x1c00] sm:$0xff]  ;;  %v2118_v1 = vld [vmem:[%s10542_s29 + $0x1c10] sm:$0xff]  ;;  %2115 = vst [vmem:[%s10547_s30 + $0xdf8] sm:$0xff] %v2114_v63 }
  0xf5   : > { %2117 = vst [vmem:[%s10547_s30 + $0xe00] sm:$0xff] %v2116_v0  ;;  %2119 = vst [vmem:[%s10547_s30 + $0xe08] sm:$0xff] %v2118_v1  ;;  %v2120_v2 = vld [vmem:[%s10542_s29 + $0x1c20] sm:$0xff]  ;;  %v2122_v3 = vld [vmem:[%s10542_s29 + $0x1c30] sm:$0xff] }
  0xf6   : > { %v2124_v4 = vld [vmem:[%s10542_s29 + $0x1c40] sm:$0xff]  ;;  %2121 = vst [vmem:[%s10547_s30 + $0xe10] sm:$0xff] %v2120_v2  ;;  %2123 = vst [vmem:[%s10547_s30 + $0xe18] sm:$0xff] %v2122_v3  ;;  %v2126_v5 = vld [vmem:[%s10542_s29 + $0x1c50] sm:$0xff] }
  0xf7   : > { %2125 = vst [vmem:[%s10547_s30 + $0xe20] sm:$0xff] %v2124_v4  ;;  %v2128_v6 = vld [vmem:[%s10542_s29 + $0x1c60] sm:$0xff]  ;;  %v2130_v7 = vld [vmem:[%s10542_s29 + $0x1c70] sm:$0xff]  ;;  %2127 = vst [vmem:[%s10547_s30 + $0xe28] sm:$0xff] %v2126_v5 }
  0xf8   : > { %2129 = vst [vmem:[%s10547_s30 + $0xe30] sm:$0xff] %v2128_v6  ;;  %2131 = vst [vmem:[%s10547_s30 + $0xe38] sm:$0xff] %v2130_v7  ;;  %v2132_v8 = vld [vmem:[%s10542_s29 + $0x1c80] sm:$0xff]  ;;  %v2134_v9 = vld [vmem:[%s10542_s29 + $0x1c90] sm:$0xff] }
  0xf9   : > { %v2136_v10 = vld [vmem:[%s10542_s29 + $0x1ca0] sm:$0xff]  ;;  %2133 = vst [vmem:[%s10547_s30 + $0xe40] sm:$0xff] %v2132_v8  ;;  %2135 = vst [vmem:[%s10547_s30 + $0xe48] sm:$0xff] %v2134_v9  ;;  %v2138_v11 = vld [vmem:[%s10542_s29 + $0x1cb0] sm:$0xff] }
  0xfa   : > { %2137 = vst [vmem:[%s10547_s30 + $0xe50] sm:$0xff] %v2136_v10  ;;  %v2140_v12 = vld [vmem:[%s10542_s29 + $0x1cc0] sm:$0xff]  ;;  %v2142_v13 = vld [vmem:[%s10542_s29 + $0x1cd0] sm:$0xff]  ;;  %2139 = vst [vmem:[%s10547_s30 + $0xe58] sm:$0xff] %v2138_v11 }
  0xfb   : > { %2141 = vst [vmem:[%s10547_s30 + $0xe60] sm:$0xff] %v2140_v12  ;;  %2143 = vst [vmem:[%s10547_s30 + $0xe68] sm:$0xff] %v2142_v13  ;;  %v2144_v14 = vld [vmem:[%s10542_s29 + $0x1ce0] sm:$0xff]  ;;  %v2146_v15 = vld [vmem:[%s10542_s29 + $0x1cf0] sm:$0xff] }
  0xfc   : > { %v2148_v16 = vld [vmem:[%s10542_s29 + $0x1d00] sm:$0xff]  ;;  %2145 = vst [vmem:[%s10547_s30 + $0xe70] sm:$0xff] %v2144_v14  ;;  %2147 = vst [vmem:[%s10547_s30 + $0xe78] sm:$0xff] %v2146_v15  ;;  %v2150_v17 = vld [vmem:[%s10542_s29 + $0x1d10] sm:$0xff] }
  0xfd   : > { %2149 = vst [vmem:[%s10547_s30 + $0xe80] sm:$0xff] %v2148_v16  ;;  %v2152_v18 = vld [vmem:[%s10542_s29 + $0x1d20] sm:$0xff]  ;;  %v2154_v19 = vld [vmem:[%s10542_s29 + $0x1d30] sm:$0xff]  ;;  %2151 = vst [vmem:[%s10547_s30 + $0xe88] sm:$0xff] %v2150_v17 }
  0xfe   : > { %2153 = vst [vmem:[%s10547_s30 + $0xe90] sm:$0xff] %v2152_v18  ;;  %2155 = vst [vmem:[%s10547_s30 + $0xe98] sm:$0xff] %v2154_v19  ;;  %v2156_v20 = vld [vmem:[%s10542_s29 + $0x1d40] sm:$0xff]  ;;  %v2158_v21 = vld [vmem:[%s10542_s29 + $0x1d50] sm:$0xff] }
  0xff   : > { %v2160_v22 = vld [vmem:[%s10542_s29 + $0x1d60] sm:$0xff]  ;;  %2157 = vst [vmem:[%s10547_s30 + $0xea0] sm:$0xff] %v2156_v20  ;;  %2159 = vst [vmem:[%s10547_s30 + $0xea8] sm:$0xff] %v2158_v21  ;;  %v2162_v23 = vld [vmem:[%s10542_s29 + $0x1d70] sm:$0xff] }
 0x100   : > { %2161 = vst [vmem:[%s10547_s30 + $0xeb0] sm:$0xff] %v2160_v22  ;;  %v2164_v24 = vld [vmem:[%s10542_s29 + $0x1d80] sm:$0xff]  ;;  %v2166_v25 = vld [vmem:[%s10542_s29 + $0x1d90] sm:$0xff]  ;;  %2163 = vst [vmem:[%s10547_s30 + $0xeb8] sm:$0xff] %v2162_v23 }
 0x101   : > { %2165 = vst [vmem:[%s10547_s30 + $0xec0] sm:$0xff] %v2164_v24  ;;  %2167 = vst [vmem:[%s10547_s30 + $0xec8] sm:$0xff] %v2166_v25  ;;  %v2168_v26 = vld [vmem:[%s10542_s29 + $0x1da0] sm:$0xff]  ;;  %v2170_v27 = vld [vmem:[%s10542_s29 + $0x1db0] sm:$0xff] }
 0x102   : > { %v2172_v28 = vld [vmem:[%s10542_s29 + $0x1dc0] sm:$0xff]  ;;  %2169 = vst [vmem:[%s10547_s30 + $0xed0] sm:$0xff] %v2168_v26  ;;  %2171 = vst [vmem:[%s10547_s30 + $0xed8] sm:$0xff] %v2170_v27  ;;  %v2174_v29 = vld [vmem:[%s10542_s29 + $0x1dd0] sm:$0xff] }
 0x103   : > { %2173 = vst [vmem:[%s10547_s30 + $0xee0] sm:$0xff] %v2172_v28  ;;  %v2176_v30 = vld [vmem:[%s10542_s29 + $0x1de0] sm:$0xff]  ;;  %v2178_v31 = vld [vmem:[%s10542_s29 + $0x1df0] sm:$0xff]  ;;  %2175 = vst [vmem:[%s10547_s30 + $0xee8] sm:$0xff] %v2174_v29 }
 0x104   : > { %2177 = vst [vmem:[%s10547_s30 + $0xef0] sm:$0xff] %v2176_v30  ;;  %2179 = vst [vmem:[%s10547_s30 + $0xef8] sm:$0xff] %v2178_v31  ;;  %v2180_v32 = vld [vmem:[%s10542_s29 + $0x1e00] sm:$0xff]  ;;  %v2182_v33 = vld [vmem:[%s10542_s29 + $0x1e10] sm:$0xff] }
 0x105   : > { %v2184_v34 = vld [vmem:[%s10542_s29 + $0x1e20] sm:$0xff]  ;;  %2181 = vst [vmem:[%s10547_s30 + $0xf00] sm:$0xff] %v2180_v32  ;;  %2183 = vst [vmem:[%s10547_s30 + $0xf08] sm:$0xff] %v2182_v33  ;;  %v2186_v35 = vld [vmem:[%s10542_s29 + $0x1e30] sm:$0xff] }
 0x106   : > { %2185 = vst [vmem:[%s10547_s30 + $0xf10] sm:$0xff] %v2184_v34  ;;  %v2188_v36 = vld [vmem:[%s10542_s29 + $0x1e40] sm:$0xff]  ;;  %v2190_v37 = vld [vmem:[%s10542_s29 + $0x1e50] sm:$0xff]  ;;  %2187 = vst [vmem:[%s10547_s30 + $0xf18] sm:$0xff] %v2186_v35 }
 0x107   : > { %2189 = vst [vmem:[%s10547_s30 + $0xf20] sm:$0xff] %v2188_v36  ;;  %2191 = vst [vmem:[%s10547_s30 + $0xf28] sm:$0xff] %v2190_v37  ;;  %v2192_v38 = vld [vmem:[%s10542_s29 + $0x1e60] sm:$0xff]  ;;  %v2194_v39 = vld [vmem:[%s10542_s29 + $0x1e70] sm:$0xff] }
 0x108   : > { %v2196_v40 = vld [vmem:[%s10542_s29 + $0x1e80] sm:$0xff]  ;;  %2193 = vst [vmem:[%s10547_s30 + $0xf30] sm:$0xff] %v2192_v38  ;;  %2195 = vst [vmem:[%s10547_s30 + $0xf38] sm:$0xff] %v2194_v39  ;;  %v2198_v41 = vld [vmem:[%s10542_s29 + $0x1e90] sm:$0xff] }
 0x109   : > { %2197 = vst [vmem:[%s10547_s30 + $0xf40] sm:$0xff] %v2196_v40  ;;  %v2200_v42 = vld [vmem:[%s10542_s29 + $0x1ea0] sm:$0xff]  ;;  %v2202_v43 = vld [vmem:[%s10542_s29 + $0x1eb0] sm:$0xff]  ;;  %2199 = vst [vmem:[%s10547_s30 + $0xf48] sm:$0xff] %v2198_v41 }
 0x10a   : > { %2201 = vst [vmem:[%s10547_s30 + $0xf50] sm:$0xff] %v2200_v42  ;;  %2203 = vst [vmem:[%s10547_s30 + $0xf58] sm:$0xff] %v2202_v43  ;;  %v2204_v44 = vld [vmem:[%s10542_s29 + $0x1ec0] sm:$0xff]  ;;  %v2206_v45 = vld [vmem:[%s10542_s29 + $0x1ed0] sm:$0xff] }
 0x10b   : > { %v2208_v46 = vld [vmem:[%s10542_s29 + $0x1ee0] sm:$0xff]  ;;  %2205 = vst [vmem:[%s10547_s30 + $0xf60] sm:$0xff] %v2204_v44  ;;  %2207 = vst [vmem:[%s10547_s30 + $0xf68] sm:$0xff] %v2206_v45  ;;  %v2210_v47 = vld [vmem:[%s10542_s29 + $0x1ef0] sm:$0xff] }
 0x10c   : > { %2209 = vst [vmem:[%s10547_s30 + $0xf70] sm:$0xff] %v2208_v46  ;;  %v2212_v48 = vld [vmem:[%s10542_s29 + $0x1f00] sm:$0xff]  ;;  %v2214_v49 = vld [vmem:[%s10542_s29 + $0x1f10] sm:$0xff]  ;;  %2211 = vst [vmem:[%s10547_s30 + $0xf78] sm:$0xff] %v2210_v47 }
 0x10d   : > { %2213 = vst [vmem:[%s10547_s30 + $0xf80] sm:$0xff] %v2212_v48  ;;  %2215 = vst [vmem:[%s10547_s30 + $0xf88] sm:$0xff] %v2214_v49  ;;  %v2216_v50 = vld [vmem:[%s10542_s29 + $0x1f20] sm:$0xff]  ;;  %v2218_v51 = vld [vmem:[%s10542_s29 + $0x1f30] sm:$0xff] }
 0x10e   : > { %v2220_v52 = vld [vmem:[%s10542_s29 + $0x1f40] sm:$0xff]  ;;  %2217 = vst [vmem:[%s10547_s30 + $0xf90] sm:$0xff] %v2216_v50  ;;  %2219 = vst [vmem:[%s10547_s30 + $0xf98] sm:$0xff] %v2218_v51  ;;  %v2222_v53 = vld [vmem:[%s10542_s29 + $0x1f50] sm:$0xff] }
 0x10f   : > { %2221 = vst [vmem:[%s10547_s30 + $0xfa0] sm:$0xff] %v2220_v52  ;;  %v2224_v54 = vld [vmem:[%s10542_s29 + $0x1f60] sm:$0xff]  ;;  %v2226_v55 = vld [vmem:[%s10542_s29 + $0x1f70] sm:$0xff]  ;;  %2223 = vst [vmem:[%s10547_s30 + $0xfa8] sm:$0xff] %v2222_v53 }
 0x110   : > { %2225 = vst [vmem:[%s10547_s30 + $0xfb0] sm:$0xff] %v2224_v54  ;;  %2227 = vst [vmem:[%s10547_s30 + $0xfb8] sm:$0xff] %v2226_v55  ;;  %v2228_v56 = vld [vmem:[%s10542_s29 + $0x1f80] sm:$0xff]  ;;  %v2230_v57 = vld [vmem:[%s10542_s29 + $0x1f90] sm:$0xff] }
 0x111   : > { %v2232_v58 = vld [vmem:[%s10542_s29 + $0x1fa0] sm:$0xff]  ;;  %2229 = vst [vmem:[%s10547_s30 + $0xfc0] sm:$0xff] %v2228_v56  ;;  %2231 = vst [vmem:[%s10547_s30 + $0xfc8] sm:$0xff] %v2230_v57  ;;  %v2234_v59 = vld [vmem:[%s10542_s29 + $0x1fb0] sm:$0xff] }
 0x112   : > { %2233 = vst [vmem:[%s10547_s30 + $0xfd0] sm:$0xff] %v2232_v58  ;;  %v2236_v60 = vld [vmem:[%s10542_s29 + $0x1fc0] sm:$0xff]  ;;  %v2238_v61 = vld [vmem:[%s10542_s29 + $0x1fd0] sm:$0xff]  ;;  %2235 = vst [vmem:[%s10547_s30 + $0xfd8] sm:$0xff] %v2234_v59 }
 0x113   : > { %2237 = vst [vmem:[%s10547_s30 + $0xfe0] sm:$0xff] %v2236_v60  ;;  %2239 = vst [vmem:[%s10547_s30 + $0xfe8] sm:$0xff] %v2238_v61  ;;  %v2240_v62 = vld [vmem:[%s10542_s29 + $0x1fe0] sm:$0xff]  ;;  %v2242_v63 = vld [vmem:[%s10542_s29 + $0x1ff0] sm:$0xff] }
 0x114   : > { %2241 = vst [vmem:[%s10547_s30 + $0xff0] sm:$0xff] %v2240_v62  ;;  %2243 = vst [vmem:[%s10547_s30 + $0xff8] sm:$0xff] %v2242_v63 }
 0x115 PF: > { %p8950_p7 = scmp.ge.s32.totalorder %s10473_s17, 1  ;;  %p4332_p8 = scmp.lt.s32.totalorder %s10473_s17, 3 }
 0x117   : > { %p4333_p9 = pnand %p8950_p7, %p4332_p8 }
 0x118   : > { %s4339_s5 = sand.u32 (!%p4333_p9), 1, %s10465_s15   ;;  %v11576_v0 = vld [vmem:[%s12458_s0] sm:$0xff] (!%p4333_p9)  ;;  %s8953_s15 = sshll.u32 (!%p4333_p9), %s10517_s18, 1 }
 0x119   : > { %4336 = sbr.rel (%p4333_p9) target bundleno = 1046 (0x416), region = 76  ;;  %v11581_v1 = vld [vmem:[%s12458_s0 + $0x80] sm:$0xff] (!%p4333_p9)  ;;  %s8951_s12 = sshll.u32 (!%p4333_p9), %s4339_s5, 12 }
 0x11a   : > { %v11586_v2 = vld [vmem:[%s12458_s0 + $0x40] sm:$0xff] (!%p4333_p9)  ;;  %v8955_v3 = vcombine.low (!%p4333_p9), %v11576_v0, %v11581_v1  ;;  %v8956_v4 = vcombine.high (!%p4333_p9), %v11576_v0, %v11581_v1  ;;  %s11603_s17 = scalar_lea.vmem (!%p4333_p9), [#allocation2], %s8951_s12  ;;  %p4374_p10 = scmp.lt.s32.totalorder (!%p4333_p9), %s8953_s15, 3 }
 0x11b   : > { %v11597_v5 = vld [vmem:[%s12458_s0 + $0xc0] sm:$0xff] (!%p4333_p9)  ;;  %v9689_v12 = vld [vmem:[%s11603_s17 + $0x14] ss:$8 sps:$4 sm:$0xff] (!%p4333_p9)   ;;  %v9693_v14 = vld [vmem:[%s11603_s17 + $0x10] ss:$8 sps:$4 sm:$0xff] (!%p4333_p9)  }
 0x11c   : > { %v8971_v6 = vcombine.low (!%p4333_p9), %v11586_v2, %v11597_v5  ;;  %v8972_v7 = vcombine.high (!%p4333_p9), %v11586_v2, %v11597_v5  ;;  %v9683_v8 = vld [vmem:[%s11603_s17 + $0x4] ss:$8 sps:$4 sm:$0xff] (!%p4333_p9)   ;;  %7871 = vmatprep.mubr.bf16.mxu1 (!%p4333_p9), %v8956_v4  ;;  %v9687_v10 = vld [vmem:[%s11603_s17] ss:$8 sps:$4 sm:$0xff] (!%p4333_p9)   ;;  %v9691_v13 = vld [vmem:[%s11603_s17 + $0x814] ss:$8 sps:$4 sm:$0xff] (!%p4333_p9)  }
 0x11d   : > { %v9685_v9 = vld [vmem:[%s11603_s17 + $0x804] ss:$8 sps:$4 sm:$0xff] (!%p4333_p9)   ;;  %7839 = vmatprep.subr.bf16.mxu1 (!%p4333_p9), %v9683_v8  ;;  %v9688_v11 = vld [vmem:[%s11603_s17 + $0x800] ss:$8 sps:$4 sm:$0xff] (!%p4333_p9)   ;;  %v9694_v15 = vld [vmem:[%s11603_s17 + $0x810] ss:$8 sps:$4 sm:$0xff] (!%p4333_p9)  }
 0x11e   : > { %8295 = vmatprep.mubr.bf16.mxu0 (!%p4333_p9), %v8972_v7  ;;  %8263 = vmatprep.subr.bf16.mxu0 (!%p4333_p9), %v9685_v9  ;;  %v9695_v16 = vld [vmem:[%s11603_s17 + $0x24] ss:$8 sps:$4 sm:$0xff] (!%p4333_p9)   ;;  %v9699_v18 = vld [vmem:[%s11603_s17 + $0x20] ss:$8 sps:$4 sm:$0xff] (!%p4333_p9)   ;;  %v9701_v20 = vld [vmem:[%s11603_s17 + $0x34] ss:$8 sps:$4 sm:$0xff] (!%p4333_p9)  }
 0x11f   : > { %7840 = vmatpush1.bf16.msra.mxu1 (!%p4333_p9), %v9687_v10  ;;  %8264 = vmatpush1.bf16.msra.mxu0 (!%p4333_p9), %v9688_v11  ;;  %v9697_v17 = vld [vmem:[%s11603_s17 + $0x824] ss:$8 sps:$4 sm:$0xff] (!%p4333_p9)   ;;  %v9700_v19 = vld [vmem:[%s11603_s17 + $0x820] ss:$8 sps:$4 sm:$0xff] (!%p4333_p9)   ;;  %v9703_v21 = vld [vmem:[%s11603_s17 + $0x834] ss:$8 sps:$4 sm:$0xff] (!%p4333_p9)  }
 0x120   : > { %7841 = vmatprep.subr.bf16.mxu1 %v9689_v12  ;;  %8265 = vmatprep.subr.bf16.mxu0 %v9691_v13  ;;  %v9705_v22 = vld [vmem:[%s11603_s17 + $0x30] ss:$8 sps:$4 sm:$0xff]   ;;  %v9707_v24 = vld [vmem:[%s11603_s17 + $0x44] ss:$8 sps:$4 sm:$0xff]   ;;  %v9711_v26 = vld [vmem:[%s11603_s17 + $0x40] ss:$8 sps:$4 sm:$0xff]  }
 0x121   : > { %v9706_v23 = vld [vmem:[%s11603_s17 + $0x830] ss:$8 sps:$4 sm:$0xff]   ;;  %v9709_v25 = vld [vmem:[%s11603_s17 + $0x844] ss:$8 sps:$4 sm:$0xff]   ;;  %v9712_v27 = vld [vmem:[%s11603_s17 + $0x840] ss:$8 sps:$4 sm:$0xff]  }
 0x122   : > { %v9713_v28 = vld [vmem:[%s11603_s17 + $0x54] ss:$8 sps:$4 sm:$0xff]   ;;  %v9717_v30 = vld [vmem:[%s11603_s17 + $0x50] ss:$8 sps:$4 sm:$0xff]   ;;  %v9719_v32 = vld [vmem:[%s11603_s17 + $0x64] ss:$8 sps:$4 sm:$0xff]  }
 0x123   : > { %7842 = vmatpush1.bf16.msra.mxu1 %v9693_v14  ;;  %8266 = vmatpush1.bf16.msra.mxu0 %v9694_v15  ;;  %v9715_v29 = vld [vmem:[%s11603_s17 + $0x854] ss:$8 sps:$4 sm:$0xff]   ;;  %v9718_v31 = vld [vmem:[%s11603_s17 + $0x850] ss:$8 sps:$4 sm:$0xff]   ;;  %v9721_v33 = vld [vmem:[%s11603_s17 + $0x864] ss:$8 sps:$4 sm:$0xff]  }
 0x124   : > { %7843 = vmatprep.subr.bf16.mxu1 %v9695_v16  ;;  %8267 = vmatprep.subr.bf16.mxu0 %v9697_v17  ;;  %v9723_v34 = vld [vmem:[%s11603_s17 + $0x60] ss:$8 sps:$4 sm:$0xff]   ;;  %v9725_v36 = vld [vmem:[%s11603_s17 + $0x74] ss:$8 sps:$4 sm:$0xff]   ;;  %v9729_v38 = vld [vmem:[%s11603_s17 + $0x70] ss:$8 sps:$4 sm:$0xff]  }
 0x125   : > { %v9724_v35 = vld [vmem:[%s11603_s17 + $0x860] ss:$8 sps:$4 sm:$0xff]   ;;  %v9727_v37 = vld [vmem:[%s11603_s17 + $0x874] ss:$8 sps:$4 sm:$0xff]   ;;  %v9730_v39 = vld [vmem:[%s11603_s17 + $0x870] ss:$8 sps:$4 sm:$0xff]  }
 0x126   : > { %v9731_v40 = vld [vmem:[%s11603_s17 + $0x84] ss:$8 sps:$4 sm:$0xff]   ;;  %v9735_v42 = vld [vmem:[%s11603_s17 + $0x80] ss:$8 sps:$4 sm:$0xff]   ;;  %v9737_v44 = vld [vmem:[%s11603_s17 + $0x94] ss:$8 sps:$4 sm:$0xff]  }
 0x127   : > { %7844 = vmatpush1.bf16.msra.mxu1 %v9699_v18  ;;  %8268 = vmatpush1.bf16.msra.mxu0 %v9700_v19  ;;  %v9733_v41 = vld [vmem:[%s11603_s17 + $0x884] ss:$8 sps:$4 sm:$0xff]   ;;  %v9736_v43 = vld [vmem:[%s11603_s17 + $0x880] ss:$8 sps:$4 sm:$0xff]   ;;  %v9739_v45 = vld [vmem:[%s11603_s17 + $0x894] ss:$8 sps:$4 sm:$0xff]  }
 0x128   : > { %7845 = vmatprep.subr.bf16.mxu1 %v9701_v20  ;;  %8269 = vmatprep.subr.bf16.mxu0 %v9703_v21  ;;  %v9741_v46 = vld [vmem:[%s11603_s17 + $0x90] ss:$8 sps:$4 sm:$0xff]   ;;  %v9743_v48 = vld [vmem:[%s11603_s17 + $0xa4] ss:$8 sps:$4 sm:$0xff]   ;;  %v9747_v50 = vld [vmem:[%s11603_s17 + $0xa0] ss:$8 sps:$4 sm:$0xff]  }
 0x129   : > { %v9742_v47 = vld [vmem:[%s11603_s17 + $0x890] ss:$8 sps:$4 sm:$0xff]   ;;  %v9745_v49 = vld [vmem:[%s11603_s17 + $0x8a4] ss:$8 sps:$4 sm:$0xff]   ;;  %v9748_v51 = vld [vmem:[%s11603_s17 + $0x8a0] ss:$8 sps:$4 sm:$0xff]  }
 0x12a   : > { %v9749_v52 = vld [vmem:[%s11603_s17 + $0xb4] ss:$8 sps:$4 sm:$0xff]   ;;  %v9753_v54 = vld [vmem:[%s11603_s17 + $0xb0] ss:$8 sps:$4 sm:$0xff]   ;;  %v9755_v56 = vld [vmem:[%s11603_s17 + $0xc4] ss:$8 sps:$4 sm:$0xff]  }
 0x12b   : > { %7846 = vmatpush1.bf16.msra.mxu1 %v9705_v22  ;;  %8270 = vmatpush1.bf16.msra.mxu0 %v9706_v23  ;;  %v9751_v53 = vld [vmem:[%s11603_s17 + $0x8b4] ss:$8 sps:$4 sm:$0xff]   ;;  %v9754_v55 = vld [vmem:[%s11603_s17 + $0x8b0] ss:$8 sps:$4 sm:$0xff]   ;;  %v9757_v57 = vld [vmem:[%s11603_s17 + $0x8c4] ss:$8 sps:$4 sm:$0xff]  }
 0x12c   : > { %7847 = vmatprep.subr.bf16.mxu1 %v9707_v24  ;;  %8271 = vmatprep.subr.bf16.mxu0 %v9709_v25  ;;  %v9759_v58 = vld [vmem:[%s11603_s17 + $0xc0] ss:$8 sps:$4 sm:$0xff]   ;;  %v9761_v60 = vld [vmem:[%s11603_s17 + $0xd4] ss:$8 sps:$4 sm:$0xff]   ;;  %v9765_v62 = vld [vmem:[%s11603_s17 + $0xd0] ss:$8 sps:$4 sm:$0xff]  }
 0x12d   : > { %v9760_v59 = vld [vmem:[%s11603_s17 + $0x8c0] ss:$8 sps:$4 sm:$0xff]   ;;  %v9763_v61 = vld [vmem:[%s11603_s17 + $0x8d4] ss:$8 sps:$4 sm:$0xff]   ;;  %v9766_v63 = vld [vmem:[%s11603_s17 + $0x8d0] ss:$8 sps:$4 sm:$0xff]  }
 0x12e   : > { %v9767_v4 = vld [vmem:[%s11603_s17 + $0xe4] ss:$8 sps:$4 sm:$0xff]   ;;  %v9771_v8 = vld [vmem:[%s11603_s17 + $0xe0] ss:$8 sps:$4 sm:$0xff]   ;;  %v9773_v10 = vld [vmem:[%s11603_s17 + $0xf4] ss:$8 sps:$4 sm:$0xff]  }
 0x12f   : > { %7848 = vmatpush1.bf16.msra.mxu1 %v9711_v26  ;;  %8272 = vmatpush1.bf16.msra.mxu0 %v9712_v27  ;;  %v9769_v7 = vld [vmem:[%s11603_s17 + $0x8e4] ss:$8 sps:$4 sm:$0xff]   ;;  %v9772_v9 = vld [vmem:[%s11603_s17 + $0x8e0] ss:$8 sps:$4 sm:$0xff]   ;;  %v9775_v11 = vld [vmem:[%s11603_s17 + $0x8f4] ss:$8 sps:$4 sm:$0xff]  }
 0x130   : > { %7849 = vmatprep.subr.bf16.mxu1 %v9713_v28  ;;  %8273 = vmatprep.subr.bf16.mxu0 %v9715_v29  ;;  %v9777_v12 = vld [vmem:[%s11603_s17 + $0xf0] ss:$8 sps:$4 sm:$0xff]   ;;  %v9781_v14 = vld [vmem:[%s11603_s17 + $0x104] ss:$8 sps:$4 sm:$0xff]   ;;  %v9779_v20 = vld [vmem:[%s11603_s17 + $0x100] ss:$8 sps:$4 sm:$0xff]  }
 0x131   : > { %v9778_v13 = vld [vmem:[%s11603_s17 + $0x8f0] ss:$8 sps:$4 sm:$0xff]   ;;  %v9784_v15 = vld [vmem:[%s11603_s17 + $0x904] ss:$8 sps:$4 sm:$0xff]   ;;  %v9782_v21 = vld [vmem:[%s11603_s17 + $0x900] ss:$8 sps:$4 sm:$0xff]  }
 0x132   : > { %v4415_v16 = vld [vmem:[%s12458_s0 + $0x100] sm:$0xff]  ;;  %v9787_v22 = vld [vmem:[%s11603_s17 + $0x114] ss:$8 sps:$4 sm:$0xff]   ;;  %v9785_v26 = vld [vmem:[%s11603_s17 + $0x110] ss:$8 sps:$4 sm:$0xff]   ;;  %s12468_s15 = smov (!%p4374_p10, %s8953_s15), 3 }
 0x133   : > { %7850 = vmatpush1.bf16.msra.mxu1 %v9717_v30  ;;  %8274 = vmatpush1.bf16.msra.mxu0 %v9718_v31  ;;  %v4431_v17 = vld [vmem:[%s12458_s0 + $0x180] sm:$0xff]  ;;  %v9790_v23 = vld [vmem:[%s11603_s17 + $0x914] ss:$8 sps:$4 sm:$0xff]   ;;  %v9788_v27 = vld [vmem:[%s11603_s17 + $0x910] ss:$8 sps:$4 sm:$0xff]   ;;  %s4376_s11 = scalar_lea.vmem %s12461_s3, %s12468_s15  ;;  %s4381_s14 = scalar_lea.vmem %s12462_s4, %s12468_s15 }
 0x134   : > { %7851 = vmatprep.subr.bf16.mxu1 %v9719_v32  ;;  %8275 = vmatprep.subr.bf16.mxu0 %v9721_v33  ;;  %v4423_v18 = vld [vmem:[%s12458_s0 + $0x140] sm:$0xff]  ;;  %v8988_v24 = vcombine.high %v4415_v16, %v4431_v17  ;;  %v9799_v5 = vld [vmem:[%s11603_s17 + $0x134] ss:$8 sps:$4 sm:$0xff]   ;;  %v9797_v30 = vld [vmem:[%s11603_s17 + $0x130] ss:$8 sps:$4 sm:$0xff]   ;;  %s9537_s20 = sshll.u32 (%p10532_p5), %s10517_s18, 4 }
 0x135   : > { %v4439_v19 = vld [vmem:[%s12458_s0 + $0x1c0] sm:$0xff]  ;;  %v9800_v31 = vld [vmem:[%s11603_s17 + $0x930] ss:$8 sps:$4 sm:$0xff]   ;;  %s8798_s25 = scalar_lea.vmem (%p10532_p5), %s12460_s2, %s9537_s20 }
 0x136   : > { %v9004_v25 = vcombine.high %v4423_v18, %v4439_v19  ;;  %v9793_v28 = vld [vmem:[%s11603_s17 + $0x124] ss:$8 sps:$4 sm:$0xff]   ;;  %v9791_v0 = vld [vmem:[%s11603_s17 + $0x120] ss:$8 sps:$4 sm:$0xff]   ;;  %v9003_v2 = vcombine.low %v4423_v18, %v4439_v19  ;;  %v9857_v18 = vld [vmem:[%s11603_s17 + $0x1d0] ss:$8 sps:$4 sm:$0xff]  }
 0x137   : > { %7852 = vmatpush1.bf16.msra.mxu1 %v9723_v34  ;;  %8276 = vmatpush1.bf16.msra.mxu0 %v9724_v35  ;;  %v9796_v29 = vld [vmem:[%s11603_s17 + $0x924] ss:$8 sps:$4 sm:$0xff]   ;;  %v9794_v1 = vld [vmem:[%s11603_s17 + $0x920] ss:$8 sps:$4 sm:$0xff]   ;;  %v9860_v19 = vld [vmem:[%s11603_s17 + $0x9d0] ss:$8 sps:$4 sm:$0xff]  }
 0x138   : > { %7853 = vmatprep.subr.bf16.mxu1 %v9725_v36  ;;  %8277 = vmatprep.subr.bf16.mxu0 %v9727_v37  ;;  %v9805_v32 = vld [vmem:[%s11603_s17 + $0x144] ss:$8 sps:$4 sm:$0xff]   ;;  %v9803_v34 = vld [vmem:[%s11603_s17 + $0x140] ss:$8 sps:$4 sm:$0xff]   ;;  %v9811_v36 = vld [vmem:[%s11603_s17 + $0x154] ss:$8 sps:$4 sm:$0xff]  }
 0x139   : > { %v9808_v33 = vld [vmem:[%s11603_s17 + $0x944] ss:$8 sps:$4 sm:$0xff]   ;;  %v9806_v35 = vld [vmem:[%s11603_s17 + $0x940] ss:$8 sps:$4 sm:$0xff]   ;;  %v9814_v37 = vld [vmem:[%s11603_s17 + $0x954] ss:$8 sps:$4 sm:$0xff]  }
 0x13b   : > { %7854 = vmatpush1.bf16.msra.mxu1 %v9729_v38  ;;  %8278 = vmatpush1.bf16.msra.mxu0 %v9730_v39  ;;  %v9809_v38 = vld [vmem:[%s11603_s17 + $0x150] ss:$8 sps:$4 sm:$0xff]  }
 0x13c   : > { %7855 = vmatprep.subr.bf16.mxu1 %v9731_v40  ;;  %8279 = vmatprep.subr.bf16.mxu0 %v9733_v41  ;;  %v9812_v39 = vld [vmem:[%s11603_s17 + $0x950] ss:$8 sps:$4 sm:$0xff]   ;;  %v9817_v40 = vld [vmem:[%s11603_s17 + $0x164] ss:$8 sps:$4 sm:$0xff]  }
 0x13d   : > { %v9820_v41 = vld [vmem:[%s11603_s17 + $0x964] ss:$8 sps:$4 sm:$0xff]  }
 0x13f   : > { %7856 = vmatpush1.bf16.msra.mxu1 %v9735_v42  ;;  %8280 = vmatpush1.bf16.msra.mxu0 %v9736_v43  ;;  %v11716_v42 = vld [vmem:[%s12458_s0 + $0x8] sm:$0xff] }
 0x140   : > { %7857 = vmatprep.subr.bf16.mxu1 %v9737_v44  ;;  %8281 = vmatprep.subr.bf16.mxu0 %v9739_v45  ;;  %v11721_v43 = vld [vmem:[%s12458_s0 + $0x88] sm:$0xff] }
 0x141   : > { %v9815_v44 = vld [vmem:[%s11603_s17 + $0x160] ss:$8 sps:$4 sm:$0xff]   ;;  %v8958_v45 = vcombine.high %v11716_v42, %v11721_v43 }
 0x143   : > { %7858 = vmatpush1.bf16.msra.mxu1 %v9741_v46  ;;  %8282 = vmatpush1.bf16.msra.mxu0 %v9742_v47  ;;  %v9818_v46 = vld [vmem:[%s11603_s17 + $0x960] ss:$8 sps:$4 sm:$0xff]  }
 0x144   : > { %7859 = vmatprep.subr.bf16.mxu1 %v9743_v48  ;;  %8283 = vmatprep.subr.bf16.mxu0 %v9745_v49  ;;  %v11730_v47 = vld [vmem:[%s12458_s0 + $0x48] sm:$0xff]  ;;  %v9823_v49 = vld [vmem:[%s11603_s17 + $0x174] ss:$8 sps:$4 sm:$0xff]  }
 0x145   : > { %v11735_v48 = vld [vmem:[%s12458_s0 + $0xc8] sm:$0xff] }
 0x147   : > { %7860 = vmatpush1.bf16.msra.mxu1 %v9747_v50  ;;  %8284 = vmatpush1.bf16.msra.mxu0 %v9748_v51  ;;  %v8974_v50 = vcombine.high %v11730_v47, %v11735_v48  ;;  %v9826_v51 = vld [vmem:[%s11603_s17 + $0x974] ss:$8 sps:$4 sm:$0xff]  }
 0x148   : > { %7861 = vmatprep.subr.bf16.mxu1 %v9749_v52  ;;  %8285 = vmatprep.subr.bf16.mxu0 %v9751_v53  ;;  %v9821_v52 = vld [vmem:[%s11603_s17 + $0x170] ss:$8 sps:$4 sm:$0xff]  }
 0x149   : > { %v9824_v53 = vld [vmem:[%s11603_s17 + $0x970] ss:$8 sps:$4 sm:$0xff]  }
 0x14b   : > { %7862 = vmatpush1.bf16.msra.mxu1 %v9753_v54  ;;  %8286 = vmatpush1.bf16.msra.mxu0 %v9754_v55  ;;  %v9829_v54 = vld [vmem:[%s11603_s17 + $0x184] ss:$8 sps:$4 sm:$0xff]  }
 0x14c   : > { %7863 = vmatprep.subr.bf16.mxu1 %v9755_v56  ;;  %8287 = vmatprep.subr.bf16.mxu0 %v9757_v57  ;;  %v9832_v55 = vld [vmem:[%s11603_s17 + $0x984] ss:$8 sps:$4 sm:$0xff]   ;;  %v9827_v56 = vld [vmem:[%s11603_s17 + $0x180] ss:$8 sps:$4 sm:$0xff]  }
 0x14d   : > { %v9830_v57 = vld [vmem:[%s11603_s17 + $0x980] ss:$8 sps:$4 sm:$0xff]  }
 0x14f   : > { %7864 = vmatpush1.bf16.msra.mxu1 %v9759_v58  ;;  %8288 = vmatpush1.bf16.msra.mxu0 %v9760_v59  ;;  %v9835_v58 = vld [vmem:[%s11603_s17 + $0x194] ss:$8 sps:$4 sm:$0xff]  }
 0x150   : > { %7865 = vmatprep.subr.bf16.mxu1 %v9761_v60  ;;  %8289 = vmatprep.subr.bf16.mxu0 %v9763_v61  ;;  %v9838_v59 = vld [vmem:[%s11603_s17 + $0x994] ss:$8 sps:$4 sm:$0xff]   ;;  %v9833_v60 = vld [vmem:[%s11603_s17 + $0x190] ss:$8 sps:$4 sm:$0xff]  }
 0x151   : > { %v9836_v61 = vld [vmem:[%s11603_s17 + $0x990] ss:$8 sps:$4 sm:$0xff]  }
 0x153   : > { %7866 = vmatpush1.bf16.msra.mxu1 %v9765_v62  ;;  %8290 = vmatpush1.bf16.msra.mxu0 %v9766_v63  ;;  %v9841_v62 = vld [vmem:[%s11603_s17 + $0x1a4] ss:$8 sps:$4 sm:$0xff]  }
 0x154   : > { %7867 = vmatprep.subr.bf16.mxu1 %v9767_v4  ;;  %8291 = vmatprep.subr.bf16.mxu0 %v9769_v7  ;;  %v9844_v63 = vld [vmem:[%s11603_s17 + $0x9a4] ss:$8 sps:$4 sm:$0xff]   ;;  %v9839_v4 = vld [vmem:[%s11603_s17 + $0x1a0] ss:$8 sps:$4 sm:$0xff]  }
 0x155   : > { %v9842_v7 = vld [vmem:[%s11603_s17 + $0x9a0] ss:$8 sps:$4 sm:$0xff]  }
 0x157   : > { %7868 = vmatpush1.bf16.msra.mxu1 %v9771_v8  ;;  %8292 = vmatpush1.bf16.msra.mxu0 %v9772_v9  ;;  %v9847_v8 = vld [vmem:[%s11603_s17 + $0x1b4] ss:$8 sps:$4 sm:$0xff]  }
 0x158   : > { %7869 = vmatprep.subr.bf16.mxu1 %v9773_v10  ;;  %8293 = vmatprep.subr.bf16.mxu0 %v9775_v11  ;;  %v9850_v9 = vld [vmem:[%s11603_s17 + $0x9b4] ss:$8 sps:$4 sm:$0xff]   ;;  %v9845_v10 = vld [vmem:[%s11603_s17 + $0x1b0] ss:$8 sps:$4 sm:$0xff]  }
 0x159   : > { %v9848_v11 = vld [vmem:[%s11603_s17 + $0x9b0] ss:$8 sps:$4 sm:$0xff]  }
 0x15b   : > { %7870 = vmatpush1.bf16.msra.mxu1 %v9777_v12  ;;  %8294 = vmatpush1.bf16.msra.mxu0 %v9778_v13  ;;  %v9853_v12 = vld [vmem:[%s11603_s17 + $0x1c4] ss:$8 sps:$4 sm:$0xff]  }
 0x15c   : > { %7892 = vmatprep.subr.bf16.mxu1 %v9781_v14  ;;  %8316 = vmatprep.subr.bf16.mxu0 %v9784_v15  ;;  %v9856_v13 = vld [vmem:[%s11603_s17 + $0x9c4] ss:$8 sps:$4 sm:$0xff]   ;;  %v9851_v14 = vld [vmem:[%s11603_s17 + $0x1c0] ss:$8 sps:$4 sm:$0xff]  }
 0x15d   : > { %v9854_v15 = vld [vmem:[%s11603_s17 + $0x9c0] ss:$8 sps:$4 sm:$0xff]  }
 0x15e   : > { %7872 = vmatmul.mubr.bf16.vlgmr.msra.gmra.mrb[0].mxu1 %v8955_v3  ;;  %8296 = vmatmul.mubr.bf16.vlgmr.msra.gmra.mrb[0].mxu0 %v8971_v6  ;;  %v8987_v3 = vcombine.low %v4415_v16, %v4431_v17  ;;  %v9802_v6 = vld [vmem:[%s11603_s17 + $0x934] ss:$8 sps:$4 sm:$0xff]  }
 0x15f   : > { %7893 = vmatpush1.bf16.msra.mxu1 %v9779_v20  ;;  %8317 = vmatpush1.bf16.msra.mxu0 %v9782_v21  ;;  %v9859_v16 = vld [vmem:[%s11603_s17 + $0x1d4] ss:$8 sps:$4 sm:$0xff]   ;;  %v9865_v20 = vld [vmem:[%s11603_s17 + $0x1e4] ss:$8 sps:$4 sm:$0xff]  }
 0x160   : > { %7894 = vmatprep.subr.bf16.mxu1 %v9787_v22  ;;  %8318 = vmatprep.subr.bf16.mxu0 %v9790_v23  ;;  %v9862_v17 = vld [vmem:[%s11603_s17 + $0x9d4] ss:$8 sps:$4 sm:$0xff]   ;;  %v9868_v21 = vld [vmem:[%s11603_s17 + $0x9e4] ss:$8 sps:$4 sm:$0xff]   ;;  %v9863_v22 = vld [vmem:[%s11603_s17 + $0x1e0] ss:$8 sps:$4 sm:$0xff]  }
 0x161   : > { %7881 = vmatprep.mubr.bf16.mxu1 %v8988_v24  ;;  %8305 = vmatprep.mubr.bf16.mxu0 %v9004_v25  ;;  %v9866_v23 = vld [vmem:[%s11603_s17 + $0x9e0] ss:$8 sps:$4 sm:$0xff]   ;;  %v9871_v24 = vld [vmem:[%s11603_s17 + $0x1f4] ss:$8 sps:$4 sm:$0xff]  }
 0x162   : > { %v9874_v25 = vld [vmem:[%s11603_s17 + $0x9f4] ss:$8 sps:$4 sm:$0xff]  }
 0x163   : > { %7895 = vmatpush1.bf16.msra.mxu1 %v9785_v26  ;;  %8319 = vmatpush1.bf16.msra.mxu0 %v9788_v27  ;;  %v9869_v26 = vld [vmem:[%s11603_s17 + $0x1f0] ss:$8 sps:$4 sm:$0xff]  }
 0x164   : > { %7896 = vmatprep.subr.bf16.mxu1 %v9793_v28  ;;  %8320 = vmatprep.subr.bf16.mxu0 %v9796_v29  ;;  %v9872_v27 = vld [vmem:[%s11603_s17 + $0x9f0] ss:$8 sps:$4 sm:$0xff]   ;;  %v9877_v28 = vld [vmem:[%s11603_s17 + $0x204] ss:$8 sps:$4 sm:$0xff]  }
 0x165   : > { %v9880_v29 = vld [vmem:[%s11603_s17 + $0xa04] ss:$8 sps:$4 sm:$0xff]  }
 0x166   : > { %7882 = vmatmul.mubr.bf16.gmra.mrb[4].mxu1 %v8987_v3  ;;  %8306 = vmatmul.mubr.bf16.gmra.mrb[4].mxu0 %v9003_v2  ;;  %v4416_v3 = vld [vmem:[%s12458_s0 + $0x108] sm:$0xff] }
 0x167   : > { %7897 = vmatpush1.bf16.msra.mxu1 %v9791_v0  ;;  %8321 = vmatpush1.bf16.msra.mxu0 %v9794_v1  ;;  %v9875_v0 = vld [vmem:[%s11603_s17 + $0x200] ss:$8 sps:$4 sm:$0xff]  }
 0x168   : > { %7898 = vmatprep.subr.bf16.mxu1 %v9799_v5  ;;  %8322 = vmatprep.subr.bf16.mxu0 %v9802_v6  ;;  %v9878_v1 = vld [vmem:[%s11603_s17 + $0xa00] ss:$8 sps:$4 sm:$0xff]   ;;  %v8957_v5 = vcombine.low %v11716_v42, %v11721_v43  ;;  %v8973_v6 = vcombine.low %v11730_v47, %v11735_v48  ;;  %v11806_v42 = vld [vmem:[%s12458_s0 + $0x10] sm:$0xff] }
 0x169   : > { %7924 = vmatprep.mubr.bf16.mxu1 %v8958_v45  ;;  %8348 = vmatprep.mubr.bf16.mxu0 %v8974_v50  ;;  %v4432_v2 = vld [vmem:[%s12458_s0 + $0x188] sm:$0xff]  ;;  %v11811_v43 = vld [vmem:[%s12458_s0 + $0x90] sm:$0xff] }
 0x16a   : > { %v11821_v47 = vld [vmem:[%s12458_s0 + $0xd0] sm:$0xff]  ;;  %v8960_v50 = vcombine.high %v11806_v42, %v11811_v43 }
 0x16b   : > { %7899 = vmatpush1.bf16.msra.mxu1 %v9797_v30  ;;  %8323 = vmatpush1.bf16.msra.mxu0 %v9800_v31  ;;  %v4424_v30 = vld [vmem:[%s12458_s0 + $0x148] sm:$0xff]  ;;  %v9895_v48 = vld [vmem:[%s11603_s17 + $0x234] ss:$8 sps:$4 sm:$0xff]  }
 0x16c   : > { %7900 = vmatprep.subr.bf16.mxu1 %v9805_v32  ;;  %8324 = vmatprep.subr.bf16.mxu0 %v9808_v33  ;;  %v4440_v31 = vld [vmem:[%s12458_s0 + $0x1c8] sm:$0xff]  ;;  %v9883_v32 = vld [vmem:[%s11603_s17 + $0x214] ss:$8 sps:$4 sm:$0xff]  }
 0x16d   : > { %v9886_v33 = vld [vmem:[%s11603_s17 + $0xa14] ss:$8 sps:$4 sm:$0xff]   ;;  %v9005_v45 = vcombine.low %v4424_v30, %v4440_v31 }
 0x16f   : > { %7901 = vmatpush1.bf16.msra.mxu1 %v9803_v34  ;;  %8325 = vmatpush1.bf16.msra.mxu0 %v9806_v35  ;;  %v8990_v34 = vcombine.high %v4416_v3, %v4432_v2  ;;  %v9006_v35 = vcombine.high %v4424_v30, %v4440_v31  ;;  %v9961_v30 = vld [vmem:[%s11603_s17 + $0x2e4] ss:$8 sps:$4 sm:$0xff]  }
 0x170   : > { %7902 = vmatprep.subr.bf16.mxu1 %v9811_v36  ;;  %8326 = vmatprep.subr.bf16.mxu0 %v9814_v37  ;;  %v9881_v36 = vld [vmem:[%s11603_s17 + $0x210] ss:$8 sps:$4 sm:$0xff]   ;;  %v9964_v31 = vld [vmem:[%s11603_s17 + $0xae4] ss:$8 sps:$4 sm:$0xff]  }
 0x171   : > { %v9884_v37 = vld [vmem:[%s11603_s17 + $0xa10] ss:$8 sps:$4 sm:$0xff]  }
 0x173   : > { %7903 = vmatpush1.bf16.msra.mxu1 %v9809_v38  ;;  %8327 = vmatpush1.bf16.msra.mxu0 %v9812_v39  ;;  %v9889_v38 = vld [vmem:[%s11603_s17 + $0x224] ss:$8 sps:$4 sm:$0xff]  }
 0x174   : > { %7904 = vmatprep.subr.bf16.mxu1 %v9817_v40  ;;  %8328 = vmatprep.subr.bf16.mxu0 %v9820_v41  ;;  %v9892_v39 = vld [vmem:[%s11603_s17 + $0xa24] ss:$8 sps:$4 sm:$0xff]   ;;  %v9887_v40 = vld [vmem:[%s11603_s17 + $0x220] ss:$8 sps:$4 sm:$0xff]  }
 0x175   : > { %v9890_v41 = vld [vmem:[%s11603_s17 + $0xa20] ss:$8 sps:$4 sm:$0xff]  }
 0x177   : > { %7905 = vmatpush1.bf16.msra.mxu1 %v9815_v44  ;;  %8329 = vmatpush1.bf16.msra.mxu0 %v9818_v46  ;;  %v8989_v44 = vcombine.low %v4416_v3, %v4432_v2  ;;  %v11816_v46 = vld [vmem:[%s12458_s0 + $0x50] sm:$0xff] }
 0x178   : > { %7906 = vmatprep.subr.bf16.mxu1 %v9823_v49  ;;  %8330 = vmatprep.subr.bf16.mxu0 %v9826_v51  ;;  %v9898_v49 = vld [vmem:[%s11603_s17 + $0xa34] ss:$8 sps:$4 sm:$0xff]   ;;  %v8976_v51 = vcombine.high %v11816_v46, %v11821_v47 }
 0x179   : > { %v9955_v3 = vld [vmem:[%s11603_s17 + $0x2d4] ss:$8 sps:$4 sm:$0xff]  }
 0x17a   : > { %v9958_v2 = vld [vmem:[%s11603_s17 + $0xad4] ss:$8 sps:$4 sm:$0xff]  }
 0x17b   : > { %7907 = vmatpush1.bf16.msra.mxu1 %v9821_v52  ;;  %8331 = vmatpush1.bf16.msra.mxu0 %v9824_v53  ;;  %v9893_v52 = vld [vmem:[%s11603_s17 + $0x230] ss:$8 sps:$4 sm:$0xff]  }
 0x17c   : > { %7908 = vmatprep.subr.bf16.mxu1 %v9829_v54  ;;  %8332 = vmatprep.subr.bf16.mxu0 %v9832_v55  ;;  %v9896_v53 = vld [vmem:[%s11603_s17 + $0xa30] ss:$8 sps:$4 sm:$0xff]   ;;  %v9901_v54 = vld [vmem:[%s11603_s17 + $0x244] ss:$8 sps:$4 sm:$0xff]  }
 0x17d   : > { %v9904_v55 = vld [vmem:[%s11603_s17 + $0xa44] ss:$8 sps:$4 sm:$0xff]  }
 0x17f   : > { %7909 = vmatpush1.bf16.msra.mxu1 %v9827_v56  ;;  %8333 = vmatpush1.bf16.msra.mxu0 %v9830_v57  ;;  %v9899_v56 = vld [vmem:[%s11603_s17 + $0x240] ss:$8 sps:$4 sm:$0xff]  }
 0x180   : > { %7910 = vmatprep.subr.bf16.mxu1 %v9835_v58  ;;  %8334 = vmatprep.subr.bf16.mxu0 %v9838_v59  ;;  %v9902_v57 = vld [vmem:[%s11603_s17 + $0xa40] ss:$8 sps:$4 sm:$0xff]   ;;  %v9907_v58 = vld [vmem:[%s11603_s17 + $0x254] ss:$8 sps:$4 sm:$0xff]  }
 0x181   : > { %v9910_v59 = vld [vmem:[%s11603_s17 + $0xa54] ss:$8 sps:$4 sm:$0xff]  }
 0x183   : > { %7911 = vmatpush1.bf16.msra.mxu1 %v9833_v60  ;;  %8335 = vmatpush1.bf16.msra.mxu0 %v9836_v61  ;;  %v9905_v60 = vld [vmem:[%s11603_s17 + $0x250] ss:$8 sps:$4 sm:$0xff]  }
 0x184   : > { %7912 = vmatprep.subr.bf16.mxu1 %v9841_v62  ;;  %8336 = vmatprep.subr.bf16.mxu0 %v9844_v63  ;;  %v9908_v61 = vld [vmem:[%s11603_s17 + $0xa50] ss:$8 sps:$4 sm:$0xff]   ;;  %v9913_v62 = vld [vmem:[%s11603_s17 + $0x264] ss:$8 sps:$4 sm:$0xff]  }
 0x185   : > { %v9916_v63 = vld [vmem:[%s11603_s17 + $0xa64] ss:$8 sps:$4 sm:$0xff]  }
 0x187   : > { %7913 = vmatpush1.bf16.msra.mxu1 %v9839_v4  ;;  %8337 = vmatpush1.bf16.msra.mxu0 %v9842_v7  ;;  %v9911_v4 = vld [vmem:[%s11603_s17 + $0x260] ss:$8 sps:$4 sm:$0xff]  }
 0x188   : > { %7914 = vmatprep.subr.bf16.mxu1 %v9847_v8  ;;  %8338 = vmatprep.subr.bf16.mxu0 %v9850_v9  ;;  %v9914_v7 = vld [vmem:[%s11603_s17 + $0xa60] ss:$8 sps:$4 sm:$0xff]   ;;  %v9919_v8 = vld [vmem:[%s11603_s17 + $0x274] ss:$8 sps:$4 sm:$0xff]  }
 0x189   : > { %v9922_v9 = vld [vmem:[%s11603_s17 + $0xa74] ss:$8 sps:$4 sm:$0xff]  }
 0x18b   : > { %7915 = vmatpush1.bf16.msra.mxu1 %v9845_v10  ;;  %8339 = vmatpush1.bf16.msra.mxu0 %v9848_v11  ;;  %v9917_v10 = vld [vmem:[%s11603_s17 + $0x270] ss:$8 sps:$4 sm:$0xff]  }
 0x18c   : > { %7916 = vmatprep.subr.bf16.mxu1 %v9853_v12  ;;  %8340 = vmatprep.subr.bf16.mxu0 %v9856_v13  ;;  %v9920_v11 = vld [vmem:[%s11603_s17 + $0xa70] ss:$8 sps:$4 sm:$0xff]   ;;  %v9925_v12 = vld [vmem:[%s11603_s17 + $0x284] ss:$8 sps:$4 sm:$0xff]  }
 0x18d   : > { %v9928_v13 = vld [vmem:[%s11603_s17 + $0xa84] ss:$8 sps:$4 sm:$0xff]  }
 0x18f   : > { %7917 = vmatpush1.bf16.msra.mxu1 %v9851_v14  ;;  %8341 = vmatpush1.bf16.msra.mxu0 %v9854_v15  ;;  %v9923_v14 = vld [vmem:[%s11603_s17 + $0x280] ss:$8 sps:$4 sm:$0xff]  }
 0x190   : > { %7918 = vmatprep.subr.bf16.mxu1 %v9859_v16  ;;  %8342 = vmatprep.subr.bf16.mxu0 %v9862_v17  ;;  %v9926_v15 = vld [vmem:[%s11603_s17 + $0xa80] ss:$8 sps:$4 sm:$0xff]   ;;  %v9931_v16 = vld [vmem:[%s11603_s17 + $0x294] ss:$8 sps:$4 sm:$0xff]  }
 0x191   : > { %v9934_v17 = vld [vmem:[%s11603_s17 + $0xa94] ss:$8 sps:$4 sm:$0xff]  }
 0x193   : > { %7919 = vmatpush1.bf16.msra.mxu1 %v9857_v18  ;;  %8343 = vmatpush1.bf16.msra.mxu0 %v9860_v19  ;;  %v9929_v18 = vld [vmem:[%s11603_s17 + $0x290] ss:$8 sps:$4 sm:$0xff]  }
 0x194   : > { %7920 = vmatprep.subr.bf16.mxu1 %v9865_v20  ;;  %8344 = vmatprep.subr.bf16.mxu0 %v9868_v21  ;;  %v9932_v19 = vld [vmem:[%s11603_s17 + $0xa90] ss:$8 sps:$4 sm:$0xff]   ;;  %v9937_v20 = vld [vmem:[%s11603_s17 + $0x2a4] ss:$8 sps:$4 sm:$0xff]  }
 0x195   : > { %v9940_v21 = vld [vmem:[%s11603_s17 + $0xaa4] ss:$8 sps:$4 sm:$0xff]  }
 0x197   : > { %7921 = vmatpush1.bf16.msra.mxu1 %v9863_v22  ;;  %8345 = vmatpush1.bf16.msra.mxu0 %v9866_v23  ;;  %v9935_v22 = vld [vmem:[%s11603_s17 + $0x2a0] ss:$8 sps:$4 sm:$0xff]  }
 0x198   : > { %7922 = vmatprep.subr.bf16.mxu1 %v9871_v24  ;;  %8346 = vmatprep.subr.bf16.mxu0 %v9874_v25  ;;  %v9938_v23 = vld [vmem:[%s11603_s17 + $0xaa0] ss:$8 sps:$4 sm:$0xff]   ;;  %v9943_v24 = vld [vmem:[%s11603_s17 + $0x2b4] ss:$8 sps:$4 sm:$0xff]  }
 0x199   : > { %v9946_v25 = vld [vmem:[%s11603_s17 + $0xab4] ss:$8 sps:$4 sm:$0xff]  }
 0x19b   : > { %7923 = vmatpush1.bf16.msra.mxu1 %v9869_v26  ;;  %8347 = vmatpush1.bf16.msra.mxu0 %v9872_v27  ;;  %v9941_v26 = vld [vmem:[%s11603_s17 + $0x2b0] ss:$8 sps:$4 sm:$0xff]  }
 0x19c   : > { %7945 = vmatprep.subr.bf16.mxu1 %v9877_v28  ;;  %8369 = vmatprep.subr.bf16.mxu0 %v9880_v29  ;;  %v9944_v27 = vld [vmem:[%s11603_s17 + $0xab0] ss:$8 sps:$4 sm:$0xff]   ;;  %v9949_v28 = vld [vmem:[%s11603_s17 + $0x2c4] ss:$8 sps:$4 sm:$0xff]  }
 0x19d   : > { %v9952_v29 = vld [vmem:[%s11603_s17 + $0xac4] ss:$8 sps:$4 sm:$0xff]  }
 0x19e   : > { %7925 = vmatmul.mubr.bf16.vlgmr.msra.gmra.mrb[0].mxu1 %v8957_v5  ;;  %8349 = vmatmul.mubr.bf16.vlgmr.msra.gmra.mrb[0].mxu0 %v8973_v6  ;;  %v9953_v5 = vld [vmem:[%s11603_s17 + $0x2d0] ss:$8 sps:$4 sm:$0xff]  }
 0x19f   : > { %7946 = vmatpush1.bf16.msra.mxu1 %v9875_v0  ;;  %8370 = vmatpush1.bf16.msra.mxu0 %v9878_v1  ;;  %v9947_v0 = vld [vmem:[%s11603_s17 + $0x2c0] ss:$8 sps:$4 sm:$0xff]   ;;  %v9956_v6 = vld [vmem:[%s11603_s17 + $0xad0] ss:$8 sps:$4 sm:$0xff]  }
 0x1a0   : > { %7947 = vmatprep.subr.bf16.mxu1 %v9883_v32  ;;  %8371 = vmatprep.subr.bf16.mxu0 %v9886_v33  ;;  %v9950_v1 = vld [vmem:[%s11603_s17 + $0xac0] ss:$8 sps:$4 sm:$0xff]  }
 0x1a1   : > { %7934 = vmatprep.mubr.bf16.mxu1 %v8990_v34  ;;  %8358 = vmatprep.mubr.bf16.mxu0 %v9006_v35  ;;  %v9959_v32 = vld [vmem:[%s11603_s17 + $0x2e0] ss:$8 sps:$4 sm:$0xff]   ;;  %v9967_v34 = vld [vmem:[%s11603_s17 + $0x2f4] ss:$8 sps:$4 sm:$0xff]  }
 0x1a2   : > { %v9962_v33 = vld [vmem:[%s11603_s17 + $0xae0] ss:$8 sps:$4 sm:$0xff]   ;;  %v9970_v35 = vld [vmem:[%s11603_s17 + $0xaf4] ss:$8 sps:$4 sm:$0xff]  }
 0x1a3   : > { %7948 = vmatpush1.bf16.msra.mxu1 %v9881_v36  ;;  %8372 = vmatpush1.bf16.msra.mxu0 %v9884_v37  ;;  %v9965_v36 = vld [vmem:[%s11603_s17 + $0x2f0] ss:$8 sps:$4 sm:$0xff]  }
 0x1a4   : > { %7949 = vmatprep.subr.bf16.mxu1 %v9889_v38  ;;  %8373 = vmatprep.subr.bf16.mxu0 %v9892_v39  ;;  %v9968_v37 = vld [vmem:[%s11603_s17 + $0xaf0] ss:$8 sps:$4 sm:$0xff]   ;;  %v9973_v38 = vld [vmem:[%s11603_s17 + $0x304] ss:$8 sps:$4 sm:$0xff]  }
 0x1a5   : > { %v9976_v39 = vld [vmem:[%s11603_s17 + $0xb04] ss:$8 sps:$4 sm:$0xff]  }
 0x1a6   : > { %7935 = vmatmul.mubr.bf16.gmra.mrb[4].mxu1 %v8989_v44  ;;  %8359 = vmatmul.mubr.bf16.gmra.mrb[4].mxu0 %v9005_v45  ;;  %v4417_v44 = vld [vmem:[%s12458_s0 + $0x110] sm:$0xff] }
 0x1a7   : > { %7950 = vmatpush1.bf16.msra.mxu1 %v9887_v40  ;;  %8374 = vmatpush1.bf16.msra.mxu0 %v9890_v41  ;;  %v9971_v40 = vld [vmem:[%s11603_s17 + $0x300] ss:$8 sps:$4 sm:$0xff]   ;;  %v4433_v45 = vld [vmem:[%s12458_s0 + $0x190] sm:$0xff] }
 0x1a8   : > { %7951 = vmatprep.subr.bf16.mxu1 %v9895_v48  ;;  %8375 = vmatprep.subr.bf16.mxu0 %v9898_v49  ;;  %v9974_v41 = vld [vmem:[%s11603_s17 + $0xb00] ss:$8 sps:$4 sm:$0xff]   ;;  %v8959_v48 = vcombine.low %v11806_v42, %v11811_v43  ;;  %v8975_v49 = vcombine.low %v11816_v46, %v11821_v47  ;;  %v9982_v42 = vld [vmem:[%s11603_s17 + $0xb14] ss:$8 sps:$4 sm:$0xff]   ;;  %v8992_v43 = vcombine.high %v4417_v44, %v4433_v45  ;;  %v9977_v47 = vld [vmem:[%s11603_s17 + $0x310] ss:$8 sps:$4 sm:$0xff]  }
 0x1a9   : > { %7977 = vmatprep.mubr.bf16.mxu1 %v8960_v50  ;;  %8401 = vmatprep.mubr.bf16.mxu0 %v8976_v51  ;;  %v4425_v50 = vld [vmem:[%s12458_s0 + $0x150] sm:$0xff] }
 0x1aa   : > { %v4441_v51 = vld [vmem:[%s12458_s0 + $0x1d0] sm:$0xff] }
 0x1ab   : > { %7952 = vmatpush1.bf16.msra.mxu1 %v9893_v52  ;;  %8376 = vmatpush1.bf16.msra.mxu0 %v9896_v53  ;;  %v9979_v52 = vld [vmem:[%s11603_s17 + $0x314] ss:$8 sps:$4 sm:$0xff]   ;;  %v9008_v46 = vcombine.high %v4425_v50, %v4441_v51  ;;  %v9980_v53 = vld [vmem:[%s11603_s17 + $0xb10] ss:$8 sps:$4 sm:$0xff]  }
 0x1ac   : > { %7953 = vmatprep.subr.bf16.mxu1 %v9901_v54  ;;  %8377 = vmatprep.subr.bf16.mxu0 %v9904_v55  ;;  %v9985_v54 = vld [vmem:[%s11603_s17 + $0x324] ss:$8 sps:$4 sm:$0xff]  }
 0x1ad   : > { %v9988_v55 = vld [vmem:[%s11603_s17 + $0xb24] ss:$8 sps:$4 sm:$0xff]  }
 0x1af   : > { %7954 = vmatpush1.bf16.msra.mxu1 %v9899_v56  ;;  %8378 = vmatpush1.bf16.msra.mxu0 %v9902_v57  ;;  %v9983_v56 = vld [vmem:[%s11603_s17 + $0x320] ss:$8 sps:$4 sm:$0xff]  }
 0x1b0   : > { %7955 = vmatprep.subr.bf16.mxu1 %v9907_v58  ;;  %8379 = vmatprep.subr.bf16.mxu0 %v9910_v59  ;;  %v9986_v57 = vld [vmem:[%s11603_s17 + $0xb20] ss:$8 sps:$4 sm:$0xff]   ;;  %v11910_v58 = vld [vmem:[%s12458_s0 + $0x18] sm:$0xff] }
 0x1b1   : > { %v11915_v59 = vld [vmem:[%s12458_s0 + $0x98] sm:$0xff] }
 0x1b3   : > { %7956 = vmatpush1.bf16.msra.mxu1 %v9905_v60  ;;  %8380 = vmatpush1.bf16.msra.mxu0 %v9908_v61  ;;  %v8991_v60 = vcombine.low %v4417_v44, %v4433_v45  ;;  %v9007_v61 = vcombine.low %v4425_v50, %v4441_v51  ;;  %v10051_v44 = vld [vmem:[%s11603_s17 + $0x3d4] ss:$8 sps:$4 sm:$0xff]   ;;  %v10057_v50 = vld [vmem:[%s11603_s17 + $0x3e4] ss:$8 sps:$4 sm:$0xff]  }
 0x1b4   : > { %7957 = vmatprep.subr.bf16.mxu1 %v9913_v62  ;;  %8381 = vmatprep.subr.bf16.mxu0 %v9916_v63  ;;  %v11920_v62 = vld [vmem:[%s12458_s0 + $0x58] sm:$0xff]  ;;  %v10060_v51 = vld [vmem:[%s11603_s17 + $0xbe4] ss:$8 sps:$4 sm:$0xff]  }
 0x1b5   : > { %v11925_v63 = vld [vmem:[%s12458_s0 + $0xd8] sm:$0xff] }
 0x1b6   : > { %v10054_v45 = vld [vmem:[%s11603_s17 + $0xbd4] ss:$8 sps:$4 sm:$0xff]  }
 0x1b7   : > { %7958 = vmatpush1.bf16.msra.mxu1 %v9911_v4  ;;  %8382 = vmatpush1.bf16.msra.mxu0 %v9914_v7  ;;  %v9991_v4 = vld [vmem:[%s11603_s17 + $0x334] ss:$8 sps:$4 sm:$0xff]  }
 0x1b8   : > { %7959 = vmatprep.subr.bf16.mxu1 %v9919_v8  ;;  %8383 = vmatprep.subr.bf16.mxu0 %v9922_v9  ;;  %v9994_v7 = vld [vmem:[%s11603_s17 + $0xb34] ss:$8 sps:$4 sm:$0xff]   ;;  %v8962_v8 = vcombine.high %v11910_v58, %v11915_v59  ;;  %v8978_v9 = vcombine.high %v11920_v62, %v11925_v63 }
 0x1bb   : > { %7960 = vmatpush1.bf16.msra.mxu1 %v9917_v10  ;;  %8384 = vmatpush1.bf16.msra.mxu0 %v9920_v11  ;;  %v9989_v10 = vld [vmem:[%s11603_s17 + $0x330] ss:$8 sps:$4 sm:$0xff]  }
 0x1bc   : > { %7961 = vmatprep.subr.bf16.mxu1 %v9925_v12  ;;  %8385 = vmatprep.subr.bf16.mxu0 %v9928_v13  ;;  %v9992_v11 = vld [vmem:[%s11603_s17 + $0xb30] ss:$8 sps:$4 sm:$0xff]   ;;  %v9997_v12 = vld [vmem:[%s11603_s17 + $0x344] ss:$8 sps:$4 sm:$0xff]  }
 0x1bd   : > { %v10000_v13 = vld [vmem:[%s11603_s17 + $0xb44] ss:$8 sps:$4 sm:$0xff]  }
 0x1bf   : > { %7962 = vmatpush1.bf16.msra.mxu1 %v9923_v14  ;;  %8386 = vmatpush1.bf16.msra.mxu0 %v9926_v15  ;;  %v9995_v14 = vld [vmem:[%s11603_s17 + $0x340] ss:$8 sps:$4 sm:$0xff]  }
 0x1c0   : > { %7963 = vmatprep.subr.bf16.mxu1 %v9931_v16  ;;  %8387 = vmatprep.subr.bf16.mxu0 %v9934_v17  ;;  %v9998_v15 = vld [vmem:[%s11603_s17 + $0xb40] ss:$8 sps:$4 sm:$0xff]   ;;  %v10003_v16 = vld [vmem:[%s11603_s17 + $0x354] ss:$8 sps:$4 sm:$0xff]  }
 0x1c1   : > { %v10006_v17 = vld [vmem:[%s11603_s17 + $0xb54] ss:$8 sps:$4 sm:$0xff]  }
 0x1c3   : > { %7964 = vmatpush1.bf16.msra.mxu1 %v9929_v18  ;;  %8388 = vmatpush1.bf16.msra.mxu0 %v9932_v19  ;;  %v10001_v18 = vld [vmem:[%s11603_s17 + $0x350] ss:$8 sps:$4 sm:$0xff]  }
 0x1c4   : > { %7965 = vmatprep.subr.bf16.mxu1 %v9937_v20  ;;  %8389 = vmatprep.subr.bf16.mxu0 %v9940_v21  ;;  %v10004_v19 = vld [vmem:[%s11603_s17 + $0xb50] ss:$8 sps:$4 sm:$0xff]   ;;  %v10009_v20 = vld [vmem:[%s11603_s17 + $0x364] ss:$8 sps:$4 sm:$0xff]  }
 0x1c5   : > { %v10012_v21 = vld [vmem:[%s11603_s17 + $0xb64] ss:$8 sps:$4 sm:$0xff]  }
 0x1c7   : > { %7966 = vmatpush1.bf16.msra.mxu1 %v9935_v22  ;;  %8390 = vmatpush1.bf16.msra.mxu0 %v9938_v23  ;;  %v10007_v22 = vld [vmem:[%s11603_s17 + $0x360] ss:$8 sps:$4 sm:$0xff]  }
 0x1c8   : > { %7967 = vmatprep.subr.bf16.mxu1 %v9943_v24  ;;  %8391 = vmatprep.subr.bf16.mxu0 %v9946_v25  ;;  %v10010_v23 = vld [vmem:[%s11603_s17 + $0xb60] ss:$8 sps:$4 sm:$0xff]   ;;  %v10015_v24 = vld [vmem:[%s11603_s17 + $0x374] ss:$8 sps:$4 sm:$0xff]  }
 0x1c9   : > { %v10018_v25 = vld [vmem:[%s11603_s17 + $0xb74] ss:$8 sps:$4 sm:$0xff]  }
 0x1cb   : > { %7968 = vmatpush1.bf16.msra.mxu1 %v9941_v26  ;;  %8392 = vmatpush1.bf16.msra.mxu0 %v9944_v27  ;;  %v10013_v26 = vld [vmem:[%s11603_s17 + $0x370] ss:$8 sps:$4 sm:$0xff]  }
 0x1cc   : > { %7969 = vmatprep.subr.bf16.mxu1 %v9949_v28  ;;  %8393 = vmatprep.subr.bf16.mxu0 %v9952_v29  ;;  %v10016_v27 = vld [vmem:[%s11603_s17 + $0xb70] ss:$8 sps:$4 sm:$0xff]   ;;  %v10021_v28 = vld [vmem:[%s11603_s17 + $0x384] ss:$8 sps:$4 sm:$0xff]  }
 0x1cd   : > { %v10024_v29 = vld [vmem:[%s11603_s17 + $0xb84] ss:$8 sps:$4 sm:$0xff]  }
 0x1cf   : > { %7970 = vmatpush1.bf16.msra.mxu1 %v9947_v0  ;;  %8394 = vmatpush1.bf16.msra.mxu0 %v9950_v1  ;;  %v10019_v0 = vld [vmem:[%s11603_s17 + $0x380] ss:$8 sps:$4 sm:$0xff]  }
 0x1d0   : > { %7971 = vmatprep.subr.bf16.mxu1 %v9955_v3  ;;  %8395 = vmatprep.subr.bf16.mxu0 %v9958_v2  ;;  %v10022_v1 = vld [vmem:[%s11603_s17 + $0xb80] ss:$8 sps:$4 sm:$0xff]   ;;  %v10027_v3 = vld [vmem:[%s11603_s17 + $0x394] ss:$8 sps:$4 sm:$0xff]  }
 0x1d1   : > { %v10030_v2 = vld [vmem:[%s11603_s17 + $0xb94] ss:$8 sps:$4 sm:$0xff]  }
 0x1d3   : > { %7972 = vmatpush1.bf16.msra.mxu1 %v9953_v5  ;;  %8396 = vmatpush1.bf16.msra.mxu0 %v9956_v6  ;;  %v10025_v5 = vld [vmem:[%s11603_s17 + $0x390] ss:$8 sps:$4 sm:$0xff]  }
 0x1d4   : > { %7973 = vmatprep.subr.bf16.mxu1 %v9961_v30  ;;  %8397 = vmatprep.subr.bf16.mxu0 %v9964_v31  ;;  %v10028_v6 = vld [vmem:[%s11603_s17 + $0xb90] ss:$8 sps:$4 sm:$0xff]   ;;  %v10033_v30 = vld [vmem:[%s11603_s17 + $0x3a4] ss:$8 sps:$4 sm:$0xff]  }
 0x1d5   : > { %v10036_v31 = vld [vmem:[%s11603_s17 + $0xba4] ss:$8 sps:$4 sm:$0xff]  }
 0x1d7   : > { %7974 = vmatpush1.bf16.msra.mxu1 %v9959_v32  ;;  %8398 = vmatpush1.bf16.msra.mxu0 %v9962_v33  ;;  %v10031_v32 = vld [vmem:[%s11603_s17 + $0x3a0] ss:$8 sps:$4 sm:$0xff]  }
 0x1d8   : > { %7975 = vmatprep.subr.bf16.mxu1 %v9967_v34  ;;  %8399 = vmatprep.subr.bf16.mxu0 %v9970_v35  ;;  %v10034_v33 = vld [vmem:[%s11603_s17 + $0xba0] ss:$8 sps:$4 sm:$0xff]   ;;  %v10039_v34 = vld [vmem:[%s11603_s17 + $0x3b4] ss:$8 sps:$4 sm:$0xff]  }
 0x1d9   : > { %v10042_v35 = vld [vmem:[%s11603_s17 + $0xbb4] ss:$8 sps:$4 sm:$0xff]  }
 0x1db   : > { %7976 = vmatpush1.bf16.msra.mxu1 %v9965_v36  ;;  %8400 = vmatpush1.bf16.msra.mxu0 %v9968_v37  ;;  %v10037_v36 = vld [vmem:[%s11603_s17 + $0x3b0] ss:$8 sps:$4 sm:$0xff]  }
 0x1dc   : > { %7998 = vmatprep.subr.bf16.mxu1 %v9973_v38  ;;  %8422 = vmatprep.subr.bf16.mxu0 %v9976_v39  ;;  %v10040_v37 = vld [vmem:[%s11603_s17 + $0xbb0] ss:$8 sps:$4 sm:$0xff]   ;;  %v10045_v38 = vld [vmem:[%s11603_s17 + $0x3c4] ss:$8 sps:$4 sm:$0xff]  }
 0x1dd   : > { %v10048_v39 = vld [vmem:[%s11603_s17 + $0xbc4] ss:$8 sps:$4 sm:$0xff]  }
 0x1de   : > { %7978 = vmatmul.mubr.bf16.vlgmr.msra.gmra.mrb[0].mxu1 %v8959_v48  ;;  %8402 = vmatmul.mubr.bf16.vlgmr.msra.gmra.mrb[0].mxu0 %v8975_v49  ;;  %v10049_v48 = vld [vmem:[%s11603_s17 + $0x3d0] ss:$8 sps:$4 sm:$0xff]  }
 0x1df   : > { %7999 = vmatpush1.bf16.msra.mxu1 %v9971_v40  ;;  %8423 = vmatpush1.bf16.msra.mxu0 %v9974_v41  ;;  %v10043_v40 = vld [vmem:[%s11603_s17 + $0x3c0] ss:$8 sps:$4 sm:$0xff]   ;;  %v10052_v49 = vld [vmem:[%s11603_s17 + $0xbd0] ss:$8 sps:$4 sm:$0xff]  }
 0x1e0   : > { %8000 = vmatprep.subr.bf16.mxu1 %v9979_v52  ;;  %8424 = vmatprep.subr.bf16.mxu0 %v9982_v42  ;;  %v10046_v41 = vld [vmem:[%s11603_s17 + $0xbc0] ss:$8 sps:$4 sm:$0xff]  }
 0x1e1   : > { %7987 = vmatprep.mubr.bf16.mxu1 %v8992_v43  ;;  %8411 = vmatprep.mubr.bf16.mxu0 %v9008_v46  ;;  %v10055_v52 = vld [vmem:[%s11603_s17 + $0x3e0] ss:$8 sps:$4 sm:$0xff]   ;;  %v10063_v43 = vld [vmem:[%s11603_s17 + $0x3f4] ss:$8 sps:$4 sm:$0xff]  }
 0x1e2   : > { %v10058_v42 = vld [vmem:[%s11603_s17 + $0xbe0] ss:$8 sps:$4 sm:$0xff]   ;;  %v10066_v46 = vld [vmem:[%s11603_s17 + $0xbf4] ss:$8 sps:$4 sm:$0xff]  }
 0x1e3   : > { %8001 = vmatpush1.bf16.msra.mxu1 %v9977_v47  ;;  %8425 = vmatpush1.bf16.msra.mxu0 %v9980_v53  ;;  %v10061_v47 = vld [vmem:[%s11603_s17 + $0x3f0] ss:$8 sps:$4 sm:$0xff]  }
 0x1e4   : > { %8002 = vmatprep.subr.bf16.mxu1 %v9985_v54  ;;  %8426 = vmatprep.subr.bf16.mxu0 %v9988_v55  ;;  %v10064_v53 = vld [vmem:[%s11603_s17 + $0xbf0] ss:$8 sps:$4 sm:$0xff]   ;;  %v10069_v54 = vld [vmem:[%s11603_s17 + $0x404] ss:$8 sps:$4 sm:$0xff]  }
 0x1e5   : > { %v10072_v55 = vld [vmem:[%s11603_s17 + $0xc04] ss:$8 sps:$4 sm:$0xff]  }
 0x1e6   : > { %7988 = vmatmul.mubr.bf16.gmra.mrb[4].mxu1 %v8991_v60  ;;  %8412 = vmatmul.mubr.bf16.gmra.mrb[4].mxu0 %v9007_v61  ;;  %v4418_v60 = vld [vmem:[%s12458_s0 + $0x118] sm:$0xff] }
 0x1e7   : > { %8003 = vmatpush1.bf16.msra.mxu1 %v9983_v56  ;;  %8427 = vmatpush1.bf16.msra.mxu0 %v9986_v57  ;;  %v10067_v56 = vld [vmem:[%s11603_s17 + $0x400] ss:$8 sps:$4 sm:$0xff]   ;;  %v4434_v61 = vld [vmem:[%s12458_s0 + $0x198] sm:$0xff] }
 0x1e8   : > { %8004 = vmatprep.subr.bf16.mxu1 %v9991_v4  ;;  %8428 = vmatprep.subr.bf16.mxu0 %v9994_v7  ;;  %v10070_v57 = vld [vmem:[%s11603_s17 + $0xc00] ss:$8 sps:$4 sm:$0xff]   ;;  %v8961_v4 = vcombine.low %v11910_v58, %v11915_v59  ;;  %v8977_v7 = vcombine.low %v11920_v62, %v11925_v63  ;;  %v10078_v58 = vld [vmem:[%s11603_s17 + $0xc14] ss:$8 sps:$4 sm:$0xff]   ;;  %v8994_v59 = vcombine.high %v4418_v60, %v4434_v61  ;;  %v10073_v63 = vld [vmem:[%s11603_s17 + $0x410] ss:$8 sps:$4 sm:$0xff]  }
 0x1e9   : > { %8030 = vmatprep.mubr.bf16.mxu1 %v8962_v8  ;;  %8454 = vmatprep.mubr.bf16.mxu0 %v8978_v9  ;;  %v4426_v8 = vld [vmem:[%s12458_s0 + $0x158] sm:$0xff] }
 0x1ea   : > { %v4442_v9 = vld [vmem:[%s12458_s0 + $0x1d8] sm:$0xff] }
 0x1eb   : > { %8005 = vmatpush1.bf16.msra.mxu1 %v9989_v10  ;;  %8429 = vmatpush1.bf16.msra.mxu0 %v9992_v11  ;;  %v10075_v10 = vld [vmem:[%s11603_s17 + $0x414] ss:$8 sps:$4 sm:$0xff]   ;;  %v9010_v62 = vcombine.high %v4426_v8, %v4442_v9  ;;  %v10076_v11 = vld [vmem:[%s11603_s17 + $0xc10] ss:$8 sps:$4 sm:$0xff]  }
 0x1ec   : > { %8006 = vmatprep.subr.bf16.mxu1 %v9997_v12  ;;  %8430 = vmatprep.subr.bf16.mxu0 %v10000_v13  ;;  %v10081_v12 = vld [vmem:[%s11603_s17 + $0x424] ss:$8 sps:$4 sm:$0xff]  }
 0x1ed   : > { %v10084_v13 = vld [vmem:[%s11603_s17 + $0xc24] ss:$8 sps:$4 sm:$0xff]  }
 0x1ef   : > { %8007 = vmatpush1.bf16.msra.mxu1 %v9995_v14  ;;  %8431 = vmatpush1.bf16.msra.mxu0 %v9998_v15  ;;  %v10079_v14 = vld [vmem:[%s11603_s17 + $0x420] ss:$8 sps:$4 sm:$0xff]  }
 0x1f0   : > { %8008 = vmatprep.subr.bf16.mxu1 %v10003_v16  ;;  %8432 = vmatprep.subr.bf16.mxu0 %v10006_v17  ;;  %v10082_v15 = vld [vmem:[%s11603_s17 + $0xc20] ss:$8 sps:$4 sm:$0xff]  }
 0x1f1   : > { %v12014_v16 = vld [vmem:[%s12458_s0 + $0x20] sm:$0xff] }
 0x1f2   : > { %v12019_v17 = vld [vmem:[%s12458_s0 + $0xa0] sm:$0xff] }
 0x1f3   : > { %8009 = vmatpush1.bf16.msra.mxu1 %v10001_v18  ;;  %8433 = vmatpush1.bf16.msra.mxu0 %v10004_v19  ;;  %v8993_v18 = vcombine.low %v4418_v60, %v4434_v61  ;;  %v9009_v19 = vcombine.low %v4426_v8, %v4442_v9  ;;  %v10147_v60 = vld [vmem:[%s11603_s17 + $0x4d4] ss:$8 sps:$4 sm:$0xff]   ;;  %v10153_v8 = vld [vmem:[%s11603_s17 + $0x4e4] ss:$8 sps:$4 sm:$0xff]  }
 0x1f4   : > { %8010 = vmatprep.subr.bf16.mxu1 %v10009_v20  ;;  %8434 = vmatprep.subr.bf16.mxu0 %v10012_v21  ;;  %v12024_v20 = vld [vmem:[%s12458_s0 + $0x60] sm:$0xff]  ;;  %v10150_v61 = vld [vmem:[%s11603_s17 + $0xcd4] ss:$8 sps:$4 sm:$0xff]  }
 0x1f5   : > { %v12029_v21 = vld [vmem:[%s12458_s0 + $0xe0] sm:$0xff] }
 0x1f6   : > { %v10156_v9 = vld [vmem:[%s11603_s17 + $0xce4] ss:$8 sps:$4 sm:$0xff]  }
 0x1f7   : > { %8011 = vmatpush1.bf16.msra.mxu1 %v10007_v22  ;;  %8435 = vmatpush1.bf16.msra.mxu0 %v10010_v23  ;;  %v10087_v22 = vld [vmem:[%s11603_s17 + $0x434] ss:$8 sps:$4 sm:$0xff]  }
 0x1f8   : > { %8012 = vmatprep.subr.bf16.mxu1 %v10015_v24  ;;  %8436 = vmatprep.subr.bf16.mxu0 %v10018_v25  ;;  %v10090_v23 = vld [vmem:[%s11603_s17 + $0xc34] ss:$8 sps:$4 sm:$0xff]   ;;  %v8964_v24 = vcombine.high %v12014_v16, %v12019_v17  ;;  %v8980_v25 = vcombine.high %v12024_v20, %v12029_v21 }
 0x1fb   : > { %8013 = vmatpush1.bf16.msra.mxu1 %v10013_v26  ;;  %8437 = vmatpush1.bf16.msra.mxu0 %v10016_v27  ;;  %v10085_v26 = vld [vmem:[%s11603_s17 + $0x430] ss:$8 sps:$4 sm:$0xff]  }
 0x1fc   : > { %8014 = vmatprep.subr.bf16.mxu1 %v10021_v28  ;;  %8438 = vmatprep.subr.bf16.mxu0 %v10024_v29  ;;  %v10088_v27 = vld [vmem:[%s11603_s17 + $0xc30] ss:$8 sps:$4 sm:$0xff]   ;;  %v10093_v28 = vld [vmem:[%s11603_s17 + $0x444] ss:$8 sps:$4 sm:$0xff]  }
 0x1fd   : > { %v10096_v29 = vld [vmem:[%s11603_s17 + $0xc44] ss:$8 sps:$4 sm:$0xff]  }
 0x1ff   : > { %8015 = vmatpush1.bf16.msra.mxu1 %v10019_v0  ;;  %8439 = vmatpush1.bf16.msra.mxu0 %v10022_v1  ;;  %v10091_v0 = vld [vmem:[%s11603_s17 + $0x440] ss:$8 sps:$4 sm:$0xff]  }
 0x200   : > { %8016 = vmatprep.subr.bf16.mxu1 %v10027_v3  ;;  %8440 = vmatprep.subr.bf16.mxu0 %v10030_v2  ;;  %v10094_v1 = vld [vmem:[%s11603_s17 + $0xc40] ss:$8 sps:$4 sm:$0xff]   ;;  %v10099_v3 = vld [vmem:[%s11603_s17 + $0x454] ss:$8 sps:$4 sm:$0xff]  }
 0x201   : > { %v10102_v2 = vld [vmem:[%s11603_s17 + $0xc54] ss:$8 sps:$4 sm:$0xff]  }
 0x203   : > { %8017 = vmatpush1.bf16.msra.mxu1 %v10025_v5  ;;  %8441 = vmatpush1.bf16.msra.mxu0 %v10028_v6  ;;  %v10097_v5 = vld [vmem:[%s11603_s17 + $0x450] ss:$8 sps:$4 sm:$0xff]  }
 0x204   : > { %8018 = vmatprep.subr.bf16.mxu1 %v10033_v30  ;;  %8442 = vmatprep.subr.bf16.mxu0 %v10036_v31  ;;  %v10100_v6 = vld [vmem:[%s11603_s17 + $0xc50] ss:$8 sps:$4 sm:$0xff]   ;;  %v10105_v30 = vld [vmem:[%s11603_s17 + $0x464] ss:$8 sps:$4 sm:$0xff]  }
 0x205   : > { %v10108_v31 = vld [vmem:[%s11603_s17 + $0xc64] ss:$8 sps:$4 sm:$0xff]  }
 0x207   : > { %8019 = vmatpush1.bf16.msra.mxu1 %v10031_v32  ;;  %8443 = vmatpush1.bf16.msra.mxu0 %v10034_v33  ;;  %v10103_v32 = vld [vmem:[%s11603_s17 + $0x460] ss:$8 sps:$4 sm:$0xff]  }
 0x208   : > { %8020 = vmatprep.subr.bf16.mxu1 %v10039_v34  ;;  %8444 = vmatprep.subr.bf16.mxu0 %v10042_v35  ;;  %v10106_v33 = vld [vmem:[%s11603_s17 + $0xc60] ss:$8 sps:$4 sm:$0xff]   ;;  %v10111_v34 = vld [vmem:[%s11603_s17 + $0x474] ss:$8 sps:$4 sm:$0xff]  }
 0x209   : > { %v10114_v35 = vld [vmem:[%s11603_s17 + $0xc74] ss:$8 sps:$4 sm:$0xff]  }
 0x20b   : > { %8021 = vmatpush1.bf16.msra.mxu1 %v10037_v36  ;;  %8445 = vmatpush1.bf16.msra.mxu0 %v10040_v37  ;;  %v10109_v36 = vld [vmem:[%s11603_s17 + $0x470] ss:$8 sps:$4 sm:$0xff]  }
 0x20c   : > { %8022 = vmatprep.subr.bf16.mxu1 %v10045_v38  ;;  %8446 = vmatprep.subr.bf16.mxu0 %v10048_v39  ;;  %v10112_v37 = vld [vmem:[%s11603_s17 + $0xc70] ss:$8 sps:$4 sm:$0xff]   ;;  %v10117_v38 = vld [vmem:[%s11603_s17 + $0x484] ss:$8 sps:$4 sm:$0xff]  }
 0x20d   : > { %v10120_v39 = vld [vmem:[%s11603_s17 + $0xc84] ss:$8 sps:$4 sm:$0xff]  }
 0x20f   : > { %8023 = vmatpush1.bf16.msra.mxu1 %v10043_v40  ;;  %8447 = vmatpush1.bf16.msra.mxu0 %v10046_v41  ;;  %v10115_v40 = vld [vmem:[%s11603_s17 + $0x480] ss:$8 sps:$4 sm:$0xff]  }
 0x210   : > { %8024 = vmatprep.subr.bf16.mxu1 %v10051_v44  ;;  %8448 = vmatprep.subr.bf16.mxu0 %v10054_v45  ;;  %v10118_v41 = vld [vmem:[%s11603_s17 + $0xc80] ss:$8 sps:$4 sm:$0xff]   ;;  %v10123_v44 = vld [vmem:[%s11603_s17 + $0x494] ss:$8 sps:$4 sm:$0xff]  }
 0x211   : > { %v10126_v45 = vld [vmem:[%s11603_s17 + $0xc94] ss:$8 sps:$4 sm:$0xff]  }
 0x213   : > { %8025 = vmatpush1.bf16.msra.mxu1 %v10049_v48  ;;  %8449 = vmatpush1.bf16.msra.mxu0 %v10052_v49  ;;  %v10121_v48 = vld [vmem:[%s11603_s17 + $0x490] ss:$8 sps:$4 sm:$0xff]  }
 0x214   : > { %8026 = vmatprep.subr.bf16.mxu1 %v10057_v50  ;;  %8450 = vmatprep.subr.bf16.mxu0 %v10060_v51  ;;  %v10124_v49 = vld [vmem:[%s11603_s17 + $0xc90] ss:$8 sps:$4 sm:$0xff]   ;;  %v10129_v50 = vld [vmem:[%s11603_s17 + $0x4a4] ss:$8 sps:$4 sm:$0xff]  }
 0x215   : > { %v10132_v51 = vld [vmem:[%s11603_s17 + $0xca4] ss:$8 sps:$4 sm:$0xff]  }
 0x217   : > { %8027 = vmatpush1.bf16.msra.mxu1 %v10055_v52  ;;  %8451 = vmatpush1.bf16.msra.mxu0 %v10058_v42  ;;  %v10127_v52 = vld [vmem:[%s11603_s17 + $0x4a0] ss:$8 sps:$4 sm:$0xff]  }
 0x218   : > { %8028 = vmatprep.subr.bf16.mxu1 %v10063_v43  ;;  %8452 = vmatprep.subr.bf16.mxu0 %v10066_v46  ;;  %v10130_v42 = vld [vmem:[%s11603_s17 + $0xca0] ss:$8 sps:$4 sm:$0xff]   ;;  %v10135_v43 = vld [vmem:[%s11603_s17 + $0x4b4] ss:$8 sps:$4 sm:$0xff]  }
 0x219   : > { %v10138_v46 = vld [vmem:[%s11603_s17 + $0xcb4] ss:$8 sps:$4 sm:$0xff]  }
 0x21b   : > { %8029 = vmatpush1.bf16.msra.mxu1 %v10061_v47  ;;  %8453 = vmatpush1.bf16.msra.mxu0 %v10064_v53  ;;  %v10133_v47 = vld [vmem:[%s11603_s17 + $0x4b0] ss:$8 sps:$4 sm:$0xff]  }
 0x21c   : > { %8051 = vmatprep.subr.bf16.mxu1 %v10069_v54  ;;  %8475 = vmatprep.subr.bf16.mxu0 %v10072_v55  ;;  %v10136_v53 = vld [vmem:[%s11603_s17 + $0xcb0] ss:$8 sps:$4 sm:$0xff]   ;;  %v10141_v54 = vld [vmem:[%s11603_s17 + $0x4c4] ss:$8 sps:$4 sm:$0xff]  }
 0x21d   : > { %v10144_v55 = vld [vmem:[%s11603_s17 + $0xcc4] ss:$8 sps:$4 sm:$0xff]  }
 0x21e   : > { %8031 = vmatmul.mubr.bf16.vlgmr.msra.gmra.mrb[0].mxu1 %v8961_v4  ;;  %8455 = vmatmul.mubr.bf16.vlgmr.msra.gmra.mrb[0].mxu0 %v8977_v7  ;;  %v10145_v4 = vld [vmem:[%s11603_s17 + $0x4d0] ss:$8 sps:$4 sm:$0xff]  }
 0x21f   : > { %8052 = vmatpush1.bf16.msra.mxu1 %v10067_v56  ;;  %8476 = vmatpush1.bf16.msra.mxu0 %v10070_v57  ;;  %v10139_v56 = vld [vmem:[%s11603_s17 + $0x4c0] ss:$8 sps:$4 sm:$0xff]   ;;  %v10148_v7 = vld [vmem:[%s11603_s17 + $0xcd0] ss:$8 sps:$4 sm:$0xff]  }
 0x220   : > { %8053 = vmatprep.subr.bf16.mxu1 %v10075_v10  ;;  %8477 = vmatprep.subr.bf16.mxu0 %v10078_v58  ;;  %v10142_v57 = vld [vmem:[%s11603_s17 + $0xcc0] ss:$8 sps:$4 sm:$0xff]  }
 0x221   : > { %8040 = vmatprep.mubr.bf16.mxu1 %v8994_v59  ;;  %8464 = vmatprep.mubr.bf16.mxu0 %v9010_v62  ;;  %v10151_v10 = vld [vmem:[%s11603_s17 + $0x4e0] ss:$8 sps:$4 sm:$0xff]   ;;  %v10159_v59 = vld [vmem:[%s11603_s17 + $0x4f4] ss:$8 sps:$4 sm:$0xff]  }
 0x222   : > { %v10154_v58 = vld [vmem:[%s11603_s17 + $0xce0] ss:$8 sps:$4 sm:$0xff]   ;;  %v10162_v62 = vld [vmem:[%s11603_s17 + $0xcf4] ss:$8 sps:$4 sm:$0xff]  }
 0x223   : > { %8054 = vmatpush1.bf16.msra.mxu1 %v10073_v63  ;;  %8478 = vmatpush1.bf16.msra.mxu0 %v10076_v11  ;;  %v10157_v63 = vld [vmem:[%s11603_s17 + $0x4f0] ss:$8 sps:$4 sm:$0xff]  }
 0x224   : > { %8055 = vmatprep.subr.bf16.mxu1 %v10081_v12  ;;  %8479 = vmatprep.subr.bf16.mxu0 %v10084_v13  ;;  %v10160_v11 = vld [vmem:[%s11603_s17 + $0xcf0] ss:$8 sps:$4 sm:$0xff]   ;;  %v10165_v12 = vld [vmem:[%s11603_s17 + $0x504] ss:$8 sps:$4 sm:$0xff]  }
 0x225   : > { %v10168_v13 = vld [vmem:[%s11603_s17 + $0xd04] ss:$8 sps:$4 sm:$0xff]  }
 0x226   : > { %8041 = vmatmul.mubr.bf16.gmra.mrb[4].mxu1 %v8993_v18  ;;  %8465 = vmatmul.mubr.bf16.gmra.mrb[4].mxu0 %v9009_v19  ;;  %v4427_v18 = vld [vmem:[%s12458_s0 + $0x160] sm:$0xff] }
 0x227   : > { %8056 = vmatpush1.bf16.msra.mxu1 %v10079_v14  ;;  %8480 = vmatpush1.bf16.msra.mxu0 %v10082_v15  ;;  %v4419_v14 = vld [vmem:[%s12458_s0 + $0x120] sm:$0xff] }
 0x228   : > { %8057 = vmatprep.subr.bf16.mxu1 %v10087_v22  ;;  %8481 = vmatprep.subr.bf16.mxu0 %v10090_v23  ;;  %v4435_v15 = vld [vmem:[%s12458_s0 + $0x1a0] sm:$0xff]  ;;  %v8963_v22 = vcombine.low %v12014_v16, %v12019_v17  ;;  %v8979_v23 = vcombine.low %v12024_v20, %v12029_v21  ;;  %v12116_v20 = vld [vmem:[%s12458_s0 + $0x28] sm:$0xff] }
 0x229   : > { %8083 = vmatprep.mubr.bf16.mxu1 %v8964_v24  ;;  %8507 = vmatprep.mubr.bf16.mxu0 %v8980_v25  ;;  %v4443_v19 = vld [vmem:[%s12458_s0 + $0x1e0] sm:$0xff]  ;;  %v12121_v21 = vld [vmem:[%s12458_s0 + $0xa8] sm:$0xff] }
 0x22a   : > { %v10163_v24 = vld [vmem:[%s11603_s17 + $0x500] ss:$8 sps:$4 sm:$0xff]   ;;  %v10177_v16 = vld [vmem:[%s11603_s17 + $0x524] ss:$8 sps:$4 sm:$0xff]  }
 0x22b   : > { %8058 = vmatpush1.bf16.msra.mxu1 %v10085_v26  ;;  %8482 = vmatpush1.bf16.msra.mxu0 %v10088_v27  ;;  %v10166_v25 = vld [vmem:[%s11603_s17 + $0xd00] ss:$8 sps:$4 sm:$0xff]   ;;  %v10171_v26 = vld [vmem:[%s11603_s17 + $0x514] ss:$8 sps:$4 sm:$0xff]   ;;  %v10180_v17 = vld [vmem:[%s11603_s17 + $0xd24] ss:$8 sps:$4 sm:$0xff]  }
 0x22c   : > { %8059 = vmatprep.subr.bf16.mxu1 %v10093_v28  ;;  %8483 = vmatprep.subr.bf16.mxu0 %v10096_v29  ;;  %v10174_v27 = vld [vmem:[%s11603_s17 + $0xd14] ss:$8 sps:$4 sm:$0xff]   ;;  %v10169_v28 = vld [vmem:[%s11603_s17 + $0x510] ss:$8 sps:$4 sm:$0xff]  }
 0x22d   : > { %v10172_v29 = vld [vmem:[%s11603_s17 + $0xd10] ss:$8 sps:$4 sm:$0xff]  }
 0x22f   : > { %8060 = vmatpush1.bf16.msra.mxu1 %v10091_v0  ;;  %8484 = vmatpush1.bf16.msra.mxu0 %v10094_v1  ;;  %v8996_v0 = vcombine.high %v4419_v14, %v4435_v15  ;;  %v9012_v1 = vcombine.high %v4427_v18, %v4443_v19 }
 0x230   : > { %8061 = vmatprep.subr.bf16.mxu1 %v10099_v3  ;;  %8485 = vmatprep.subr.bf16.mxu0 %v10102_v2  ;;  %v12126_v3 = vld [vmem:[%s12458_s0 + $0x68] sm:$0xff] }
 0x231   : > { %v12131_v2 = vld [vmem:[%s12458_s0 + $0xe8] sm:$0xff] }
 0x233   : > { %8062 = vmatpush1.bf16.msra.mxu1 %v10097_v5  ;;  %8486 = vmatpush1.bf16.msra.mxu0 %v10100_v6  ;;  %v8995_v5 = vcombine.low %v4419_v14, %v4435_v15  ;;  %v9011_v6 = vcombine.low %v4427_v18, %v4443_v19  ;;  %v10235_v14 = vld [vmem:[%s11603_s17 + $0x5c0] ss:$8 sps:$4 sm:$0xff]   ;;  %v10243_v18 = vld [vmem:[%s11603_s17 + $0x5d4] ss:$8 sps:$4 sm:$0xff]  }
 0x234   : > { %8063 = vmatprep.subr.bf16.mxu1 %v10105_v30  ;;  %8487 = vmatprep.subr.bf16.mxu0 %v10108_v31  ;;  %v10175_v30 = vld [vmem:[%s11603_s17 + $0x520] ss:$8 sps:$4 sm:$0xff]   ;;  %v10246_v19 = vld [vmem:[%s11603_s17 + $0xdd4] ss:$8 sps:$4 sm:$0xff]  }
 0x235   : > { %v10178_v31 = vld [vmem:[%s11603_s17 + $0xd20] ss:$8 sps:$4 sm:$0xff]  }
 0x236   : > { %v10238_v15 = vld [vmem:[%s11603_s17 + $0xdc0] ss:$8 sps:$4 sm:$0xff]  }
 0x237   : > { %8064 = vmatpush1.bf16.msra.mxu1 %v10103_v32  ;;  %8488 = vmatpush1.bf16.msra.mxu0 %v10106_v33  ;;  %v10183_v32 = vld [vmem:[%s11603_s17 + $0x534] ss:$8 sps:$4 sm:$0xff]  }
 0x238   : > { %8065 = vmatprep.subr.bf16.mxu1 %v10111_v34  ;;  %8489 = vmatprep.subr.bf16.mxu0 %v10114_v35  ;;  %v10186_v33 = vld [vmem:[%s11603_s17 + $0xd34] ss:$8 sps:$4 sm:$0xff]   ;;  %v8966_v34 = vcombine.high %v12116_v20, %v12121_v21  ;;  %v8982_v35 = vcombine.high %v12126_v3, %v12131_v2 }
 0x23b   : > { %8066 = vmatpush1.bf16.msra.mxu1 %v10109_v36  ;;  %8490 = vmatpush1.bf16.msra.mxu0 %v10112_v37  ;;  %v10181_v36 = vld [vmem:[%s11603_s17 + $0x530] ss:$8 sps:$4 sm:$0xff]  }
 0x23c   : > { %8067 = vmatprep.subr.bf16.mxu1 %v10117_v38  ;;  %8491 = vmatprep.subr.bf16.mxu0 %v10120_v39  ;;  %v10184_v37 = vld [vmem:[%s11603_s17 + $0xd30] ss:$8 sps:$4 sm:$0xff]   ;;  %v10189_v38 = vld [vmem:[%s11603_s17 + $0x544] ss:$8 sps:$4 sm:$0xff]  }
 0x23d   : > { %v10192_v39 = vld [vmem:[%s11603_s17 + $0xd44] ss:$8 sps:$4 sm:$0xff]  }
 0x23f   : > { %8068 = vmatpush1.bf16.msra.mxu1 %v10115_v40  ;;  %8492 = vmatpush1.bf16.msra.mxu0 %v10118_v41  ;;  %v10187_v40 = vld [vmem:[%s11603_s17 + $0x540] ss:$8 sps:$4 sm:$0xff]  }
 0x240   : > { %8069 = vmatprep.subr.bf16.mxu1 %v10123_v44  ;;  %8493 = vmatprep.subr.bf16.mxu0 %v10126_v45  ;;  %v10190_v41 = vld [vmem:[%s11603_s17 + $0xd40] ss:$8 sps:$4 sm:$0xff]   ;;  %v10195_v44 = vld [vmem:[%s11603_s17 + $0x554] ss:$8 sps:$4 sm:$0xff]  }
 0x241   : > { %v10198_v45 = vld [vmem:[%s11603_s17 + $0xd54] ss:$8 sps:$4 sm:$0xff]  }
 0x243   : > { %8070 = vmatpush1.bf16.msra.mxu1 %v10121_v48  ;;  %8494 = vmatpush1.bf16.msra.mxu0 %v10124_v49  ;;  %v10193_v48 = vld [vmem:[%s11603_s17 + $0x550] ss:$8 sps:$4 sm:$0xff]  }
 0x244   : > { %8071 = vmatprep.subr.bf16.mxu1 %v10129_v50  ;;  %8495 = vmatprep.subr.bf16.mxu0 %v10132_v51  ;;  %v10196_v49 = vld [vmem:[%s11603_s17 + $0xd50] ss:$8 sps:$4 sm:$0xff]   ;;  %v10201_v50 = vld [vmem:[%s11603_s17 + $0x564] ss:$8 sps:$4 sm:$0xff]  }
 0x245   : > { %v10204_v51 = vld [vmem:[%s11603_s17 + $0xd64] ss:$8 sps:$4 sm:$0xff]  }
 0x247   : > { %8072 = vmatpush1.bf16.msra.mxu1 %v10127_v52  ;;  %8496 = vmatpush1.bf16.msra.mxu0 %v10130_v42  ;;  %v10199_v52 = vld [vmem:[%s11603_s17 + $0x560] ss:$8 sps:$4 sm:$0xff]  }
 0x248   : > { %8073 = vmatprep.subr.bf16.mxu1 %v10135_v43  ;;  %8497 = vmatprep.subr.bf16.mxu0 %v10138_v46  ;;  %v10202_v42 = vld [vmem:[%s11603_s17 + $0xd60] ss:$8 sps:$4 sm:$0xff]   ;;  %v10207_v43 = vld [vmem:[%s11603_s17 + $0x574] ss:$8 sps:$4 sm:$0xff]  }
 0x249   : > { %v10210_v46 = vld [vmem:[%s11603_s17 + $0xd74] ss:$8 sps:$4 sm:$0xff]  }
 0x24b   : > { %8074 = vmatpush1.bf16.msra.mxu1 %v10133_v47  ;;  %8498 = vmatpush1.bf16.msra.mxu0 %v10136_v53  ;;  %v10205_v47 = vld [vmem:[%s11603_s17 + $0x570] ss:$8 sps:$4 sm:$0xff]  }
 0x24c   : > { %8075 = vmatprep.subr.bf16.mxu1 %v10141_v54  ;;  %8499 = vmatprep.subr.bf16.mxu0 %v10144_v55  ;;  %v10208_v53 = vld [vmem:[%s11603_s17 + $0xd70] ss:$8 sps:$4 sm:$0xff]   ;;  %v10213_v54 = vld [vmem:[%s11603_s17 + $0x584] ss:$8 sps:$4 sm:$0xff]  }
 0x24d   : > { %v10216_v55 = vld [vmem:[%s11603_s17 + $0xd84] ss:$8 sps:$4 sm:$0xff]  }
 0x24f   : > { %8076 = vmatpush1.bf16.msra.mxu1 %v10139_v56  ;;  %8500 = vmatpush1.bf16.msra.mxu0 %v10142_v57  ;;  %v10211_v56 = vld [vmem:[%s11603_s17 + $0x580] ss:$8 sps:$4 sm:$0xff]  }
 0x250   : > { %8077 = vmatprep.subr.bf16.mxu1 %v10147_v60  ;;  %8501 = vmatprep.subr.bf16.mxu0 %v10150_v61  ;;  %v10214_v57 = vld [vmem:[%s11603_s17 + $0xd80] ss:$8 sps:$4 sm:$0xff]   ;;  %v10219_v60 = vld [vmem:[%s11603_s17 + $0x594] ss:$8 sps:$4 sm:$0xff]  }
 0x251   : > { %v10222_v61 = vld [vmem:[%s11603_s17 + $0xd94] ss:$8 sps:$4 sm:$0xff]  }
 0x253   : > { %8078 = vmatpush1.bf16.msra.mxu1 %v10145_v4  ;;  %8502 = vmatpush1.bf16.msra.mxu0 %v10148_v7  ;;  %v10217_v4 = vld [vmem:[%s11603_s17 + $0x590] ss:$8 sps:$4 sm:$0xff]  }
 0x254   : > { %8079 = vmatprep.subr.bf16.mxu1 %v10153_v8  ;;  %8503 = vmatprep.subr.bf16.mxu0 %v10156_v9  ;;  %v10220_v7 = vld [vmem:[%s11603_s17 + $0xd90] ss:$8 sps:$4 sm:$0xff]   ;;  %v10225_v8 = vld [vmem:[%s11603_s17 + $0x5a4] ss:$8 sps:$4 sm:$0xff]  }
 0x255   : > { %v10228_v9 = vld [vmem:[%s11603_s17 + $0xda4] ss:$8 sps:$4 sm:$0xff]  }
 0x257   : > { %8080 = vmatpush1.bf16.msra.mxu1 %v10151_v10  ;;  %8504 = vmatpush1.bf16.msra.mxu0 %v10154_v58  ;;  %v10223_v10 = vld [vmem:[%s11603_s17 + $0x5a0] ss:$8 sps:$4 sm:$0xff]  }
 0x258   : > { %8081 = vmatprep.subr.bf16.mxu1 %v10159_v59  ;;  %8505 = vmatprep.subr.bf16.mxu0 %v10162_v62  ;;  %v10226_v58 = vld [vmem:[%s11603_s17 + $0xda0] ss:$8 sps:$4 sm:$0xff]   ;;  %v10231_v59 = vld [vmem:[%s11603_s17 + $0x5b4] ss:$8 sps:$4 sm:$0xff]  }
 0x259   : > { %v10234_v62 = vld [vmem:[%s11603_s17 + $0xdb4] ss:$8 sps:$4 sm:$0xff]  }
 0x25b   : > { %8082 = vmatpush1.bf16.msra.mxu1 %v10157_v63  ;;  %8506 = vmatpush1.bf16.msra.mxu0 %v10160_v11  ;;  %v10229_v63 = vld [vmem:[%s11603_s17 + $0x5b0] ss:$8 sps:$4 sm:$0xff]  }
 0x25c   : > { %8104 = vmatprep.subr.bf16.mxu1 %v10165_v12  ;;  %8528 = vmatprep.subr.bf16.mxu0 %v10168_v13  ;;  %v10232_v11 = vld [vmem:[%s11603_s17 + $0xdb0] ss:$8 sps:$4 sm:$0xff]   ;;  %v10237_v12 = vld [vmem:[%s11603_s17 + $0x5c4] ss:$8 sps:$4 sm:$0xff]  }
 0x25d   : > { %v10240_v13 = vld [vmem:[%s11603_s17 + $0xdc4] ss:$8 sps:$4 sm:$0xff]  }
 0x25e   : > { %8084 = vmatmul.mubr.bf16.vlgmr.msra.gmra.mrb[0].mxu1 %v8963_v22  ;;  %8508 = vmatmul.mubr.bf16.vlgmr.msra.gmra.mrb[0].mxu0 %v8979_v23  ;;  %v10241_v22 = vld [vmem:[%s11603_s17 + $0x5d0] ss:$8 sps:$4 sm:$0xff]  }
 0x25f   : > { %8105 = vmatpush1.bf16.msra.mxu1 %v10163_v24  ;;  %8529 = vmatpush1.bf16.msra.mxu0 %v10166_v25  ;;  %v10244_v23 = vld [vmem:[%s11603_s17 + $0xdd0] ss:$8 sps:$4 sm:$0xff]   ;;  %v10249_v24 = vld [vmem:[%s11603_s17 + $0x5e4] ss:$8 sps:$4 sm:$0xff]  }
 0x260   : > { %8106 = vmatprep.subr.bf16.mxu1 %v10171_v26  ;;  %8530 = vmatprep.subr.bf16.mxu0 %v10174_v27  ;;  %v10252_v25 = vld [vmem:[%s11603_s17 + $0xde4] ss:$8 sps:$4 sm:$0xff]   ;;  %v10247_v26 = vld [vmem:[%s11603_s17 + $0x5e0] ss:$8 sps:$4 sm:$0xff]  }
 0x261   : > { %8093 = vmatprep.mubr.bf16.mxu1 %v8996_v0  ;;  %8517 = vmatprep.mubr.bf16.mxu0 %v9012_v1  ;;  %v10250_v27 = vld [vmem:[%s11603_s17 + $0xde0] ss:$8 sps:$4 sm:$0xff]   ;;  %v10253_v0 = vld [vmem:[%s11603_s17 + $0x5f0] ss:$8 sps:$4 sm:$0xff]  }
 0x262   : > { %v10256_v1 = vld [vmem:[%s11603_s17 + $0xdf0] ss:$8 sps:$4 sm:$0xff]  }
 0x263   : > { %8107 = vmatpush1.bf16.msra.mxu1 %v10169_v28  ;;  %8531 = vmatpush1.bf16.msra.mxu0 %v10172_v29  ;;  %v10255_v28 = vld [vmem:[%s11603_s17 + $0x5f4] ss:$8 sps:$4 sm:$0xff]  }
 0x264   : > { %8108 = vmatprep.subr.bf16.mxu1 %v10177_v16  ;;  %8532 = vmatprep.subr.bf16.mxu0 %v10180_v17  ;;  %v10258_v29 = vld [vmem:[%s11603_s17 + $0xdf4] ss:$8 sps:$4 sm:$0xff]   ;;  %v10261_v16 = vld [vmem:[%s11603_s17 + $0x604] ss:$8 sps:$4 sm:$0xff]  }
 0x265   : > { %v10264_v17 = vld [vmem:[%s11603_s17 + $0xe04] ss:$8 sps:$4 sm:$0xff]  }
 0x266   : > { %8094 = vmatmul.mubr.bf16.gmra.mrb[4].mxu1 %v8995_v5  ;;  %8518 = vmatmul.mubr.bf16.gmra.mrb[4].mxu0 %v9011_v6  ;;  %v4420_v5 = vld [vmem:[%s12458_s0 + $0x128] sm:$0xff]  ;;  %v8965_v6 = vcombine.low %v12116_v20, %v12121_v21 }
 0x267   : > { %8109 = vmatpush1.bf16.msra.mxu1 %v10175_v30  ;;  %8533 = vmatpush1.bf16.msra.mxu0 %v10178_v31  ;;  %v8981_v30 = vcombine.low %v12126_v3, %v12131_v2  ;;  %v4436_v31 = vld [vmem:[%s12458_s0 + $0x1a8] sm:$0xff]  ;;  %v10267_v3 = vld [vmem:[%s11603_s17 + $0x614] ss:$8 sps:$4 sm:$0xff]  }
 0x268   : > { %8110 = vmatprep.subr.bf16.mxu1 %v10183_v32  ;;  %8534 = vmatprep.subr.bf16.mxu0 %v10186_v33  ;;  %v4428_v32 = vld [vmem:[%s12458_s0 + $0x168] sm:$0xff]  ;;  %v10270_v2 = vld [vmem:[%s11603_s17 + $0xe14] ss:$8 sps:$4 sm:$0xff]  }
 0x269   : > { %8136 = vmatprep.mubr.bf16.mxu1 %v8966_v34  ;;  %8560 = vmatprep.mubr.bf16.mxu0 %v8982_v35  ;;  %v4444_v33 = vld [vmem:[%s12458_s0 + $0x1e8] sm:$0xff]  ;;  %v8998_v34 = vcombine.high %v4420_v5, %v4436_v31 }
 0x26a   : > { %v10259_v20 = vld [vmem:[%s11603_s17 + $0x600] ss:$8 sps:$4 sm:$0xff]   ;;  %v9014_v35 = vcombine.high %v4428_v32, %v4444_v33 }
 0x26b   : > { %8111 = vmatpush1.bf16.msra.mxu1 %v10181_v36  ;;  %8535 = vmatpush1.bf16.msra.mxu0 %v10184_v37  ;;  %v10262_v21 = vld [vmem:[%s11603_s17 + $0xe00] ss:$8 sps:$4 sm:$0xff]   ;;  %v10265_v36 = vld [vmem:[%s11603_s17 + $0x610] ss:$8 sps:$4 sm:$0xff]  }
 0x26c   : > { %8112 = vmatprep.subr.bf16.mxu1 %v10189_v38  ;;  %8536 = vmatprep.subr.bf16.mxu0 %v10192_v39  ;;  %v10268_v37 = vld [vmem:[%s11603_s17 + $0xe10] ss:$8 sps:$4 sm:$0xff]   ;;  %v10273_v38 = vld [vmem:[%s11603_s17 + $0x624] ss:$8 sps:$4 sm:$0xff]  }
 0x26d   : > { %v10276_v39 = vld [vmem:[%s11603_s17 + $0xe24] ss:$8 sps:$4 sm:$0xff]  }
 0x26f   : > { %8113 = vmatpush1.bf16.msra.mxu1 %v10187_v40  ;;  %8537 = vmatpush1.bf16.msra.mxu0 %v10190_v41  ;;  %v12220_v40 = vld [vmem:[%s12458_s0 + $0x30] sm:$0xff]  ;;  %v8997_v41 = vcombine.low %v4420_v5, %v4436_v31  ;;  %v10331_v5 = vld [vmem:[%s11603_s17 + $0x6c0] ss:$8 sps:$4 sm:$0xff]  }
 0x270   : > { %8114 = vmatprep.subr.bf16.mxu1 %v10195_v44  ;;  %8538 = vmatprep.subr.bf16.mxu0 %v10198_v45  ;;  %v9013_v44 = vcombine.low %v4428_v32, %v4444_v33  ;;  %v12225_v45 = vld [vmem:[%s12458_s0 + $0xb0] sm:$0xff] }
 0x271   : > { %v10342_v31 = vld [vmem:[%s11603_s17 + $0xed4] ss:$8 sps:$4 sm:$0xff]   ;;  %v10337_v32 = vld [vmem:[%s11603_s17 + $0x6d0] ss:$8 sps:$4 sm:$0xff]  }
 0x272   : > { %v10340_v33 = vld [vmem:[%s11603_s17 + $0xed0] ss:$8 sps:$4 sm:$0xff]  }
 0x273   : > { %8115 = vmatpush1.bf16.msra.mxu1 %v10193_v48  ;;  %8539 = vmatpush1.bf16.msra.mxu0 %v10196_v49  ;;  %v12230_v48 = vld [vmem:[%s12458_s0 + $0x70] sm:$0xff] }
 0x274   : > { %8116 = vmatprep.subr.bf16.mxu1 %v10201_v50  ;;  %8540 = vmatprep.subr.bf16.mxu0 %v10204_v51  ;;  %v12235_v49 = vld [vmem:[%s12458_s0 + $0xf0] sm:$0xff]  ;;  %v10271_v50 = vld [vmem:[%s11603_s17 + $0x620] ss:$8 sps:$4 sm:$0xff]  }
 0x275   : > { %v10274_v51 = vld [vmem:[%s11603_s17 + $0xe20] ss:$8 sps:$4 sm:$0xff]  }
 0x277   : > { %8117 = vmatpush1.bf16.msra.mxu1 %v10199_v52  ;;  %8541 = vmatpush1.bf16.msra.mxu0 %v10202_v42  ;;  %v10279_v52 = vld [vmem:[%s11603_s17 + $0x634] ss:$8 sps:$4 sm:$0xff]  }
 0x278   : > { %8118 = vmatprep.subr.bf16.mxu1 %v10207_v43  ;;  %8542 = vmatprep.subr.bf16.mxu0 %v10210_v46  ;;  %v10282_v42 = vld [vmem:[%s11603_s17 + $0xe34] ss:$8 sps:$4 sm:$0xff]   ;;  %v8968_v43 = vcombine.high %v12220_v40, %v12225_v45  ;;  %v8984_v46 = vcombine.high %v12230_v48, %v12235_v49 }
 0x27b   : > { %8119 = vmatpush1.bf16.msra.mxu1 %v10205_v47  ;;  %8543 = vmatpush1.bf16.msra.mxu0 %v10208_v53  ;;  %v10277_v47 = vld [vmem:[%s11603_s17 + $0x630] ss:$8 sps:$4 sm:$0xff]  }
 0x27c   : > { %8120 = vmatprep.subr.bf16.mxu1 %v10213_v54  ;;  %8544 = vmatprep.subr.bf16.mxu0 %v10216_v55  ;;  %v10280_v53 = vld [vmem:[%s11603_s17 + $0xe30] ss:$8 sps:$4 sm:$0xff]   ;;  %v10285_v54 = vld [vmem:[%s11603_s17 + $0x644] ss:$8 sps:$4 sm:$0xff]  }
 0x27d   : > { %v10288_v55 = vld [vmem:[%s11603_s17 + $0xe44] ss:$8 sps:$4 sm:$0xff]  }
 0x27f   : > { %8121 = vmatpush1.bf16.msra.mxu1 %v10211_v56  ;;  %8545 = vmatpush1.bf16.msra.mxu0 %v10214_v57  ;;  %v10283_v56 = vld [vmem:[%s11603_s17 + $0x640] ss:$8 sps:$4 sm:$0xff]  }
 0x280   : > { %8122 = vmatprep.subr.bf16.mxu1 %v10219_v60  ;;  %8546 = vmatprep.subr.bf16.mxu0 %v10222_v61  ;;  %v10286_v57 = vld [vmem:[%s11603_s17 + $0xe40] ss:$8 sps:$4 sm:$0xff]   ;;  %v10291_v60 = vld [vmem:[%s11603_s17 + $0x654] ss:$8 sps:$4 sm:$0xff]  }
 0x281   : > { %v10294_v61 = vld [vmem:[%s11603_s17 + $0xe54] ss:$8 sps:$4 sm:$0xff]  }
 0x283   : > { %8123 = vmatpush1.bf16.msra.mxu1 %v10217_v4  ;;  %8547 = vmatpush1.bf16.msra.mxu0 %v10220_v7  ;;  %v10289_v4 = vld [vmem:[%s11603_s17 + $0x650] ss:$8 sps:$4 sm:$0xff]  }
 0x284   : > { %8124 = vmatprep.subr.bf16.mxu1 %v10225_v8  ;;  %8548 = vmatprep.subr.bf16.mxu0 %v10228_v9  ;;  %v10292_v7 = vld [vmem:[%s11603_s17 + $0xe50] ss:$8 sps:$4 sm:$0xff]   ;;  %v10297_v8 = vld [vmem:[%s11603_s17 + $0x664] ss:$8 sps:$4 sm:$0xff]  }
 0x285   : > { %v10300_v9 = vld [vmem:[%s11603_s17 + $0xe64] ss:$8 sps:$4 sm:$0xff]  }
 0x287   : > { %8125 = vmatpush1.bf16.msra.mxu1 %v10223_v10  ;;  %8549 = vmatpush1.bf16.msra.mxu0 %v10226_v58  ;;  %v10295_v10 = vld [vmem:[%s11603_s17 + $0x660] ss:$8 sps:$4 sm:$0xff]  }
 0x288   : > { %8126 = vmatprep.subr.bf16.mxu1 %v10231_v59  ;;  %8550 = vmatprep.subr.bf16.mxu0 %v10234_v62  ;;  %v10298_v58 = vld [vmem:[%s11603_s17 + $0xe60] ss:$8 sps:$4 sm:$0xff]   ;;  %v10303_v59 = vld [vmem:[%s11603_s17 + $0x674] ss:$8 sps:$4 sm:$0xff]  }
 0x289   : > { %v10306_v62 = vld [vmem:[%s11603_s17 + $0xe74] ss:$8 sps:$4 sm:$0xff]  }
 0x28b   : > { %8127 = vmatpush1.bf16.msra.mxu1 %v10229_v63  ;;  %8551 = vmatpush1.bf16.msra.mxu0 %v10232_v11  ;;  %v10301_v63 = vld [vmem:[%s11603_s17 + $0x670] ss:$8 sps:$4 sm:$0xff]  }
 0x28c   : > { %8128 = vmatprep.subr.bf16.mxu1 %v10237_v12  ;;  %8552 = vmatprep.subr.bf16.mxu0 %v10240_v13  ;;  %v10304_v11 = vld [vmem:[%s11603_s17 + $0xe70] ss:$8 sps:$4 sm:$0xff]   ;;  %v10309_v12 = vld [vmem:[%s11603_s17 + $0x684] ss:$8 sps:$4 sm:$0xff]  }
 0x28d   : > { %v10312_v13 = vld [vmem:[%s11603_s17 + $0xe84] ss:$8 sps:$4 sm:$0xff]  }
 0x28f   : > { %8129 = vmatpush1.bf16.msra.mxu1 %v10235_v14  ;;  %8553 = vmatpush1.bf16.msra.mxu0 %v10238_v15  ;;  %v10307_v14 = vld [vmem:[%s11603_s17 + $0x680] ss:$8 sps:$4 sm:$0xff]  }
 0x290   : > { %8130 = vmatprep.subr.bf16.mxu1 %v10243_v18  ;;  %8554 = vmatprep.subr.bf16.mxu0 %v10246_v19  ;;  %v10310_v15 = vld [vmem:[%s11603_s17 + $0xe80] ss:$8 sps:$4 sm:$0xff]   ;;  %v10315_v18 = vld [vmem:[%s11603_s17 + $0x694] ss:$8 sps:$4 sm:$0xff]  }
 0x291   : > { %v10318_v19 = vld [vmem:[%s11603_s17 + $0xe94] ss:$8 sps:$4 sm:$0xff]  }
 0x293   : > { %8131 = vmatpush1.bf16.msra.mxu1 %v10241_v22  ;;  %8555 = vmatpush1.bf16.msra.mxu0 %v10244_v23  ;;  %v10313_v22 = vld [vmem:[%s11603_s17 + $0x690] ss:$8 sps:$4 sm:$0xff]  }
 0x294   : > { %8132 = vmatprep.subr.bf16.mxu1 %v10249_v24  ;;  %8556 = vmatprep.subr.bf16.mxu0 %v10252_v25  ;;  %v10316_v23 = vld [vmem:[%s11603_s17 + $0xe90] ss:$8 sps:$4 sm:$0xff]   ;;  %v10321_v24 = vld [vmem:[%s11603_s17 + $0x6a4] ss:$8 sps:$4 sm:$0xff]  }
 0x295   : > { %v10324_v25 = vld [vmem:[%s11603_s17 + $0xea4] ss:$8 sps:$4 sm:$0xff]  }
 0x297   : > { %8133 = vmatpush1.bf16.msra.mxu1 %v10247_v26  ;;  %8557 = vmatpush1.bf16.msra.mxu0 %v10250_v27  ;;  %v10319_v26 = vld [vmem:[%s11603_s17 + $0x6a0] ss:$8 sps:$4 sm:$0xff]  }
 0x298   : > { %8134 = vmatprep.subr.bf16.mxu1 %v10255_v28  ;;  %8558 = vmatprep.subr.bf16.mxu0 %v10258_v29  ;;  %v10322_v27 = vld [vmem:[%s11603_s17 + $0xea0] ss:$8 sps:$4 sm:$0xff]   ;;  %v10327_v28 = vld [vmem:[%s11603_s17 + $0x6b4] ss:$8 sps:$4 sm:$0xff]  }
 0x299   : > { %v10330_v29 = vld [vmem:[%s11603_s17 + $0xeb4] ss:$8 sps:$4 sm:$0xff]  }
 0x29b   : > { %8135 = vmatpush1.bf16.msra.mxu1 %v10253_v0  ;;  %8559 = vmatpush1.bf16.msra.mxu0 %v10256_v1  ;;  %v10325_v0 = vld [vmem:[%s11603_s17 + $0x6b0] ss:$8 sps:$4 sm:$0xff]  }
 0x29c   : > { %8157 = vmatprep.subr.bf16.mxu1 %v10261_v16  ;;  %8581 = vmatprep.subr.bf16.mxu0 %v10264_v17  ;;  %v10328_v1 = vld [vmem:[%s11603_s17 + $0xeb0] ss:$8 sps:$4 sm:$0xff]   ;;  %v10333_v16 = vld [vmem:[%s11603_s17 + $0x6c4] ss:$8 sps:$4 sm:$0xff]  }
 0x29d   : > { %v10336_v17 = vld [vmem:[%s11603_s17 + $0xec4] ss:$8 sps:$4 sm:$0xff]  }
 0x29e   : > { %8137 = vmatmul.mubr.bf16.vlgmr.msra.gmra.mrb[0].mxu1 %v8965_v6  ;;  %8561 = vmatmul.mubr.bf16.vlgmr.msra.gmra.mrb[0].mxu0 %v8981_v30  ;;  %v10334_v6 = vld [vmem:[%s11603_s17 + $0xec0] ss:$8 sps:$4 sm:$0xff]   ;;  %v10339_v30 = vld [vmem:[%s11603_s17 + $0x6d4] ss:$8 sps:$4 sm:$0xff]  }
 0x29f   : > { %8158 = vmatpush1.bf16.msra.mxu1 %v10259_v20  ;;  %8582 = vmatpush1.bf16.msra.mxu0 %v10262_v21  ;;  %v10345_v20 = vld [vmem:[%s11603_s17 + $0x6e4] ss:$8 sps:$4 sm:$0xff]  }
 0x2a0   : > { %8159 = vmatprep.subr.bf16.mxu1 %v10267_v3  ;;  %8583 = vmatprep.subr.bf16.mxu0 %v10270_v2  ;;  %v10348_v21 = vld [vmem:[%s11603_s17 + $0xee4] ss:$8 sps:$4 sm:$0xff]   ;;  %v10343_v3 = vld [vmem:[%s11603_s17 + $0x6e0] ss:$8 sps:$4 sm:$0xff]  }
 0x2a1   : > { %8146 = vmatprep.mubr.bf16.mxu1 %v8998_v34  ;;  %8570 = vmatprep.mubr.bf16.mxu0 %v9014_v35  ;;  %v10346_v2 = vld [vmem:[%s11603_s17 + $0xee0] ss:$8 sps:$4 sm:$0xff]   ;;  %v10351_v34 = vld [vmem:[%s11603_s17 + $0x6f4] ss:$8 sps:$4 sm:$0xff]  }
 0x2a2   : > { %v10354_v35 = vld [vmem:[%s11603_s17 + $0xef4] ss:$8 sps:$4 sm:$0xff]  }
 0x2a3   : > { %8160 = vmatpush1.bf16.msra.mxu1 %v10265_v36  ;;  %8584 = vmatpush1.bf16.msra.mxu0 %v10268_v37  ;;  %v10349_v36 = vld [vmem:[%s11603_s17 + $0x6f0] ss:$8 sps:$4 sm:$0xff]  }
 0x2a4   : > { %8161 = vmatprep.subr.bf16.mxu1 %v10273_v38  ;;  %8585 = vmatprep.subr.bf16.mxu0 %v10276_v39  ;;  %v10352_v37 = vld [vmem:[%s11603_s17 + $0xef0] ss:$8 sps:$4 sm:$0xff]   ;;  %v10357_v38 = vld [vmem:[%s11603_s17 + $0x704] ss:$8 sps:$4 sm:$0xff]  }
 0x2a5   : > { %v10360_v39 = vld [vmem:[%s11603_s17 + $0xf04] ss:$8 sps:$4 sm:$0xff]  }
 0x2a6   : > { %8147 = vmatmul.mubr.bf16.gmra.mrb[4].mxu1 %v8997_v41  ;;  %8571 = vmatmul.mubr.bf16.gmra.mrb[4].mxu0 %v9013_v44  ;;  %v4421_v41 = vld [vmem:[%s12458_s0 + $0x130] sm:$0xff]  ;;  %v8967_v44 = vcombine.low %v12220_v40, %v12225_v45  ;;  %v10355_v40 = vld [vmem:[%s11603_s17 + $0x700] ss:$8 sps:$4 sm:$0xff]  }
 0x2a7   : > { %8162 = vmatpush1.bf16.msra.mxu1 %v10271_v50  ;;  %8586 = vmatpush1.bf16.msra.mxu0 %v10274_v51  ;;  %v8983_v50 = vcombine.low %v12230_v48, %v12235_v49  ;;  %v4437_v51 = vld [vmem:[%s12458_s0 + $0x1b0] sm:$0xff]  ;;  %v10358_v45 = vld [vmem:[%s11603_s17 + $0xf00] ss:$8 sps:$4 sm:$0xff]  }
 0x2a8   : > { %8163 = vmatprep.subr.bf16.mxu1 %v10279_v52  ;;  %8587 = vmatprep.subr.bf16.mxu0 %v10282_v42  ;;  %v4429_v52 = vld [vmem:[%s12458_s0 + $0x170] sm:$0xff] }
 0x2a9   : > { %8189 = vmatprep.mubr.bf16.mxu1 %v8968_v43  ;;  %8613 = vmatprep.mubr.bf16.mxu0 %v8984_v46  ;;  %v4445_v42 = vld [vmem:[%s12458_s0 + $0x1f0] sm:$0xff]  ;;  %v9000_v43 = vcombine.high %v4421_v41, %v4437_v51 }
 0x2aa   : > { %v10363_v48 = vld [vmem:[%s11603_s17 + $0x714] ss:$8 sps:$4 sm:$0xff]   ;;  %v9016_v46 = vcombine.high %v4429_v52, %v4445_v42 }
 0x2ab   : > { %8164 = vmatpush1.bf16.msra.mxu1 %v10277_v47  ;;  %8588 = vmatpush1.bf16.msra.mxu0 %v10280_v53  ;;  %v10366_v49 = vld [vmem:[%s11603_s17 + $0xf14] ss:$8 sps:$4 sm:$0xff]   ;;  %v10361_v47 = vld [vmem:[%s11603_s17 + $0x710] ss:$8 sps:$4 sm:$0xff]  }
 0x2ac   : > { %8165 = vmatprep.subr.bf16.mxu1 %v10285_v54  ;;  %8589 = vmatprep.subr.bf16.mxu0 %v10288_v55  ;;  %v10364_v53 = vld [vmem:[%s11603_s17 + $0xf10] ss:$8 sps:$4 sm:$0xff]   ;;  %v10369_v54 = vld [vmem:[%s11603_s17 + $0x724] ss:$8 sps:$4 sm:$0xff]  }
 0x2ad   : > { %v10372_v55 = vld [vmem:[%s11603_s17 + $0xf24] ss:$8 sps:$4 sm:$0xff]  }
 0x2af   : > { %8166 = vmatpush1.bf16.msra.mxu1 %v10283_v56  ;;  %8590 = vmatpush1.bf16.msra.mxu0 %v10286_v57  ;;  %v12324_v56 = vld [vmem:[%s12458_s0 + $0x38] sm:$0xff]  ;;  %v8999_v57 = vcombine.low %v4421_v41, %v4437_v51  ;;  %v10427_v41 = vld [vmem:[%s11603_s17 + $0x7c0] ss:$8 sps:$4 sm:$0xff]  }
 0x2b0   : > { %8167 = vmatprep.subr.bf16.mxu1 %v10291_v60  ;;  %8591 = vmatprep.subr.bf16.mxu0 %v10294_v61  ;;  %v9015_v60 = vcombine.low %v4429_v52, %v4445_v42  ;;  %v12329_v61 = vld [vmem:[%s12458_s0 + $0xb8] sm:$0xff] }
 0x2b1   : > { %v10438_v51 = vld [vmem:[%s11603_s17 + $0xfd4] ss:$8 sps:$4 sm:$0xff]   ;;  %v10433_v52 = vld [vmem:[%s11603_s17 + $0x7d0] ss:$8 sps:$4 sm:$0xff]  }
 0x2b2   : > { %v10436_v42 = vld [vmem:[%s11603_s17 + $0xfd0] ss:$8 sps:$4 sm:$0xff]  }
 0x2b3   : > { %8168 = vmatpush1.bf16.msra.mxu1 %v10289_v4  ;;  %8592 = vmatpush1.bf16.msra.mxu0 %v10292_v7  ;;  %v12334_v4 = vld [vmem:[%s12458_s0 + $0x78] sm:$0xff] }
 0x2b4   : > { %8169 = vmatprep.subr.bf16.mxu1 %v10297_v8  ;;  %8593 = vmatprep.subr.bf16.mxu0 %v10300_v9  ;;  %v12339_v7 = vld [vmem:[%s12458_s0 + $0xf8] sm:$0xff]  ;;  %v10367_v8 = vld [vmem:[%s11603_s17 + $0x720] ss:$8 sps:$4 sm:$0xff]  }
 0x2b5   : > { %v10370_v9 = vld [vmem:[%s11603_s17 + $0xf20] ss:$8 sps:$4 sm:$0xff]  }
 0x2b7   : > { %8170 = vmatpush1.bf16.msra.mxu1 %v10295_v10  ;;  %8594 = vmatpush1.bf16.msra.mxu0 %v10298_v58  ;;  %v10375_v10 = vld [vmem:[%s11603_s17 + $0x734] ss:$8 sps:$4 sm:$0xff]  }
 0x2b8   : > { %8171 = vmatprep.subr.bf16.mxu1 %v10303_v59  ;;  %8595 = vmatprep.subr.bf16.mxu0 %v10306_v62  ;;  %v10378_v58 = vld [vmem:[%s11603_s17 + $0xf34] ss:$8 sps:$4 sm:$0xff]   ;;  %v8970_v59 = vcombine.high %v12324_v56, %v12329_v61  ;;  %v8986_v62 = vcombine.high %v12334_v4, %v12339_v7 }
 0x2bb   : > { %8172 = vmatpush1.bf16.msra.mxu1 %v10301_v63  ;;  %8596 = vmatpush1.bf16.msra.mxu0 %v10304_v11  ;;  %v10373_v63 = vld [vmem:[%s11603_s17 + $0x730] ss:$8 sps:$4 sm:$0xff]  }
 0x2bc   : > { %8173 = vmatprep.subr.bf16.mxu1 %v10309_v12  ;;  %8597 = vmatprep.subr.bf16.mxu0 %v10312_v13  ;;  %v10376_v11 = vld [vmem:[%s11603_s17 + $0xf30] ss:$8 sps:$4 sm:$0xff]   ;;  %v10381_v12 = vld [vmem:[%s11603_s17 + $0x744] ss:$8 sps:$4 sm:$0xff]  }
 0x2bd   : > { %v10384_v13 = vld [vmem:[%s11603_s17 + $0xf44] ss:$8 sps:$4 sm:$0xff]  }
 0x2bf   : > { %8174 = vmatpush1.bf16.msra.mxu1 %v10307_v14  ;;  %8598 = vmatpush1.bf16.msra.mxu0 %v10310_v15  ;;  %v10379_v14 = vld [vmem:[%s11603_s17 + $0x740] ss:$8 sps:$4 sm:$0xff]  }
 0x2c0   : > { %8175 = vmatprep.subr.bf16.mxu1 %v10315_v18  ;;  %8599 = vmatprep.subr.bf16.mxu0 %v10318_v19  ;;  %v10382_v15 = vld [vmem:[%s11603_s17 + $0xf40] ss:$8 sps:$4 sm:$0xff]   ;;  %v10387_v18 = vld [vmem:[%s11603_s17 + $0x754] ss:$8 sps:$4 sm:$0xff]  }
 0x2c1   : > { %v10390_v19 = vld [vmem:[%s11603_s17 + $0xf54] ss:$8 sps:$4 sm:$0xff]  }
 0x2c3   : > { %8176 = vmatpush1.bf16.msra.mxu1 %v10313_v22  ;;  %8600 = vmatpush1.bf16.msra.mxu0 %v10316_v23  ;;  %v10385_v22 = vld [vmem:[%s11603_s17 + $0x750] ss:$8 sps:$4 sm:$0xff]  }
 0x2c4   : > { %8177 = vmatprep.subr.bf16.mxu1 %v10321_v24  ;;  %8601 = vmatprep.subr.bf16.mxu0 %v10324_v25  ;;  %v10388_v23 = vld [vmem:[%s11603_s17 + $0xf50] ss:$8 sps:$4 sm:$0xff]   ;;  %v10393_v24 = vld [vmem:[%s11603_s17 + $0x764] ss:$8 sps:$4 sm:$0xff]  }
 0x2c5   : > { %v10396_v25 = vld [vmem:[%s11603_s17 + $0xf64] ss:$8 sps:$4 sm:$0xff]  }
 0x2c7   : > { %8178 = vmatpush1.bf16.msra.mxu1 %v10319_v26  ;;  %8602 = vmatpush1.bf16.msra.mxu0 %v10322_v27  ;;  %v10391_v26 = vld [vmem:[%s11603_s17 + $0x760] ss:$8 sps:$4 sm:$0xff]  }
 0x2c8   : > { %8179 = vmatprep.subr.bf16.mxu1 %v10327_v28  ;;  %8603 = vmatprep.subr.bf16.mxu0 %v10330_v29  ;;  %v10394_v27 = vld [vmem:[%s11603_s17 + $0xf60] ss:$8 sps:$4 sm:$0xff]   ;;  %v10399_v28 = vld [vmem:[%s11603_s17 + $0x774] ss:$8 sps:$4 sm:$0xff]  }
 0x2c9   : > { %v10402_v29 = vld [vmem:[%s11603_s17 + $0xf74] ss:$8 sps:$4 sm:$0xff]  }
 0x2cb   : > { %8180 = vmatpush1.bf16.msra.mxu1 %v10325_v0  ;;  %8604 = vmatpush1.bf16.msra.mxu0 %v10328_v1  ;;  %v10397_v0 = vld [vmem:[%s11603_s17 + $0x770] ss:$8 sps:$4 sm:$0xff]  }
 0x2cc   : > { %8181 = vmatprep.subr.bf16.mxu1 %v10333_v16  ;;  %8605 = vmatprep.subr.bf16.mxu0 %v10336_v17  ;;  %v10400_v1 = vld [vmem:[%s11603_s17 + $0xf70] ss:$8 sps:$4 sm:$0xff]   ;;  %v10405_v16 = vld [vmem:[%s11603_s17 + $0x784] ss:$8 sps:$4 sm:$0xff]  }
 0x2cd   : > { %v10408_v17 = vld [vmem:[%s11603_s17 + $0xf84] ss:$8 sps:$4 sm:$0xff]  }
 0x2cf   : > { %8182 = vmatpush1.bf16.msra.mxu1 %v10331_v5  ;;  %8606 = vmatpush1.bf16.msra.mxu0 %v10334_v6  ;;  %v10403_v5 = vld [vmem:[%s11603_s17 + $0x780] ss:$8 sps:$4 sm:$0xff]  }
 0x2d0   : > { %8183 = vmatprep.subr.bf16.mxu1 %v10339_v30  ;;  %8607 = vmatprep.subr.bf16.mxu0 %v10342_v31  ;;  %v10406_v6 = vld [vmem:[%s11603_s17 + $0xf80] ss:$8 sps:$4 sm:$0xff]   ;;  %v10411_v30 = vld [vmem:[%s11603_s17 + $0x794] ss:$8 sps:$4 sm:$0xff]  }
 0x2d1   : > { %v10414_v31 = vld [vmem:[%s11603_s17 + $0xf94] ss:$8 sps:$4 sm:$0xff]  }
 0x2d3   : > { %8184 = vmatpush1.bf16.msra.mxu1 %v10337_v32  ;;  %8608 = vmatpush1.bf16.msra.mxu0 %v10340_v33  ;;  %v10409_v32 = vld [vmem:[%s11603_s17 + $0x790] ss:$8 sps:$4 sm:$0xff]  }
 0x2d4   : > { %8185 = vmatprep.subr.bf16.mxu1 %v10345_v20  ;;  %8609 = vmatprep.subr.bf16.mxu0 %v10348_v21  ;;  %v10412_v33 = vld [vmem:[%s11603_s17 + $0xf90] ss:$8 sps:$4 sm:$0xff]   ;;  %v10417_v20 = vld [vmem:[%s11603_s17 + $0x7a4] ss:$8 sps:$4 sm:$0xff]  }
 0x2d5   : > { %v10420_v21 = vld [vmem:[%s11603_s17 + $0xfa4] ss:$8 sps:$4 sm:$0xff]  }
 0x2d7   : > { %8186 = vmatpush1.bf16.msra.mxu1 %v10343_v3  ;;  %8610 = vmatpush1.bf16.msra.mxu0 %v10346_v2  ;;  %v10415_v3 = vld [vmem:[%s11603_s17 + $0x7a0] ss:$8 sps:$4 sm:$0xff]  }
 0x2d8   : > { %8187 = vmatprep.subr.bf16.mxu1 %v10351_v34  ;;  %8611 = vmatprep.subr.bf16.mxu0 %v10354_v35  ;;  %v10418_v2 = vld [vmem:[%s11603_s17 + $0xfa0] ss:$8 sps:$4 sm:$0xff]   ;;  %v10423_v34 = vld [vmem:[%s11603_s17 + $0x7b4] ss:$8 sps:$4 sm:$0xff]  }
 0x2d9   : > { %v10426_v35 = vld [vmem:[%s11603_s17 + $0xfb4] ss:$8 sps:$4 sm:$0xff]  }
 0x2db   : > { %8188 = vmatpush1.bf16.msra.mxu1 %v10349_v36  ;;  %8612 = vmatpush1.bf16.msra.mxu0 %v10352_v37  ;;  %v10421_v36 = vld [vmem:[%s11603_s17 + $0x7b0] ss:$8 sps:$4 sm:$0xff]  }
 0x2dc   : > { %8210 = vmatprep.subr.bf16.mxu1 %v10357_v38  ;;  %8634 = vmatprep.subr.bf16.mxu0 %v10360_v39  ;;  %v10424_v37 = vld [vmem:[%s11603_s17 + $0xfb0] ss:$8 sps:$4 sm:$0xff]   ;;  %v10429_v38 = vld [vmem:[%s11603_s17 + $0x7c4] ss:$8 sps:$4 sm:$0xff]  }
 0x2dd   : > { %v10432_v39 = vld [vmem:[%s11603_s17 + $0xfc4] ss:$8 sps:$4 sm:$0xff]  }
 0x2de   : > { %8190 = vmatmul.mubr.bf16.vlgmr.msra.gmra.mrb[0].mxu1 %v8967_v44  ;;  %8614 = vmatmul.mubr.bf16.vlgmr.msra.gmra.mrb[0].mxu0 %v8983_v50  ;;  %v10430_v44 = vld [vmem:[%s11603_s17 + $0xfc0] ss:$8 sps:$4 sm:$0xff]   ;;  %v10435_v50 = vld [vmem:[%s11603_s17 + $0x7d4] ss:$8 sps:$4 sm:$0xff]  }
 0x2df   : > { %8211 = vmatpush1.bf16.msra.mxu1 %v10355_v40  ;;  %8635 = vmatpush1.bf16.msra.mxu0 %v10358_v45  ;;  %v10441_v40 = vld [vmem:[%s11603_s17 + $0x7e4] ss:$8 sps:$4 sm:$0xff]  }
 0x2e0   : > { %8212 = vmatprep.subr.bf16.mxu1 %v10363_v48  ;;  %8636 = vmatprep.subr.bf16.mxu0 %v10366_v49  ;;  %v10444_v45 = vld [vmem:[%s11603_s17 + $0xfe4] ss:$8 sps:$4 sm:$0xff]   ;;  %v10439_v48 = vld [vmem:[%s11603_s17 + $0x7e0] ss:$8 sps:$4 sm:$0xff]  }
 0x2e1   : > { %8199 = vmatprep.mubr.bf16.mxu1 %v9000_v43  ;;  %8623 = vmatprep.mubr.bf16.mxu0 %v9016_v46  ;;  %v10442_v49 = vld [vmem:[%s11603_s17 + $0xfe0] ss:$8 sps:$4 sm:$0xff]   ;;  %v10447_v43 = vld [vmem:[%s11603_s17 + $0x7f4] ss:$8 sps:$4 sm:$0xff]  }
 0x2e2   : > { %v10450_v46 = vld [vmem:[%s11603_s17 + $0xff4] ss:$8 sps:$4 sm:$0xff]  }
 0x2e3   : > { %8213 = vmatpush1.bf16.msra.mxu1 %v10361_v47  ;;  %8637 = vmatpush1.bf16.msra.mxu0 %v10364_v53  ;;  %v10445_v47 = vld [vmem:[%s11603_s17 + $0x7f0] ss:$8 sps:$4 sm:$0xff]  }
 0x2e4   : > { %8214 = vmatprep.subr.bf16.mxu1 %v10369_v54  ;;  %8638 = vmatprep.subr.bf16.mxu0 %v10372_v55  ;;  %v10448_v53 = vld [vmem:[%s11603_s17 + $0xff0] ss:$8 sps:$4 sm:$0xff]   ;;  %s8952_s17 = sshll.u32 %s4339_s5, 6 }
 0x2e5   : > { %v4422_v54 = vld [vmem:[%s12458_s0 + $0x138] sm:$0xff]  ;;  %s12417_s9 = scalar_lea.vmem [#allocation3], %s8952_s17 }
 0x2e6   : > { %8200 = vmatmul.mubr.bf16.gmra.mrb[4].mxu1 %v8999_v57  ;;  %8624 = vmatmul.mubr.bf16.gmra.mrb[4].mxu0 %v9015_v60  ;;  %v4438_v55 = vld [vmem:[%s12458_s0 + $0x1b8] sm:$0xff] }
 0x2e7   : > { %8215 = vmatpush1.bf16.msra.mxu1 %v10367_v8  ;;  %8639 = vmatpush1.bf16.msra.mxu0 %v10370_v9  ;;  %v4430_v57 = vld [vmem:[%s12458_s0 + $0x178] sm:$0xff]  ;;  %v8969_v8 = vcombine.low %v12324_v56, %v12329_v61  ;;  %v8985_v9 = vcombine.low %v12334_v4, %v12339_v7 }
 0x2e8   : > { %8216 = vmatprep.subr.bf16.mxu1 %v10375_v10  ;;  %8640 = vmatprep.subr.bf16.mxu0 %v10378_v58  ;;  %v4446_v60 = vld [vmem:[%s12458_s0 + $0x1f8] sm:$0xff]  ;;  %v9002_v10 = vcombine.high %v4422_v54, %v4438_v55 }
 0x2e9   : > { %8242 = vmatprep.mubr.bf16.mxu1 %v8970_v59  ;;  %8666 = vmatprep.mubr.bf16.mxu0 %v8986_v62  ;;  %v9018_v58 = vcombine.high %v4430_v57, %v4446_v60  ;;  %v9001_v59 = vcombine.low %v4422_v54, %v4438_v55  ;;  %v9017_v62 = vcombine.low %v4430_v57, %v4446_v60 }
 0x2eb   : > { %8217 = vmatpush1.bf16.msra.mxu1 %v10373_v63  ;;  %8641 = vmatpush1.bf16.msra.mxu0 %v10376_v11 }
 0x2ec   : > { %8218 = vmatprep.subr.bf16.mxu1 %v10381_v12  ;;  %8642 = vmatprep.subr.bf16.mxu0 %v10384_v13 }
 0x2ef   : > { %8219 = vmatpush1.bf16.msra.mxu1 %v10379_v14  ;;  %8643 = vmatpush1.bf16.msra.mxu0 %v10382_v15 }
 0x2f0   : > { %8220 = vmatprep.subr.bf16.mxu1 %v10387_v18  ;;  %8644 = vmatprep.subr.bf16.mxu0 %v10390_v19 }
 0x2f3   : > { %8221 = vmatpush1.bf16.msra.mxu1 %v10385_v22  ;;  %8645 = vmatpush1.bf16.msra.mxu0 %v10388_v23 }
 0x2f4   : > { %8222 = vmatprep.subr.bf16.mxu1 %v10393_v24  ;;  %8646 = vmatprep.subr.bf16.mxu0 %v10396_v25 }
 0x2f7   : > { %8223 = vmatpush1.bf16.msra.mxu1 %v10391_v26  ;;  %8647 = vmatpush1.bf16.msra.mxu0 %v10394_v27 }
 0x2f8   : > { %8224 = vmatprep.subr.bf16.mxu1 %v10399_v28  ;;  %8648 = vmatprep.subr.bf16.mxu0 %v10402_v29 }
 0x2fb   : > { %8225 = vmatpush1.bf16.msra.mxu1 %v10397_v0  ;;  %8649 = vmatpush1.bf16.msra.mxu0 %v10400_v1 }
 0x2fc   : > { %8226 = vmatprep.subr.bf16.mxu1 %v10405_v16  ;;  %8650 = vmatprep.subr.bf16.mxu0 %v10408_v17 }
 0x2ff   : > { %8227 = vmatpush1.bf16.msra.mxu1 %v10403_v5  ;;  %8651 = vmatpush1.bf16.msra.mxu0 %v10406_v6 }
 0x300   : > { %8228 = vmatprep.subr.bf16.mxu1 %v10411_v30  ;;  %8652 = vmatprep.subr.bf16.mxu0 %v10414_v31 }
 0x303   : > { %8229 = vmatpush1.bf16.msra.mxu1 %v10409_v32  ;;  %8653 = vmatpush1.bf16.msra.mxu0 %v10412_v33 }
 0x304   : > { %8230 = vmatprep.subr.bf16.mxu1 %v10417_v20  ;;  %8654 = vmatprep.subr.bf16.mxu0 %v10420_v21 }
 0x307   : > { %8231 = vmatpush1.bf16.msra.mxu1 %v10415_v3  ;;  %8655 = vmatpush1.bf16.msra.mxu0 %v10418_v2 }
 0x308   : > { %8232 = vmatprep.subr.bf16.mxu1 %v10423_v34  ;;  %8656 = vmatprep.subr.bf16.mxu0 %v10426_v35 }
 0x30b   : > { %8233 = vmatpush1.bf16.msra.mxu1 %v10421_v36  ;;  %8657 = vmatpush1.bf16.msra.mxu0 %v10424_v37 }
 0x30c   : > { %8234 = vmatprep.subr.bf16.mxu1 %v10429_v38  ;;  %8658 = vmatprep.subr.bf16.mxu0 %v10432_v39 }
 0x30f   : > { %8235 = vmatpush1.bf16.msra.mxu1 %v10427_v41  ;;  %8659 = vmatpush1.bf16.msra.mxu0 %v10430_v44 }
 0x310   : > { %8236 = vmatprep.subr.bf16.mxu1 %v10435_v50  ;;  %8660 = vmatprep.subr.bf16.mxu0 %v10438_v51 }
 0x313   : > { %8237 = vmatpush1.bf16.msra.mxu1 %v10433_v52  ;;  %8661 = vmatpush1.bf16.msra.mxu0 %v10436_v42 }
 0x314   : > { %8238 = vmatprep.subr.bf16.mxu1 %v10441_v40  ;;  %8662 = vmatprep.subr.bf16.mxu0 %v10444_v45 }
 0x317   : > { %8239 = vmatpush1.bf16.msra.mxu1 %v10439_v48  ;;  %8663 = vmatpush1.bf16.msra.mxu0 %v10442_v49  ;;  %v10475_v49 = vmov 1966171168  }
 0x318   : > { %8240 = vmatprep.subr.bf16.mxu1 %v10447_v43  ;;  %8664 = vmatprep.subr.bf16.mxu0 %v10450_v46  ;;  %v8717_v43 = vunpack.c.l.s4 %v10475_v49  ;;  %v8719_v46 = vlaneseq }
 0x31a   : > { %vm8733_vm0 = vcmp.lt.s32.totalorder %v8719_v46, 256 }
 0x31b   : > { %8241 = vmatpush1.bf16.msra.mxu1 %v10445_v47  ;;  %8665 = vmatpush1.bf16.msra.mxu0 %v10448_v53 }
 0x31e   : > { %8243 = vmatmul.mubr.bf16.vlgmr.msra.gmra.mrb[0].mxu1 %v8969_v8  ;;  %8667 = vmatmul.mubr.bf16.vlgmr.msra.gmra.mrb[0].mxu0 %v8985_v9 }
 0x31f   : > { %8252 = vmatprep.mubr.bf16.mxu1 %v9002_v10  ;;  %8676 = vmatprep.mubr.bf16.mxu0 %v9018_v58  ;;  %v8718_v10 = vunpack.c.0.s8 %v8717_v43  ;;  %v8720_v58 = vshrl.u32 %v8719_v46, 7 }
 0x326   : > { %8253 = vmatmul.mubr.bf16.gmra.mrb[4].mxu1 %v9001_v59  ;;  %8677 = vmatmul.mubr.bf16.gmra.mrb[4].mxu0 %v9017_v62 }
 0x3f1   : > { %v8244_v63 = vpop.f32.mrb[0].mxu1  ;;  %v8668_v11 = vpop.f32.mrb[0].mxu0 }
 0x3f2   : > { %v9538_v56 = vadd.f32 %v8668_v11, %v8244_v63  ;;  %v8246_v61 = vpop.f32.mrb[1].mxu1  ;;  %v8670_v12 = vpop.f32.mrb[1].mxu0 }
 0x3f3   : > { %v9539_v4 = vadd.f32 %v8670_v12, %v8246_v61  ;;  %v8248_v7 = vpop.f32.mrb[2].mxu1  ;;  %v8672_v13 = vpop.f32.mrb[2].mxu0 }
 0x3f4   : > { %8687 = vst [vmem:[%s12417_s9] sm:$0xff] %v9538_v56  ;;  %v9540_v14 = vadd.f32 %v8672_v13, %v8248_v7  ;;  %v8250_v15 = vpop.f32.mrb[3].mxu1  ;;  %v8674_v18 = vpop.f32.mrb[3].mxu0  ;;  %v8736_v22 = vmul.f32 %v9538_v56, %v9538_v56  ;;  %v8721_v7 = vsub.s32 %v8718_v10, %v8720_v58 }
 0x3f5   : > { %8688 = vst [vmem:[%s12417_s9 + $0x8] sm:$0xff] %v9539_v4  ;;  %v9541_v19 = vadd.f32 %v8674_v18, %v8250_v15  ;;  %v8737_v25 = vmul.f32 %v9539_v4, %v9539_v4 }
 0x3f6   : > { %8689 = vst [vmem:[%s12417_s9 + $0x10] sm:$0xff] %v9540_v14  ;;  %v8695_v23 = vadd.f32 %v9540_v14, %v9538_v56  ;;  %v8738_v24 = vmul.f32 %v9540_v14, %v9540_v14 }
 0x3f7   : > { %8690 = vst [vmem:[%s12417_s9 + $0x18] sm:$0xff] %v9541_v19  ;;  %v8704_v26 = vadd.f32 %v9541_v19, %v9539_v4  ;;  %v8739_v27 = vmul.f32 %v9541_v19, %v9541_v19 }
 0x3f8   : > { %v8744_v28 = vadd.f32 %v8738_v24, %v8736_v22 }
 0x3f9   : > { %v8753_v29 = vadd.f32 %v8739_v27, %v8737_v25  ;;  %v8254_v0 = vpop.f32.mrb[4].mxu1  ;;  %v8678_v1 = vpop.f32.mrb[4].mxu0 }
 0x3fa   : > { %v9542_v16 = vadd.f32 %v8678_v1, %v8254_v0  ;;  %v8256_v17 = vpop.f32.mrb[5].mxu1  ;;  %v8680_v5 = vpop.f32.mrb[5].mxu0 }
 0x3fb   : > { %v9543_v6 = vadd.f32 %v8680_v5, %v8256_v17  ;;  %v8258_v30 = vpop.f32.mrb[6].mxu1  ;;  %v8682_v31 = vpop.f32.mrb[6].mxu0 }
 0x3fc   : > { %8691 = vst [vmem:[%s12417_s9 + $0x20] sm:$0xff] %v9542_v16  ;;  %v8696_v32 = vadd.f32 %v9542_v16, %v8695_v23  ;;  %v8740_v33 = vmul.f32 %v9542_v16, %v9542_v16  ;;  %v9544_v20 = vadd.f32 %v8682_v31, %v8258_v30  ;;  %v8260_v21 = vpop.f32.mrb[7].mxu1  ;;  %v8684_v3 = vpop.f32.mrb[7].mxu0  ;;  %v8813_v27 = vld [vmem:[%s12417_s9 + $0x8] sm:$0xff] (%p10532_p5) }
 0x3fd   : > { %8692 = vst [vmem:[%s12417_s9 + $0x28] sm:$0xff] %v9543_v6  ;;  %v8705_v2 = vadd.f32 %v9543_v6, %v8704_v26  ;;  %v8741_v34 = vmul.f32 %v9543_v6, %v9543_v6  ;;  %v9545_v35 = vadd.f32 %v8684_v3, %v8260_v21  ;;  %v8811_v26 = vld [vmem:[%s12417_s9] sm:$0xff] (%p10532_p5)  ;;  %8814 = vst [vmem:[%s8798_s25 + $0x8] sm:$0xff] (%p10532_p5), %v8813_v27 }
 0x3fe   : > { %v8745_v36 = vadd.f32 %v8744_v28, %v8740_v33  ;;  %8693 = vst [vmem:[%s12417_s9 + $0x30] sm:$0xff] %v9544_v20  ;;  %v8697_v37 = vadd.f32 %v9544_v20, %v8696_v32  ;;  %v8742_v38 = vmul.f32 %v9544_v20, %v9544_v20  ;;  %v8815_v28 = vld [vmem:[%s12417_s9 + $0x10] sm:$0xff] (%p10532_p5)  ;;  %8812 = vst [vmem:[%s8798_s25] sm:$0xff] (%p10532_p5), %v8811_v26 }
 0x3ff   : > { %v8754_v39 = vadd.f32 %v8753_v29, %v8741_v34  ;;  %8694 = vst [vmem:[%s12417_s9 + $0x38] sm:$0xff] %v9545_v35  ;;  %v8706_v41 = vadd.f32 %v9545_v35, %v8705_v2  ;;  %v8743_v44 = vmul.f32 %v9545_v35, %v9545_v35  ;;  %v8817_v29 = vld [vmem:[%s12417_s9 + $0x18] sm:$0xff] (%p10532_p5)  ;;  %8816 = vst [vmem:[%s8798_s25 + $0x20] sm:$0xff] (%p10532_p5), %v8815_v28 }
 0x400   : > { %v8698_v50 = vrot.slane %v8697_v37, 4  ;;  %v8746_v51 = vadd.f32 %v8745_v36, %v8742_v38  ;;  %8818 = vst [vmem:[%s8798_s25 + $0x28] sm:$0xff] (%p10532_p5), %v8817_v29 }
 0x401   : > { %v8707_v52 = vrot.slane %v8706_v41, 4  ;;  %v8755_v42 = vadd.f32 %v8754_v39, %v8743_v44 }
 0x402   : > { %v8699_v40 = vadd.f32 %v8698_v50, %v8697_v37  ;;  %v8747_v45 = vrot.slane %v8746_v51, 4 }
 0x403   : > { %v8708_v48 = vadd.f32 %v8707_v52, %v8706_v41  ;;  %v8756_v47 = vrot.slane %v8755_v42, 4  ;;  %v8819_v0 = vld [vmem:[%s12417_s9 + $0x20] sm:$0xff] (%p10532_p5) }
 0x404   : > { %v8700_v53 = vrot.slane %v8699_v40, 2  ;;  %v8748_v54 = vadd.f32 %v8747_v45, %v8746_v51  ;;  %v8821_v1 = vld [vmem:[%s12417_s9 + $0x28] sm:$0xff] (%p10532_p5)  ;;  %8820 = vst [vmem:[%s8798_s25 + $0x40] sm:$0xff] (%p10532_p5), %v8819_v0 }
 0x405   : > { %v8709_v55 = vrot.slane %v8708_v48, 2  ;;  %v8757_v57 = vadd.f32 %v8756_v47, %v8755_v42  ;;  %8822 = vst [vmem:[%s8798_s25 + $0x48] sm:$0xff] (%p10532_p5), %v8821_v1  ;;  %v8823_v16 = vld [vmem:[%s12417_s9 + $0x30] sm:$0xff] (%p10532_p5) }
 0x406   : > { %v8701_v60 = vadd.f32 %v8700_v53, %v8699_v40  ;;  %v8749_v8 = vrot.slane %v8748_v54, 2  ;;  %v8825_v17 = vld [vmem:[%s12417_s9 + $0x38] sm:$0xff] (%p10532_p5)  ;;  %8824 = vst [vmem:[%s8798_s25 + $0x60] sm:$0xff] (%p10532_p5), %v8823_v16 }
 0x407   : > { %v8710_v9 = vadd.f32 %v8709_v55, %v8708_v48  ;;  %v8758_v59 = vrot.slane %v8757_v57, 2  ;;  %8826 = vst [vmem:[%s8798_s25 + $0x68] sm:$0xff] (%p10532_p5), %v8825_v17 }
 0x408   : > { %v8702_v62 = vrot.slane %v8701_v60, 1  ;;  %v8750_v63 = vadd.f32 %v8749_v8, %v8748_v54 }
 0x409   : > { %v8711_v11 = vrot.slane %v8710_v9, 1  ;;  %v8759_v56 = vadd.f32 %v8758_v59, %v8757_v57 }
 0x40a   : > { %v8703_v61 = vadd.f32 %v8702_v62, %v8701_v60  ;;  %v8751_v12 = vrot.slane %v8750_v63, 1 }
 0x40b   : > { %v8712_v4 = vadd.f32 %v8711_v11, %v8710_v9  ;;  %v8760_v13 = vrot.slane %v8759_v56, 1 }
 0x40c   : > { %v8752_v14 = vadd.f32 %v8751_v12, %v8750_v63 }
 0x40d   : > { %v8715_v15 = vcombine.low %v8703_v61, %v8712_v4  ;;  %v8761_v18 = vadd.f32 %v8760_v13, %v8759_v56 }
 0x40f   : > { %v8722_v19 = vrot.slane %v8715_v15, %v8721_v7  ;;  %v8764_v22 = vcombine.low %v8752_v14, %v8761_v18  ;;  %8795 = sbr.rel (!%p10532_p5) target bundleno = 1046 (0x416), region = 84 }
 0x411   : > { %v8729_v23 = vrot.slane %v8722_v19, %v8721_v7  ;;  %v8771_v24 = vrot.slane %v8764_v22, %v8721_v7 }
 0x413   : > { %8735 = vst.msk [vmem:[%s4376_s11] sm:$0x3] %vm8733_vm0, %v8729_v23  ;;  %v8778_v25 = vrot.slane %v8771_v24, %v8721_v7 }
 0x415   : > { %8780 = vst.msk [vmem:[%s4381_s14] sm:$0x3] %vm8733_vm0, %v8778_v25 }
 0x416 PF: > { %p12_p11 = scmp.ge.s32.totalorder %s10520_s19, 4   ;;  %s12464_s15 = smov %s10469_s16 }
 0x417   : > { %s12465_s16 = smov %s10530_s22  ;;  %s12466_s17 = smov %s10520_s19 }
 0x418   :  { %14 = sbr.rel (!%p12_p11) target bundleno = 2 (0x2), region = 168 }

</bundles_post_ra>
